<compile_context>
chip_gen: v7x
topology: tpu7x:2x2x1
jax: 0.10.0
libtpu: 0.0.40
codegen_flags: <defaults>
</compile_context>

<pallas_src>
import functools

import jax
import jax.numpy as jnp
import numpy as np
from jax.experimental import pallas as pl
from jax.experimental.pallas import tpu as pltpu


def _softplus(h, beta):
    """PyTorch nn.Softplus(beta) with threshold=20 (on beta*h)."""
    z = beta * h
    return jnp.where(z > 20.0, h,
                     jnp.log(1.0 + jnp.exp(jnp.minimum(z, 20.0))) * (1.0 / beta))


def _implicit_fwd_kernel(plan, beta, *refs):
    """One lane-tile of points (feature-major layout).

    refs = (xT, B, phase, <per-layer params...>, out)
      xT    : (d_in, tile_n)      transposed point coordinates
      B     : (2*d_in*L, d_in)    fused frequency-encoding matrix
      phase : (2*d_in*L, 1)       0 for sin rows, pi/2 for cos rows
      per-layer params (PyTorch (out,in) orientation, biases as (out,1)):
        "first": W_x (H0,d_in), W_s (H0,2*d_in*L), b
        "skip" : W_h (H,prev),  W_x (H,d_in), W_s (H,2*d_in*L), b   (fused /sqrt2)
        "dense": W   (H,prev),  b
      out   : (out_dim, tile_n)
    """
    out_ref = refs[-1]
    it = iter(refs[:-1])

    xT = next(it)[...]                                   # (d_in, tile_n)
    Bm = next(it)[...]                                   # (enc, d_in)
    ph = next(it)[...]                                   # (enc, 1)

    # Fused positional encoding: all sin/cos features in one matmul + one sin.
    s = jnp.sin(jnp.dot(Bm, xT, preferred_element_type=jnp.float32) + ph)

    inv_sqrt2 = 0.7071067811865476
    n_layers = len(plan)
    h = None
    for li, kind in enumerate(plan):
        if kind == "first":
            wx = next(it)[...]; ws = next(it)[...]; b = next(it)[...]
            h = (jnp.dot(wx, xT, preferred_element_type=jnp.float32)
                 + jnp.dot(ws, s, preferred_element_type=jnp.float32) + b)
        elif kind == "skip":
            wh = next(it)[...]; wx = next(it)[...]; ws = next(it)[...]; b = next(it)[...]
            h = (jnp.dot(wh, h, preferred_element_type=jnp.float32)
                 + jnp.dot(wx, xT, preferred_element_type=jnp.float32)
                 + jnp.dot(ws, s, preferred_element_type=jnp.float32)) * inv_sqrt2 + b
        else:  # "dense"
            w = next(it)[...]; b = next(it)[...]
            h = jnp.dot(w, h, preferred_element_type=jnp.float32) + b
        if li < n_layers - 1:
            h = _softplus(h, beta)

    out_ref[...] = h


def implicit_network_forward(x, weights, biases, *, multires, skip_in=(),
                             d_in=3, beta=100.0, tile_n=1024):
    """Pallas wrapper.

    x: (N, d_in) f32 points, N % tile_n == 0, tile_n % 128 == 0.
    weights[l]: (out_l, in_l) effective Linear weights (PyTorch orientation,
                weight_norm already folded in);  biases[l]: (out_l,).
    Returns (N, d_out + feature_vector_size) f32, matching ImplicitNetwork.forward.
    """
    N, d = x.shape
    assert d == d_in
    assert multires > 0  # TODO(synk): multires == 0 (no positional embedding) path not implemented.
    assert 0 not in skip_in
    assert N % tile_n == 0 and tile_n % 128 == 0
    skip_in = tuple(skip_in)

    input_ch = d_in + d_in * 2 * multires
    enc_dim = d_in * 2 * multires
    out_dim = weights[-1].shape[0]

    # Fused frequency-encoding operands: embed order is per-frequency
    # [sin(f_k x_xyz), cos(f_k x_xyz)], matching get_embedder's column order.
    b_rows, ph_rows = [], []
    for k in range(multires):
        f = float(2.0 ** k)
        eye = f * np.eye(d_in, dtype=np.float32)
        b_rows += [eye, eye]
        ph_rows += [np.zeros((d_in,), np.float32),
                    np.full((d_in,), np.pi / 2.0, np.float32)]
    Bm = jnp.asarray(np.concatenate(b_rows, axis=0))        # (enc_dim, d_in)
    phase = jnp.asarray(np.concatenate(ph_rows)[:, None])   # (enc_dim, 1)
    assert Bm.shape == (enc_dim, d_in)

    # Flat argument list + static layer plan (concats eliminated by column splits).
    args = [jnp.asarray(x, jnp.float32).T, Bm, phase]
    in_specs = [
        pl.BlockSpec((d_in, tile_n), lambda i: (0, i)),      # points tile (lane-dense)
        pl.BlockSpec((enc_dim, d_in), lambda i: (0, 0)),     # B (resident)
        pl.BlockSpec((enc_dim, 1), lambda i: (0, 0)),        # phase (resident)
    ]
    plan = []
    for l, (W, b) in enumerate(zip(weights, biases)):
        W = jnp.asarray(W, jnp.float32)
        b2 = jnp.asarray(b, jnp.float32).reshape(-1, 1)
        if l == 0:
            plan.append("first")
            args += [W[:, :d_in], W[:, d_in:], b2]
        elif l in skip_in:
            plan.append("skip")
            hw = W.shape[1] - input_ch          # width of the running activation
            args += [W[:, :hw], W[:, hw:hw + d_in], W[:, hw + d_in:], b2]
        else:
            plan.append("dense")
            args += [W, b2]
    for a in args[3:]:
        in_specs.append(pl.BlockSpec(a.shape, lambda i: (0, 0)))   # resident params

    kernel = functools.partial(_implicit_fwd_kernel, tuple(plan), float(beta))

    out_t = pl.pallas_call(
        kernel,
        out_shape=jax.ShapeDtypeStruct((out_dim, N), jnp.float32),
        grid_spec=pltpu.PrefetchScalarGridSpec(
            num_scalar_prefetch=0,
            grid=(N // tile_n,),
            in_specs=in_specs,
            out_specs=pl.BlockSpec((out_dim, tile_n), lambda i: (0, i)),
        ),
        compiler_params=pltpu.CompilerParams(dimension_semantics=("parallel",)),
    )(*args)
    return out_t.T                                            # back to (N, out_dim)


def implicit_network_ref(x, weights, biases, *, multires, skip_in=(), d_in=3, beta=100.0):
    """Pure-JAX reference replicating ImplicitNetwork.forward."""
    feats = [x]
    for k in range(multires):
        f = float(2.0 ** k)
        feats += [jnp.sin(f * x), jnp.cos(f * x)]
    inp = jnp.concatenate(feats, axis=1)
    h = inp
    n_layers = len(weights) + 1
    for l, (W, b) in enumerate(zip(weights, biases)):
        if l in skip_in:
            h = jnp.concatenate([h, inp], axis=1) / np.sqrt(2.0)
        h = h @ W.T + b
        if l < n_layers - 2:
            h = _softplus(h, beta)
    return h


if __name__ == "__main__":
    key = jax.random.PRNGKey(0)

    # Small ImplicitNetwork config:
    #   d_in=3, multires=6 -> input_ch=39, hidden dims [64,64,64,64],
    #   skip_in=(2,), d_out=4, feature_vector_size=32 -> output width 36.
    d_in, multires = 3, 6
    d_out, feature_vector_size = 4, 32
    hidden = [64, 64, 64, 64]
    skip_in = (2,)
    input_ch = d_in + d_in * 2 * multires
    dims = [input_ch] + hidden + [d_out + feature_vector_size]

    N = 2048                       # points (multiple of tile_n)
    keys = jax.random.split(key, 1 + 2 * (len(dims) - 1))
    x = jax.random.uniform(keys[0], (N, d_in), jnp.float32, minval=-1.0, maxval=1.0)

    # Synthetic effective parameters (weight_norm / geometric_init folded into values).
    weights, biases = [], []
    for l in range(len(dims) - 1):
        out_d = dims[l + 1] - dims[0] if (l + 1) in skip_in else dims[l + 1]
        in_d = dims[l]
        W = (jax.random.normal(keys[1 + 2 * l], (out_d, in_d), jnp.float32)
             * (1.0 / np.sqrt(in_d)))
        b = 0.01 * jax.random.normal(keys[2 + 2 * l], (out_d,), jnp.float32)
        weights.append(W)
        biases.append(b)

    out = implicit_network_forward(x, weights, biases, multires=multires,
                                   skip_in=skip_in, d_in=d_in, beta=100.0, tile_n=512)
    out = jax.block_until_ready(out)

    ref = implicit_network_ref(x, weights, biases, multires=multires,
                               skip_in=skip_in, d_in=d_in, beta=100.0)
    err = float(jnp.max(jnp.abs(out - ref)))

    assert out.shape == (N, d_out + feature_vector_size) and out.dtype == jnp.float32
    assert err < 5e-2, f"max abs error vs reference: {err}"
    print("KERNEL_OK")
</pallas_src>

<mosaic_0001>
module attributes {stable_mosaic.version = 11 : i64} {
  func.func @_implicit_fwd_kernel(%arg0: i32, %arg1: memref<3x512xf32, #tpu.memory_space<vmem>>, %arg2: memref<36x3xf32, #tpu.memory_space<vmem>>, %arg3: memref<36x1xf32, #tpu.memory_space<vmem>>, %arg4: memref<64x3xf32, #tpu.memory_space<vmem>>, %arg5: memref<64x36xf32, #tpu.memory_space<vmem>>, %arg6: memref<64x1xf32, #tpu.memory_space<vmem>>, %arg7: memref<25x64xf32, #tpu.memory_space<vmem>>, %arg8: memref<25x1xf32, #tpu.memory_space<vmem>>, %arg9: memref<64x25xf32, #tpu.memory_space<vmem>>, %arg10: memref<64x3xf32, #tpu.memory_space<vmem>>, %arg11: memref<64x36xf32, #tpu.memory_space<vmem>>, %arg12: memref<64x1xf32, #tpu.memory_space<vmem>>, %arg13: memref<64x64xf32, #tpu.memory_space<vmem>>, %arg14: memref<64x1xf32, #tpu.memory_space<vmem>>, %arg15: memref<36x64xf32, #tpu.memory_space<vmem>>, %arg16: memref<36x1xf32, #tpu.memory_space<vmem>>, %arg17: memref<36x512xf32, #tpu.memory_space<vmem>>) attributes {dimension_semantics = [#tpu.dimension_semantics<parallel>], iteration_bounds = array<i64: 4>, scalar_prefetch = 0 : i64, scratch_operands = 0 : i64, tpu.core_type = #tpu.core_type<tc>, window_params = [{transform_indices = @transform_0, window_bounds = array<i64: 3, 512>}, {pipeline_mode = #tpu.pipeline_mode<synchronous>, transform_indices = @transform_1, window_bounds = array<i64: 36, 3>}, {pipeline_mode = #tpu.pipeline_mode<synchronous>, transform_indices = @transform_2, window_bounds = array<i64: 36, 1>}, {pipeline_mode = #tpu.pipeline_mode<synchronous>, transform_indices = @transform_3, window_bounds = array<i64: 64, 3>}, {pipeline_mode = #tpu.pipeline_mode<synchronous>, transform_indices = @transform_4, window_bounds = array<i64: 64, 36>}, {pipeline_mode = #tpu.pipeline_mode<synchronous>, transform_indices = @transform_5, window_bounds = array<i64: 64, 1>}, {pipeline_mode = #tpu.pipeline_mode<synchronous>, transform_indices = @transform_6, window_bounds = array<i64: 25, 64>}, {pipeline_mode = #tpu.pipeline_mode<synchronous>, transform_indices = @transform_7, window_bounds = array<i64: 25, 1>}, {pipeline_mode = #tpu.pipeline_mode<synchronous>, transform_indices = @transform_8, window_bounds = array<i64: 64, 25>}, {pipeline_mode = #tpu.pipeline_mode<synchronous>, transform_indices = @transform_9, window_bounds = array<i64: 64, 3>}, {pipeline_mode = #tpu.pipeline_mode<synchronous>, transform_indices = @transform_10, window_bounds = array<i64: 64, 36>}, {pipeline_mode = #tpu.pipeline_mode<synchronous>, transform_indices = @transform_11, window_bounds = array<i64: 64, 1>}, {pipeline_mode = #tpu.pipeline_mode<synchronous>, transform_indices = @transform_12, window_bounds = array<i64: 64, 64>}, {pipeline_mode = #tpu.pipeline_mode<synchronous>, transform_indices = @transform_13, window_bounds = array<i64: 64, 1>}, {pipeline_mode = #tpu.pipeline_mode<synchronous>, transform_indices = @transform_14, window_bounds = array<i64: 36, 64>}, {pipeline_mode = #tpu.pipeline_mode<synchronous>, transform_indices = @transform_15, window_bounds = array<i64: 36, 1>}, {transform_indices = @transform_16, window_bounds = array<i64: 36, 512>}]} {
    %c0 = arith.constant 0 : index
    %c0_0 = arith.constant 0 : index
    %0 = vector.load %arg1[%c0, %c0_0] : memref<3x512xf32, #tpu.memory_space<vmem>>, vector<3x512xf32>
    %c0_1 = arith.constant 0 : index
    %c0_2 = arith.constant 0 : index
    %1 = vector.load %arg2[%c0_1, %c0_2] : memref<36x3xf32, #tpu.memory_space<vmem>>, vector<36x3xf32>
    %c0_3 = arith.constant 0 : index
    %c0_4 = arith.constant 0 : index
    %2 = vector.load %arg3[%c0_3, %c0_4] : memref<36x1xf32, #tpu.memory_space<vmem>>, vector<36x1xf32>
    %cst = arith.constant dense<0.000000e+00> : vector<36x512xf32>
    %3 = tpu.matmul %1, %0, %cst {dimension_numbers = #tpu.dot_dimension_numbers<[1], [0], [0], [1], [0, 0, 1, 1], [], []>} : vector<36x3xf32>, vector<3x512xf32>, vector<36x512xf32> -> vector<36x512xf32>
    %4 = vector.broadcast %2 : vector<36x1xf32> to vector<36x512xf32>
    %5 = arith.addf %3, %4 : vector<36x512xf32>
    %6 = math.sin %5 : vector<36x512xf32>
    %c0_5 = arith.constant 0 : index
    %c0_6 = arith.constant 0 : index
    %7 = vector.load %arg4[%c0_5, %c0_6] : memref<64x3xf32, #tpu.memory_space<vmem>>, vector<64x3xf32>
    %c0_7 = arith.constant 0 : index
    %c0_8 = arith.constant 0 : index
    %8 = vector.load %arg5[%c0_7, %c0_8] : memref<64x36xf32, #tpu.memory_space<vmem>>, vector<64x36xf32>
    %c0_9 = arith.constant 0 : index
    %c0_10 = arith.constant 0 : index
    %9 = vector.load %arg6[%c0_9, %c0_10] : memref<64x1xf32, #tpu.memory_space<vmem>>, vector<64x1xf32>
    %cst_11 = arith.constant dense<0.000000e+00> : vector<64x512xf32>
    %10 = tpu.matmul %7, %0, %cst_11 {dimension_numbers = #tpu.dot_dimension_numbers<[1], [0], [0], [1], [0, 0, 1, 1], [], []>} : vector<64x3xf32>, vector<3x512xf32>, vector<64x512xf32> -> vector<64x512xf32>
    %cst_12 = arith.constant dense<0.000000e+00> : vector<64x512xf32>
    %11 = tpu.matmul %8, %6, %cst_12 {dimension_numbers = #tpu.dot_dimension_numbers<[1], [0], [0], [1], [0, 0, 1, 1], [], []>} : vector<64x36xf32>, vector<36x512xf32>, vector<64x512xf32> -> vector<64x512xf32>
    %12 = arith.addf %10, %11 : vector<64x512xf32>
    %13 = vector.broadcast %9 : vector<64x1xf32> to vector<64x512xf32>
    %14 = arith.addf %12, %13 : vector<64x512xf32>
    %cst_13 = arith.constant 1.000000e+02 : f32
    %15 = vector.broadcast %cst_13 : f32 to vector<64x512xf32>
    %16 = arith.mulf %15, %14 : vector<64x512xf32>
    %cst_14 = arith.constant 2.000000e+01 : f32
    %17 = vector.broadcast %cst_14 : f32 to vector<64x512xf32>
    %18 = arith.cmpf ogt, %16, %17 : vector<64x512xf32>
    %cst_15 = arith.constant 2.000000e+01 : f32
    %19 = vector.broadcast %cst_15 : f32 to vector<64x512xf32>
    %20 = arith.minimumf %16, %19 : vector<64x512xf32>
    %21 = math.exp %20 : vector<64x512xf32>
    %cst_16 = arith.constant 1.000000e+00 : f32
    %22 = vector.broadcast %cst_16 : f32 to vector<64x512xf32>
    %23 = arith.addf %22, %21 : vector<64x512xf32>
    %24 = math.log %23 : vector<64x512xf32>
    %cst_17 = arith.constant 0.00999999977 : f32
    %25 = vector.broadcast %cst_17 : f32 to vector<64x512xf32>
    %26 = arith.mulf %24, %25 : vector<64x512xf32>
    %27 = arith.select %18, %14, %26 : vector<64x512xi1>, vector<64x512xf32>
    %c0_18 = arith.constant 0 : index
    %c0_19 = arith.constant 0 : index
    %28 = vector.load %arg7[%c0_18, %c0_19] : memref<25x64xf32, #tpu.memory_space<vmem>>, vector<25x64xf32>
    %c0_20 = arith.constant 0 : index
    %c0_21 = arith.constant 0 : index
    %29 = vector.load %arg8[%c0_20, %c0_21] : memref<25x1xf32, #tpu.memory_space<vmem>>, vector<25x1xf32>
    %cst_22 = arith.constant dense<0.000000e+00> : vector<25x512xf32>
    %30 = tpu.matmul %28, %27, %cst_22 {dimension_numbers = #tpu.dot_dimension_numbers<[1], [0], [0], [1], [0, 0, 1, 1], [], []>} : vector<25x64xf32>, vector<64x512xf32>, vector<25x512xf32> -> vector<25x512xf32>
    %31 = vector.broadcast %29 : vector<25x1xf32> to vector<25x512xf32>
    %32 = arith.addf %30, %31 : vector<25x512xf32>
    %cst_23 = arith.constant 1.000000e+02 : f32
    %33 = vector.broadcast %cst_23 : f32 to vector<25x512xf32>
    %34 = arith.mulf %33, %32 : vector<25x512xf32>
    %cst_24 = arith.constant 2.000000e+01 : f32
    %35 = vector.broadcast %cst_24 : f32 to vector<25x512xf32>
    %36 = arith.cmpf ogt, %34, %35 : vector<25x512xf32>
    %cst_25 = arith.constant 2.000000e+01 : f32
    %37 = vector.broadcast %cst_25 : f32 to vector<25x512xf32>
    %38 = arith.minimumf %34, %37 : vector<25x512xf32>
    %39 = math.exp %38 : vector<25x512xf32>
    %cst_26 = arith.constant 1.000000e+00 : f32
    %40 = vector.broadcast %cst_26 : f32 to vector<25x512xf32>
    %41 = arith.addf %40, %39 : vector<25x512xf32>
    %42 = math.log %41 : vector<25x512xf32>
    %cst_27 = arith.constant 0.00999999977 : f32
    %43 = vector.broadcast %cst_27 : f32 to vector<25x512xf32>
    %44 = arith.mulf %42, %43 : vector<25x512xf32>
    %45 = arith.select %36, %32, %44 : vector<25x512xi1>, vector<25x512xf32>
    %c0_28 = arith.constant 0 : index
    %c0_29 = arith.constant 0 : index
    %46 = vector.load %arg9[%c0_28, %c0_29] : memref<64x25xf32, #tpu.memory_space<vmem>>, vector<64x25xf32>
    %c0_30 = arith.constant 0 : index
    %c0_31 = arith.constant 0 : index
    %47 = vector.load %arg10[%c0_30, %c0_31] : memref<64x3xf32, #tpu.memory_space<vmem>>, vector<64x3xf32>
    %c0_32 = arith.constant 0 : index
    %c0_33 = arith.constant 0 : index
    %48 = vector.load %arg11[%c0_32, %c0_33] : memref<64x36xf32, #tpu.memory_space<vmem>>, vector<64x36xf32>
    %c0_34 = arith.constant 0 : index
    %c0_35 = arith.constant 0 : index
    %49 = vector.load %arg12[%c0_34, %c0_35] : memref<64x1xf32, #tpu.memory_space<vmem>>, vector<64x1xf32>
    %cst_36 = arith.constant dense<0.000000e+00> : vector<64x512xf32>
    %50 = tpu.matmul %46, %45, %cst_36 {dimension_numbers = #tpu.dot_dimension_numbers<[1], [0], [0], [1], [0, 0, 1, 1], [], []>} : vector<64x25xf32>, vector<25x512xf32>, vector<64x512xf32> -> vector<64x512xf32>
    %cst_37 = arith.constant dense<0.000000e+00> : vector<64x512xf32>
    %51 = tpu.matmul %47, %0, %cst_37 {dimension_numbers = #tpu.dot_dimension_numbers<[1], [0], [0], [1], [0, 0, 1, 1], [], []>} : vector<64x3xf32>, vector<3x512xf32>, vector<64x512xf32> -> vector<64x512xf32>
    %52 = arith.addf %50, %51 : vector<64x512xf32>
    %cst_38 = arith.constant dense<0.000000e+00> : vector<64x512xf32>
    %53 = tpu.matmul %48, %6, %cst_38 {dimension_numbers = #tpu.dot_dimension_numbers<[1], [0], [0], [1], [0, 0, 1, 1], [], []>} : vector<64x36xf32>, vector<36x512xf32>, vector<64x512xf32> -> vector<64x512xf32>
    %54 = arith.addf %52, %53 : vector<64x512xf32>
    %cst_39 = arith.constant 0.707106769 : f32
    %55 = vector.broadcast %cst_39 : f32 to vector<64x512xf32>
    %56 = arith.mulf %54, %55 : vector<64x512xf32>
    %57 = vector.broadcast %49 : vector<64x1xf32> to vector<64x512xf32>
    %58 = arith.addf %56, %57 : vector<64x512xf32>
    %cst_40 = arith.constant 1.000000e+02 : f32
    %59 = vector.broadcast %cst_40 : f32 to vector<64x512xf32>
    %60 = arith.mulf %59, %58 : vector<64x512xf32>
    %cst_41 = arith.constant 2.000000e+01 : f32
    %61 = vector.broadcast %cst_41 : f32 to vector<64x512xf32>
    %62 = arith.cmpf ogt, %60, %61 : vector<64x512xf32>
    %cst_42 = arith.constant 2.000000e+01 : f32
    %63 = vector.broadcast %cst_42 : f32 to vector<64x512xf32>
    %64 = arith.minimumf %60, %63 : vector<64x512xf32>
    %65 = math.exp %64 : vector<64x512xf32>
    %cst_43 = arith.constant 1.000000e+00 : f32
    %66 = vector.broadcast %cst_43 : f32 to vector<64x512xf32>
    %67 = arith.addf %66, %65 : vector<64x512xf32>
    %68 = math.log %67 : vector<64x512xf32>
    %cst_44 = arith.constant 0.00999999977 : f32
    %69 = vector.broadcast %cst_44 : f32 to vector<64x512xf32>
    %70 = arith.mulf %68, %69 : vector<64x512xf32>
    %71 = arith.select %62, %58, %70 : vector<64x512xi1>, vector<64x512xf32>
    %c0_45 = arith.constant 0 : index
    %c0_46 = arith.constant 0 : index
    %72 = vector.load %arg13[%c0_45, %c0_46] : memref<64x64xf32, #tpu.memory_space<vmem>>, vector<64x64xf32>
    %c0_47 = arith.constant 0 : index
    %c0_48 = arith.constant 0 : index
    %73 = vector.load %arg14[%c0_47, %c0_48] : memref<64x1xf32, #tpu.memory_space<vmem>>, vector<64x1xf32>
    %cst_49 = arith.constant dense<0.000000e+00> : vector<64x512xf32>
    %74 = tpu.matmul %72, %71, %cst_49 {dimension_numbers = #tpu.dot_dimension_numbers<[1], [0], [0], [1], [0, 0, 1, 1], [], []>} : vector<64x64xf32>, vector<64x512xf32>, vector<64x512xf32> -> vector<64x512xf32>
    %75 = vector.broadcast %73 : vector<64x1xf32> to vector<64x512xf32>
    %76 = arith.addf %74, %75 : vector<64x512xf32>
    %cst_50 = arith.constant 1.000000e+02 : f32
    %77 = vector.broadcast %cst_50 : f32 to vector<64x512xf32>
    %78 = arith.mulf %77, %76 : vector<64x512xf32>
    %cst_51 = arith.constant 2.000000e+01 : f32
    %79 = vector.broadcast %cst_51 : f32 to vector<64x512xf32>
    %80 = arith.cmpf ogt, %78, %79 : vector<64x512xf32>
    %cst_52 = arith.constant 2.000000e+01 : f32
    %81 = vector.broadcast %cst_52 : f32 to vector<64x512xf32>
    %82 = arith.minimumf %78, %81 : vector<64x512xf32>
    %83 = math.exp %82 : vector<64x512xf32>
    %cst_53 = arith.constant 1.000000e+00 : f32
    %84 = vector.broadcast %cst_53 : f32 to vector<64x512xf32>
    %85 = arith.addf %84, %83 : vector<64x512xf32>
    %86 = math.log %85 : vector<64x512xf32>
    %cst_54 = arith.constant 0.00999999977 : f32
    %87 = vector.broadcast %cst_54 : f32 to vector<64x512xf32>
    %88 = arith.mulf %86, %87 : vector<64x512xf32>
    %89 = arith.select %80, %76, %88 : vector<64x512xi1>, vector<64x512xf32>
    %c0_55 = arith.constant 0 : index
    %c0_56 = arith.constant 0 : index
    %90 = vector.load %arg15[%c0_55, %c0_56] : memref<36x64xf32, #tpu.memory_space<vmem>>, vector<36x64xf32>
    %c0_57 = arith.constant 0 : index
    %c0_58 = arith.constant 0 : index
    %91 = vector.load %arg16[%c0_57, %c0_58] : memref<36x1xf32, #tpu.memory_space<vmem>>, vector<36x1xf32>
    %cst_59 = arith.constant dense<0.000000e+00> : vector<36x512xf32>
    %92 = tpu.matmul %90, %89, %cst_59 {dimension_numbers = #tpu.dot_dimension_numbers<[1], [0], [0], [1], [0, 0, 1, 1], [], []>} : vector<36x64xf32>, vector<64x512xf32>, vector<36x512xf32> -> vector<36x512xf32>
    %93 = vector.broadcast %91 : vector<36x1xf32> to vector<36x512xf32>
    %94 = arith.addf %92, %93 : vector<36x512xf32>
    %c0_60 = arith.constant 0 : index
    %c0_61 = arith.constant 0 : index
    %95 = vector.load %arg17[%c0_60, %c0_61] : memref<36x512xf32, #tpu.memory_space<vmem>>, vector<36x512xf32>
    tpu.vector_store %arg17[%c0_60, %c0_61], %94 {strides = array<i32>} : memref<36x512xf32, #tpu.memory_space<vmem>>, vector<36x512xf32>,
    return
  }
  func.func @transform_0(%arg0: i32) -> (i32, i32) {
    %c0_i32 = arith.constant 0 : i32
    %c0_i32_0 = arith.constant 0 : i32
    return %c0_i32, %arg0 : i32, i32
  }
  func.func @transform_1(%arg0: i32) -> (i32, i32) {
    %c0_i32 = arith.constant 0 : i32
    %c0_i32_0 = arith.constant 0 : i32
    %c0_i32_1 = arith.constant 0 : i32
    return %c0_i32, %c0_i32_0 : i32, i32
  }
  func.func @transform_2(%arg0: i32) -> (i32, i32) {
    %c0_i32 = arith.constant 0 : i32
    %c0_i32_0 = arith.constant 0 : i32
    %c0_i32_1 = arith.constant 0 : i32
    return %c0_i32, %c0_i32_0 : i32, i32
  }
  func.func @transform_3(%arg0: i32) -> (i32, i32) {
    %c0_i32 = arith.constant 0 : i32
    %c0_i32_0 = arith.constant 0 : i32
    %c0_i32_1 = arith.constant 0 : i32
    return %c0_i32, %c0_i32_0 : i32, i32
  }
  func.func @transform_4(%arg0: i32) -> (i32, i32) {
    %c0_i32 = arith.constant 0 : i32
    %c0_i32_0 = arith.constant 0 : i32
    %c0_i32_1 = arith.constant 0 : i32
    return %c0_i32, %c0_i32_0 : i32, i32
  }
  func.func @transform_5(%arg0: i32) -> (i32, i32) {
    %c0_i32 = arith.constant 0 : i32
    %c0_i32_0 = arith.constant 0 : i32
    %c0_i32_1 = arith.constant 0 : i32
    return %c0_i32, %c0_i32_0 : i32, i32
  }
  func.func @transform_6(%arg0: i32) -> (i32, i32) {
    %c0_i32 = arith.constant 0 : i32
    %c0_i32_0 = arith.constant 0 : i32
    %c0_i32_1 = arith.constant 0 : i32
    return %c0_i32, %c0_i32_0 : i32, i32
  }
  func.func @transform_7(%arg0: i32) -> (i32, i32) {
    %c0_i32 = arith.constant 0 : i32
    %c0_i32_0 = arith.constant 0 : i32
    %c0_i32_1 = arith.constant 0 : i32
    return %c0_i32, %c0_i32_0 : i32, i32
  }
  func.func @transform_8(%arg0: i32) -> (i32, i32) {
    %c0_i32 = arith.constant 0 : i32
    %c0_i32_0 = arith.constant 0 : i32
    %c0_i32_1 = arith.constant 0 : i32
    return %c0_i32, %c0_i32_0 : i32, i32
  }
  func.func @transform_9(%arg0: i32) -> (i32, i32) {
    %c0_i32 = arith.constant 0 : i32
    %c0_i32_0 = arith.constant 0 : i32
    %c0_i32_1 = arith.constant 0 : i32
    return %c0_i32, %c0_i32_0 : i32, i32
  }
  func.func @transform_10(%arg0: i32) -> (i32, i32) {
    %c0_i32 = arith.constant 0 : i32
    %c0_i32_0 = arith.constant 0 : i32
    %c0_i32_1 = arith.constant 0 : i32
    return %c0_i32, %c0_i32_0 : i32, i32
  }
  func.func @transform_11(%arg0: i32) -> (i32, i32) {
    %c0_i32 = arith.constant 0 : i32
    %c0_i32_0 = arith.constant 0 : i32
    %c0_i32_1 = arith.constant 0 : i32
    return %c0_i32, %c0_i32_0 : i32, i32
  }
  func.func @transform_12(%arg0: i32) -> (i32, i32) {
    %c0_i32 = arith.constant 0 : i32
    %c0_i32_0 = arith.constant 0 : i32
    %c0_i32_1 = arith.constant 0 : i32
    return %c0_i32, %c0_i32_0 : i32, i32
  }
  func.func @transform_13(%arg0: i32) -> (i32, i32) {
    %c0_i32 = arith.constant 0 : i32
    %c0_i32_0 = arith.constant 0 : i32
    %c0_i32_1 = arith.constant 0 : i32
    return %c0_i32, %c0_i32_0 : i32, i32
  }
  func.func @transform_14(%arg0: i32) -> (i32, i32) {
    %c0_i32 = arith.constant 0 : i32
    %c0_i32_0 = arith.constant 0 : i32
    %c0_i32_1 = arith.constant 0 : i32
    return %c0_i32, %c0_i32_0 : i32, i32
  }
  func.func @transform_15(%arg0: i32) -> (i32, i32) {
    %c0_i32 = arith.constant 0 : i32
    %c0_i32_0 = arith.constant 0 : i32
    %c0_i32_1 = arith.constant 0 : i32
    return %c0_i32, %c0_i32_0 : i32, i32
  }
  func.func @transform_16(%arg0: i32) -> (i32, i32) {
    %c0_i32 = arith.constant 0 : i32
    %c0_i32_0 = arith.constant 0 : i32
    return %c0_i32, %arg0 : i32, i32
  }
}

</mosaic_0001>

<bundles_post_ra>
// kernel: tpu_custom_call.1
= control target key start
LH: loop header
LB: loop body
LE: loop exit
PB: predicated region body
PF: predicated region fallthrough
CT: control target
= control target key end

     0   :  { %s11769_s0 = inlined_call_operand.vmem [shape: f32[3,2048], index: 0, kind: input, shape index: {}]   ;;  %s11770_s1 = inlined_call_operand.vmem [shape: f32[36,3], index: 1, kind: input, shape index: {}]   ;;  %s11771_s2 = inlined_call_operand.vmem [shape: f32[36,1], index: 2, kind: input, shape index: {}]   ;;  %s11772_s3 = inlined_call_operand.vmem [shape: f32[64,3], index: 3, kind: input, shape index: {}]   ;;  %s11773_s4 = inlined_call_operand.vmem [shape: f32[64,36], index: 4, kind: input, shape index: {}]   ;;  %s11774_s5 = inlined_call_operand.vmem [shape: f32[64,1], index: 5, kind: input, shape index: {}]   ;;  %s11775_s6 = inlined_call_operand.vmem [shape: f32[25,64], index: 6, kind: input, shape index: {}]   ;;  %s11776_s7 = inlined_call_operand.vmem [shape: f32[25,1], index: 7, kind: input, shape index: {}]   ;;  %s11777_s8 = inlined_call_operand.vmem [shape: f32[64,25], index: 8, kind: input, shape index: {}]   ;;  %s11778_s9 = inlined_call_operand.vmem [shape: f32[64,3], index: 9, kind: input, shape index: {}]   ;;  %s11779_s10 = inlined_call_operand.vmem [shape: f32[64,36], index: 10, kind: input, shape index: {}]   ;;  %s11780_s11 = inlined_call_operand.vmem [shape: f32[64,1], index: 11, kind: input, shape index: {}]   ;;  %s11781_s12 = inlined_call_operand.vmem [shape: f32[64,64], index: 12, kind: input, shape index: {}]   ;;  %s11782_s13 = inlined_call_operand.vmem [shape: f32[64,1], index: 13, kind: input, shape index: {}]   ;;  %s11783_s14 = inlined_call_operand.vmem [shape: f32[36,64], index: 14, kind: input, shape index: {}]   ;;  %s11784_s15 = inlined_call_operand.vmem [shape: f32[36,1], index: 15, kind: input, shape index: {}]   ;;  %s11785_s16 = inlined_call_operand.hbm [shape: f32[36,2048], index: 16, kind: output, shape index: {}]  }
   0x1   :  { %11961 = sst [smem:[#allocation64_spill]] %s11769_s0 }
   0x2   :  { %21 = vsyncpa [#allocation3], 0 }
   0x3   :  { %23 = vsyncpa [#allocation3 + $0x1], 0  ;;  %s7695_s21 = smov 0   ;;  %s7697_s22 = smov 0  }
   0x4   :  { %s7699_s23 = smov 0   ;;  %s7701_s24 = smov 0  }
   0x5 LB: > { %11962 = sst [smem:[#allocation5_spill]] %s7583_s21  ;;  %s7716_s25 = sadd.s32 4294967295, %s7595_s24   ;;  %s7595_s24 = sphi %s7701_s24, %s12350_s24   ;;  %s7591_s23 = sphi %s7699_s23, %s12352_s23   ;;  %s7587_s22 = sphi %s7697_s22, %s12354_s22   ;;  %s7583_s21 = sphi %s7695_s21, %s12353_s21  }
   0x6   : > { %11963 = sst [smem:[#allocation6_spill]] %s7591_s23  ;;  %s6382_s26 = sadd.s32 4294967294, %s7595_s24  }
   0x7   : > { %11964 = sst [smem:[#allocation7_spill]] %s7595_s24  ;;  %s7720_s27 = sadd.s32 1, %s7595_s24  }
   0x8   : > { %11965 = sst [smem:[#allocation8_spill]] %s7720_s27  ;;  %s377_s28 = sadd.s32 1, %s7591_s23 }
   0x9   : > { %s374_s29 = ssub.s32 %s7595_s24, %s7720_s27  ;;  %p387_p0 = scmp.ne.s32.totalorder %s7591_s23, %s7587_s22 }
   0xa   : > { %p375_p1 = scmp.eq.s32.totalorder %s374_s29, 0  ;;  %p388_p2 = scmp.eq.s32.totalorder %s7716_s25, 3 }
   0xb   : > { %p393_p3 = scmp.ne.s32.totalorder %s7587_s22, %s7583_s21  ;;  %p394_p4 = scmp.eq.s32.totalorder %s6382_s26, 3 }
   0xc   : > { %s7731_s30 = scalar_select %p375_p1, %s7591_s23, %s377_s28  }
   0xd   : > { %p7733_p5 = por %p388_p2, %p387_p0  ;;  %p7737_p6 = por %p394_p4, %p393_p3 }
   0xe   : > { %11966 = sst [smem:[#allocation9_spill]] %s7731_s30  ;;  %p6385_p7 = scmp.ge.s32.totalorder %s7595_s24, 1 }
   0xf   : > { %s11968_s17 = scalar_select %p7737_p6, 1, 0 }
  0x10   : > { %p466_p8 = scmp.lt.s32.totalorder %s7595_s24, 5 }
  0x11   : > { %11969 = sst [smem:[#allocation10_spill]] %s11968_s17 }
  0x12   : > { %p467_p9 = pnand %p6385_p7, %p466_p8 }
  0x14   : > { %470 = sbr.rel (%p467_p9) target bundleno = 2328 (0x918), region = 84 }
  0x1b   : > { %s6386_s18 = sshll.u32 %s7716_s25, 2  ;;  %v11792_v0 = vmov 0.0   ;;  %v7598_v1 = vmov 0   ;;  %v530_v2 = vld [vmem:[%s11771_s2] sm:$0xff]  ;;  %v532_v3 = vld [vmem:[%s11771_s2 + $0x10] sm:$0xff]  ;;  %v531_v4 = vld [vmem:[%s11771_s2 + $0x8] sm:$0xff] }
  0x1c   : > { %p517_p10 = scmp.lt.s32.totalorder %s6386_s18, 15  ;;  %653 = vmatprep.mubr.f32.mxu0 %v11792_v0  ;;  %748 = vmatprep.mubr.f32.mxu1 %v11792_v0  ;;  %v533_v5 = vld [vmem:[%s11771_s2 + $0x18] sm:$0xff]  ;;  %s11970_s20 = sld [smem:[#allocation64_spill]]  ;;  %vm11852_vm0 = vcmask 1042432   ;;  %v525_v10 = vld [vmem:[%s11770_s1] sm:$0xff]  ;;  %vm11847_vm1 = vcmask 23552  }
  0x1d   : > { %6997 = vset.pattern.permute.xlu0 %v7598_v1  ;;  %6998 = vset.pattern.permute.xlu1 %v7598_v1  ;;  %v534_v11 = vld [vmem:[%s11771_s2 + $0x20] sm:$0xf]  ;;  %v526_v13 = vld [vmem:[%s11770_s1 + $0x8] sm:$0xff]  ;;  %v2877_v15 = vld [vmem:[%s11774_s5 + $0x10] sm:$0xff]  ;;  %s513_s19 = sand.u32 1, %s7587_s22   ;;  %s6620_s23 = sshll.u32 %s7716_s25, 9 }
  0x1e   : > { %s12356_s18 = smov (!%p517_p10, %s6386_s18), 15  ;;  %537 = vperm.xlu0 %6997, %v530_v2   ;;  %547 = vperm.xlu1 %6998, %v532_v3   ;;  %v2875_v12 = vld [vmem:[%s11774_s5] sm:$0xff]  ;;  %v2876_v14 = vld [vmem:[%s11774_s5 + $0x8] sm:$0xff]  ;;  %v527_v16 = vld [vmem:[%s11770_s1 + $0x10] sm:$0xff]  ;;  %s11718_s25 = scalar_lea.hbm %s11785_s16, %s6620_s23 }
  0x1f   : > { %s6387_s17 = sshll.u32 %s12356_s18, 2  ;;  %v2878_v17 = vld [vmem:[%s11774_s5 + $0x18] sm:$0xff]  ;;  %v2879_v18 = vld [vmem:[%s11774_s5 + $0x20] sm:$0xff]  ;;  %v2880_v20 = vld [vmem:[%s11774_s5 + $0x28] sm:$0xff]  ;;  %s11728_s18 = scalar_lea.sflag [#allocation3], %s513_s19 }
  0x20   : > { %v528_v19 = vld [vmem:[%s11770_s1 + $0x18] sm:$0xff]  ;;  %v2881_v21 = vld [vmem:[%s11774_s5 + $0x30] sm:$0xff]  ;;  %v529_v22 = vld [vmem:[%s11770_s1 + $0x20] sm:$0xf] }
  0x21   : > { %v2882_v23 = vld [vmem:[%s11774_s5 + $0x38] sm:$0xff]  ;;  %v3793_v24 = vld [vmem:[%s11776_s7] sm:$0xff]  ;;  %v3794_v25 = vld [vmem:[%s11776_s7 + $0x8] sm:$0xff] }
  0x22   : > { %s7761_s24 = scalar_lea.vmem %s11970_s20, %s6387_s17  ;;  %542 = vperm.xlu0 %6997, %v531_v4   ;;  %552 = vperm.xlu1 %6998, %v533_v5   ;;  %v3795_v26 = vld [vmem:[%s11776_s7 + $0x10] sm:$0xff]  ;;  %v3796_v27 = vld [vmem:[%s11776_s7 + $0x18] sm:$0x1]  ;;  %v4192_v28 = vld [vmem:[%s11780_s11] sm:$0xff]  ;;  %s6865_s20 = smul.u32 160, %s513_s19 }
  0x23   : > { %v523_v6 = vld [vmem:[%s7761_s24] sm:$0x77]  ;;  %v524_v7 = vld [vmem:[%s7761_s24 + $0x8] sm:$0x77]  ;;  %v4194_v30 = vld [vmem:[%s11780_s11 + $0x10] sm:$0xff] }
  0x24   : > { %v7765_v8 = vcombine.high %v523_v6, %v523_v6  ;;  %v7767_v9 = vcombine.high %v524_v7, %v524_v7  ;;  %v4193_v29 = vld [vmem:[%s11780_s11 + $0x8] sm:$0xff]  ;;  %v4195_v31 = vld [vmem:[%s11780_s11 + $0x18] sm:$0xff]  ;;  %v4196_v32 = vld [vmem:[%s11780_s11 + $0x20] sm:$0xff]  ;;  %s11695_s30 = scalar_lea.vmem [#allocation2], %s6865_s20 }
  0x25   : > { %v4197_v33 = vld [vmem:[%s11780_s11 + $0x28] sm:$0xff]  ;;  %v4198_v34 = vld [vmem:[%s11780_s11 + $0x30] sm:$0xff]  ;;  %v4199_v35 = vld [vmem:[%s11780_s11 + $0x38] sm:$0xff]  ;;  %s6320_s21 = sshll.u32 %s11695_s30, 4  ;;  %s11720_s21 = int_to_ptr.vmem [resolvable:$true] %s6320_s21 }
  0x26   : > { %11971 = vst [vmem:[#allocation11_spill] sm:$0xff] %v7765_v8  ;;  %11972 = vst [vmem:[#allocation12_spill] sm:$0xff] %v7767_v9  ;;  %6388 = vmatprep.subr.msk.mxu0 %vm11852_vm0, %v7765_v8  ;;  %6395 = vmatprep.subr.msk.mxu1 %vm11852_vm0, %v7767_v9  ;;  %v5428_v36 = vld [vmem:[%s11782_s13] sm:$0xff]  ;;  %v5429_v37 = vld [vmem:[%s11782_s13 + $0x8] sm:$0xff]  ;;  %s7533_s26 = scalar_lea.vmem %s11720_s21, 2560 }
  0x27   : > { %6389 = vmatpush1.msk.msra.mxu0 %vm11852_vm0, %v523_v6  ;;  %6396 = vmatpush1.msk.msra.mxu1 %vm11852_vm0, %v524_v7  ;;  %v5430_v38 = vld [vmem:[%s11782_s13 + $0x10] sm:$0xff]  ;;  %v5431_v39 = vld [vmem:[%s11782_s13 + $0x18] sm:$0xff]  ;;  %v5432_v40 = vld [vmem:[%s11782_s13 + $0x20] sm:$0xff]  ;;  %p7534_p11 = scmp.ne.s32.totalorder %s11720_s21, %s7533_s26 }
  0x28   : > { %6390 = vmatmul.mubr.msk.f32.vlgmr.msra.gmra.mrb[0].mxu0 %vm11847_vm1, %v525_v10  ;;  %6397 = vmatmul.mubr.msk.f32.vlgmr.msra.gmra.mrb[0].mxu1 %vm11847_vm1, %v525_v10  ;;  %v5433_v41 = vld [vmem:[%s11782_s13 + $0x28] sm:$0xff]  ;;  %v5434_v42 = vld [vmem:[%s11782_s13 + $0x30] sm:$0xff]  ;;  %v5435_v43 = vld [vmem:[%s11782_s13 + $0x38] sm:$0xff] }
  0x29   : > { %659 = vmatprep.mubr.f32.mxu0 %v11792_v0  ;;  %754 = vmatprep.mubr.f32.mxu1 %v11792_v0  ;;  %v6051_v44 = vld [vmem:[%s11784_s15] sm:$0xff]  ;;  %v6052_v45 = vld [vmem:[%s11784_s15 + $0x8] sm:$0xff]  ;;  %v6053_v46 = vld [vmem:[%s11784_s15 + $0x10] sm:$0xff]  ;;  %p7535_p12 = pnand %p7534_p11, %p7733_p5 }
  0x2a   : > { %557 = vperm.xlu0 %6997, %v534_v11   ;;  %3399 = vperm.xlu1 %6998, %v2875_v12   ;;  %v6054_v47 = vld [vmem:[%s11784_s15 + $0x18] sm:$0xff]  ;;  %v6055_v48 = vld [vmem:[%s11784_s15 + $0x20] sm:$0xf] }
  0x2b   : > { %p7536_p13 = pneg %p7535_p12 }
  0x2c   : > { %6391 = vmatmul.mubr.msk.f32.gmra.mrb[2].mxu0 %vm11847_vm1, %v526_v13  ;;  %6398 = vmatmul.mubr.msk.f32.gmra.mrb[2].mxu1 %vm11847_vm1, %v526_v13 }
  0x2d   : > { %665 = vmatprep.mubr.f32.mxu0 %v11792_v0  ;;  %760 = vmatprep.mubr.f32.mxu1 %v11792_v0 }
  0x2e   : > { %3404 = vperm.xlu0 %6997, %v2876_v14   ;;  %3409 = vperm.xlu1 %6998, %v2877_v15  }
  0x30   : > { %6392 = vmatmul.mubr.msk.f32.gmra.mrb[4].mxu0 %vm11847_vm1, %v527_v16  ;;  %6399 = vmatmul.mubr.msk.f32.gmra.mrb[4].mxu1 %vm11847_vm1, %v527_v16 }
  0x31   : > { %671 = vmatprep.mubr.f32.mxu0 %v11792_v0  ;;  %766 = vmatprep.mubr.f32.mxu1 %v11792_v0 }
  0x32   : > { %3414 = vperm.xlu0 %6997, %v2878_v17   ;;  %3419 = vperm.xlu1 %6998, %v2879_v18  }
  0x34   : > { %6393 = vmatmul.mubr.msk.f32.gmra.mrb[6].mxu0 %vm11847_vm1, %v528_v19  ;;  %6400 = vmatmul.mubr.msk.f32.gmra.mrb[6].mxu1 %vm11847_vm1, %v528_v19 }
  0x35   : > { %677 = vmatprep.mubr.f32.mxu0 %v11792_v0  ;;  %772 = vmatprep.mubr.f32.mxu1 %v11792_v0 }
  0x36   : > { %3424 = vperm.xlu0 %6997, %v2880_v20   ;;  %3429 = vperm.xlu1 %6998, %v2881_v21  }
  0x38   : > { %6394 = vmatmul.mubr.msk.f32.gmra.mrb[8].mxu0 %vm11847_vm1, %v529_v22  ;;  %6401 = vmatmul.mubr.msk.f32.gmra.mrb[8].mxu1 %vm11847_vm1, %v529_v22 }
  0x39   : > { %2985 = vmatprep.mubr.f32.mxu0 %v11792_v0  ;;  %3098 = vmatprep.mubr.f32.mxu1 %v11792_v0 }
  0x3a   : > { %3434 = vperm.xlu0 %6997, %v2882_v23   ;;  %3799 = vperm.xlu1 %6998, %v3793_v24  }
  0x3e   : > { %3804 = vperm.xlu0 %6997, %v3794_v25   ;;  %3809 = vperm.xlu1 %6998, %v3795_v26  }
  0x42   : > { %3814 = vperm.xlu0 %6997, %v3796_v27   ;;  %5030 = vperm.xlu1 %6998, %v4192_v28   ;;  %v11807_v28 = vmov 683565275  }
  0x46   : > { %5035 = vperm.xlu0 %6997, %v4193_v29   ;;  %5040 = vperm.xlu1 %6998, %v4194_v30  }
  0x4a   : > { %5045 = vperm.xlu0 %6997, %v4195_v31   ;;  %5050 = vperm.xlu1 %6998, %v4196_v32   ;;  %v11809_v32 = vmov 2475754826  }
  0x4e   : > { %5055 = vperm.xlu0 %6997, %v4197_v33   ;;  %5060 = vperm.xlu1 %6998, %v4198_v34   ;;  %v11799_v34 = vmov 2131351028  }
  0x52   : > { %5065 = vperm.xlu0 %6997, %v4199_v35   ;;  %5438 = vperm.xlu1 %6998, %v5428_v36   ;;  %v11797_v36 = vmov 2102212464  }
  0x56   : > { %5443 = vperm.xlu0 %6997, %v5429_v37   ;;  %5448 = vperm.xlu1 %6998, %v5430_v38   ;;  %v11805_v38 = vmov 920167782  }
  0x5a   : > { %5453 = vperm.xlu0 %6997, %v5431_v39   ;;  %5458 = vperm.xlu1 %6998, %v5432_v40  }
  0x5e   : > { %5463 = vperm.xlu0 %6997, %v5433_v41   ;;  %5468 = vperm.xlu1 %6998, %v5434_v42  }
  0x62   : > { %5473 = vperm.xlu0 %6997, %v5435_v43   ;;  %6058 = vperm.xlu1 %6998, %v6051_v44  }
  0x66   : > { %6063 = vperm.xlu0 %6997, %v6052_v45   ;;  %6068 = vperm.xlu1 %6998, %v6053_v46   ;;  %v11801_v46 = vmov 1326507024  }
  0x6a   : > { %6073 = vperm.xlu0 %6997, %v6054_v47   ;;  %6078 = vperm.xlu1 %6998, %v6055_v48  }
  0x9d   : > { %v538_v49 = vpop.permute.xlu0 %537 }
  0xfb   : > { %v655_v50 = vpop.f32.mrb[0].mxu0  ;;  %v750_v51 = vpop.f32.mrb[0].mxu1 }
  0xfc   : > { %v7912_v52 = vadd.f32 %v655_v50, %v538_v49  ;;  %v7914_v53 = vadd.f32 %v750_v51, %v538_v49  ;;  %v657_v54 = vpop.f32.mrb[1].mxu0  ;;  %v752_v55 = vpop.f32.mrb[1].mxu1 }
  0xfd   : > { %v7916_v56 = vadd.f32 %v657_v54, %v538_v49  ;;  %v7935_v17 = vadd.f32 %v752_v55, %v538_v49 }
  0xfe   : > { %11973 = vst [vmem:[#allocation13_spill] sm:$0xff] %v7912_v52  ;;  %11974 = vst [vmem:[#allocation14_spill] sm:$0xff] %v7914_v53  ;;  %v779_v57 = vand.u32 2147483647, %v7912_v52  ;;  %v782_v58 = vand.u32 2139095040, %v7912_v52  ;;  %v990_v60 = vand.u32 2139095040, %v7914_v53 }
  0xff   : > { %v987_v59 = vand.u32 2147483647, %v7914_v53  ;;  %v7922_v61 = vpop.f32.mrb[2].mxu0  ;;  %v886_v63 = vand.u32 2139095040, %v7916_v56  ;;  %v7929_v6 = vpop.f32.mrb[2].mxu1  ;;  %11975 = vst [vmem:[#allocation15_spill] sm:$0xff] %v7935_v17 }
 0x100   : > { %v783_v62 = vshrl.u32 %v782_v58, 23  ;;  %v786_v1 = vand.u32 8388607, %v779_v57  ;;  %v991_v2 = vshrl.u32 %v990_v60, 23  ;;  %v7931_v12 = vpop.f32.mrb[3].mxu0  ;;  %v7933_v13 = vpop.f32.mrb[3].mxu1 }
 0x101   : > { %v994_v3 = vand.u32 8388607, %v987_v59  ;;  %v887_v5 = vshrl.u32 %v886_v63, 23  ;;  %v11795_v25 = vand.u32 2147483647, %v7916_v56  ;;  %v1094_v26 = vand.u32 2139095040, %v7935_v17 }
 0x102   : > { %v6402_v4 = vadd.s32 4294967169, %v783_v62  ;;  %v6410_v7 = vadd.s32 4294967169, %v991_v2  ;;  %v787_v14 = vor.u32 8388608, %v786_v1 }
 0x103   : > { %v6406_v11 = vadd.s32 4294967169, %v887_v5  ;;  %v995_v15 = vor.u32 8388608, %v994_v3  ;;  %v7953_v40 = vpop.f32.mrb[4].mxu0 }
 0x104   : > { %v789_v10 = vadd.s32 1, %v6402_v4  ;;  %v997_v16 = vadd.s32 1, %v6410_v7  ;;  %v7939_v23 = vshll.u32 %v787_v14, 8 }
 0x105   : > { %v7937_v19 = vadd.s32 1, %v6406_v11  ;;  %v7941_v24 = vshll.u32 %v995_v15, 8 }
 0x106   : > { %vm790_vm2 = vcmp.gt.s32.totalorder %v789_v10, 0  ;;  %vm998_vm3 = vcmp.gt.s32.totalorder %v997_v16, 0 }
 0x107   : > { %v791_v18 = vsel %vm790_vm2, %v789_v10, 0  ;;  %v999_v22 = vsel %vm998_vm3, %v997_v16, 0  ;;  %vm894_vm4 = vcmp.gt.s32.totalorder %v7937_v19, 0 }
 0x108   : > { %v792_v20 = vshrl.u32 %v791_v18, 5  ;;  %v793_v21 = vand.u32 31, %v791_v18  ;;  %v7946_v30 = vshrl.u32 %v999_v22, 5  ;;  %v1001_v31 = vand.u32 31, %v999_v22 }
 0x10a   : > { %v794_v27 = vsub.s32 32, %v793_v21  ;;  %v796_v29 = vshll.u32 %v11807_v28, %v793_v21  ;;  %v799_v33 = vshll.u32 %v11809_v32, %v793_v21  ;;  %v802_v35 = vshll.u32 %v11799_v34, %v793_v21 }
 0x10b   : > { %v805_v37 = vshll.u32 %v11797_v36, %v793_v21  ;;  %v808_v39 = vshll.u32 %v11805_v38, %v793_v21  ;;  %vm811_vm5 = vcmp.lt.s32.totalorder %v792_v20, 1  ;;  %vm812_vm6 = vcmp.lt.s32.totalorder %v792_v20, 2 }
 0x10c   : > { %v797_v41 = vshrl.u32 %v11809_v32, %v794_v27  ;;  %v800_v42 = vshrl.u32 %v11799_v34, %v794_v27  ;;  %v803_v43 = vshrl.u32 %v11797_v36, %v794_v27  ;;  %v795_v44 = vshrl.u32 %v11807_v28, %v794_v27 }
 0x10d   : > { %v806_v45 = vshrl.u32 %v11805_v38, %v794_v27  ;;  %v809_v47 = vshrl.u32 %v11801_v46, %v794_v27  ;;  %v1002_v51 = vsub.s32 32, %v1001_v31  ;;  %vm813_vm7 = vcmp.lt.s32.totalorder %v792_v20, 3 }
 0x10e   : > { %v798_v48 = vor.u32 %v797_v41, %v796_v29  ;;  %v801_v49 = vor.u32 %v800_v42, %v799_v33  ;;  %v804_v50 = vor.u32 %v803_v43, %v802_v35  ;;  %vm814_vm8 = vcmp.lt.s32.totalorder %v792_v20, 4 }
 0x10f   : > { %v807_v54 = vor.u32 %v806_v45, %v805_v37  ;;  %v810_v55 = vor.u32 %v809_v47, %v808_v39  ;;  %v1004_v4 = vshll.u32 %v11807_v28, %v1001_v31  ;;  %v1005_v10 = vshrl.u32 %v11809_v32, %v1002_v51 }
 0x110   : > { %v815_v58 = vsel %vm811_vm5, %v795_v44, %v798_v48  ;;  %v816_v60 = vsel %vm814_vm8, %v804_v50, 2102212464  ;;  %v819_v62 = vsel %vm811_vm5, %v798_v48, %v801_v49  ;;  %v823_v63 = vsel %vm811_vm5, %v801_v49, %v804_v50 }
 0x111   : > { %v817_v1 = vsel %vm813_vm7, %v801_v49, %v816_v60  ;;  %v820_v2 = vsel %vm814_vm8, %v807_v54, 920167782  ;;  %v824_v3 = vsel %vm814_vm8, %v810_v55, 1326507024  ;;  %v1007_v11 = vshll.u32 %v11809_v32, %v1001_v31 }
 0x112   : > { %v821_v5 = vsel %vm813_vm7, %v804_v50, %v820_v2  ;;  %v825_v7 = vsel %vm813_vm7, %v807_v54, %v824_v3  ;;  %v818_v14 = vsel %vm812_vm6, %v815_v58, %v817_v1  ;;  %v1008_v18 = vshrl.u32 %v11799_v34, %v1002_v51 }
 0x113   : > { %v822_v15 = vsel %vm812_vm6, %v819_v62, %v821_v5  ;;  %v826_v16 = vsel %vm812_vm6, %v823_v63, %v825_v7  ;;  %v1006_v33 = vor.u32 %v1005_v10, %v1004_v4  ;;  %v1010_v37 = vshll.u32 %v11799_v34, %v1001_v31 }
 0x114   : > { %v7972_v21 = vmul.u32.u64.low %v7939_v23, %v826_v16  ;;  %v7973_v22 = vmul.u32.u64.high %v7939_v23, %v826_v16, %v7972_v21  ;;  %v7976_v27 = vmul.u32.u64.low %v7939_v23, %v822_v15  ;;  %v7977_v29 = vmul.u32.u64.high %v7939_v23, %v822_v15, %v7976_v27 }
 0x115   : > { %v1009_v35 = vor.u32 %v1008_v18, %v1007_v11  ;;  %v1011_v39 = vshrl.u32 %v11797_v36, %v1002_v51  ;;  %v1013_v20 = vshll.u32 %v11797_v36, %v1001_v31  ;;  %v1014_v41 = vshrl.u32 %v11805_v38, %v1002_v51  ;;  %v8010_v18 = vpop.f32.mrb[4].mxu1 }
 0x116   : > { %v1017_v42 = vshrl.u32 %v11801_v46, %v1002_v51  ;;  %v895_v43 = vsel %vm894_vm4, %v7937_v19, 0  ;;  %v834_v44 = vmul.u32 %v7939_v23, %v818_v14  ;;  %v1003_v45 = vshrl.u32 %v11807_v28, %v1002_v51 }
 0x117   : > { %v1012_v47 = vor.u32 %v1011_v39, %v1010_v37  ;;  %v1016_v48 = vshll.u32 %v11805_v38, %v1001_v31  ;;  %vm836_vm9 = vc.u32 %v7973_v22, %v7976_v27  ;;  %v837_v49 = vadd.s32 1, %v7977_v29 }
 0x118   : > { %v1015_v50 = vor.u32 %v1014_v41, %v1013_v20  ;;  %vm1019_vm10 = vcmp.lt.s32.totalorder %v7946_v30, 1  ;;  %vm1021_vm11 = vcmp.lt.s32.totalorder %v7946_v30, 3  ;;  %vm1022_vm12 = vcmp.lt.s32.totalorder %v7946_v30, 4 }
 0x119   : > { %v1018_v54 = vor.u32 %v1017_v42, %v1016_v48  ;;  %v1027_v19 = vsel %vm1019_vm10, %v1006_v33, %v1009_v35  ;;  %v838_v23 = vsel %vm836_vm9, %v837_v49, %v7977_v29  ;;  %v1024_v51 = vsel %vm1022_vm12, %v1012_v47, 2102212464 }
 0x11a   : > { %v1028_v55 = vsel %vm1022_vm12, %v1015_v50, 920167782  ;;  %v1031_v58 = vsel %vm1019_vm10, %v1009_v35, %v1012_v47  ;;  %v839_v31 = vadd.s32 %v838_v23, %v834_v44  ;;  %vm1020_vm13 = vcmp.lt.s32.totalorder %v7946_v30, 2 }
 0x11b   : > { %v1029_v60 = vsel %vm1021_vm11, %v1012_v47, %v1028_v55  ;;  %v1032_v62 = vsel %vm1022_vm12, %v1018_v54, 1326507024  ;;  %v1023_v63 = vsel %vm1019_vm10, %v1003_v45, %v1006_v33  ;;  %v1025_v1 = vsel %vm1021_vm11, %v1009_v35, %v1024_v51 }
 0x11c   : > { %v1030_v2 = vsel %vm1020_vm13, %v1027_v19, %v1029_v60  ;;  %v1033_v3 = vsel %vm1021_vm11, %v1015_v50, %v1032_v62  ;;  %v840_v4 = vadd.s32 536870912, %v839_v31  ;;  %v897_v15 = vand.u32 31, %v895_v43 }
 0x11d   : > { %v1034_v5 = vsel %vm1020_vm13, %v1031_v58, %v1033_v3  ;;  %v8000_v7 = vmul.u32.u64.low %v7941_v24, %v1030_v2  ;;  %v8001_v10 = vmul.u32.u64.high %v7941_v24, %v1030_v2, %v8000_v7  ;;  %v1026_v30 = vsel %vm1020_vm13, %v1023_v63, %v1025_v1 }
 0x11e   : > { %v8005_v11 = vmul.u32.u64.low %v7941_v24, %v1034_v5  ;;  %v8006_v14 = vmul.u32.u64.high %v7941_v24, %v1034_v5, %v8005_v11  ;;  %v8008_v16 = vshrl.u32 %v840_v4, 30  ;;  %v898_v21 = vsub.s32 32, %v897_v15 }
 0x11f   : > { %v1045_v33 = vadd.s32 1, %v8001_v10  ;;  %v890_v35 = vand.u32 8388607, %v11795_v25  ;;  %v1095_v37 = vshrl.u32 %v1094_v26, 23  ;;  %v1042_v39 = vmul.u32 %v7941_v24, %v1026_v30 }
 0x120   : > { %v842_v29 = vshll.u32 %v8008_v16, 30  ;;  %vm1044_vm14 = vc.u32 %v8006_v14, %v8000_v7  ;;  %v8021_v20 = vshrl.u32 %v895_v43, 5  ;;  %v903_v41 = vshll.u32 %v11809_v32, %v897_v15 }
 0x121   : > { %v1046_v44 = vsel %vm1044_vm14, %v1045_v33, %v8001_v10  ;;  %v901_v45 = vshrl.u32 %v11809_v32, %v898_v21  ;;  %v904_v47 = vshrl.u32 %v11799_v34, %v898_v21  ;;  %v900_v26 = vshll.u32 %v11807_v28, %v897_v15 }
 0x122   : > { %v8024_v42 = vsub.s32 %v839_v31, %v842_v29  ;;  %v1047_v48 = vadd.s32 %v1046_v44, %v1042_v39  ;;  %v906_v24 = vshll.u32 %v11799_v34, %v897_v15  ;;  %v907_v49 = vshrl.u32 %v11797_v36, %v898_v21 }
 0x123   : > { %v905_v50 = vor.u32 %v904_v47, %v903_v41  ;;  %v909_v54 = vshll.u32 %v11797_v36, %v897_v15  ;;  %v910_v19 = vshrl.u32 %v11805_v38, %v898_v21  ;;  %v912_v55 = vshll.u32 %v11805_v38, %v897_v15 }
 0x124   : > { %v845_v43 = vsub.s32 0, %v8024_v42  ;;  %v1048_v23 = vadd.s32 536870912, %v1047_v48  ;;  %v908_v51 = vor.u32 %v907_v49, %v906_v24  ;;  %v913_v58 = vshrl.u32 %v11801_v46, %v898_v21 }
 0x125   : > { %v902_v60 = vor.u32 %v901_v45, %v900_v26  ;;  %v911_v62 = vor.u32 %v910_v19, %v909_v54  ;;  %vm918_vm15 = vcmp.lt.s32.totalorder %v8021_v20, 4  ;;  %v11794_v2 = vand.u32 2147483647, %v7935_v17 }
 0x126   : > { %v6403_v31 = vmin.u32 %v845_v43, %v8024_v42  ;;  %v8038_v63 = vshrl.u32 %v1048_v23, 30  ;;  %v914_v1 = vor.u32 %v913_v58, %v912_v55  ;;  %vm915_vm2 = vcmp.lt.s32.totalorder %v8021_v20, 1 }
 0x127   : > { %v924_v4 = vsel %vm918_vm15, %v911_v62, 920167782  ;;  %v6414_v5 = vadd.s32 4294967169, %v1095_v37  ;;  %v891_v11 = vor.u32 8388608, %v890_v35  ;;  %vm917_vm3 = vcmp.lt.s32.totalorder %v8021_v20, 3 }
 0x128   : > { %v847_v3 = vclz %v6403_v31  ;;  %v1050_v10 = vshll.u32 %v8038_v63, 30  ;;  %v927_v15 = vsel %vm915_vm2, %v905_v50, %v908_v51  ;;  %v923_v29 = vsel %vm915_vm2, %v902_v60, %v905_v50 }
 0x129   : > { %v925_v33 = vsel %vm917_vm3, %v908_v51, %v924_v4  ;;  %v928_v39 = vsel %vm918_vm15, %v914_v1, 1326507024  ;;  %vm916_vm4 = vcmp.lt.s32.totalorder %v8021_v20, 2  ;;  %v920_v35 = vsel %vm918_vm15, %v908_v51, 2102212464 }
 0x12a   : > { %v6404_v30 = vadd.s32 4294967294, %v847_v3  ;;  %v8055_v41 = vsub.s32 %v1047_v48, %v1050_v10  ;;  %v929_v37 = vsel %vm917_vm3, %v911_v62, %v928_v39  ;;  %v899_v44 = vshrl.u32 %v11807_v28, %v898_v21  ;;  %v8080_v3 = vpop.f32.mrb[5].mxu0 }
 0x12b   : > { %v930_v45 = vsel %vm916_vm4, %v927_v15, %v929_v37  ;;  %v1101_v47 = vadd.s32 1, %v6414_v5  ;;  %v926_v48 = vsel %vm916_vm4, %v923_v29, %v925_v33  ;;  %v931_v49 = vshll.u32 %v891_v11, 8 }
 0x12c   : > { %vm6405_vm5 = vcmp.lt.s32.totalorder %v6404_v30, 0  ;;  %v1053_v24 = vsub.s32 0, %v8055_v41  ;;  %v919_v54 = vsel %vm915_vm2, %v899_v44, %v902_v60  ;;  %v921_v19 = vsel %vm917_vm3, %v905_v50, %v920_v35 }
 0x12d   : > { %v850_v26 = vsel %vm6405_vm5, 0, %v6404_v30  ;;  %vm1102_vm6 = vcmp.gt.s32.totalorder %v1101_v47, 0  ;;  %v8073_v23 = vmul.u32.u64.low %v931_v49, %v930_v45  ;;  %v8074_v51 = vmul.u32.u64.high %v931_v49, %v930_v45, %v8073_v23  ;;  %v8089_v30 = vpop.permute.xlu0 %542 }
 0x12e   : > { %v855_v43 = vsub.s32 4294967266, %v850_v26  ;;  %v6411_v21 = vmin.u32 %v1053_v24, %v8055_v41  ;;  %v1103_v55 = vsel %vm1102_vm6, %v1101_v47, 0  ;;  %v922_v60 = vsel %vm916_vm4, %v919_v54, %v921_v19 }
 0x12f   : > { %v8076_v58 = vmul.u32.u64.low %v931_v49, %v926_v48  ;;  %v8077_v31 = vmul.u32.u64.high %v931_v49, %v926_v48, %v8076_v58  ;;  %v1105_v1 = vand.u32 31, %v1103_v55  ;;  %v1098_v50 = vand.u32 8388607, %v11794_v2 }
 0x130   : > { %v1055_v62 = vclz %v6411_v21  ;;  %v856_v4 = vadd.s32 127, %v855_v43  ;;  %v851_v10 = vsub.s32 32, %v850_v26  ;;  %v938_v29 = vmul.u32 %v931_v49, %v922_v60 }
 0x131   : > { %vm940_vm7 = vc.u32 %v8074_v51, %v8076_v58  ;;  %v1106_v5 = vsub.s32 32, %v1105_v1  ;;  %v941_v15 = vadd.s32 1, %v8077_v31  ;;  %v835_v33 = vadd.s32 %v7976_v27, %v7973_v22 }
 0x132   : > { %v6412_v11 = vadd.s32 4294967294, %v1055_v62  ;;  %v857_v39 = vshll.u32 %v856_v4, 23  ;;  %v8096_v35 = vadd.f32 %v7922_v61, %v8089_v30  ;;  %v1099_v44 = vor.u32 8388608, %v1098_v50 }
 0x133   : > { %v942_v20 = vsel %vm940_vm7, %v941_v15, %v8077_v31  ;;  %v1109_v45 = vshrl.u32 %v11809_v32, %v1106_v5  ;;  %v1112_v47 = vshrl.u32 %v11799_v34, %v1106_v5  ;;  %v852_v24 = vshll.u32 %v8024_v42, %v850_v26 }
 0x134   : > { %11976 = vst [vmem:[#allocation16_spill] sm:$0xff] %v8096_v35  ;;  %v943_v37 = vadd.s32 %v942_v20, %v938_v29  ;;  %v853_v48 = vshrl.u32 %v835_v33, %v851_v10  ;;  %vm6413_vm8 = vcmp.lt.s32.totalorder %v6412_v11, 0  ;;  %v1104_v49 = vshrl.u32 %v1103_v55, 5 }
 0x135   : > { %v1108_v22 = vshll.u32 %v11807_v28, %v1105_v1  ;;  %v1111_v27 = vshll.u32 %v11809_v32, %v1105_v1  ;;  %v1115_v54 = vshrl.u32 %v11797_v36, %v1106_v5  ;;  %v858_v61 = vor.u32 4788187, %v857_v39 }
 0x136   : > { %v944_v43 = vadd.s32 536870912, %v943_v37  ;;  %v1114_v19 = vshll.u32 %v11799_v34, %v1105_v1  ;;  %v1117_v21 = vshll.u32 %v11797_v36, %v1105_v1  ;;  %v1118_v23 = vshrl.u32 %v11805_v38, %v1106_v5 }
 0x137   : > { %v8107_v31 = vsel %vm6413_vm8, 0, %v6412_v11  ;;  %v1110_v26 = vor.u32 %v1109_v45, %v1108_v22  ;;  %v1113_v55 = vor.u32 %v1112_v47, %v1111_v27  ;;  %v1120_v60 = vshll.u32 %v11805_v38, %v1105_v1 }
 0x138   : > { %v8109_v42 = vshrl.u32 %v944_v43, 30  ;;  %v1116_v62 = vor.u32 %v1115_v54, %v1114_v19  ;;  %v1119_v4 = vor.u32 %v1118_v23, %v1117_v21  ;;  %v1121_v50 = vshrl.u32 %v11801_v46, %v1106_v5 }
 0x139   : > { %v854_v10 = vor.u32 %v853_v48, %v852_v24  ;;  %v865_v15 = vsub.s32 4, %v8008_v16  ;;  %v1139_v33 = vshll.u32 %v1099_v44, 8  ;;  %v1063_v39 = vsub.s32 4294967266, %v8107_v31 }
 0x13a   : > { %v946_v29 = vshll.u32 %v8109_v42, 30  ;;  %v1107_v11 = vshrl.u32 %v11807_v28, %v1106_v5  ;;  %v1122_v20 = vor.u32 %v1121_v50, %v1120_v60  ;;  %v1198_v45 = vand.u32 2139095040, %v8096_v35 }
 0x13b   : > { %v859_v47 = vand.u32 2147483647, %v858_v61  ;;  %vm1123_vm9 = vcmp.lt.s32.totalorder %v1104_v49, 1  ;;  %vm1126_vm10 = vcmp.lt.s32.totalorder %v1104_v49, 4  ;;  %vm1125_vm11 = vcmp.lt.s32.totalorder %v1104_v49, 3 }
 0x13c   : > { %v8118_v43 = vsub.s32 %v943_v37, %v946_v29  ;;  %v1128_v1 = vsel %vm1126_vm10, %v1116_v62, 2102212464  ;;  %v1131_v24 = vsel %vm1123_vm9, %v1110_v26, %v1113_v55  ;;  %v1132_v48 = vsel %vm1126_vm10, %v1119_v4, 920167782 }
 0x13d   : > { %v1059_v22 = vsub.s32 32, %v8107_v31  ;;  %vm1124_vm12 = vcmp.lt.s32.totalorder %v1104_v49, 2  ;;  %v1133_v27 = vsel %vm1125_vm11, %v1116_v62, %v1132_v48  ;;  %v1064_v54 = vadd.s32 127, %v1063_v39 }
 0x13e   : > { %v949_v44 = vsub.s32 0, %v8118_v43  ;;  %v1134_v5 = vsel %vm1124_vm12, %v1131_v24, %v1133_v27  ;;  %v1135_v19 = vsel %vm1123_vm9, %v1113_v55, %v1116_v62  ;;  %v1136_v21 = vsel %vm1126_vm10, %v1122_v20, 1326507024 }
 0x13f   : > { %v1127_v61 = vsel %vm1123_vm9, %v1107_v11, %v1110_v26  ;;  %v1129_v23 = vsel %vm1125_vm11, %v1113_v55, %v1128_v1  ;;  %v1137_v60 = vsel %vm1125_vm11, %v1119_v4, %v1136_v21  ;;  %v1043_v50 = vadd.s32 %v8000_v7, %v8006_v14 }
 0x140   : > { %v6407_v37 = vmin.u32 %v949_v44, %v8118_v43  ;;  %v1138_v29 = vsel %vm1124_vm12, %v1135_v19, %v1137_v60  ;;  %v8127_v0 = vmul.u32.u64.low %v1139_v33, %v1134_v5  ;;  %v8128_v2 = vmul.u32.u64.high %v1139_v33, %v1134_v5, %v8127_v0 }
 0x141   : > { %v861_v48 = vcvt.s32.f32 %v854_v10  ;;  %v8131_v25 = vmul.u32.u64.low %v1139_v33, %v1138_v29  ;;  %v8132_v24 = vmul.u32.u64.high %v1139_v33, %v1138_v29, %v8131_v25  ;;  %v1130_v62 = vsel %vm1124_vm12, %v1127_v61, %v1129_v23 }
 0x142   : > { %v951_v39 = vclz %v6407_v37  ;;  %v1199_v20 = vshrl.u32 %v1198_v45, 23  ;;  %v1061_v55 = vshrl.u32 %v1043_v50, %v1059_v22  ;;  %v1065_v4 = vshll.u32 %v1064_v54, 23  ;;  %v8148_v22 = vpop.f32.mrb[5].mxu1 }
 0x143   : > { %v862_v26 = vmul.f32 %v861_v48, %v859_v47  ;;  %vm781_vm13 = vcmp.lt.s32.totalorder %v7912_v52, 0  ;;  %v1149_v7 = vadd.s32 1, %v8128_v2  ;;  %v1060_v25 = vshll.u32 %v8055_v41, %v8107_v31 }
 0x144   : > { %v6408_v11 = vadd.s32 4294967294, %v951_v39  ;;  %v6418_v14 = vadd.s32 4294967169, %v1199_v20  ;;  %v8140_v10 = vsel %vm781_vm13, %v865_v15, %v8008_v16  ;;  %v1146_v49 = vmul.u32 %v1139_v33, %v1130_v62 }
 0x145   : > { %vm1148_vm14 = vc.u32 %v8132_v24, %v8127_v0  ;;  %v1073_v45 = vsub.s32 4, %v8038_v63  ;;  %v863_v44 = vxor.u32 2147483648, %v862_v26  ;;  %v1062_v27 = vor.u32 %v1061_v55, %v1060_v25 }
 0x146   : > { %vm6409_vm15 = vcmp.lt.s32.totalorder %v6408_v11, 0  ;;  %v1150_v47 = vsel %vm1148_vm14, %v1149_v7, %v8128_v2  ;;  %v1205_v1 = vadd.s32 1, %v6418_v14  ;;  %v1066_v54 = vor.u32 4788187, %v1065_v4 }
 0x147   : > { %v1151_v16 = vadd.s32 %v1150_v47, %v1146_v49  ;;  %vm989_vm2 = vcmp.lt.s32.totalorder %v7914_v53, 0  ;;  %v11796_v41 = vand.u32 2147483647, %v8096_v35  ;;  %v8154_v31 = vadd.f32 %v7929_v6, %v8089_v30 }
 0x148   : > { %vm1206_vm3 = vcmp.gt.s32.totalorder %v1205_v1, 0  ;;  %vm8158_vm4 = vcmp.le.f32.partialorder %v779_v57, 0.7853982  ;;  %v8162_v15 = vsel %vm6409_vm15, 0, %v6408_v11  ;;  %v8170_v21 = vsel %vm989_vm2, %v1073_v45, %v8038_v63 }
 0x149   : > { %11977 = vst [vmem:[#allocation17_spill] sm:$0xff] %v8154_v31  ;;  %v1152_v33 = vadd.s32 536870912, %v1151_v16  ;;  %v1207_v5 = vsel %vm1206_vm3, %v1205_v1, 0  ;;  %v868_v19 = vsel %vm8158_vm4, 0, %v8140_v10  ;;  %v939_v6 = vadd.s32 %v8076_v58, %v8074_v51 }
 0x14a   : > { %v1209_v57 = vand.u32 31, %v1207_v5  ;;  %v8176_v37 = vsel %vm781_vm13, %v863_v44, %v862_v26  ;;  %v1067_v61 = vand.u32 2147483647, %v1066_v54  ;;  %v1069_v23 = vcvt.s32.f32 %v1062_v27 }
 0x14b   : > { %v8178_v60 = vshrl.u32 %v1152_v33, 30  ;;  %v959_v50 = vsub.s32 4294967266, %v8162_v15  ;;  %v1202_v29 = vand.u32 8388607, %v11796_v41  ;;  %v1406_v63 = vand.u32 2139095040, %v8154_v31 }
 0x14c   : > { %v1210_v48 = vsub.s32 32, %v1209_v57  ;;  %v1208_v51 = vshrl.u32 %v1207_v5, 5  ;;  %v1212_v58 = vshll.u32 %v11807_v28, %v1209_v57  ;;  %v1215_v62 = vshll.u32 %v11809_v32, %v1209_v57 }
 0x14d   : > { %11980 = vst [vmem:[#allocation18_spill] sm:$0xff] %v8178_v60  ;;  %v1154_v39 = vshll.u32 %v8178_v60, 30  ;;  %v1218_v55 = vshll.u32 %v11799_v34, %v1209_v57  ;;  %v1221_v7 = vshll.u32 %v11797_v36, %v1209_v57  ;;  %v1224_v25 = vshll.u32 %v11805_v38, %v1209_v57 }
 0x14e   : > { %v1213_v20 = vshrl.u32 %v11809_v32, %v1210_v48  ;;  %v1216_v26 = vshrl.u32 %v11799_v34, %v1210_v48  ;;  %v1219_v4 = vshrl.u32 %v11797_v36, %v1210_v48  ;;  %v1222_v14 = vshrl.u32 %v11805_v38, %v1210_v48 }
 0x14f   : > { %v8191_v11 = vsub.s32 %v1151_v16, %v1154_v39  ;;  %v1225_v1 = vshrl.u32 %v11801_v46, %v1210_v48  ;;  %v1070_v44 = vmul.f32 %v1069_v23, %v1067_v61  ;;  %v1203_v54 = vor.u32 8388608, %v1202_v29 }
 0x150   : > { %v1214_v49 = vor.u32 %v1213_v20, %v1212_v58  ;;  %v1217_v45 = vor.u32 %v1216_v26, %v1215_v62  ;;  %v1220_v47 = vor.u32 %v1219_v4, %v1218_v55  ;;  %v1223_v33 = vor.u32 %v1222_v14, %v1221_v7 }
 0x151   : > { %v1157_v27 = vsub.s32 0, %v8191_v11  ;;  %v955_v5 = vsub.s32 32, %v8162_v15  ;;  %v960_v16 = vadd.s32 127, %v959_v50  ;;  %v1226_v39 = vor.u32 %v1225_v1, %v1224_v25 }
 0x152   : > { %v1407_v41 = vshrl.u32 %v1406_v63, 23  ;;  %v1211_v34 = vshrl.u32 %v11807_v28, %v1210_v48  ;;  %vm1227_vm5 = vcmp.lt.s32.totalorder %v1208_v51, 1  ;;  %vm1230_vm6 = vcmp.lt.s32.totalorder %v1208_v51, 4 }
 0x153   : > { %v6415_v36 = vmin.u32 %v1157_v27, %v8191_v11  ;;  %vm1229_vm7 = vcmp.lt.s32.totalorder %v1208_v51, 3  ;;  %v1232_v57 = vsel %vm1230_vm6, %v1220_v47, 2102212464  ;;  %v1235_v58 = vsel %vm1227_vm5, %v1214_v49, %v1217_v45 }
 0x154   : > { %v1236_v62 = vsel %vm1230_vm6, %v1223_v33, 920167782  ;;  %vm1228_vm8 = vcmp.lt.s32.totalorder %v1208_v51, 2  ;;  %v1239_v23 = vsel %vm1227_vm5, %v1217_v45, %v1220_v47  ;;  %v1243_v29 = vshll.u32 %v1203_v54, 8 }
 0x155   : > { %v1237_v61 = vsel %vm1229_vm7, %v1220_v47, %v1236_v62  ;;  %v961_v20 = vshll.u32 %v960_v16, 23  ;;  %v1231_v26 = vsel %vm1227_vm5, %v1211_v34, %v1214_v49  ;;  %v1240_v55 = vsel %vm1230_vm6, %v1226_v39, 1326507024  ;;  %v8245_v39 = vpop.f32.mrb[6].mxu0 }
 0x156   : > { %v1238_v50 = vsel %vm1228_vm8, %v1235_v58, %v1237_v61  ;;  %v1159_v63 = vclz %v6415_v36  ;;  %v1233_v4 = vsel %vm1229_vm7, %v1217_v45, %v1232_v57  ;;  %v1241_v7 = vsel %vm1229_vm7, %v1223_v33, %v1240_v55 }
 0x157   : > { %v6426_v14 = vadd.s32 4294967169, %v1407_v41  ;;  %v957_v48 = vshrl.u32 %v939_v6, %v955_v5  ;;  %v1242_v25 = vsel %vm1228_vm8, %v1239_v23, %v1241_v7  ;;  %v1071_v46 = vxor.u32 2147483648, %v1070_v44 }
 0x158   : > { %v8203_v1 = vmul.u32.u64.low %v1243_v29, %v1238_v50  ;;  %v8204_v27 = vmul.u32.u64.high %v1243_v29, %v1238_v50, %v8203_v1  ;;  %v8207_v62 = vmul.u32.u64.low %v1243_v29, %v1242_v25  ;;  %v8208_v47 = vmul.u32.u64.high %v1243_v29, %v1242_v25, %v8207_v62 }
 0x159   : > { %v11804_v34 = vand.u32 2147483647, %v8154_v31  ;;  %v956_v49 = vshll.u32 %v8118_v43, %v8162_v15  ;;  %v962_v36 = vor.u32 4788187, %v961_v20  ;;  %v1234_v45 = vsel %vm1228_vm8, %v1231_v26, %v1233_v4 }
 0x15a   : > { %v1413_v41 = vadd.s32 1, %v6426_v14  ;;  %v8218_v6 = vadd.s32 3, %v868_v19  ;;  %vm8222_vm9 = vcmp.le.f32.partialorder %v987_v59, 0.7853982  ;;  %v6416_v33 = vadd.s32 4294967294, %v1159_v63 }
 0x15b   : > { %v8228_v43 = vadd.f32 %v7931_v12, %v8089_v30  ;;  %v867_v15 = vsel %vm8158_vm4, %v7912_v52, %v8176_v37  ;;  %v958_v51 = vor.u32 %v957_v48, %v956_v49  ;;  %v1253_v10 = vadd.s32 1, %v8204_v27 }
 0x15c   : > { %11981 = vst [vmem:[#allocation19_spill] sm:$0xff] %v8218_v6  ;;  %vm1414_vm10 = vcmp.gt.s32.totalorder %v1413_v41, 0  ;;  %v1072_v59 = vsel %vm989_vm2, %v1071_v46, %v1070_v44  ;;  %v1076_v19 = vsel %vm8222_vm9, 0, %v8170_v21  ;;  %v1250_v5 = vmul.u32 %v1243_v29, %v1234_v45 }
 0x15d   : > { %vm1252_vm11 = vc.u32 %v8208_v47, %v8203_v1  ;;  %v963_v12 = vand.u32 2147483647, %v962_v36  ;;  %v1410_v2 = vand.u32 8388607, %v11804_v34  ;;  %v1415_v37 = vsel %vm1414_vm10, %v1413_v41, 0 }
 0x15e   : > { %v1254_v16 = vsel %vm1252_vm11, %v1253_v10, %v8204_v27  ;;  %7001 = vcosq.f32 %v867_v15  ;;  %vm6417_vm12 = vcmp.lt.s32.totalorder %v6416_v33, 0  ;;  %v1302_v44 = vand.u32 2139095040, %v8228_v43 }
 0x15f   : > { %v1255_v46 = vadd.s32 %v1254_v16, %v1250_v5  ;;  %7003 = vsinq.f32 %v867_v15  ;;  %v8248_v21 = vadd.s32 3, %v1076_v19  ;;  %v965_v57 = vcvt.s32.f32 %v958_v51 }
 0x160   : > { %v1417_v58 = vand.u32 31, %v1415_v37  ;;  %v8253_v61 = vsel %vm8222_vm9, %v7914_v53, %v1072_v59  ;;  %v8257_v23 = vadd.s32 %v8127_v0, %v8132_v24  ;;  %v11803_v20 = vand.u32 2147483647, %v8228_v43 }
 0x161   : > { %11984 = vst [vmem:[#allocation20_spill] sm:$0xff] %v8248_v21  ;;  %v1256_v29 = vadd.s32 536870912, %v1255_v46  ;;  %v966_v26 = vmul.f32 %v965_v57, %v963_v12  ;;  %v8260_v50 = vsel %vm6417_vm12, 0, %v6416_v33  ;;  %v1411_v55 = vor.u32 8388608, %v1410_v2 }
 0x162   : > { %v1418_v63 = vsub.s32 32, %v1417_v58  ;;  %v1420_v7 = vshll.u32 %v11807_v28, %v1417_v58  ;;  %v1423_v14 = vshll.u32 %v11809_v32, %v1417_v58  ;;  %v1303_v48 = vshrl.u32 %v1302_v44, 23 }
 0x163   : > { %v8262_v4 = vshrl.u32 %v1256_v29, 30  ;;  %v11985_v27 = vmov 2131351028   ;;  %v11986_v62 = vmov 2102212464   ;;  %v1416_v45 = vshrl.u32 %v1415_v37, 5 }
 0x164   : > { %v1421_v25 = vshrl.u32 %v11809_v32, %v1418_v63  ;;  %v1424_v0 = vshrl.u32 %v11985_v27, %v1418_v63  ;;  %v1426_v24 = vshll.u32 %v11985_v27, %v1417_v58  ;;  %v1427_v49 = vshrl.u32 %v11986_v62, %v1418_v63 }
 0x165   : > { %v1258_v36 = vshll.u32 %v8262_v4, 30  ;;  %v1429_v41 = vshll.u32 %v11986_v62, %v1417_v58  ;;  %v1430_v54 = vshrl.u32 %v11805_v38, %v1418_v63  ;;  %vm885_vm13 = vcmp.lt.s32.totalorder %v7916_v56, 0 }
 0x166   : > { %v1422_v33 = vor.u32 %v1421_v25, %v1420_v7  ;;  %v1425_v15 = vor.u32 %v1424_v0, %v1423_v14  ;;  %v1428_v51 = vor.u32 %v1427_v49, %v1426_v24  ;;  %v11987_v10 = vmov 1326507024  }
 0x167   : > { %v1433_v59 = vshrl.u32 %v11987_v10, %v1418_v63  ;;  %v1167_v19 = vsub.s32 4294967266, %v8260_v50  ;;  %v8276_v5 = vsub.s32 %v1255_v46, %v1258_v36  ;;  %v1431_v12 = vor.u32 %v1430_v54, %v1429_v41 }
 0x168   : > { %v1432_v16 = vshll.u32 %v11805_v38, %v1417_v58  ;;  %v967_v2 = vxor.u32 2147483648, %v966_v26  ;;  %v1163_v37 = vsub.s32 32, %v8260_v50  ;;  %v1451_v44 = vshll.u32 %v1411_v55, 8  ;;  %v8282_v29 = vpop.eup %7001 }
 0x169   : > { %v1306_v57 = vand.u32 8388607, %v11803_v20  ;;  %11988 = vst [vmem:[#allocation21_spill] sm:$0xff] %v8282_v29  ;;  %v1261_v7 = vsub.s32 0, %v8276_v5  ;;  %vm1435_vm14 = vcmp.lt.s32.totalorder %v1416_v45, 1  ;;  %vm1438_vm15 = vcmp.lt.s32.totalorder %v1416_v45, 4  ;;  %v8285_v25 = vpop.eup %7003 }
 0x16a   : > { %v1434_v14 = vor.u32 %v1433_v59, %v1432_v16  ;;  %11989 = vst [vmem:[#allocation22_spill] sm:$0xff] %v8285_v25  ;;  %v11990_v46 = vand.u32 2147483647, %v7916_v56  ;;  %v1419_v55 = vshrl.u32 %v11807_v28, %v1418_v63  ;;  %v1440_v0 = vsel %vm1438_vm15, %v1428_v51, 2102212464  ;;  %v8299_v28 = vpop.f32.mrb[6].mxu1 }
 0x16b   : > { %v1443_v24 = vsel %vm1435_vm14, %v1422_v33, %v1425_v15  ;;  %v6422_v49 = vadd.s32 4294967169, %v1303_v48  ;;  %v1168_v36 = vadd.s32 127, %v1167_v19  ;;  %v6419_v41 = vmin.u32 %v1261_v7, %v8276_v5 }
 0x16c   : > { %vm8289_vm2 = vcmp.le.f32.partialorder %v11990_v46, 0.7853982  ;;  %vm1437_vm3 = vcmp.lt.s32.totalorder %v1416_v45, 3  ;;  %v1444_v54 = vsel %vm1438_vm15, %v1431_v12, 920167782  ;;  %vm1436_vm4 = vcmp.lt.s32.totalorder %v1416_v45, 2 }
 0x16d   : > { %v1439_v59 = vsel %vm1435_vm14, %v1419_v55, %v1422_v33  ;;  %v1445_v16 = vsel %vm1437_vm3, %v1428_v51, %v1444_v54  ;;  %v1447_v20 = vsel %vm1435_vm14, %v1425_v15, %v1428_v51  ;;  %v1263_v46 = vclz %v6419_v41 }
 0x16e   : > { %v1441_v34 = vsel %vm1437_vm3, %v1425_v15, %v1440_v0  ;;  %v1446_v38 = vsel %vm1436_vm4, %v1443_v24, %v1445_v16  ;;  %v1448_v63 = vsel %vm1438_vm15, %v1434_v14, 1326507024  ;;  %v1309_v7 = vadd.s32 1, %v6422_v49 }
 0x16f   : > { %v1449_v32 = vsel %vm1437_vm3, %v1431_v12, %v1448_v63  ;;  %v8301_v48 = vmul.u32.u64.low %v1451_v44, %v1446_v38  ;;  %v8302_v19 = vmul.u32.u64.high %v1451_v44, %v1446_v38, %v8301_v48  ;;  %v968_v9 = vsel %vm885_vm13, %v967_v2, %v966_v26 }
 0x170   : > { %v1169_v33 = vshll.u32 %v1168_v36, 23  ;;  %v6420_v55 = vadd.s32 4294967294, %v1263_v46  ;;  %v1450_v51 = vsel %vm1436_vm4, %v1447_v20, %v1449_v32  ;;  %v1165_v15 = vshrl.u32 %v8257_v23, %v1163_v37 }
 0x171   : > { %v8309_v0 = vmul.u32.u64.low %v1451_v44, %v1450_v51  ;;  %v8310_v24 = vmul.u32.u64.high %v1451_v44, %v1450_v51, %v8309_v0  ;;  %vm1310_vm5 = vcmp.gt.s32.totalorder %v1309_v7, 0  ;;  %v1442_v12 = vsel %vm1436_vm4, %v1439_v59, %v1441_v34 }
 0x172   : > { %vm6421_vm6 = vcmp.lt.s32.totalorder %v6420_v55, 0  ;;  %v1307_v38 = vor.u32 8388608, %v1306_v57  ;;  %v1311_v14 = vsel %vm1310_vm5, %v1309_v7, 0  ;;  %7005 = vcosq.f32 %v8253_v61 }
 0x173   : > { %v1461_v49 = vadd.s32 1, %v8302_v19  ;;  %v1313_v26 = vand.u32 31, %v1311_v14  ;;  %v8317_v2 = vadd.f32 %v7933_v13, %v8089_v30  ;;  %7007 = vsinq.f32 %v8253_v61 }
 0x174   : > { %v8323_v32 = vsel %vm8289_vm2, %v7916_v56, %v968_v9  ;;  %v1164_v34 = vshll.u32 %v8191_v11, %v8260_v50  ;;  %v1170_v23 = vor.u32 4788187, %v1169_v33  ;;  %v8327_v20 = vsel %vm6421_vm6, 0, %v6420_v55 }
 0x175   : > { %11993 = vst [vmem:[#allocation23_spill] sm:$0xff] %v8317_v2  ;;  %v1458_v45 = vmul.u32 %v1451_v44, %v1442_v12  ;;  %vm1460_vm7 = vc.u32 %v8310_v24, %v8301_v48  ;;  %v1314_v37 = vsub.s32 32, %v1313_v26  ;;  %v1251_v30 = vadd.s32 %v8203_v1, %v8208_v47 }
 0x176   : > { %v1166_v13 = vor.u32 %v1165_v15, %v1164_v34  ;;  %v1462_v61 = vsel %vm1460_vm7, %v1461_v49, %v8302_v19  ;;  %v8334_v57 = vshll.u32 %v1307_v38, 8  ;;  %v11994_v36 = vmov 2475754826  }
 0x177   : > { %v1463_v9 = vadd.s32 %v1462_v61, %v1458_v45  ;;  %v1317_v41 = vshrl.u32 %v11994_v36, %v1314_v37  ;;  %v1320_v11 = vshrl.u32 %v11985_v27, %v1314_v37  ;;  %v1271_v44 = vsub.s32 4294967266, %v8327_v20 }
 0x178   : > { %v11995_v54 = vmov 683565275   ;;  %v1319_v16 = vshll.u32 %v11994_v36, %v1313_v26  ;;  %v1323_v46 = vshrl.u32 %v11986_v62, %v1314_v37  ;;  %v1171_v1 = vand.u32 2147483647, %v1170_v23 }
 0x179   : > { %v1316_v59 = vshll.u32 %v11995_v54, %v1313_v26  ;;  %v1464_v47 = vadd.s32 536870912, %v1463_v9  ;;  %v1312_v63 = vshrl.u32 %v1311_v14, 5  ;;  %v1322_v19 = vshll.u32 %v11985_v27, %v1313_v26 }
 0x17a   : > { %v1321_v33 = vor.u32 %v1320_v11, %v1319_v16  ;;  %v1325_v55 = vshll.u32 %v11986_v62, %v1313_v26  ;;  %v11996_v51 = vmov 920167782   ;;  %v1173_v0 = vcvt.s32.f32 %v1166_v13 }
 0x17b   : > { %v1318_v7 = vor.u32 %v1317_v41, %v1316_v59  ;;  %v1326_v15 = vshrl.u32 %v11996_v51, %v1314_v37  ;;  %v8346_v12 = vshrl.u32 %v1464_v47, 30  ;;  %v1329_v38 = vshrl.u32 %v11987_v10, %v1314_v37 }
 0x17c   : > { %v1510_v49 = vand.u32 2139095040, %v8317_v2  ;;  %v1272_v34 = vadd.s32 127, %v1271_v44  ;;  %v1324_v45 = vor.u32 %v1323_v46, %v1322_v19  ;;  %v1328_v14 = vshll.u32 %v11996_v51, %v1313_v26  ;;  %v8351_v61 = vpop.eup %7005 }
 0x17d   : > { %v1327_v23 = vor.u32 %v1326_v15, %v1325_v55  ;;  %11997 = vst [vmem:[#allocation24_spill] sm:$0xff] %v8351_v61  ;;  %v1174_v41 = vmul.f32 %v1173_v0, %v1171_v1  ;;  %v1281_v11 = vsub.s32 4, %v8262_v4  ;;  %v1466_v59 = vshll.u32 %v8346_v12, 30  ;;  %v8355_v13 = vpop.eup %7007 }
 0x17e   : > { %vm1331_vm8 = vcmp.lt.s32.totalorder %v1312_v63, 1  ;;  %11998 = vst [vmem:[#allocation25_spill] sm:$0xff] %v8355_v13  ;;  %v1267_v16 = vsub.s32 32, %v8327_v20  ;;  %v1330_v47 = vor.u32 %v1329_v38, %v1328_v14  ;;  %vm1334_vm9 = vcmp.lt.s32.totalorder %v1312_v63, 4 }
 0x17f   : > { %v1339_v44 = vsel %vm1331_vm8, %v1318_v7, %v1321_v33  ;;  %vm1197_vm10 = vcmp.lt.s32.totalorder %v8096_v35, 0  ;;  %v8360_v46 = vsub.s32 %v1463_v9, %v1466_v59  ;;  %vm1333_vm11 = vcmp.lt.s32.totalorder %v1312_v63, 3 }
 0x180   : > { %v1340_v26 = vsel %vm1334_vm9, %v1327_v23, 920167782  ;;  %v1511_v1 = vshrl.u32 %v1510_v49, 23  ;;  %v1273_v19 = vshll.u32 %v1272_v34, 23  ;;  %vm1332_vm12 = vcmp.lt.s32.totalorder %v1312_v63, 2 }
 0x181   : > { %v1336_v55 = vsel %vm1334_vm9, %v1324_v45, 2102212464  ;;  %v1341_v15 = vsel %vm1333_vm11, %v1324_v45, %v1340_v26  ;;  %v1469_v0 = vsub.s32 0, %v8360_v46  ;;  %v1315_v38 = vshrl.u32 %v11995_v54, %v1314_v37 }
 0x182   : > { %v1342_v14 = vsel %vm1332_vm12, %v1339_v44, %v1341_v15  ;;  %v1343_v50 = vsel %vm1331_vm8, %v1321_v33, %v1324_v45  ;;  %vm11872_vm14 = vcmp.lt.s32.totalorder %v7935_v17, 0  ;;  %v1269_v9 = vshrl.u32 %v1251_v30, %v1267_v16 }
 0x183   : > { %v1344_v59 = vsel %vm1334_vm9, %v1330_v47, 1326507024  ;;  %v8372_v49 = vmul.u32.u64.low %v8334_v57, %v1342_v14  ;;  %v8373_v34 = vmul.u32.u64.high %v8334_v57, %v1342_v14, %v8372_v49  ;;  %v6427_v26 = vmin.u32 %v1469_v0, %v8360_v46 }
 0x184   : > { %v1335_v8 = vsel %vm1331_vm8, %v1315_v38, %v1318_v7  ;;  %v1337_v37 = vsel %vm1333_vm11, %v1321_v33, %v1336_v55  ;;  %v1345_v44 = vsel %vm1333_vm11, %v1327_v23, %v1344_v59  ;;  %v1268_v45 = vshll.u32 %v8276_v5, %v8327_v20  ;;  %v8390_v55 = vpop.f32.mrb[7].mxu0  ;;  %v8409_v59 = vpop.permute.xlu1 %547 }
 0x185   : > { %v1274_v15 = vor.u32 4788187, %v1273_v19  ;;  %v1346_v30 = vsel %vm1332_vm12, %v1343_v50, %v1345_v44  ;;  %v6430_v16 = vadd.s32 4294967169, %v1511_v1  ;;  %7009 = vcosq.f32 %v8323_v32 }
 0x186   : > { %v1471_v47 = vclz %v6427_v26  ;;  %v8385_v14 = vmul.u32.u64.low %v8334_v57, %v1346_v30  ;;  %v8386_v53 = vmul.u32.u64.high %v8334_v57, %v1346_v30, %v8385_v14  ;;  %v1270_v0 = vor.u32 %v1269_v9, %v1268_v45 }
 0x187   : > { %v1338_v7 = vsel %vm1332_vm12, %v1335_v8, %v1337_v37  ;;  %v1357_v33 = vadd.s32 1, %v8373_v34  ;;  %v1517_v23 = vadd.s32 1, %v6430_v16  ;;  %7011 = vsinq.f32 %v8323_v32 }
 0x188   : > { %v1175_v5 = vxor.u32 2147483648, %v1174_v41  ;;  %v11999_v20 = vand.u32 2147483647, %v8096_v35  ;;  %v6428_v1 = vadd.s32 4294967294, %v1471_v47  ;;  %v1275_v19 = vand.u32 2147483647, %v1274_v15 }
 0x189   : > { %v8402_v8 = vsel %vm1197_vm10, %v1281_v11, %v8262_v4  ;;  %v12002_v63 = vand.u32 2147483647, %v8317_v2  ;;  %vm1518_vm3 = vcmp.gt.s32.totalorder %v1517_v23, 0  ;;  %v1354_v32 = vmul.u32 %v8334_v57, %v1338_v7 }
 0x18a   : > { %vm8395_vm15 = vcmp.le.f32.partialorder %v11999_v20, 0.7853982  ;;  %vm6429_vm4 = vcmp.lt.s32.totalorder %v6428_v1, 0  ;;  %vm1356_vm5 = vc.u32 %v8386_v53, %v8372_v49  ;;  %v1519_v9 = vsel %vm1518_vm3, %v1517_v23, 0 }
 0x18b   : > { %v1514_v38 = vand.u32 8388607, %v12002_v63  ;;  %v1277_v26 = vcvt.s32.f32 %v1270_v0  ;;  %v8411_v37 = vsel %vm6429_vm4, 0, %v6428_v1  ;;  %v1358_v44 = vsel %vm1356_vm5, %v1357_v33, %v8373_v34 }
 0x18c   : > { %v1521_v4 = vand.u32 31, %v1519_v9  ;;  %v8416_v11 = vsel %vm11872_vm14, %v1175_v5, %v1174_v41  ;;  %v1359_v45 = vadd.s32 %v1358_v44, %v1354_v32  ;;  %v8423_v15 = vadd.f32 %v7953_v40, %v8409_v59 }
 0x18d   : > { %v8425_v30 = vmul.f32 %v1277_v26, %v1275_v19  ;;  %v1459_v16 = vadd.s32 %v8301_v48, %v8310_v24  ;;  %v1515_v34 = vor.u32 8388608, %v1514_v38  ;;  %v1479_v14 = vsub.s32 4294967266, %v8411_v37 }
 0x18e   : > { %12003 = vst [vmem:[#allocation26_spill] sm:$0xff] %v8423_v15  ;;  %v1522_v47 = vsub.s32 32, %v1521_v4  ;;  %v1360_v41 = vadd.s32 536870912, %v1359_v45  ;;  %v1524_v0 = vshll.u32 %v11995_v54, %v1521_v4  ;;  %v1527_v7 = vshll.u32 %v11994_v36, %v1521_v4 }
 0x18f   : > { %v1530_v40 = vshll.u32 %v11985_v27, %v1521_v4  ;;  %v8436_v20 = vpop.eup %7009  ;;  %v1520_v24 = vshrl.u32 %v1519_v9, 5  ;;  %v1533_v1 = vshll.u32 %v11986_v62, %v1521_v4  ;;  %v8442_v26 = vshll.u32 %v1515_v34, 8 }
 0x190   : > { %v1525_v33 = vshrl.u32 %v11994_v36, %v1522_v47  ;;  %v1528_v23 = vshrl.u32 %v11985_v27, %v1522_v47  ;;  %v1531_v5 = vshrl.u32 %v11986_v62, %v1522_v47  ;;  %v8438_v48 = vshrl.u32 %v1360_v41, 30 }
 0x191   : > { %v1534_v19 = vshrl.u32 %v11996_v51, %v1522_v47  ;;  %v8444_v44 = vpop.eup %7011  ;;  %v12004_v57 = vand.u32 2147483647, %v7935_v17  ;;  %v12005_v61 = vmov 0  ;;  %v1614_v13 = vand.u32 2139095040, %v8423_v15 }
 0x192   : > { %v1526_v63 = vor.u32 %v1525_v33, %v1524_v0  ;;  %v1529_v38 = vor.u32 %v1528_v23, %v1527_v7  ;;  %v1532_v32 = vor.u32 %v1531_v5, %v1530_v40  ;;  %v1362_v41 = vshll.u32 %v8438_v48, 30 }
 0x193   : > { %vm8448_vm6 = vcmp.le.f32.partialorder %v12004_v57, 0.7853982  ;;  %v1535_v9 = vor.u32 %v1534_v19, %v1533_v1  ;;  %v8456_v0 = vadd.f32 %v8010_v18, %v8409_v59  ;;  %v1475_v34 = vsub.s32 32, %v8411_v37 }
 0x194   : > { %v12006_v61 = vsel %vm8448_vm6, 4294967295, %v12005_v61  ;;  %v1480_v7 = vadd.s32 127, %v1479_v14  ;;  %v1536_v33 = vshll.u32 %v11996_v51, %v1521_v4  ;;  %v1537_v23 = vshrl.u32 %v11987_v10, %v1522_v47 }
 0x195   : > { %12007 = vst [vmem:[#allocation27_spill] sm:$0xff] %v12006_v61  ;;  %12008 = vst [vmem:[#allocation28_spill] sm:$0xff] %v8456_v0  ;;  %v8461_v57 = vsub.s32 %v1359_v45, %v1362_v41  ;;  %vm1539_vm7 = vcmp.lt.s32.totalorder %v1520_v24, 1  ;;  %vm1541_vm8 = vcmp.lt.s32.totalorder %v1520_v24, 3  ;;  %vm1542_vm9 = vcmp.lt.s32.totalorder %v1520_v24, 4 }
 0x196   : > { %v1538_v40 = vor.u32 %v1537_v23, %v1536_v33  ;;  %v1544_v5 = vsel %vm1542_vm9, %v1532_v32, 2102212464  ;;  %v1547_v1 = vsel %vm1539_vm7, %v1526_v63, %v1529_v38  ;;  %v1548_v19 = vsel %vm1542_vm9, %v1535_v9, 920167782 }
 0x197   : > { %v1365_v18 = vsub.s32 0, %v8461_v57  ;;  %v1523_v21 = vshrl.u32 %v11995_v54, %v1522_v47  ;;  %vm1540_vm11 = vcmp.lt.s32.totalorder %v1520_v24, 2  ;;  %v1549_v14 = vsel %vm1541_vm8, %v1532_v32, %v1548_v19 }
 0x198   : > { %v1481_v4 = vshll.u32 %v1480_v7, 23  ;;  %v1550_v29 = vsel %vm1540_vm11, %v1547_v1, %v1549_v14  ;;  %v1551_v45 = vsel %vm1539_vm7, %v1529_v38, %v1532_v32  ;;  %v1552_v41 = vsel %vm1542_vm9, %v1538_v40, 1326507024 }
 0x199   : > { %v6423_v25 = vmin.u32 %v1365_v18, %v8461_v57  ;;  %v1543_v33 = vsel %vm1539_vm7, %v1523_v21, %v1526_v63  ;;  %v1545_v23 = vsel %vm1541_vm8, %v1529_v38, %v1544_v5  ;;  %v1553_v52 = vsel %vm1541_vm8, %v1535_v9, %v1552_v41  ;;  %v8499_v18 = vpop.f32.mrb[7].mxu1 }
 0x19a   : > { %v1554_v6 = vsel %vm1540_vm11, %v1551_v45, %v1553_v52  ;;  %v8475_v47 = vmul.u32.u64.low %v8442_v26, %v1550_v29  ;;  %v8476_v60 = vmul.u32.u64.high %v8442_v26, %v1550_v29, %v8475_v47  ;;  %v1615_v7 = vshrl.u32 %v1614_v13, 23 }
 0x19b   : > { %vm1405_vm12 = vcmp.lt.s32.totalorder %v8154_v31, 0  ;;  %v1477_v32 = vshrl.u32 %v1459_v16, %v1475_v34  ;;  %v1367_v40 = vclz %v6423_v25  ;;  %v1179_v21 = vsel %vm8448_vm6, %v7935_v17, %v8416_v11 }
 0x19c   : > { %v8481_v1 = vmul.u32.u64.low %v8442_v26, %v1554_v6  ;;  %v8482_v19 = vmul.u32.u64.high %v8442_v26, %v1554_v6, %v8481_v1  ;;  %v1279_v52 = vxor.u32 2147483648, %v8425_v30  ;;  %v1546_v29 = vsel %vm1540_vm11, %v1543_v33, %v1545_v23 }
 0x19d   : > { %v6434_v63 = vadd.s32 4294967169, %v1615_v7  ;;  %v1476_v13 = vshll.u32 %v8360_v46, %v8411_v37  ;;  %v1482_v38 = vor.u32 4788187, %v1481_v4  ;;  %v6424_v16 = vadd.s32 4294967294, %v1367_v40 }
 0x19e   : > { %v11824_v25 = vand.u32 2147483647, %v8423_v15  ;;  %v1489_v6 = vsub.s32 4, %v8346_v12  ;;  %v1565_v9 = vadd.s32 1, %v8476_v60  ;;  %v1822_v5 = vand.u32 2139095040, %v8456_v0 }
 0x19f   : > { %v1621_v34 = vadd.s32 1, %v6434_v63  ;;  %v1478_v11 = vor.u32 %v1477_v32, %v1476_v13  ;;  %vm6425_vm3 = vcmp.lt.s32.totalorder %v6424_v16, 0  ;;  %v1562_v24 = vmul.u32 %v8442_v26, %v1546_v29 }
 0x1a0   : > { %vm1564_vm4 = vc.u32 %v8482_v19, %v8475_v47  ;;  %v1280_v46 = vsel %vm1197_vm10, %v1279_v52, %v8425_v30  ;;  %v8504_v37 = vsel %vm6425_vm3, 0, %v6424_v16  ;;  %v1483_v4 = vand.u32 2147483647, %v1482_v38 }
 0x1a1   : > { %v1566_v14 = vsel %vm1564_vm4, %v1565_v9, %v8476_v60  ;;  %vm1622_vm5 = vcmp.gt.s32.totalorder %v1621_v34, 0  ;;  %v1375_v45 = vsub.s32 4294967266, %v8504_v37  ;;  %v8510_v26 = vand.u32 8388607, %v11824_v25 }
 0x1a2   : > { %v1567_v41 = vadd.s32 %v1566_v14, %v1562_v24  ;;  %7013 = vcosq.f32 %v1179_v21  ;;  %v12009_v33 = vsel %vm8395_vm15, 0, %v8402_v8  ;;  %v1623_v30 = vsel %vm1622_vm5, %v1621_v34, 0 }
 0x1a3   : > { %v8516_v23 = vadd.s32 3, %v12009_v33  ;;  %v1823_v7 = vshrl.u32 %v1822_v5, 23  ;;  %7015 = vsinq.f32 %v1179_v21  ;;  %v1485_v60 = vcvt.s32.f32 %v1478_v11 }
 0x1a4   : > { %v1376_v32 = vadd.s32 127, %v1375_v45  ;;  %v1568_v40 = vadd.s32 536870912, %v1567_v41  ;;  %v8521_v1 = vsel %vm8395_vm15, %v8096_v35, %v1280_v46  ;;  %v8526_v52 = vsel %vm1405_vm12, %v1489_v6, %v8346_v12 }
 0x1a5   : > { %12010 = vst [vmem:[#allocation29_spill] sm:$0xff] %v8516_v23  ;;  %v1355_v8 = vadd.s32 %v8372_v49, %v8386_v53  ;;  %v1625_v29 = vand.u32 31, %v1623_v30  ;;  %v8530_v63 = vmul.f32 %v1485_v60, %v1483_v4  ;;  %v1619_v13 = vor.u32 8388608, %v8510_v26 }
 0x1a6   : > { %v8532_v21 = vshrl.u32 %v1568_v40, 30  ;;  %v1371_v50 = vsub.s32 32, %v8504_v37  ;;  %v8537_v16 = vshrl.u32 %v1623_v30, 5  ;;  %v6442_v34 = vadd.s32 4294967169, %v1823_v7 }
 0x1a7   : > { %v1626_v9 = vsub.s32 32, %v1625_v29  ;;  %v1377_v12 = vshll.u32 %v1376_v32, 23  ;;  %v1628_v53 = vshll.u32 %v11995_v54, %v1625_v29  ;;  %v1631_v49 = vshll.u32 %v11994_v36, %v1625_v29 }
 0x1a8   : > { %12011 = vst [vmem:[#allocation30_spill] sm:$0xff] %v8532_v21  ;;  %v1570_v6 = vshll.u32 %v8532_v21, 30  ;;  %v1634_v24 = vshll.u32 %v11985_v27, %v1625_v29  ;;  %v1637_v4 = vshll.u32 %v11986_v62, %v1625_v29  ;;  %v1640_v26 = vshll.u32 %v11996_v51, %v1625_v29 }
 0x1a9   : > { %v1629_v5 = vshrl.u32 %v11994_v36, %v1626_v9  ;;  %v1632_v11 = vshrl.u32 %v11985_v27, %v1626_v9  ;;  %v1635_v46 = vshrl.u32 %v11986_v62, %v1626_v9  ;;  %v1638_v45 = vshrl.u32 %v11996_v51, %v1626_v9 }
 0x1aa   : > { %v8546_v14 = vsub.s32 %v1567_v41, %v1570_v6  ;;  %v1641_v60 = vshrl.u32 %v11987_v10, %v1626_v9  ;;  %v1372_v32 = vshll.u32 %v8461_v57, %v8504_v37  ;;  %v1373_v40 = vshrl.u32 %v1355_v8, %v1371_v50 }
 0x1ab   : > { %v1630_v33 = vor.u32 %v1629_v5, %v1628_v53  ;;  %v1633_v30 = vor.u32 %v1632_v11, %v1631_v49  ;;  %v1636_v7 = vor.u32 %v1635_v46, %v1634_v24  ;;  %v1639_v38 = vor.u32 %v1638_v45, %v1637_v4 }
 0x1ac   : > { %v1573_v25 = vsub.s32 0, %v8546_v14  ;;  %v8555_v41 = vpop.eup %7013  ;;  %v1378_v6 = vor.u32 4788187, %v1377_v12  ;;  %v1642_v35 = vor.u32 %v1641_v60, %v1640_v26  ;;  %vm1643_vm10 = vcmp.lt.s32.totalorder %v8537_v16, 1 }
 0x1ad   : > { %12012 = vst [vmem:[#allocation31_spill] sm:$0xff] %v8555_v41  ;;  %v1829_v23 = vadd.s32 1, %v6442_v34  ;;  %v8558_v29 = vpop.eup %7015  ;;  %v1627_v49 = vshrl.u32 %v11995_v54, %v1626_v9  ;;  %vm1646_vm15 = vcmp.lt.s32.totalorder %v8537_v16, 4  ;;  %v1651_v57 = vsel %vm1643_vm10, %v1630_v33, %v1633_v30 }
 0x1ae   : > { %12013 = vst [vmem:[#allocation32_spill] sm:$0xff] %v8558_v29  ;;  %v6431_v53 = vmin.u32 %v1573_v25, %v8546_v14  ;;  %vm1645_vm7 = vcmp.lt.s32.totalorder %v8537_v16, 3  ;;  %v1652_v37 = vsel %vm1646_vm15, %v1639_v38, 920167782  ;;  %v1655_v8 = vsel %vm1643_vm10, %v1633_v30, %v1636_v7 }
 0x1af   : > { %v1656_v50 = vsel %vm1646_vm15, %v1642_v35, 1326507024  ;;  %vm1644_vm8 = vcmp.lt.s32.totalorder %v8537_v16, 2  ;;  %v1648_v34 = vsel %vm1646_vm15, %v1636_v7, 2102212464  ;;  %v1653_v25 = vsel %vm1645_vm7, %v1636_v7, %v1652_v37 }
 0x1b0   : > { %v1575_v12 = vclz %v6431_v53  ;;  %v1374_v9 = vor.u32 %v1373_v40, %v1372_v32  ;;  %v1654_v5 = vsel %vm1644_vm8, %v1651_v57, %v1653_v25  ;;  %v1657_v11 = vsel %vm1645_vm7, %v1639_v38, %v1656_v50 }
 0x1b1   : > { %v1659_v24 = vshll.u32 %v1619_v13, 8  ;;  %v1647_v4 = vsel %vm1643_vm10, %v1627_v49, %v1630_v33  ;;  %v1658_v35 = vsel %vm1644_vm8, %v1655_v8, %v1657_v11  ;;  %vm1830_vm9 = vcmp.gt.s32.totalorder %v1829_v23, 0 }
 0x1b2   : > { %v6432_v46 = vadd.s32 4294967294, %v1575_v12  ;;  %v1649_v45 = vsel %vm1645_vm7, %v1633_v30, %v1648_v34  ;;  %v1831_v60 = vsel %vm1830_vm9, %v1829_v23, 0  ;;  %v1379_v32 = vand.u32 2147483647, %v1378_v6  ;;  %v8596_v6 = vpop.f32.mrb[8].mxu0 }
 0x1b3   : > { %v8581_v26 = vmul.u32.u64.low %v1659_v24, %v1658_v35  ;;  %v8582_v7 = vmul.u32.u64.high %v1659_v24, %v1658_v35, %v8581_v26  ;;  %v8584_v40 = vmul.u32.u64.low %v1659_v24, %v1654_v5  ;;  %v8585_v38 = vmul.u32.u64.high %v1659_v24, %v1654_v5, %v8584_v40 }
 0x1b4   : > { %vm6433_vm11 = vcmp.lt.s32.totalorder %v6432_v46, 0  ;;  %7017 = vcosq.f32 %v8521_v1  ;;  %v1833_v33 = vand.u32 31, %v1831_v60  ;;  %v8591_v53 = vadd.f32 %v8080_v3, %v8409_v59 }
 0x1b5   : > { %v1578_v13 = vsel %vm6433_vm11, 0, %v6432_v46  ;;  %v1487_v30 = vxor.u32 2147483648, %v8530_v63  ;;  %v1381_v49 = vcvt.s32.f32 %v1374_v9  ;;  %v1650_v23 = vsel %vm1644_vm8, %v1647_v4, %v1649_v45 }
 0x1b6   : > { %v1583_v57 = vsub.s32 4294967266, %v1578_v13  ;;  %v1563_v37 = vadd.s32 %v8475_v47, %v8482_v19  ;;  %v1579_v8 = vsub.s32 32, %v1578_v13  ;;  %vm1668_vm3 = vc.u32 %v8582_v7, %v8584_v40 }
 0x1b7   : > { %v1834_v50 = vsub.s32 32, %v1833_v33  ;;  %v8602_v12 = vmul.f32 %v1381_v49, %v1379_v32  ;;  %v1669_v34 = vadd.s32 1, %v8585_v38  ;;  %v12014_v25 = vand.u32 2147483647, %v8456_v0 }
 0x1b8   : > { %v1584_v3 = vadd.s32 127, %v1583_v57  ;;  %v1666_v16 = vmul.u32 %v1659_v24, %v1650_v23  ;;  %v8607_v5 = vshrl.u32 %v1831_v60, 5  ;;  %v1836_v46 = vshll.u32 %v11995_v54, %v1833_v33 }
 0x1b9   : > { %v1826_v9 = vand.u32 8388607, %v12014_v25  ;;  %v1837_v11 = vshrl.u32 %v11994_v36, %v1834_v50  ;;  %v1840_v47 = vshrl.u32 %v11985_v27, %v1834_v50  ;;  %v1670_v19 = vsel %vm1668_vm3, %v1669_v34, %v8585_v38 }
 0x1ba   : > { %v1839_v4 = vshll.u32 %v11994_v36, %v1833_v33  ;;  %v1843_v35 = vshrl.u32 %v11986_v62, %v1834_v50  ;;  %v1581_v45 = vshrl.u32 %v1563_v37, %v1579_v8  ;;  %v1585_v26 = vshll.u32 %v1584_v3, 23 }
 0x1bb   : > { %v1671_v32 = vadd.s32 %v1670_v19, %v1666_v16  ;;  %v1842_v49 = vshll.u32 %v11985_v27, %v1833_v33  ;;  %v12015_v24 = vand.u32 2147483647, %v8154_v31  ;;  %v1838_v57 = vor.u32 %v1837_v11, %v1836_v46 }
 0x1bc   : > { %v1841_v23 = vor.u32 %v1840_v47, %v1839_v4  ;;  %v1845_v38 = vshll.u32 %v11986_v62, %v1833_v33  ;;  %v1846_v34 = vshrl.u32 %v11996_v51, %v1834_v50  ;;  %v1848_v37 = vshll.u32 %v11996_v51, %v1833_v33 }
 0x1bd   : > { %vm8618_vm4 = vcmp.le.f32.partialorder %v12015_v24, 0.7853982  ;;  %v1672_v25 = vadd.s32 536870912, %v1671_v32  ;;  %v1844_v41 = vor.u32 %v1843_v35, %v1842_v49  ;;  %v1849_v8 = vshrl.u32 %v11987_v10, %v1834_v50 }
 0x1be   : > { %v1488_v3 = vsel %vm1405_vm12, %v1487_v30, %v8530_v63  ;;  %v1580_v16 = vshll.u32 %v8546_v14, %v1578_v13  ;;  %v1827_v19 = vor.u32 8388608, %v1826_v9  ;;  %v1847_v24 = vor.u32 %v1846_v34, %v1845_v38  ;;  %v8630_v11 = vpop.eup %7017 }
 0x1bf   : > { %12018 = vst [vmem:[#allocation33_spill] sm:$0xff] %v8630_v11  ;;  %vm11884_vm5 = vcmp.lt.s32.totalorder %v8228_v43, 0  ;;  %v1586_v47 = vor.u32 4788187, %v1585_v26  ;;  %v1673_v46 = vshrl.u32 %v1672_v25, 30  ;;  %v1850_v4 = vor.u32 %v1849_v8, %v1848_v37 }
 0x1c0   : > { %vm1854_vm10 = vcmp.lt.s32.totalorder %v8607_v5, 4  ;;  %v1383_v33 = vxor.u32 2147483648, %v8602_v12  ;;  %vm1851_vm15 = vcmp.lt.s32.totalorder %v8607_v5, 1  ;;  %vm1853_vm7 = vcmp.lt.s32.totalorder %v8607_v5, 3 }
 0x1c1   : > { %v1860_v63 = vsel %vm1854_vm10, %v1847_v24, 920167782  ;;  %v1582_v14 = vor.u32 %v1581_v45, %v1580_v16  ;;  %v1674_v13 = vshll.u32 %v1673_v46, 30  ;;  %v1859_v30 = vsel %vm1851_vm15, %v1838_v57, %v1841_v23 }
 0x1c2   : > { %v1861_v9 = vsel %vm1853_vm7, %v1844_v41, %v1860_v63  ;;  %v12019_v35 = vand.u32 2147483647, %v8228_v43  ;;  %v12020_v26 = vmov 0  ;;  %v1835_v49 = vshrl.u32 %v11995_v54, %v1834_v50 }
 0x1c3   : > { %vm1852_vm8 = vcmp.lt.s32.totalorder %v8607_v5, 2  ;;  %v1863_v45 = vsel %vm1851_vm15, %v1841_v23, %v1844_v41  ;;  %v1864_v38 = vsel %vm1854_vm10, %v1850_v4, 1326507024  ;;  %v1587_v34 = vand.u32 2147483647, %v1586_v47 }
 0x1c4   : > { %vm8645_vm12 = vcmp.le.f32.partialorder %v12019_v35, 0.7853982  ;;  %v8655_v25 = vsub.s32 %v1671_v32, %v1674_v13  ;;  %v1856_v37 = vsel %vm1854_vm10, %v1844_v41, 2102212464  ;;  %v1865_v8 = vsel %vm1853_vm7, %v1847_v24, %v1864_v38 }
 0x1c5   : > { %v12021_v26 = vsel %vm8645_vm12, 4294967295, %v12020_v26  ;;  %v1862_v50 = vsel %vm1852_vm8, %v1859_v30, %v1861_v9  ;;  %v1866_v16 = vsel %vm1852_vm8, %v1863_v45, %v1865_v8  ;;  %v1867_v63 = vshll.u32 %v1827_v19, 8 }
 0x1c6   : > { %12022 = vst [vmem:[#allocation34_spill] sm:$0xff] %v12021_v26  ;;  %v1718_v35 = vand.u32 2139095040, %v8591_v53  ;;  %v1491_v32 = vsel %vm8618_vm4, %v8154_v31, %v1488_v3  ;;  %v1589_v47 = vcvt.s32.f32 %v1582_v14  ;;  %v1677_v4 = vsub.s32 0, %v8655_v25 }
 0x1c7   : > { %v1855_v41 = vsel %vm1851_vm15, %v1835_v49, %v1838_v57  ;;  %v1857_v24 = vsel %vm1853_vm7, %v1841_v23, %v1856_v37  ;;  %v8674_v13 = vmul.u32.u64.low %v1867_v63, %v1866_v16  ;;  %v8675_v30 = vmul.u32.u64.high %v1867_v63, %v1866_v16, %v8674_v13  ;;  %v8687_v37 = vpop.f32.mrb[8].mxu1 }
 0x1c8   : > { %v1719_v9 = vshrl.u32 %v1718_v35, 23  ;;  %vm11864_vm9 = vcmp.lt.s32.totalorder %v8317_v2, 0  ;;  %v1590_v19 = vmul.f32 %v1589_v47, %v1587_v34  ;;  %v6435_v45 = vmin.u32 %v1677_v4, %v8655_v25 }
 0x1c9   : > { %v8679_v38 = vmul.u32.u64.low %v1867_v63, %v1862_v50  ;;  %v8680_v3 = vmul.u32.u64.high %v1867_v63, %v1862_v50, %v8679_v38  ;;  %v1384_v57 = vsel %vm11884_vm5, %v1383_v33, %v8602_v12  ;;  %v1697_v14 = vsub.s32 4, %v1673_v46 }
 0x1ca   : > { %v11827_v23 = vand.u32 2147483647, %v8591_v53  ;;  %v6438_v49 = vadd.s32 4294967169, %v1719_v9  ;;  %7019 = vsinq.f32 %v8521_v1  ;;  %v1492_v34 = vsel %vm8618_vm4, 0, %v8526_v52 }
 0x1cb   : > { %v1679_v8 = vclz %v6435_v45  ;;  %v1858_v50 = vsel %vm1852_vm8, %v1855_v41, %v1857_v24  ;;  %7021 = vcosq.f32 %v1491_v32  ;;  %vm1613_vm11 = vcmp.lt.s32.totalorder %v8423_v15, 0 }
 0x1cc   : > { %vm1876_vm3 = vc.u32 %v8675_v30, %v8679_v38  ;;  %v1725_v12 = vadd.s32 1, %v6438_v49  ;;  %v8701_v33 = vsel %vm8645_vm12, %v8228_v43, %v1384_v57  ;;  %v12023_v1 = vand.u32 2147483647, %v8317_v2 }
 0x1cd   : > { %v12024_v52 = vmov 0  ;;  %v1591_v5 = vxor.u32 2147483648, %v1590_v19  ;;  %v6436_v60 = vadd.s32 4294967294, %v1679_v8  ;;  %v1877_v16 = vadd.s32 1, %v8680_v3 }
 0x1ce   : > { %vm8705_vm10 = vcmp.le.f32.partialorder %v12023_v1, 0.7853982  ;;  %v8712_v35 = vsel %vm1613_vm11, %v1697_v14, %v1673_v46  ;;  %v1874_v47 = vmul.u32 %v1867_v63, %v1858_v50  ;;  %v1722_v4 = vand.u32 8388607, %v11827_v23 }
 0x1cf   : > { %v12025_v52 = vsel %vm8705_vm10, 4294967295, %v12024_v52  ;;  %vm1726_vm4 = vcmp.gt.s32.totalorder %v1725_v12, 0  ;;  %vm6437_vm15 = vcmp.lt.s32.totalorder %v6436_v60, 0  ;;  %v1878_v41 = vsel %vm1876_vm3, %v1877_v16, %v8680_v3 }
 0x1d0   : > { %12026 = vst [vmem:[#allocation35_spill] sm:$0xff] %v12025_v52  ;;  %v1727_v24 = vsel %vm1726_vm4, %v1725_v12, 0  ;;  %v8719_v13 = vadd.f32 %v8148_v22, %v8409_v59  ;;  %7023 = vsinq.f32 %v1491_v32  ;;  %v8721_v9 = vsel %vm6437_vm15, 0, %v6436_v60 }
 0x1d1   : > { %v1879_v45 = vadd.s32 %v1878_v41, %v1874_v47  ;;  %v1729_v57 = vand.u32 31, %v1727_v24  ;;  %v8723_v46 = vadd.s32 3, %v1492_v34  ;;  %7025 = vcosq.f32 %v8701_v33 }
 0x1d2   : > { %12027 = vst [vmem:[#allocation36_spill] sm:$0xff] %v8719_v13  ;;  %v12029_v63 = vand.u32 2147483647, %v8423_v15  ;;  %v1667_v3 = vadd.s32 %v8584_v40, %v8582_v7  ;;  %v1592_v22 = vsel %vm11864_vm9, %v1591_v5, %v1590_v19  ;;  %v1683_v34 = vsub.s32 32, %v8721_v9 }
 0x1d3   : > { %12028 = vst [vmem:[#allocation37_spill] sm:$0xff] %v8723_v46  ;;  %v1880_v32 = vadd.s32 536870912, %v1879_v45  ;;  %v1730_v49 = vsub.s32 32, %v1729_v57  ;;  %v1687_v8 = vsub.s32 4294967266, %v8721_v9  ;;  %v1723_v50 = vor.u32 8388608, %v1722_v4 }
 0x1d4   : > { %vm8728_vm7 = vcmp.le.f32.partialorder %v12029_v63, 0.7853982  ;;  %v1926_v12 = vand.u32 2139095040, %v8719_v13  ;;  %v1732_v7 = vshll.u32 %v11995_v54, %v1729_v57  ;;  %v8747_v5 = vpop.eup %7019  ;;  %v1735_v60 = vshll.u32 %v11994_v36, %v1729_v57 }
 0x1d5   : > { %v8742_v1 = vshrl.u32 %v1880_v32, 30  ;;  %v1733_v40 = vshrl.u32 %v11994_v36, %v1730_v49  ;;  %v1736_v19 = vshrl.u32 %v11985_v27, %v1730_v49  ;;  %12032 = vst [vmem:[#allocation38_spill] sm:$0xff] %v8747_v5  ;;  %v1738_v16 = vshll.u32 %v11985_v27, %v1729_v57  ;;  %v8753_v41 = vpop.eup %7021 }
 0x1d6   : > { %v1739_v47 = vshrl.u32 %v11986_v62, %v1730_v49  ;;  %v1742_v4 = vshrl.u32 %v11996_v51, %v1730_v49  ;;  %12033 = vst [vmem:[#allocation39_spill] sm:$0xff] %v8753_v41  ;;  %v8758_v63 = vsel %vm8705_vm10, %v8317_v2, %v1592_v22  ;;  %v1728_v23 = vshrl.u32 %v1727_v24, 5 }
 0x1d7   : > { %v1882_v32 = vshll.u32 %v8742_v1, 30  ;;  %v1741_v59 = vshll.u32 %v11986_v62, %v1729_v57  ;;  %v1688_v31 = vadd.s32 127, %v1687_v8  ;;  %v1734_v46 = vor.u32 %v1733_v40, %v1732_v7 }
 0x1d8   : > { %v1737_v11 = vor.u32 %v1736_v19, %v1735_v60  ;;  %v1740_v5 = vor.u32 %v1739_v47, %v1738_v16  ;;  %v1744_v29 = vshll.u32 %v11996_v51, %v1729_v57  ;;  %v1745_v41 = vshrl.u32 %v11987_v10, %v1730_v49 }
 0x1d9   : > { %v8762_v21 = vsub.s32 %v1879_v45, %v1882_v32  ;;  %v1743_v61 = vor.u32 %v1742_v4, %v1741_v59  ;;  %v1685_v17 = vshrl.u32 %v1667_v3, %v1683_v34  ;;  %v1763_v52 = vshll.u32 %v1723_v50, 8 }
 0x1da   : > { %v1927_v2 = vshrl.u32 %v1926_v12, 23  ;;  %v8767_v26 = vpop.eup %7023  ;;  %v1731_v8 = vshrl.u32 %v11995_v54, %v1730_v49  ;;  %v1746_v7 = vor.u32 %v1745_v41, %v1744_v29  ;;  %vm1747_vm8 = vcmp.lt.s32.totalorder %v1728_v23, 1 }
 0x1db   : > { %12034 = vst [vmem:[#allocation40_spill] sm:$0xff] %v8767_v26  ;;  %v1885_v24 = vsub.s32 0, %v8762_v21  ;;  %v8771_v45 = vpop.eup %7025  ;;  %v1689_v59 = vshll.u32 %v1688_v31, 23  ;;  %vm1749_vm3 = vcmp.lt.s32.totalorder %v1728_v23, 3  ;;  %vm1750_vm4 = vcmp.lt.s32.totalorder %v1728_v23, 4 }
 0x1dc   : > { %12035 = vst [vmem:[#allocation41_spill] sm:$0xff] %v8771_v45  ;;  %v1755_v57 = vsel %vm1747_vm8, %v1734_v46, %v1737_v11  ;;  %v1752_v34 = vsel %vm1750_vm4, %v1740_v5, 2102212464  ;;  %v1756_v50 = vsel %vm1750_vm4, %v1743_v61, 920167782  ;;  %v1759_v40 = vsel %vm1747_vm8, %v1737_v11, %v1740_v5 }
 0x1dd   : > { %v6443_v3 = vmin.u32 %v1885_v24, %v8762_v21  ;;  %vm1748_vm15 = vcmp.lt.s32.totalorder %v1728_v23, 2  ;;  %v1751_v12 = vsel %vm1747_vm8, %v1731_v8, %v1734_v46  ;;  %v1757_v19 = vsel %vm1749_vm3, %v1740_v5, %v1756_v50  ;;  %v8780_v24 = vpop.permute.xlu1 %552 }
 0x1de   : > { %v1760_v60 = vsel %vm1750_vm4, %v1746_v7, 1326507024  ;;  %v1753_v47 = vsel %vm1749_vm3, %v1737_v11, %v1752_v34  ;;  %v1758_v49 = vsel %vm1748_vm15, %v1755_v57, %v1757_v19  ;;  %v1684_v4 = vshll.u32 %v8655_v25, %v8721_v9  ;;  %v8791_v9 = vpop.f32.mrb[9].mxu0 }
 0x1df   : > { %v1887_v16 = vclz %v6443_v3  ;;  %v1761_v29 = vsel %vm1749_vm3, %v1743_v61, %v1760_v60  ;;  %v8776_v41 = vmul.u32.u64.low %v1763_v52, %v1758_v49  ;;  %v8777_v32 = vmul.u32.u64.high %v1763_v52, %v1758_v49, %v8776_v41 }
 0x1e0   : > { %v1762_v31 = vsel %vm1748_vm15, %v1759_v40, %v1761_v29  ;;  %v1690_v22 = vor.u32 4788187, %v1689_v59  ;;  %v1754_v5 = vsel %vm1748_vm15, %v1751_v12, %v1753_v47  ;;  %v6446_v8 = vadd.s32 4294967169, %v1927_v2 }
 0x1e1   : > { %v6444_v26 = vadd.s32 4294967294, %v1887_v16  ;;  %v8782_v23 = vmul.u32.u64.low %v1763_v52, %v1762_v31  ;;  %v8783_v46 = vmul.u32.u64.high %v1763_v52, %v1762_v31, %v8782_v23  ;;  %v12036_v11 = vand.u32 2147483647, %v8719_v13 }
 0x1e2   : > { %v8789_v25 = vadd.f32 %v8245_v39, %v8780_v24  ;;  %7027 = vsinq.f32 %v8701_v33  ;;  %v1686_v7 = vor.u32 %v1685_v17, %v1684_v4  ;;  %v12038_v59 = vsel %vm8728_vm7, 0, %v8712_v35 }
 0x1e3   : > { %v1930_v61 = vand.u32 8388607, %v12036_v11  ;;  %v8798_v57 = vadd.s32 3, %v12038_v59  ;;  %vm6445_vm8 = vcmp.lt.s32.totalorder %v6444_v26, 0  ;;  %7029 = vcosq.f32 %v8758_v63 }
 0x1e4   : > { %12037 = vst [vmem:[#allocation42_spill] sm:$0xff] %v8789_v25  ;;  %v1890_v2 = vsel %vm6445_vm8, 0, %v6444_v26  ;;  %v1773_v3 = vadd.s32 1, %v8777_v32  ;;  %v1933_v34 = vadd.s32 1, %v6446_v8  ;;  %v1691_v39 = vand.u32 2147483647, %v1690_v22 }
 0x1e5   : > { %12039 = vst [vmem:[#allocation43_spill] sm:$0xff] %v8798_v57  ;;  %v1895_v50 = vsub.s32 4294967266, %v1890_v2  ;;  %v1770_v40 = vmul.u32 %v1763_v52, %v1754_v5  ;;  %v1931_v12 = vor.u32 8388608, %v1930_v61  ;;  %v1891_v19 = vsub.s32 32, %v1890_v2 }
 0x1e6   : > { %vm1772_vm3 = vc.u32 %v8783_v46, %v8776_v41  ;;  %vm1934_vm4 = vcmp.gt.s32.totalorder %v1933_v34, 0  ;;  %v2030_v17 = vand.u32 2139095040, %v8789_v25  ;;  %v1693_v33 = vcvt.s32.f32 %v1686_v7 }
 0x1e7   : > { %v1896_v35 = vadd.s32 127, %v1895_v50  ;;  %v1774_v60 = vsel %vm1772_vm3, %v1773_v3, %v8777_v32  ;;  %v1935_v16 = vsel %vm1934_vm4, %v1933_v34, 0  ;;  %v1875_v26 = vadd.s32 %v8679_v38, %v8675_v30 }
 0x1e8   : > { %v1775_v47 = vadd.s32 %v1774_v60, %v1770_v40  ;;  %v1937_v22 = vand.u32 31, %v1935_v16  ;;  %v8810_v52 = vadd.f32 %v8299_v28, %v8780_v24  ;;  %v8812_v49 = vmul.f32 %v1693_v33, %v1691_v39 }
 0x1e9   : > { %v1892_v29 = vshll.u32 %v8762_v21, %v1890_v2  ;;  %v8815_v4 = vshll.u32 %v1931_v12, 8  ;;  %v1893_v23 = vshrl.u32 %v1875_v26, %v1891_v19  ;;  %v2031_v8 = vshrl.u32 %v2030_v17, 23 }
 0x1ea   : > { %v1776_v32 = vadd.s32 536870912, %v1775_v47  ;;  %v1938_v5 = vsub.s32 32, %v1937_v22  ;;  %v1897_v11 = vshll.u32 %v1896_v35, 23  ;;  %v1936_v30 = vshrl.u32 %v1935_v16, 5 }
 0x1eb   : > { %v1940_v38 = vshll.u32 %v11995_v54, %v1937_v22  ;;  %v1943_v61 = vshll.u32 %v11994_v36, %v1937_v22  ;;  %v1946_v59 = vshll.u32 %v11985_v27, %v1937_v22  ;;  %v1949_v34 = vshll.u32 %v11986_v62, %v1937_v22 }
 0x1ec   : > { %v8820_v28 = vshrl.u32 %v1776_v32, 30  ;;  %v1941_v7 = vshrl.u32 %v11994_v36, %v1938_v5  ;;  %v1944_v21 = vshrl.u32 %v11985_v27, %v1938_v5  ;;  %v8825_v2 = vpop.eup %7027  ;;  %v1947_v3 = vshrl.u32 %v11986_v62, %v1938_v5 }
 0x1ed   : > { %v1950_v39 = vshrl.u32 %v11996_v51, %v1938_v5  ;;  %v1952_v50 = vshll.u32 %v11996_v51, %v1937_v22  ;;  %v8831_v40 = vpop.eup %7029  ;;  %v1953_v33 = vshrl.u32 %v11987_v10, %v1938_v5  ;;  %v1894_v35 = vor.u32 %v1893_v23, %v1892_v29 }
 0x1ee   : > { %12040 = vst [vmem:[#allocation44_spill] sm:$0xff] %v8820_v28  ;;  %12041 = vst [vmem:[#allocation45_spill] sm:$0xff] %v8831_v40  ;;  %v1778_v12 = vshll.u32 %v8820_v28, 30  ;;  %v1942_v19 = vor.u32 %v1941_v7, %v1940_v38  ;;  %v1945_v17 = vor.u32 %v1944_v21, %v1943_v61  ;;  %v1948_v60 = vor.u32 %v1947_v3, %v1946_v59 }
 0x1ef   : > { %v1951_v16 = vor.u32 %v1950_v39, %v1949_v34  ;;  %v6450_v26 = vadd.s32 4294967169, %v2031_v8  ;;  %v1898_v32 = vor.u32 4788187, %v1897_v11  ;;  %v1954_v57 = vor.u32 %v1953_v33, %v1952_v50  ;;  %v8848_v50 = vpop.f32.mrb[9].mxu1 }
 0x1f0   : > { %v8835_v31 = vsub.s32 %v1775_v47, %v1778_v12  ;;  %vm1955_vm15 = vcmp.lt.s32.totalorder %v1936_v30, 1  ;;  %v1939_v45 = vshrl.u32 %v11995_v54, %v1938_v5  ;;  %vm1958_vm8 = vcmp.lt.s32.totalorder %v1936_v30, 4 }
 0x1f1   : > { %v1963_v22 = vsel %vm1955_vm15, %v1942_v19, %v1945_v17  ;;  %v12042_v40 = vand.u32 2147483647, %v8789_v25  ;;  %vm1957_vm3 = vcmp.lt.s32.totalorder %v1936_v30, 3  ;;  %v1960_v61 = vsel %vm1958_vm8, %v1948_v60, 2102212464 }
 0x1f2   : > { %v1781_v38 = vsub.s32 0, %v8835_v31  ;;  %v1964_v29 = vsel %vm1958_vm8, %v1951_v16, 920167782  ;;  %vm1956_vm4 = vcmp.lt.s32.totalorder %v1936_v30, 2  ;;  %v1967_v8 = vsel %vm1955_vm15, %v1945_v17, %v1948_v60 }
 0x1f3   : > { %v2034_v28 = vand.u32 8388607, %v12042_v40  ;;  %v1965_v23 = vsel %vm1957_vm3, %v1948_v60, %v1964_v29  ;;  %v1968_v11 = vsel %vm1958_vm8, %v1954_v57, 1326507024  ;;  %v1899_v47 = vand.u32 2147483647, %v1898_v32 }
 0x1f4   : > { %v6439_v7 = vmin.u32 %v1781_v38, %v8835_v31  ;;  %v1959_v21 = vsel %vm1955_vm15, %v1939_v45, %v1942_v19  ;;  %v1966_v5 = vsel %vm1956_vm4, %v1963_v22, %v1965_v23  ;;  %v1961_v59 = vsel %vm1957_vm3, %v1945_v17, %v1960_v61 }
 0x1f5   : > { %v1969_v3 = vsel %vm1957_vm3, %v1951_v16, %v1968_v11  ;;  %v8844_v34 = vmul.u32.u64.low %v8815_v4, %v1966_v5  ;;  %v8845_v39 = vmul.u32.u64.high %v8815_v4, %v1966_v5, %v8844_v34  ;;  %v1695_v40 = vxor.u32 2147483648, %v8812_v49 }
 0x1f6   : > { %v1901_v12 = vcvt.s32.f32 %v1894_v35  ;;  %v1783_v33 = vclz %v6439_v7  ;;  %v1970_v57 = vsel %vm1956_vm4, %v1967_v8, %v1969_v3  ;;  %7031 = vsinq.f32 %v8758_v63 }
 0x1f7   : > { %v8854_v45 = vmul.u32.u64.low %v8815_v4, %v1970_v57  ;;  %v8855_v19 = vmul.u32.u64.high %v8815_v4, %v1970_v57, %v8854_v45  ;;  %v2037_v17 = vadd.s32 1, %v6450_v26  ;;  %v1905_v16 = vsub.s32 4, %v8742_v1 }
 0x1f8   : > { %v8857_v60 = vmul.f32 %v1901_v12, %v1899_v47  ;;  %v6440_v32 = vadd.s32 4294967294, %v1783_v33  ;;  %v1962_v22 = vsel %vm1956_vm4, %v1959_v21, %v1961_v59  ;;  %v1981_v38 = vadd.s32 1, %v8845_v39 }
 0x1f9   : > { %v2035_v35 = vor.u32 8388608, %v2034_v28  ;;  %vm2038_vm15 = vcmp.gt.s32.totalorder %v2037_v17, 0  ;;  %v2238_v61 = vand.u32 2139095040, %v8810_v52  ;;  %v8866_v63 = vsel %vm1613_vm11, %v1695_v40, %v8812_v49 }
 0x1fa   : > { %v1771_v26 = vadd.s32 %v8776_v41, %v8783_v46  ;;  %vm6441_vm8 = vcmp.lt.s32.totalorder %v6440_v32, 0  ;;  %v2039_v29 = vsel %vm2038_vm15, %v2037_v17, 0  ;;  %v1978_v30 = vmul.u32 %v8815_v4, %v1962_v22 }
 0x1fb   : > { %v1786_v23 = vsel %vm6441_vm8, 0, %v6440_v32  ;;  %vm1980_vm3 = vc.u32 %v8855_v19, %v8844_v34  ;;  %v8873_v28 = vshrl.u32 %v2039_v29, 5  ;;  %v1903_v8 = vxor.u32 2147483648, %v8857_v60 }
 0x1fc   : > { %v1787_v11 = vsub.s32 32, %v1786_v23  ;;  %v1791_v47 = vsub.s32 4294967266, %v1786_v23  ;;  %v1982_v49 = vsel %vm1980_vm3, %v1981_v38, %v8845_v39  ;;  %v2041_v21 = vand.u32 31, %v2039_v29 }
 0x1fd   : > { %v1983_v7 = vadd.s32 %v1982_v49, %v1978_v30  ;;  %v8877_v5 = vshll.u32 %v2035_v35, 8  ;;  %v2239_v41 = vshrl.u32 %v2238_v61, 23  ;;  %v1788_v46 = vshll.u32 %v8835_v31, %v1786_v23 }
 0x1fe   : > { %v1789_v59 = vshrl.u32 %v1771_v26, %v1787_v11  ;;  %v1792_v4 = vadd.s32 127, %v1791_v47  ;;  %vm2059_vm11 = vcmp.lt.s32.totalorder %v8873_v28, 1  ;;  %v2042_v40 = vsub.s32 32, %v2041_v21 }
 0x1ff   : > { %v1984_v3 = vadd.s32 536870912, %v1983_v7  ;;  %vm2060_vm4 = vcmp.lt.s32.totalorder %v8873_v28, 2  ;;  %vm2061_vm15 = vcmp.lt.s32.totalorder %v8873_v28, 3  ;;  %v2044_v39 = vshll.u32 %v11995_v54, %v2041_v21 }
 0x200   : > { %v1790_v12 = vor.u32 %v1789_v59, %v1788_v46  ;;  %v1793_v33 = vshll.u32 %v1792_v4, 23  ;;  %v2047_v57 = vshll.u32 %v11994_v36, %v2041_v21  ;;  %v8885_v45 = vpop.eup %7031  ;;  %v2045_v31 = vshrl.u32 %v11994_v36, %v2042_v40 }
 0x201   : > { %v8887_v17 = vshrl.u32 %v1984_v3, 30  ;;  %v2048_v32 = vshrl.u32 %v11985_v27, %v2042_v40  ;;  %v2050_v22 = vshll.u32 %v11985_v27, %v2041_v21  ;;  %vm1821_vm8 = vcmp.lt.s32.totalorder %v8456_v0, 0 }
 0x202   : > { %v1794_v38 = vor.u32 4788187, %v1793_v33  ;;  %v2051_v35 = vshrl.u32 %v11986_v62, %v2042_v40  ;;  %v2053_v61 = vshll.u32 %v11986_v62, %v2041_v21  ;;  %v2054_v26 = vshrl.u32 %v11996_v51, %v2042_v40 }
 0x203   : > { %12043 = vst [vmem:[#allocation46_spill] sm:$0xff] %v8887_v17  ;;  %v1986_v29 = vshll.u32 %v8887_v17, 30  ;;  %v2046_v23 = vor.u32 %v2045_v31, %v2044_v39  ;;  %v2049_v30 = vor.u32 %v2048_v32, %v2047_v57  ;;  %vm2062_vm3 = vcmp.lt.s32.totalorder %v8873_v28, 4 }
 0x204   : > { %v2052_v11 = vor.u32 %v2051_v35, %v2050_v22  ;;  %v2055_v47 = vor.u32 %v2054_v26, %v2053_v61  ;;  %v2056_v49 = vshll.u32 %v11996_v51, %v2041_v21  ;;  %v2057_v46 = vshrl.u32 %v11987_v10, %v2042_v40 }
 0x205   : > { %v12044_v59 = vand.u32 2147483647, %v8456_v0  ;;  %v1797_v3 = vcvt.s32.f32 %v1790_v12  ;;  %v8906_v33 = vsub.s32 %v1983_v7, %v1986_v29  ;;  %v2043_v39 = vshrl.u32 %v11995_v54, %v2042_v40 }
 0x206   : > { %v2067_v57 = vsel %vm2059_vm11, %v2046_v23, %v2049_v30  ;;  %v1795_v31 = vand.u32 2147483647, %v1794_v38  ;;  %v2058_v32 = vor.u32 %v2057_v46, %v2056_v49  ;;  %v2064_v21 = vsel %vm2062_vm3, %v2052_v11, 2102212464 }
 0x207   : > { %vm8902_vm1 = vcmp.le.f32.partialorder %v12044_v59, 0.7853982  ;;  %v2068_v22 = vsel %vm2062_vm3, %v2055_v47, 920167782  ;;  %v1989_v35 = vsub.s32 0, %v8906_v33  ;;  %v2063_v12 = vsel %vm2059_vm11, %v2043_v39, %v2046_v23 }
 0x208   : > { %v2069_v7 = vsel %vm2061_vm15, %v2052_v11, %v2068_v22  ;;  %v2071_v40 = vsel %vm2059_vm11, %v2049_v30, %v2052_v11  ;;  %v2065_v38 = vsel %vm2061_vm15, %v2049_v30, %v2064_v21  ;;  %v2072_v26 = vsel %vm2062_vm3, %v2058_v32, 1326507024 }
 0x209   : > { %v2070_v61 = vsel %vm2060_vm4, %v2067_v57, %v2069_v7  ;;  %v6458_v29 = vadd.s32 4294967169, %v2239_v41  ;;  %v6447_v49 = vmin.u32 %v1989_v35, %v8906_v33  ;;  %v2073_v23 = vsel %vm2061_vm15, %v2055_v47, %v2072_v26 }
 0x20a   : > { %v8932_v46 = vmul.u32.u64.low %v8877_v5, %v2070_v61  ;;  %v8933_v59 = vmul.u32.u64.high %v8877_v5, %v2070_v61, %v8932_v46  ;;  %v1699_v30 = vsel %vm8728_vm7, %v8423_v15, %v8866_v63  ;;  %vm11853_vm11 = vcmp.lt.s32.totalorder %v8591_v53, 0 }
 0x20b   : > { %v1798_v11 = vmul.f32 %v1797_v3, %v1795_v31  ;;  %v2074_v41 = vsel %vm2060_vm4, %v2071_v40, %v2073_v23  ;;  %v11848_v39 = vand.u32 2147483647, %v8810_v52  ;;  %v1904_v47 = vsel %vm1821_vm8, %v1903_v8, %v8857_v60 }
 0x20c   : > { %v1991_v57 = vclz %v6447_v49  ;;  %v8950_v32 = vmul.u32.u64.low %v8877_v5, %v2074_v41  ;;  %v8951_v21 = vmul.u32.u64.high %v8877_v5, %v2074_v41, %v8950_v32  ;;  %v2066_v14 = vsel %vm2060_vm4, %v2063_v12, %v2065_v38 }
 0x20d   : > { %v2245_v63 = vadd.s32 1, %v6458_v29  ;;  %v8957_v3 = vadd.f32 %v8390_v55, %v8780_v24  ;;  %v8961_v31 = vadd.f32 %v8499_v18, %v8780_v24  ;;  %7033 = vcosq.f32 %v1699_v30 }
 0x20e   : > { %v8968_v60 = vsel %vm1821_vm8, %v1905_v16, %v8742_v1  ;;  %v6448_v8 = vadd.s32 4294967294, %v1991_v57  ;;  %v2085_v28 = vadd.s32 1, %v8933_v59  ;;  %v8974_v55 = vsel %vm8902_vm1, %v8456_v0, %v1904_v47 }
 0x20f   : > { %12047 = vst [vmem:[#allocation47_spill] sm:$0xff] %v8957_v3  ;;  %v1799_v22 = vxor.u32 2147483648, %v1798_v11  ;;  %v2242_v18 = vand.u32 8388607, %v11848_v39  ;;  %vm2246_vm7 = vcmp.gt.s32.totalorder %v2245_v63, 0  ;;  %v2082_v24 = vmul.u32 %v8877_v5, %v2066_v14 }
 0x210   : > { %vm6449_vm4 = vcmp.lt.s32.totalorder %v6448_v8, 0  ;;  %vm2084_vm15 = vc.u32 %v8951_v21, %v8932_v46  ;;  %v2247_v1 = vsel %vm2246_vm7, %v2245_v63, 0  ;;  %7035 = vsinq.f32 %v1699_v30 }
 0x211   : > { %v12048_v16 = vand.u32 2147483647, %v8591_v53  ;;  %v1994_v12 = vsel %vm6449_vm4, 0, %v6448_v8  ;;  %v2086_v7 = vsel %vm2084_vm15, %v2085_v28, %v8933_v59  ;;  %v2249_v40 = vand.u32 31, %v2247_v1 }
 0x212   : > { %7037 = vcosq.f32 %v8974_v55  ;;  %v1999_v5 = vsub.s32 4294967266, %v1994_v12  ;;  %v2087_v61 = vadd.s32 %v2086_v7, %v2082_v24  ;;  %v1979_v26 = vadd.s32 %v8844_v34, %v8855_v19 }
 0x213   : > { %vm8983_vm8 = vcmp.le.f32.partialorder %v12048_v16, 0.7853982  ;;  %v1995_v29 = vsub.s32 32, %v1994_v12  ;;  %v2250_v49 = vsub.s32 32, %v2249_v40  ;;  %v1800_v30 = vsel %vm11853_vm11, %v1799_v22, %v1798_v11 }
 0x214   : > { %v2000_v59 = vadd.s32 127, %v1999_v5  ;;  %v2088_v41 = vadd.s32 536870912, %v2087_v61  ;;  %v2243_v47 = vor.u32 8388608, %v2242_v18  ;;  %v2252_v57 = vshll.u32 %v11995_v54, %v2249_v40 }
 0x215   : > { %v2253_v32 = vshrl.u32 %v11994_v36, %v2250_v49  ;;  %v2256_v14 = vshrl.u32 %v11985_v27, %v2250_v49  ;;  %v2259_v63 = vshrl.u32 %v11986_v62, %v2250_v49  ;;  %v2255_v19 = vshll.u32 %v11994_v36, %v2249_v40 }
 0x216   : > { %v2001_v8 = vshll.u32 %v2000_v59, 23  ;;  %v9001_v34 = vshrl.u32 %v2088_v41, 30  ;;  %v2262_v28 = vshrl.u32 %v11996_v51, %v2250_v49  ;;  %v1997_v24 = vshrl.u32 %v1979_v26, %v1995_v29 }
 0x217   : > { %v2248_v11 = vshrl.u32 %v2247_v1, 5  ;;  %v2258_v22 = vshll.u32 %v11985_v27, %v2249_v40  ;;  %v2261_v18 = vshll.u32 %v11986_v62, %v2249_v40  ;;  %v9007_v16 = vpop.eup %7033  ;;  %v1996_v7 = vshll.u32 %v8906_v33, %v1994_v12 }
 0x218   : > { %12051 = vst [vmem:[#allocation48_spill] sm:$0xff] %v9007_v16  ;;  %v2090_v5 = vshll.u32 %v9001_v34, 30  ;;  %v2254_v39 = vor.u32 %v2253_v32, %v2252_v57  ;;  %v2257_v59 = vor.u32 %v2256_v14, %v2255_v19  ;;  %v2264_v38 = vshll.u32 %v11996_v51, %v2249_v40 }
 0x219   : > { %v2260_v41 = vor.u32 %v2259_v63, %v2258_v22  ;;  %v2263_v23 = vor.u32 %v2262_v28, %v2261_v18  ;;  %v2265_v0 = vshrl.u32 %v11987_v10, %v2250_v49  ;;  %v1803_v1 = vsel %vm8983_vm8, %v8591_v53, %v1800_v30 }
 0x21a   : > { %v2002_v26 = vor.u32 4788187, %v2001_v8  ;;  %v9016_v29 = vsub.s32 %v2087_v61, %v2090_v5  ;;  %v9018_v15 = vshll.u32 %v2243_v47, 8  ;;  %v9020_v33 = vpop.eup %7035  ;;  %v1998_v12 = vor.u32 %v1997_v24, %v1996_v7 }
 0x21b   : > { %12052 = vst [vmem:[#allocation49_spill] sm:$0xff] %v9020_v33  ;;  %v2251_v57 = vshrl.u32 %v11995_v54, %v2250_v49  ;;  %v2266_v32 = vor.u32 %v2265_v0, %v2264_v38  ;;  %v2134_v14 = vand.u32 2139095040, %v8957_v3  ;;  %vm2267_vm3 = vcmp.lt.s32.totalorder %v2248_v11, 1 }
 0x21c   : > { %v9024_v40 = vpop.eup %7037  ;;  %v2093_v63 = vsub.s32 0, %v9016_v29  ;;  %vm2268_vm7 = vcmp.lt.s32.totalorder %v2248_v11, 2  ;;  %vm2270_vm4 = vcmp.lt.s32.totalorder %v2248_v11, 4  ;;  %vm2269_vm15 = vcmp.lt.s32.totalorder %v2248_v11, 3 }
 0x21d   : > { %12053 = vst [vmem:[#allocation50_spill] sm:$0xff] %v9024_v40  ;;  %v2272_v61 = vsel %vm2270_vm4, %v2260_v41, 2102212464  ;;  %v2275_v30 = vsel %vm2267_vm3, %v2254_v39, %v2257_v59  ;;  %v2276_v47 = vsel %vm2270_vm4, %v2263_v23, 920167782  ;;  %v2279_v0 = vsel %vm2267_vm3, %v2257_v59, %v2260_v41  ;;  %v9104_v40 = vpop.permute.xlu0 %557 }
 0x21e   : > { %v2003_v8 = vand.u32 2147483647, %v2002_v26  ;;  %v6451_v19 = vmin.u32 %v2093_v63, %v9016_v29  ;;  %v2277_v49 = vsel %vm2269_vm15, %v2260_v41, %v2276_v47  ;;  %v2005_v38 = vcvt.s32.f32 %v1998_v12 }
 0x21f   : > { %v2278_v28 = vsel %vm2268_vm7, %v2275_v30, %v2277_v49  ;;  %v2280_v24 = vsel %vm2270_vm4, %v2266_v32, 1326507024  ;;  %v2135_v22 = vshrl.u32 %v2134_v14, 23  ;;  %vm2029_vm0 = vcmp.lt.s32.totalorder %v8789_v25, 0 }
 0x220   : > { %v2095_v18 = vclz %v6451_v19  ;;  %v2271_v7 = vsel %vm2267_vm3, %v2251_v57, %v2254_v39  ;;  %v2273_v5 = vsel %vm2269_vm15, %v2257_v59, %v2272_v61  ;;  %v2281_v26 = vsel %vm2269_vm15, %v2263_v23, %v2280_v24 }
 0x221   : > { %7039 = vsinq.f32 %v8974_v55  ;;  %vm11859_vm11 = vcmp.lt.s32.totalorder %v8719_v13, 0  ;;  %v2282_v41 = vsel %vm2268_vm7, %v2279_v0, %v2281_v26  ;;  %v2006_v32 = vmul.f32 %v2005_v38, %v2003_v8 }
 0x222   : > { %v9040_v12 = vmul.u32.u64.low %v9018_v15, %v2278_v28  ;;  %v9041_v63 = vmul.u32.u64.high %v9018_v15, %v2278_v28, %v9040_v12  ;;  %v6452_v14 = vadd.s32 4294967294, %v2095_v18  ;;  %v12054_v23 = vsel %vm8902_vm1, 0, %v8968_v60 }
 0x223   : > { %v9045_v30 = vmul.u32.u64.low %v9018_v15, %v2282_v41  ;;  %v9046_v39 = vmul.u32.u64.high %v9018_v15, %v2282_v41, %v9045_v30  ;;  %v9052_v55 = vadd.s32 3, %v12054_v23  ;;  %7041 = vcosq.f32 %v1803_v1 }
 0x224   : > { %v2274_v59 = vsel %vm2268_vm7, %v2271_v7, %v2273_v5  ;;  %v6454_v57 = vadd.s32 4294967169, %v2135_v22  ;;  %7043 = vsinq.f32 %v1803_v1  ;;  %v2083_v61 = vadd.s32 %v8932_v46, %v8951_v21 }
 0x225   : > { %12055 = vst [vmem:[#allocation51_spill] sm:$0xff] %v9052_v55  ;;  %vm6453_vm3 = vcmp.lt.s32.totalorder %v6452_v14, 0  ;;  %v12056_v47 = vand.u32 2147483647, %v8957_v3  ;;  %v2113_v49 = vsub.s32 4, %v9001_v34  ;;  %v2293_v4 = vadd.s32 1, %v9041_v63 }
 0x226   : > { %v2098_v19 = vsel %vm6453_vm3, 0, %v6452_v14  ;;  %v2141_v60 = vadd.s32 1, %v6454_v57  ;;  %v12057_v0 = vand.u32 2147483647, %v8719_v13  ;;  %v12058_v11 = vmov 0 }
 0x227   : > { %v2138_v8 = vand.u32 8388607, %v12056_v47  ;;  %v2007_v1 = vxor.u32 2147483648, %v2006_v32  ;;  %v2099_v38 = vsub.s32 32, %v2098_v19  ;;  %v2103_v28 = vsub.s32 4294967266, %v2098_v19 }
 0x228   : > { %vm9063_vm1 = vcmp.le.f32.partialorder %v12057_v0, 0.7853982  ;;  %v2290_v46 = vmul.u32 %v9018_v15, %v2274_v59  ;;  %v2100_v21 = vshll.u32 %v9016_v29, %v2098_v19  ;;  %vm2292_vm7 = vc.u32 %v9046_v39, %v9040_v12 }
 0x229   : > { %v12059_v11 = vsel %vm9063_vm1, 4294967295, %v12058_v11  ;;  %vm2142_vm4 = vcmp.gt.s32.totalorder %v2141_v60, 0  ;;  %v2342_v24 = vand.u32 2139095040, %v8961_v31  ;;  %v2101_v22 = vshrl.u32 %v2083_v61, %v2099_v38 }
 0x22a   : > { %12060 = vst [vmem:[#allocation52_spill] sm:$0xff] %v12059_v11  ;;  %v2104_v18 = vadd.s32 127, %v2103_v28  ;;  %v2294_v7 = vsel %vm2292_vm7, %v2293_v4, %v9041_v63  ;;  %v2143_v5 = vsel %vm2142_vm4, %v2141_v60, 0  ;;  %v9076_v26 = vsel %vm2029_vm0, %v2113_v49, %v9001_v34 }
 0x22b   : > { %v2295_v41 = vadd.s32 %v2294_v7, %v2290_v46  ;;  %v2145_v15 = vand.u32 31, %v2143_v5  ;;  %v2008_v14 = vsel %vm11859_vm11, %v2007_v1, %v2006_v32  ;;  %v2102_v30 = vor.u32 %v2101_v22, %v2100_v21  ;;  %v9081_v57 = vpop.eup %7039 }
 0x22c   : > { %v2105_v23 = vshll.u32 %v2104_v18, 23  ;;  %v2139_v59 = vor.u32 8388608, %v2138_v8  ;;  %12061 = vst [vmem:[#allocation53_spill] sm:$0xff] %v9081_v57  ;;  %v2144_v63 = vshrl.u32 %v2143_v5, 5  ;;  %v2343_v19 = vshrl.u32 %v2342_v24, 23 }
 0x22d   : > { %v2296_v61 = vadd.s32 536870912, %v2295_v41  ;;  %v2146_v47 = vsub.s32 32, %v2145_v15  ;;  %v2109_v60 = vcvt.s32.f32 %v2102_v30  ;;  %v2148_v34 = vshll.u32 %v11995_v54, %v2145_v15  ;;  %v9085_v0 = vpop.eup %7041 }
 0x22e   : > { %v2106_v4 = vor.u32 4788187, %v2105_v23  ;;  %v2151_v49 = vshll.u32 %v11994_v36, %v2145_v15  ;;  %12062 = vst [vmem:[#allocation54_spill] sm:$0xff] %v9085_v0  ;;  %v2154_v1 = vshll.u32 %v11985_v27, %v2145_v15  ;;  %v9092_v28 = vpop.eup %7043  ;;  %v2157_v24 = vshll.u32 %v11986_v62, %v2145_v15 }
 0x22f   : > { %v9087_v38 = vshrl.u32 %v2296_v61, 30  ;;  %v2149_v32 = vshrl.u32 %v11994_v36, %v2146_v47  ;;  %v2152_v8 = vshrl.u32 %v11985_v27, %v2146_v47  ;;  %v2155_v21 = vshrl.u32 %v11986_v62, %v2146_v47 }
 0x230   : > { %v2107_v46 = vand.u32 2147483647, %v2106_v4  ;;  %v2158_v22 = vshrl.u32 %v11996_v51, %v2146_v47  ;;  %v9100_v18 = vsel %vm9063_vm1, %v8719_v13, %v2008_v14  ;;  %v2161_v4 = vshrl.u32 %v11987_v10, %v2146_v47 }
 0x231   : > { %v2298_v7 = vshll.u32 %v9087_v38, 30  ;;  %v2150_v5 = vor.u32 %v2149_v32, %v2148_v34  ;;  %v2153_v30 = vor.u32 %v2152_v8, %v2151_v49  ;;  %v2156_v61 = vor.u32 %v2155_v21, %v2154_v1 }
 0x232   : > { %v2110_v23 = vmul.f32 %v2109_v60, %v2107_v46  ;;  %v2159_v29 = vor.u32 %v2158_v22, %v2157_v24  ;;  %v2160_v55 = vshll.u32 %v11996_v51, %v2145_v15  ;;  %v2179_v16 = vshll.u32 %v2139_v59, 8 }
 0x233   : > { %v9106_v57 = vsub.s32 %v2295_v41, %v2298_v7  ;;  %v12063_v33 = vand.u32 2147483647, %v8961_v31  ;;  %v12064_v11 = vand.u32 2147483647, %v8789_v25  ;;  %v2147_v60 = vshrl.u32 %v11995_v54, %v2146_v47 }
 0x234   : > { %vm2163_vm3 = vcmp.lt.s32.totalorder %v2144_v63, 1  ;;  %v6462_v49 = vadd.s32 4294967169, %v2343_v19  ;;  %v9120_v41 = vadd.f32 %v8596_v6, %v9104_v40  ;;  %v2111_v32 = vxor.u32 2147483648, %v2110_v23 }
 0x235   : > { %v2346_v14 = vand.u32 8388607, %v12063_v33  ;;  %vm9113_vm15 = vcmp.le.f32.partialorder %v12064_v11, 0.7853982  ;;  %v2301_v15 = vsub.s32 0, %v9106_v57  ;;  %v2162_v59 = vor.u32 %v2161_v4, %v2160_v55 }
 0x236   : > { %vm2166_vm7 = vcmp.lt.s32.totalorder %v2144_v63, 4  ;;  %vm2165_vm4 = vcmp.lt.s32.totalorder %v2144_v63, 3  ;;  %v2171_v11 = vsel %vm2163_vm3, %v2150_v5, %v2153_v30  ;;  %v2291_v1 = vadd.s32 %v9040_v12, %v9046_v39 }
 0x237   : > { %v2168_v33 = vsel %vm2166_vm7, %v2156_v61, 2102212464  ;;  %v2172_v8 = vsel %vm2166_vm7, %v2159_v29, 920167782  ;;  %v6459_v47 = vmin.u32 %v2301_v15, %v9106_v57  ;;  %vm2164_vm11 = vcmp.lt.s32.totalorder %v2144_v63, 2 }
 0x238   : > { %v2173_v19 = vsel %vm2165_vm4, %v2156_v61, %v2172_v8  ;;  %v2167_v6 = vsel %vm2163_vm3, %v2147_v60, %v2150_v5  ;;  %v2169_v46 = vsel %vm2165_vm4, %v2153_v30, %v2168_v33  ;;  %v2175_v55 = vsel %vm2163_vm3, %v2153_v30, %v2156_v61 }
 0x239   : > { %v2174_v21 = vsel %vm2164_vm11, %v2171_v11, %v2173_v19  ;;  %v2112_v24 = vsel %vm2029_vm0, %v2111_v32, %v2110_v23  ;;  %v2303_v22 = vclz %v6459_v47  ;;  %v2176_v7 = vsel %vm2166_vm7, %v2162_v59, 1326507024 }
 0x23a   : > { %v2347_v4 = vor.u32 8388608, %v2346_v14  ;;  %v2177_v12 = vsel %vm2165_vm4, %v2159_v29, %v2176_v7  ;;  %v9134_v39 = vmul.u32.u64.low %v2179_v16, %v2174_v21  ;;  %v9135_v15 = vmul.u32.u64.high %v2179_v16, %v2174_v21, %v9134_v39 }
 0x23b   : > { %v2349_v8 = vadd.s32 1, %v6462_v49  ;;  %v6460_v13 = vadd.s32 4294967294, %v2303_v22  ;;  %v2170_v5 = vsel %vm2164_vm11, %v2167_v6, %v2169_v46  ;;  %v2178_v60 = vsel %vm2164_vm11, %v2175_v55, %v2177_v12 }
 0x23c   : > { %v11862_v33 = vand.u32 2147483647, %v9120_v41  ;;  %v9139_v11 = vmul.u32.u64.low %v2179_v16, %v2178_v60  ;;  %v9140_v30 = vmul.u32.u64.high %v2179_v16, %v2178_v60, %v9139_v11  ;;  %v2446_v23 = vand.u32 2139095040, %v9120_v41 }
 0x23d   : > { %vm2350_vm3 = vcmp.gt.s32.totalorder %v2349_v8, 0  ;;  %v9146_v29 = vsel %vm9113_vm15, %v8789_v25, %v2112_v24  ;;  %vm6461_vm0 = vcmp.lt.s32.totalorder %v6460_v13, 0  ;;  %v9148_v61 = vshll.u32 %v2347_v4, 8 }
 0x23e   : > { %v2351_v63 = vsel %vm2350_vm3, %v2349_v8, 0  ;;  %v2306_v14 = vsel %vm6461_vm0, 0, %v6460_v13  ;;  %v2186_v49 = vmul.u32 %v2179_v16, %v2170_v5  ;;  %v2189_v32 = vadd.s32 1, %v9135_v15 }
 0x23f   : > { %v2353_v59 = vand.u32 31, %v2351_v63  ;;  %v2307_v47 = vsub.s32 32, %v2306_v14  ;;  %v2311_v19 = vsub.s32 4294967266, %v2306_v14  ;;  %v9151_v6 = vshrl.u32 %v2351_v63, 5 }
 0x240   : > { %v9155_v46 = vand.u32 8388607, %v11862_v33  ;;  %v2308_v21 = vshll.u32 %v9106_v57, %v2306_v14  ;;  %vm2188_vm11 = vc.u32 %v9140_v30, %v9134_v39  ;;  %v2447_v24 = vshrl.u32 %v2446_v23, 23 }
 0x241   : > { %v2354_v55 = vsub.s32 32, %v2353_v59  ;;  %v2309_v13 = vshrl.u32 %v2291_v1, %v2307_v47  ;;  %v2312_v16 = vadd.s32 127, %v2311_v19  ;;  %v2190_v22 = vsel %vm2188_vm11, %v2189_v32, %v9135_v15 }
 0x242   : > { %v2356_v7 = vshll.u32 %v11995_v54, %v2353_v59  ;;  %v2191_v4 = vadd.s32 %v2190_v22, %v2186_v49  ;;  %v2359_v8 = vshll.u32 %v11994_v36, %v2353_v59  ;;  %v2362_v11 = vshll.u32 %v11985_v27, %v2353_v59 }
 0x243   : > { %v2357_v12 = vshrl.u32 %v11994_v36, %v2354_v55  ;;  %v2360_v5 = vshrl.u32 %v11985_v27, %v2354_v55  ;;  %v2310_v60 = vor.u32 %v2309_v13, %v2308_v21  ;;  %v2313_v57 = vshll.u32 %v2312_v16, 23 }
 0x244   : > { %v2363_v63 = vshrl.u32 %v11986_v62, %v2354_v55  ;;  %v2192_v23 = vadd.s32 536870912, %v2191_v4  ;;  %v2355_v1 = vshrl.u32 %v11995_v54, %v2354_v55  ;;  %v2365_v49 = vshll.u32 %v11986_v62, %v2353_v59 }
 0x245   : > { %v2358_v14 = vor.u32 %v2357_v12, %v2356_v7  ;;  %v2361_v15 = vor.u32 %v2360_v5, %v2359_v8  ;;  %v2314_v32 = vor.u32 4788187, %v2313_v57  ;;  %v2366_v19 = vshrl.u32 %v11996_v51, %v2354_v55 }
 0x246   : > { %v2364_v47 = vor.u32 %v2363_v63, %v2362_v11  ;;  %v2317_v22 = vcvt.s32.f32 %v2310_v60  ;;  %v9170_v33 = vshrl.u32 %v2192_v23, 30  ;;  %v2368_v21 = vshll.u32 %v11996_v51, %v2353_v59 }
 0x247   : > { %v2369_v13 = vshrl.u32 %v11987_v10, %v2354_v55  ;;  %vm2237_vm7 = vcmp.lt.s32.totalorder %v8810_v52, 0  ;;  %v2315_v16 = vand.u32 2147483647, %v2314_v32  ;;  %v2367_v25 = vor.u32 %v2366_v19, %v2365_v49 }
 0x248   : > { %vm2371_vm4 = vcmp.lt.s32.totalorder %v9151_v6, 1  ;;  %vm2372_vm3 = vcmp.lt.s32.totalorder %v9151_v6, 2  ;;  %v2194_v7 = vshll.u32 %v9170_v33, 30  ;;  %vm2373_vm0 = vcmp.lt.s32.totalorder %v9151_v6, 3 }
 0x249   : > { %v2370_v12 = vor.u32 %v2369_v13, %v2368_v21  ;;  %vm2374_vm11 = vcmp.lt.s32.totalorder %v9151_v6, 4  ;;  %v2318_v8 = vmul.f32 %v2317_v22, %v2315_v16  ;;  %v2379_v59 = vsel %vm2371_vm4, %v2358_v14, %v2361_v15 }
 0x24a   : > { %v2376_v5 = vsel %vm2374_vm11, %v2364_v47, 2102212464  ;;  %v2380_v60 = vsel %vm2374_vm11, %v2367_v25, 920167782  ;;  %v12067_v55 = vand.u32 2147483647, %v8810_v52  ;;  %v9186_v11 = vsub.s32 %v2191_v4, %v2194_v7 }
 0x24b   : > { %v2375_v63 = vsel %vm2371_vm4, %v2355_v1, %v2358_v14  ;;  %v2381_v23 = vsel %vm2373_vm0, %v2364_v47, %v2380_v60  ;;  %v2383_v32 = vsel %vm2371_vm4, %v2361_v15, %v2364_v47  ;;  %v2319_v49 = vxor.u32 2147483648, %v2318_v8 }
 0x24c   : > { %vm9182_vm9 = vcmp.le.f32.partialorder %v12067_v55, 0.7853982  ;;  %v2377_v19 = vsel %vm2373_vm0, %v2361_v15, %v2376_v5  ;;  %v2382_v22 = vsel %vm2372_vm3, %v2379_v59, %v2381_v23  ;;  %v2384_v21 = vsel %vm2374_vm11, %v2370_v12, 1326507024 }
 0x24d   : > { %v2197_v13 = vsub.s32 0, %v9186_v11  ;;  %v2385_v16 = vsel %vm2373_vm0, %v2367_v25, %v2384_v21  ;;  %v9198_v4 = vmul.u32.u64.low %v9148_v61, %v2382_v22  ;;  %v9199_v1 = vmul.u32.u64.high %v9148_v61, %v2382_v22, %v9198_v4 }
 0x24e   : > { %7045 = vcosq.f32 %v9100_v18  ;;  %v2386_v14 = vsel %vm2372_vm3, %v2383_v32, %v2385_v16  ;;  %v6466_v15 = vadd.s32 4294967169, %v2447_v24  ;;  %v9207_v47 = vadd.f32 %v8687_v37, %v9104_v40 }
 0x24f   : > { %7047 = vsinq.f32 %v9100_v18  ;;  %v6455_v7 = vmin.u32 %v2197_v13, %v9186_v11  ;;  %v9212_v25 = vmul.u32.u64.low %v9148_v61, %v2386_v14  ;;  %v9213_v12 = vmul.u32.u64.high %v9148_v61, %v2386_v14, %v9212_v25 }
 0x250   : > { %7049 = vcosq.f32 %v9146_v29  ;;  %v2378_v24 = vsel %vm2372_vm3, %v2375_v63, %v2377_v19  ;;  %v2453_v59 = vadd.s32 1, %v6466_v15  ;;  %v2320_v37 = vsel %vm2237_vm7, %v2319_v49, %v2318_v8 }
 0x251   : > { %v2199_v18 = vclz %v6455_v7  ;;  %v2397_v60 = vadd.s32 1, %v9199_v1  ;;  %v2451_v55 = vor.u32 8388608, %v9155_v46  ;;  %7051 = vsinq.f32 %v9146_v29 }
 0x252   : > { %vm2454_vm4 = vcmp.gt.s32.totalorder %v2453_v59, 0  ;;  %v11865_v23 = vand.u32 2147483647, %v9207_v47  ;;  %v2654_v32 = vand.u32 2139095040, %v9207_v47  ;;  %v2394_v6 = vmul.u32 %v9148_v61, %v2378_v24 }
 0x253   : > { %v6456_v22 = vadd.s32 4294967294, %v2199_v18  ;;  %vm2396_vm3 = vc.u32 %v9213_v12, %v9198_v4  ;;  %v2455_v63 = vsel %vm2454_vm4, %v2453_v59, 0  ;;  %v9234_v8 = vsel %vm9182_vm9, %v8810_v52, %v2320_v37 }
 0x254   : > { %v2187_v29 = vadd.s32 %v9134_v39, %v9140_v30  ;;  %v2398_v46 = vsel %vm2396_vm3, %v2397_v60, %v9199_v1  ;;  %v2457_v49 = vand.u32 31, %v2455_v63  ;;  %v9239_v21 = vshrl.u32 %v2455_v63, 5 }
 0x255   : > { %vm6457_vm0 = vcmp.lt.s32.totalorder %v6456_v22, 0  ;;  %v2399_v19 = vadd.s32 %v2398_v46, %v2394_v6  ;;  %v9241_v61 = vshll.u32 %v2451_v55, 8  ;;  %v2655_v14 = vshrl.u32 %v2654_v32, 23 }
 0x256   : > { %v2202_v13 = vsel %vm6457_vm0, 0, %v6456_v22  ;;  %v2458_v16 = vsub.s32 32, %v2457_v49  ;;  %v9245_v15 = vand.u32 8388607, %v11865_v23  ;;  %v2460_v39 = vshll.u32 %v11995_v54, %v2457_v49 }
 0x257   : > { %v2203_v7 = vsub.s32 32, %v2202_v13  ;;  %v2207_v25 = vsub.s32 4294967266, %v2202_v13  ;;  %v2400_v24 = vadd.s32 536870912, %v2399_v19  ;;  %v2204_v1 = vshll.u32 %v9186_v11, %v2202_v13 }
 0x258   : > { %v9248_v30 = vpop.eup %7045  ;;  %v2461_v59 = vshrl.u32 %v11994_v36, %v2458_v16  ;;  %v2463_v37 = vshll.u32 %v11994_v36, %v2457_v49  ;;  %v2464_v18 = vshrl.u32 %v11985_v27, %v2458_v16  ;;  %v2467_v6 = vshrl.u32 %v11986_v62, %v2458_v16 }
 0x259   : > { %12070 = vst [vmem:[#allocation55_spill] sm:$0xff] %v9248_v30  ;;  %v9254_v60 = vpop.eup %7047  ;;  %v2205_v55 = vshrl.u32 %v2187_v29, %v2203_v7  ;;  %v2208_v32 = vadd.s32 127, %v2207_v25  ;;  %v9256_v22 = vshrl.u32 %v2400_v24, 30  ;;  %v2466_v23 = vshll.u32 %v11985_v27, %v2457_v49 }
 0x25a   : > { %12071 = vst [vmem:[#allocation56_spill] sm:$0xff] %v9254_v60  ;;  %v9259_v63 = vpop.eup %7049  ;;  %v2462_v46 = vor.u32 %v2461_v59, %v2460_v39  ;;  %v2469_v11 = vshll.u32 %v11986_v62, %v2457_v49  ;;  %v2470_v13 = vshrl.u32 %v11996_v51, %v2458_v16  ;;  %v2465_v60 = vor.u32 %v2464_v18, %v2463_v37 }
 0x25b   : > { %12072 = vst [vmem:[#allocation57_spill] sm:$0xff] %v9256_v22  ;;  %12073 = vst [vmem:[#allocation58_spill] sm:$0xff] %v9259_v63  ;;  %v2206_v5 = vor.u32 %v2205_v55, %v2204_v1  ;;  %v2209_v30 = vshll.u32 %v2208_v32, 23  ;;  %v2402_v17 = vshll.u32 %v9256_v22, 30  ;;  %v9265_v29 = vpop.eup %7051  ;;  %v2468_v7 = vor.u32 %v2467_v6, %v2466_v23 }
 0x25c   : > { %12074 = vst [vmem:[#allocation59_spill] sm:$0xff] %v9265_v29  ;;  %v2471_v25 = vor.u32 %v2470_v13, %v2469_v11  ;;  %v2472_v24 = vshll.u32 %v11996_v51, %v2457_v49  ;;  %v2473_v63 = vshrl.u32 %v11987_v10, %v2458_v16  ;;  %v2459_v0 = vshrl.u32 %v11995_v54, %v2458_v16 }
 0x25d   : > { %v2210_v39 = vor.u32 4788187, %v2209_v30  ;;  %v9269_v59 = vsub.s32 %v2399_v19, %v2402_v17  ;;  %v9274_v1 = vadd.f32 %v8791_v9, %v9104_v40  ;;  %v2213_v55 = vcvt.s32.f32 %v2206_v5 }
 0x25e   : > { %v2474_v32 = vor.u32 %v2473_v63, %v2472_v24  ;;  %vm2475_vm11 = vcmp.lt.s32.totalorder %v9239_v21, 1  ;;  %vm2477_vm4 = vcmp.lt.s32.totalorder %v9239_v21, 3  ;;  %vm2478_vm3 = vcmp.lt.s32.totalorder %v9239_v21, 4 }
 0x25f   : > { %v2211_v23 = vand.u32 2147483647, %v2210_v39  ;;  %v2405_v49 = vsub.s32 0, %v9269_v59  ;;  %v2483_v30 = vsel %vm2475_vm11, %v2462_v46, %v2465_v60  ;;  %v2480_v17 = vsel %vm2478_vm3, %v2468_v7, 2102212464 }
 0x260   : > { %v2484_v19 = vsel %vm2478_vm3, %v2471_v25, 920167782  ;;  %v2487_v37 = vsel %vm2475_vm11, %v2465_v60, %v2468_v7  ;;  %v2488_v16 = vsel %vm2478_vm3, %v2474_v32, 1326507024  ;;  %vm2476_vm0 = vcmp.lt.s32.totalorder %v9239_v21, 2 }
 0x261   : > { %v2214_v18 = vmul.f32 %v2213_v55, %v2211_v23  ;;  %v6463_v9 = vmin.u32 %v2405_v49, %v9269_v59  ;;  %v2485_v5 = vsel %vm2477_vm4, %v2468_v7, %v2484_v19  ;;  %v2479_v6 = vsel %vm2475_vm11, %v2459_v0, %v2462_v46 }
 0x262   : > { %v2486_v63 = vsel %vm2476_vm0, %v2483_v30, %v2485_v5  ;;  %v2489_v11 = vsel %vm2477_vm4, %v2471_v25, %v2488_v16  ;;  %v6474_v13 = vadd.s32 4294967169, %v2655_v14  ;;  %v12075_v24 = vand.u32 2147483647, %v8957_v3 }
 0x263   : > { %v12076_v39 = vmov 0  ;;  %v2215_v55 = vxor.u32 2147483648, %v2214_v18  ;;  %v2407_v32 = vclz %v6463_v9  ;;  %v2481_v23 = vsel %vm2477_vm4, %v2465_v60, %v2480_v17 }
 0x264   : > { %vm9290_vm14 = vcmp.le.f32.partialorder %v12075_v24, 0.7853982  ;;  %v2490_v0 = vsel %vm2476_vm0, %v2487_v37, %v2489_v11  ;;  %v9303_v14 = vmul.u32.u64.low %v9241_v61, %v2486_v63  ;;  %v9304_v25 = vmul.u32.u64.high %v9241_v61, %v2486_v63, %v9303_v14 }
 0x265   : > { %v12077_v39 = vsel %vm9290_vm14, 4294967295, %v12076_v39  ;;  %v9299_v46 = vmul.u32.u64.low %v9241_v61, %v2490_v0  ;;  %v9300_v7 = vmul.u32.u64.high %v9241_v61, %v2490_v0, %v9299_v46  ;;  %7053 = vcosq.f32 %v9234_v8 }
 0x266   : > { %12078 = vst [vmem:[#allocation60_spill] sm:$0xff] %v12077_v39  ;;  %vm11877_vm11 = vcmp.lt.s32.totalorder %v8957_v3, 0  ;;  %v6464_v49 = vadd.s32 4294967294, %v2407_v32  ;;  %v2661_v30 = vadd.s32 1, %v6474_v13  ;;  %v12079_v60 = vsel %vm9113_vm15, 0, %v9076_v26 }
 0x267   : > { %v9313_v17 = vadd.s32 3, %v12079_v60  ;;  %7055 = vsinq.f32 %v9234_v8  ;;  %v2659_v37 = vor.u32 8388608, %v9245_v15  ;;  %v2395_v16 = vadd.s32 %v9198_v4, %v9213_v12 }
 0x268   : > { %vm6465_vm4 = vcmp.lt.s32.totalorder %v6464_v49, 0  ;;  %v2482_v9 = vsel %vm2476_vm0, %v2479_v6, %v2481_v23  ;;  %vm2662_vm3 = vcmp.gt.s32.totalorder %v2661_v30, 0  ;;  %v2216_v34 = vsel %vm11877_vm11, %v2215_v55, %v2214_v18 }
 0x269   : > { %12080 = vst [vmem:[#allocation61_spill] sm:$0xff] %v9313_v17  ;;  %v2410_v26 = vsel %vm6465_vm4, 0, %v6464_v49  ;;  %vm2500_vm15 = vc.u32 %v9300_v7, %v9303_v14  ;;  %v2550_v5 = vand.u32 2139095040, %v9274_v1  ;;  %v2501_v15 = vadd.s32 1, %v9304_v25 }
 0x26a   : > { %v2411_v8 = vsub.s32 32, %v2410_v26  ;;  %v2415_v63 = vsub.s32 4294967266, %v2410_v26  ;;  %v11873_v4 = vand.u32 2147483647, %v9274_v1  ;;  %v2412_v12 = vshll.u32 %v9269_v59, %v2410_v26 }
 0x26b   : > { %v2498_v21 = vmul.u32 %v9241_v61, %v2482_v9  ;;  %v2663_v6 = vsel %vm2662_vm3, %v2661_v30, 0  ;;  %v9331_v11 = vshll.u32 %v2659_v37, 8  ;;  %v2502_v24 = vsel %vm2500_vm15, %v2501_v15, %v9304_v25 }
 0x26c   : > { %v2413_v18 = vshrl.u32 %v2395_v16, %v2411_v8  ;;  %v2416_v13 = vadd.s32 127, %v2415_v63  ;;  %v2664_v55 = vshrl.u32 %v2663_v6, 5  ;;  %v9337_v32 = vsel %vm9290_vm14, %v8957_v3, %v2216_v34 }
 0x26d   : > { %v2503_v23 = vadd.s32 %v2502_v24, %v2498_v21  ;;  %v2665_v0 = vand.u32 31, %v2663_v6  ;;  %v2551_v46 = vshrl.u32 %v2550_v5, 23  ;;  %v9341_v61 = vand.u32 8388607, %v11873_v4 }
 0x26e   : > { %v2414_v49 = vor.u32 %v2413_v18, %v2412_v12  ;;  %v2417_v59 = vshll.u32 %v2416_v13, 23  ;;  %vm2683_vm0 = vcmp.lt.s32.totalorder %v2664_v55, 1  ;;  %vm2684_vm4 = vcmp.lt.s32.totalorder %v2664_v55, 2 }
 0x26f   : > { %v2504_v30 = vadd.s32 536870912, %v2503_v23  ;;  %v2666_v60 = vsub.s32 32, %v2665_v0  ;;  %v2668_v25 = vshll.u32 %v11995_v54, %v2665_v0  ;;  %v2671_v37 = vshll.u32 %v11994_v36, %v2665_v0  ;;  %v9345_v16 = vpop.eup %7053 }
 0x270   : > { %12081 = vst [vmem:[#allocation62_spill] sm:$0xff] %v9345_v16  ;;  %vm11883_vm3 = vcmp.lt.s32.totalorder %v8961_v31, 0  ;;  %v2418_v9 = vor.u32 4788187, %v2417_v59  ;;  %v2421_v34 = vcvt.s32.f32 %v2414_v49  ;;  %v2674_v26 = vshll.u32 %v11985_v27, %v2665_v0 }
 0x271   : > { %v2677_v5 = vshll.u32 %v11986_v62, %v2665_v0  ;;  %v9350_v8 = vpop.eup %7055  ;;  %v9352_v63 = vshrl.u32 %v2504_v30, 30  ;;  %v2667_v15 = vshrl.u32 %v11995_v54, %v2666_v60  ;;  %v2669_v12 = vshrl.u32 %v11994_v36, %v2666_v60 }
 0x272   : > { %12082 = vst [vmem:[#allocation63_spill] sm:$0xff] %v9350_v8  ;;  %v2672_v21 = vshrl.u32 %v11985_v27, %v2666_v60  ;;  %v2419_v6 = vand.u32 2147483647, %v2418_v9  ;;  %v2675_v18 = vshrl.u32 %v11986_v62, %v2666_v60  ;;  %v2678_v13 = vshrl.u32 %v11996_v51, %v2666_v60 }
 0x273   : > { %v2680_v24 = vshll.u32 %v11996_v51, %v2665_v0  ;;  %v2506_v49 = vshll.u32 %v9352_v63, 30  ;;  %v2670_v59 = vor.u32 %v2669_v12, %v2668_v25  ;;  %v2681_v30 = vshrl.u32 %v11987_v10, %v2666_v60 }
 0x274   : > { %v2673_v4 = vor.u32 %v2672_v21, %v2671_v37  ;;  %v2422_v19 = vmul.f32 %v2421_v34, %v2419_v6  ;;  %v2676_v16 = vor.u32 %v2675_v18, %v2674_v26  ;;  %v2679_v8 = vor.u32 %v2678_v13, %v2677_v5 }
 0x275   : > { %vm2685_vm15 = vcmp.lt.s32.totalorder %v2664_v55, 3  ;;  %v9362_v29 = vsub.s32 %v2503_v23, %v2506_v49  ;;  %v2682_v17 = vor.u32 %v2681_v30, %v2680_v24  ;;  %vm2686_vm11 = vcmp.lt.s32.totalorder %v2664_v55, 4 }
 0x276   : > { %v2687_v9 = vsel %vm2683_vm0, %v2667_v15, %v2670_v59  ;;  %v2423_v22 = vxor.u32 2147483648, %v2422_v19  ;;  %v2688_v39 = vsel %vm2686_vm11, %v2676_v16, 2102212464  ;;  %v2691_v0 = vsel %vm2683_vm0, %v2670_v59, %v2673_v4 }
 0x277   : > { %v2692_v3 = vsel %vm2686_vm11, %v2679_v8, 920167782  ;;  %v2509_v25 = vsub.s32 0, %v9362_v29  ;;  %v2689_v37 = vsel %vm2685_vm15, %v2673_v4, %v2688_v39  ;;  %v2695_v34 = vsel %vm2683_vm0, %v2673_v4, %v2676_v16 }
 0x278   : > { %v2693_v60 = vsel %vm2685_vm15, %v2676_v16, %v2692_v3  ;;  %v2696_v26 = vsel %vm2686_vm11, %v2682_v17, 1326507024  ;;  %v6470_v5 = vadd.s32 4294967169, %v2551_v46  ;;  %v9373_v15 = vadd.f32 %v8848_v50, %v9104_v40 }
 0x279   : > { %v2694_v23 = vsel %vm2684_vm4, %v2691_v0, %v2693_v60  ;;  %v2424_v12 = vsel %vm11883_vm3, %v2423_v22, %v2422_v19  ;;  %v6467_v21 = vmin.u32 %v2509_v25, %v9362_v29  ;;  %v2697_v6 = vsel %vm2685_vm15, %v2679_v8, %v2696_v26 }
 0x27a   : > { %v2555_v39 = vor.u32 8388608, %v9341_v61  ;;  %v2690_v3 = vsel %vm2684_vm4, %v2687_v9, %v2689_v37  ;;  %v2698_v4 = vsel %vm2684_vm4, %v2695_v34, %v2697_v6  ;;  %7057 = vcosq.f32 %v9337_v32 }
 0x27b   : > { %v9383_v17 = vmul.u32.u64.low %v9331_v11, %v2694_v23  ;;  %v9384_v46 = vmul.u32.u64.high %v9331_v11, %v2694_v23, %v9383_v17  ;;  %v2511_v50 = vclz %v6467_v21  ;;  %v12083_v19 = vsub.s32 4, %v9087_v38 }
 0x27c   : > { %v9389_v40 = vmul.u32.u64.low %v9331_v11, %v2698_v4  ;;  %v9390_v22 = vmul.u32.u64.high %v9331_v11, %v2698_v4, %v9389_v40  ;;  %7059 = vsinq.f32 %v9337_v32  ;;  %v12084_v55 = vand.u32 2147483647, %v8961_v31 }
 0x27d   : > { %v9397_v61 = vsel %vm2237_vm7, %v12083_v19, %v9087_v38  ;;  %v2557_v8 = vadd.s32 1, %v6470_v5  ;;  %v2499_v13 = vadd.s32 %v9303_v14, %v9300_v7  ;;  %v6468_v24 = vadd.s32 4294967294, %v2511_v50 }
 0x27e   : > { %vm9402_vm11 = vcmp.le.f32.partialorder %v12084_v55, 0.7853982  ;;  %v2706_v38 = vmul.u32 %v9331_v11, %v2690_v3  ;;  %v2709_v32 = vadd.s32 1, %v9384_v46  ;;  %v9415_v49 = vshll.u32 %v2555_v39, 8 }
 0x27f   : > { %v9409_v18 = vsel %vm9402_vm11, %v8961_v31, %v2424_v12  ;;  %vm2558_vm7 = vcmp.gt.s32.totalorder %v2557_v8, 0  ;;  %v11885_v59 = vand.u32 2147483647, %v9373_v15  ;;  %vm6469_vm0 = vcmp.lt.s32.totalorder %v6468_v24, 0 }
 0x280   : > { %vm2708_vm4 = vc.u32 %v9390_v22, %v9383_v17  ;;  %v2559_v30 = vsel %vm2558_vm7, %v2557_v8, 0  ;;  %v2758_v9 = vand.u32 2139095040, %v9373_v15  ;;  %v2514_v0 = vsel %vm6469_vm0, 0, %v6468_v24 }
 0x281   : > { %v2710_v7 = vsel %vm2708_vm4, %v2709_v32, %v9384_v46  ;;  %v2561_v14 = vand.u32 31, %v2559_v30  ;;  %v2515_v25 = vsub.s32 32, %v2514_v0  ;;  %v2519_v37 = vsub.s32 4294967266, %v2514_v0 }
 0x282   : > { %v2711_v60 = vadd.s32 %v2710_v7, %v2706_v38  ;;  %v2560_v34 = vshrl.u32 %v2559_v30, 5  ;;  %v2516_v23 = vshll.u32 %v9362_v29, %v2514_v0  ;;  %vm11886_vm15 = vcmp.lt.s32.totalorder %v9120_v41, 0 }
 0x283   : > { %v2562_v26 = vsub.s32 32, %v2561_v14  ;;  %v2564_v5 = vshll.u32 %v11995_v54, %v2561_v14  ;;  %v2567_v12 = vshll.u32 %v11994_v36, %v2561_v14  ;;  %v2517_v21 = vshrl.u32 %v2499_v13, %v2515_v25 }
 0x284   : > { %v2520_v6 = vadd.s32 127, %v2519_v37  ;;  %v2712_v39 = vadd.s32 536870912, %v2711_v60  ;;  %v2570_v3 = vshll.u32 %v11985_v27, %v2561_v14  ;;  %v2573_v40 = vshll.u32 %v11986_v62, %v2561_v14  ;;  %v9431_v19 = vpop.eup %7057 }
 0x285   : > { %v2565_v4 = vshrl.u32 %v11994_v36, %v2562_v26  ;;  %v2568_v46 = vshrl.u32 %v11985_v27, %v2562_v26  ;;  %v2571_v50 = vshrl.u32 %v11986_v62, %v2562_v26  ;;  %v2518_v29 = vor.u32 %v2517_v21, %v2516_v23 }
 0x286   : > { %v2521_v55 = vshll.u32 %v2520_v6, 23  ;;  %v9433_v8 = vshrl.u32 %v2712_v39, 30  ;;  %v2574_v13 = vshrl.u32 %v11996_v51, %v2562_v26  ;;  %v9436_v24 = vpop.eup %7059  ;;  %v9441_v0 = vand.u32 8388607, %v11885_v59 }
 0x287   : > { %v2566_v38 = vor.u32 %v2565_v4, %v2564_v5  ;;  %v2569_v32 = vor.u32 %v2568_v46, %v2567_v12  ;;  %v2572_v30 = vor.u32 %v2571_v50, %v2570_v3  ;;  %v2563_v37 = vshrl.u32 %v11995_v54, %v2562_v26 }
 0x288   : > { %v2522_v7 = vor.u32 4788187, %v2521_v55  ;;  %v2714_v25 = vshll.u32 %v9433_v8, 30  ;;  %v2575_v23 = vor.u32 %v2574_v13, %v2573_v40  ;;  %v12087_v21 = vand.u32 2147483647, %v9120_v41 }
 0x289   : > { %v2525_v39 = vcvt.s32.f32 %v2518_v29  ;;  %v2576_v5 = vshll.u32 %v11996_v51, %v2561_v14  ;;  %v2577_v12 = vshrl.u32 %v11987_v10, %v2562_v26  ;;  %vm2579_vm0 = vcmp.lt.s32.totalorder %v2560_v34, 1 }
 0x28a   : > { %vm9447_vm7 = vcmp.le.f32.partialorder %v12087_v21, 0.7853982  ;;  %v2523_v3 = vand.u32 2147483647, %v2522_v7  ;;  %v9453_v4 = vsub.s32 %v2711_v60, %v2714_v25  ;;  %vm2581_vm4 = vcmp.lt.s32.totalorder %v2560_v34, 3 }
 0x28b   : > { %vm2582_vm3 = vcmp.lt.s32.totalorder %v2560_v34, 4  ;;  %v2578_v46 = vor.u32 %v2577_v12, %v2576_v5  ;;  %v2587_v40 = vsel %vm2579_vm0, %v2566_v38, %v2569_v32  ;;  %vm2580_vm5 = vcmp.lt.s32.totalorder %v2560_v34, 2 }
 0x28c   : > { %v2584_v50 = vsel %vm2582_vm3, %v2572_v30, 2102212464  ;;  %v2588_v55 = vsel %vm2582_vm3, %v2575_v23, 920167782  ;;  %v2526_v13 = vmul.f32 %v2525_v39, %v2523_v3  ;;  %v2717_v21 = vsub.s32 0, %v9453_v4 }
 0x28d   : > { %v2589_v29 = vsel %vm2581_vm4, %v2572_v30, %v2588_v55  ;;  %v2583_v59 = vsel %vm2579_vm0, %v2563_v37, %v2566_v38  ;;  %v2591_v26 = vsel %vm2579_vm0, %v2569_v32, %v2572_v30  ;;  %v2592_v11 = vsel %vm2582_vm3, %v2578_v46, 1326507024 }
 0x28e   : > { %v2590_v14 = vsel %vm2580_vm5, %v2587_v40, %v2589_v29  ;;  %v2527_v7 = vxor.u32 2147483648, %v2526_v13  ;;  %v6475_v60 = vmin.u32 %v2717_v21, %v9453_v4  ;;  %v2585_v25 = vsel %vm2581_vm4, %v2569_v32, %v2584_v50 }
 0x28f   : > { %v2593_v5 = vsel %vm2581_vm4, %v2575_v23, %v2592_v11  ;;  %v9463_v39 = vmul.u32.u64.low %v9415_v49, %v2590_v14  ;;  %v9464_v3 = vmul.u32.u64.high %v9415_v49, %v2590_v14, %v9463_v39  ;;  %v2759_v38 = vshrl.u32 %v2758_v9, 23 }
 0x290   : > { %v2594_v12 = vsel %vm2580_vm5, %v2591_v26, %v2593_v5  ;;  %v2528_v30 = vsel %vm11886_vm15, %v2527_v7, %v2526_v13  ;;  %v2719_v37 = vclz %v6475_v60  ;;  %7061 = vcosq.f32 %v9409_v18 }
 0x291   : > { %v9471_v46 = vmul.u32.u64.low %v9415_v49, %v2594_v12  ;;  %v9472_v40 = vmul.u32.u64.high %v9415_v49, %v2594_v12, %v9471_v46  ;;  %v2586_v11 = vsel %vm2580_vm5, %v2583_v59, %v2585_v25  ;;  %v6478_v32 = vadd.s32 4294967169, %v2759_v38 }
 0x292   : > { %v12090_v23 = vsub.s32 4, %v8109_v42  ;;  %v2324_v9 = vsel %vm9182_vm9, 0, %v9397_v61  ;;  %7063 = vsinq.f32 %v9409_v18  ;;  %v2531_v55 = vsel %vm9447_vm7, %v9120_v41, %v2528_v30 }
 0x293   : > { %v6476_v13 = vadd.s32 4294967294, %v2719_v37  ;;  %v2707_v59 = vadd.s32 %v9383_v17, %v9390_v22  ;;  %v2605_v34 = vadd.s32 1, %v9464_v3  ;;  %v2765_v21 = vadd.s32 1, %v6478_v32 }
 0x294   : > { %v970_v50 = vsel %vm885_vm13, %v12090_v23, %v8109_v42  ;;  %v2602_v57 = vmul.u32 %v9415_v49, %v2586_v11  ;;  %vm2604_vm5 = vc.u32 %v9472_v40, %v9463_v39  ;;  %v2763_v61 = vor.u32 8388608, %v9441_v0 }
 0x295   : > { %v972_v42 = vsel %vm8289_vm2, 0, %v970_v50  ;;  %vm6477_vm13 = vcmp.lt.s32.totalorder %v6476_v13, 0  ;;  %7065 = vcosq.f32 %v2531_v55  ;;  %v2606_v29 = vsel %vm2604_vm5, %v2605_v34, %v9464_v3 }
 0x296   : > { %v2722_v18 = vsel %vm6477_vm13, 0, %v6476_v13  ;;  %vm2766_vm9 = vcmp.gt.s32.totalorder %v2765_v21, 0  ;;  %v2607_v22 = vadd.s32 %v2606_v29, %v2602_v57  ;;  %v976_v26 = vadd.s32 3, %v972_v42 }
 0x297   : > { %v2723_v14 = vsub.s32 32, %v2722_v18  ;;  %v2727_v17 = vsub.s32 4294967266, %v2722_v18  ;;  %v9497_v7 = vadd.s32 3, %v2324_v9  ;;  %7067 = vsinq.f32 %v2531_v55 }
 0x298   : > { %v2767_v58 = vsel %vm2766_vm9, %v2765_v21, 0  ;;  %v980_v60 = vxor.u32 2147483648, %v8444_v44  ;;  %v2724_v49 = vshll.u32 %v9453_v4, %v2722_v18  ;;  %v2608_v0 = vadd.s32 536870912, %v2607_v22 }
 0x299   : > { %v2725_v25 = vshrl.u32 %v2707_v59, %v2723_v14  ;;  %v2728_v5 = vadd.s32 127, %v2727_v17  ;;  %v9502_v12 = vadd.s32 %v9463_v39, %v9472_v40  ;;  %v2769_v3 = vand.u32 31, %v2767_v58 }
 0x29a   : > { %v9504_v38 = vshll.u32 %v2763_v61, 8  ;;  %v983_v30 = vxor.u32 2147483648, %v8436_v20  ;;  %v9507_v11 = vshrl.u32 %v2608_v0, 30  ;;  %v9509_v32 = vand.u32 3, %v976_v26  ;;  %v9511_v23 = vpop.eup %7061 }
 0x29b   : > { %v2726_v37 = vor.u32 %v2725_v25, %v2724_v49  ;;  %v2729_v46 = vshll.u32 %v2728_v5, 23  ;;  %v9513_v4 = vshrl.u32 %v2767_v58, 5  ;;  %v2770_v50 = vsub.s32 32, %v2769_v3 }
 0x29c   : > { %v2772_v9 = vshll.u32 %v11995_v54, %v2769_v3  ;;  %v2775_v39 = vshll.u32 %v11994_v36, %v2769_v3  ;;  %v9517_v40 = vpop.eup %7063  ;;  %v2610_v59 = vshll.u32 %v9507_v11, 30  ;;  %v2778_v34 = vshll.u32 %v11985_v27, %v2769_v3 }
 0x29d   : > { %v2730_v55 = vor.u32 4788187, %v2729_v46  ;;  %v2733_v13 = vcvt.s32.f32 %v2726_v37  ;;  %v2773_v21 = vshrl.u32 %v11994_v36, %v2770_v50  ;;  %v2776_v42 = vshrl.u32 %v11985_v27, %v2770_v50 }
 0x29e   : > { %v2779_v57 = vshrl.u32 %v11986_v62, %v2770_v50  ;;  %v2781_v61 = vshll.u32 %v11986_v62, %v2769_v3  ;;  %v9525_v29 = vsub.s32 %v2607_v22, %v2610_v59  ;;  %v2782_v14 = vshrl.u32 %v11996_v51, %v2770_v50 }
 0x29f   : > { %v2731_v18 = vand.u32 2147483647, %v2730_v55  ;;  %v2784_v17 = vshll.u32 %v11996_v51, %v2769_v3  ;;  %v9529_v26 = vpop.eup %7065  ;;  %vm11887_vm2 = vcmp.lt.s32.totalorder %v9207_v47, 0  ;;  %v2774_v58 = vor.u32 %v2773_v21, %v2772_v9 }
 0x2a0   : > { %v2777_v49 = vor.u32 %v2776_v42, %v2775_v39  ;;  %v2780_v36 = vor.u32 %v2779_v57, %v2778_v34  ;;  %v2785_v27 = vshrl.u32 %v11987_v10, %v2770_v50  ;;  %v2613_v5 = vsub.s32 0, %v9525_v29 }
 0x2a1   : > { %v2734_v25 = vmul.f32 %v2733_v13, %v2731_v18  ;;  %v2783_v62 = vor.u32 %v2782_v14, %v2781_v61  ;;  %v1385_v22 = vsub.s32 4, %v8438_v48  ;;  %v9535_v0 = vpop.eup %7067  ;;  %v2771_v37 = vshrl.u32 %v11995_v54, %v2770_v50 }
 0x2a2   : > { %v2786_v51 = vor.u32 %v2785_v27, %v2784_v17  ;;  %vm2787_vm3 = vcmp.lt.s32.totalorder %v9513_v4, 1  ;;  %vm979_vm0 = vcmp.eq.s32.totalorder %v9509_v32, 0  ;;  %v6471_v3 = vmin.u32 %v2613_v5, %v9525_v29 }
 0x2a3   : > { %vm2789_vm4 = vcmp.lt.s32.totalorder %v9513_v4, 3  ;;  %vm2790_vm13 = vcmp.lt.s32.totalorder %v9513_v4, 4  ;;  %v2795_v10 = vsel %vm2787_vm3, %v2774_v58, %v2777_v49  ;;  %v2799_v39 = vsel %vm2787_vm3, %v2777_v49, %v2780_v36 }
 0x2a4   : > { %v2792_v46 = vsel %vm2790_vm13, %v2780_v36, 2102212464  ;;  %v2796_v9 = vsel %vm2790_vm13, %v2783_v62, 920167782  ;;  %v2800_v54 = vsel %vm2790_vm13, %v2786_v51, 1326507024  ;;  %v2615_v59 = vclz %v6471_v3 }
 0x2a5   : > { %v12091_v50 = vand.u32 2147483647, %v9207_v47  ;;  %v2735_v13 = vxor.u32 2147483648, %v2734_v25  ;;  %vm2788_vm9 = vcmp.lt.s32.totalorder %v9513_v4, 2  ;;  %v2797_v34 = vsel %vm2789_vm4, %v2780_v36, %v2796_v9 }
 0x2a6   : > { %vm975_vm15 = vweird.f32 %v7916_v56  ;;  %v2791_v21 = vsel %vm2787_vm3, %v2771_v37, %v2774_v58  ;;  %v2798_v42 = vsel %vm2788_vm9, %v2795_v10, %v2797_v34  ;;  %v2801_v57 = vsel %vm2789_vm4, %v2783_v62, %v2800_v54  ;;  %v12097_v54 = vld [vmem:[#allocation18_spill] sm:$0xff] }
 0x2a7   : > { %vm9549_vm5 = vcmp.le.f32.partialorder %v12091_v50, 0.7853982  ;;  %vm982_vm13 = vcmp.eq.s32.totalorder %v9509_v32, 2  ;;  %v6472_v61 = vadd.s32 4294967294, %v2615_v59  ;;  %v2793_v18 = vsel %vm2789_vm4, %v2777_v49, %v2792_v46  ;;  %v12096_v46 = vld [vmem:[#allocation41_spill] sm:$0xff] }
 0x2a8   : > { %v2802_v14 = vsel %vm2788_vm9, %v2799_v39, %v2801_v57  ;;  %v981_v17 = vsel %vm979_vm0, %v8436_v20, %v980_v60  ;;  %vm978_vm3 = vcmp.lt.s32.totalorder %v9509_v32, 2  ;;  %v984_v27 = vsel %vm982_vm13, %v983_v30, %v8444_v44  ;;  %v12098_v57 = vld [vmem:[#allocation15_spill] sm:$0xff] }
 0x2a9   : > { %v9574_v58 = vmul.u32.u64.low %v9504_v38, %v2802_v14  ;;  %v9575_v36 = vmul.u32.u64.high %v9504_v38, %v2802_v14, %v9574_v58  ;;  %v2736_v49 = vsel %vm11887_vm2, %v2735_v13, %v2734_v25  ;;  %vm6473_vm4 = vcmp.lt.s32.totalorder %v6472_v61, 0  ;;  %v12100_v14 = vld [vmem:[#allocation32_spill] sm:$0xff] }
 0x2aa   : > { %v9584_v5 = vmul.u32.u64.low %v9504_v38, %v2798_v42  ;;  %v9585_v62 = vmul.u32.u64.high %v9504_v38, %v2798_v42, %v9584_v5  ;;  %v2618_v60 = vsel %vm6473_vm4, 0, %v6472_v61  ;;  %v2794_v37 = vsel %vm2788_vm9, %v2791_v21, %v2793_v18 }
 0x2ab   : > { %v985_v51 = vsel %vm978_vm3, %v981_v17, %v984_v27  ;;  %vm12094_vm0 = vcmp.lt.s32.totalorder %v8228_v43, 0  ;;  %vm1391_vm13 = vweird.f32 %v8228_v43  ;;  %v2619_v20 = vsub.s32 32, %v2618_v60 }
 0x2ac   : > { %v1386_v32 = vsel %vm12094_vm0, %v1385_v22, %v8438_v48  ;;  %v2623_v44 = vsub.s32 4294967266, %v2618_v60  ;;  %v1396_v3 = vxor.u32 2147483648, %v8825_v2  ;;  %v2620_v10 = vshll.u32 %v9525_v29, %v2618_v60 }
 0x2ad   : > { %v1388_v25 = vsel %vm8645_vm12, 0, %v1386_v32  ;;  %vm2812_vm4 = vc.u32 %v9575_v36, %v9584_v5  ;;  %v1399_v9 = vxor.u32 2147483648, %v12096_v46  ;;  %v2621_v39 = vshrl.u32 %v9502_v12, %v2619_v20  ;;  %v12105_v32 = vld [vmem:[#allocation30_spill] sm:$0xff] }
 0x2ae   : > { %v1392_v4 = vadd.s32 3, %v1388_v25  ;;  %v2624_v48 = vadd.s32 127, %v2623_v44  ;;  %v2813_v22 = vadd.s32 1, %v9585_v62  ;;  %v1177_v50 = vsub.s32 4, %v12097_v54 }
 0x2af   : > { %v9607_v13 = vsel %vm9549_vm5, %v9207_v47, %v2736_v49  ;;  %v2810_v29 = vmul.u32 %v9504_v38, %v2794_v37  ;;  %v986_v59 = vsel %vm975_vm15, nan, %v985_v51  ;;  %v2622_v21 = vor.u32 %v2621_v39, %v2620_v10 }
 0x2b0   : > { %v1393_v34 = vand.u32 3, %v1392_v4  ;;  %v2625_v42 = vshll.u32 %v2624_v48, 23  ;;  %v2814_v12 = vsel %vm2812_vm4, %v2813_v22, %v9585_v62  ;;  %vm12099_vm12 = vcmp.lt.s32.totalorder %v12098_v57, 0  ;;  %v12107_v4 = vld [vmem:[#allocation31_spill] sm:$0xff] }
 0x2b1   : > { %v1178_v61 = vsel %vm12099_vm12, %v1177_v50, %v12097_v54  ;;  %vm2549_vm9 = vcmp.lt.s32.totalorder %v9274_v1, 0  ;;  %v2815_v18 = vadd.s32 %v2814_v12, %v2810_v29  ;;  %v1188_v17 = vxor.u32 2147483648, %v12100_v14  ;;  %v12112_v12 = vld [vmem:[#allocation45_spill] sm:$0xff] }
 0x2b2   : > { %vm1395_vm3 = vcmp.eq.s32.totalorder %v1393_v34, 0  ;;  %vm1398_vm0 = vcmp.eq.s32.totalorder %v1393_v34, 2  ;;  %v2626_v38 = vor.u32 4788187, %v2625_v42  ;;  %vm1394_vm2 = vcmp.lt.s32.totalorder %v1393_v34, 2  ;;  %v12111_v34 = vld [vmem:[#allocation19_spill] sm:$0xff] }
 0x2b3   : > { %v1397_v56 = vsel %vm1395_vm3, %v12096_v46, %v1396_v3  ;;  %v1400_v58 = vsel %vm1398_vm0, %v1399_v9, %v8825_v2  ;;  %v12101_v27 = vand.u32 2147483647, %v9274_v1  ;;  %v2816_v62 = vadd.s32 536870912, %v2815_v18  ;;  %v12108_v9 = vld [vmem:[#allocation23_spill] sm:$0xff] }
 0x2b4   : > { %v1401_v60 = vsel %vm1394_vm2, %v1397_v56, %v1400_v58  ;;  %v1180_v51 = vsel %vm8448_vm6, 0, %v1178_v61  ;;  %v1593_v20 = vsub.s32 4, %v12105_v32  ;;  %v2627_v44 = vand.u32 2147483647, %v2626_v38 }
 0x2b5   : > { %vm9622_vm15 = vcmp.le.f32.partialorder %v12101_v27, 0.7853982  ;;  %v2629_v30 = vcvt.s32.f32 %v2622_v21  ;;  %v1402_v25 = vsel %vm1391_vm13, nan, %v1401_v60  ;;  %v1184_v3 = vadd.s32 3, %v1180_v51 }
 0x2b6   : > { %v9631_v2 = vshrl.u32 %v2816_v62, 30  ;;  %v9633_v10 = vpack.c.bf16 %v1402_v25, %v986_v59  ;;  %v1191_v46 = vxor.u32 2147483648, %v12107_v4  ;;  %vm12109_vm2 = vcmp.lt.s32.totalorder %v12108_v9, 0 }
 0x2b7   : > { %v1594_v39 = vsel %vm12109_vm2, %v1593_v20, %v12105_v32  ;;  %7069 = vcosq.f32 %v9607_v13  ;;  %v2630_v48 = vmul.f32 %v2629_v30, %v2627_v44  ;;  %v1185_v22 = vand.u32 3, %v1184_v3  ;;  %v12115_v30 = vld [vmem:[#allocation21_spill] sm:$0xff] }
 0x2b8   : > { %12106 = vst [vmem:[#allocation34_spill] sm:$0xff] %v9633_v10  ;;  %v1596_v50 = vsel %vm8705_vm10, 0, %v1594_v39  ;;  %v2818_v43 = vshll.u32 %v9631_v2, 30  ;;  %6622 = vmatprep.subr.bf16.mxu0 %v9633_v10  ;;  %v1604_v59 = vxor.u32 2147483648, %v8885_v45  ;;  %v873_v21 = vand.u32 3, %v12111_v34  ;;  %v12116_v39 = vld [vmem:[#allocation29_spill] sm:$0xff] }
 0x2b9   : > { %v1600_v29 = vadd.s32 3, %v1596_v50  ;;  %v2631_v42 = vxor.u32 2147483648, %v2630_v48  ;;  %vm1187_vm6 = vcmp.eq.s32.totalorder %v1185_v22, 0  ;;  %vm1190_vm13 = vcmp.eq.s32.totalorder %v1185_v22, 2 }
 0x2ba   : > { %v1607_v61 = vxor.u32 2147483648, %v12112_v12  ;;  %v9647_v38 = vsub.s32 %v2815_v18, %v2818_v43  ;;  %v1189_v56 = vsel %vm1187_vm6, %v12107_v4, %v1188_v17  ;;  %v1192_v58 = vsel %vm1190_vm13, %v1191_v46, %v12100_v14  ;;  %v12113_v14 = vld [vmem:[#allocation13_spill] sm:$0xff]  ;;  %v12114_v17 = vld [vmem:[#allocation22_spill] sm:$0xff] }
 0x2bb   : > { %v1601_v27 = vand.u32 3, %v1600_v29  ;;  %v2632_v62 = vsel %vm2549_vm9, %v2631_v42, %v2630_v48  ;;  %v2811_v60 = vadd.s32 %v9584_v5, %v9575_v36  ;;  %vm1183_vm10 = vweird.f32 %v12098_v57  ;;  %v12119_v29 = vld [vmem:[#allocation33_spill] sm:$0xff] }
 0x2bc   : > { %vm1186_vm4 = vcmp.lt.s32.totalorder %v1185_v22, 2  ;;  %v2821_v37 = vsub.s32 0, %v9647_v38  ;;  %vm1599_vm12 = vweird.f32 %v12108_v9  ;;  %vm875_vm3 = vcmp.eq.s32.totalorder %v873_v21, 0 }
 0x2bd   : > { %v1193_v51 = vsel %vm1186_vm4, %v1189_v56, %v1192_v58  ;;  %v9661_v18 = vsel %vm9622_vm15, %v9274_v1, %v2632_v62  ;;  %vm1603_vm0 = vcmp.eq.s32.totalorder %v1601_v27, 0  ;;  %vm1606_vm2 = vcmp.eq.s32.totalorder %v1601_v27, 2  ;;  %v12121_v58 = vld [vmem:[#allocation25_spill] sm:$0xff] }
 0x2be   : > { %vm871_vm6 = vweird.f32 %v12113_v14  ;;  %v876_v36 = vxor.u32 2147483648, %v12114_v17  ;;  %v6479_v5 = vmin.u32 %v2821_v37, %v9647_v38  ;;  %vm1602_vm13 = vcmp.lt.s32.totalorder %v1601_v27, 2  ;;  %v12122_v37 = vld [vmem:[#allocation16_spill] sm:$0xff] }
 0x2bf   : > { %v1605_v57 = vsel %vm1603_vm0, %v12112_v12, %v1604_v59  ;;  %v1608_v32 = vsel %vm1606_vm2, %v1607_v61, %v8885_v45  ;;  %v1194_v20 = vsel %vm1183_vm10, nan, %v1193_v51  ;;  %v879_v3 = vxor.u32 2147483648, %v12115_v30  ;;  %v12118_v45 = vld [vmem:[#allocation38_spill] sm:$0xff]  ;;  %v12120_v61 = vld [vmem:[#allocation20_spill] sm:$0xff] }
 0x2c0   : > { %v1609_v44 = vsel %vm1602_vm13, %v1605_v57, %v1608_v32  ;;  %v877_v25 = vsel %vm875_vm3, %v12115_v30, %v876_v36  ;;  %v2823_v4 = vclz %v6479_v5  ;;  %vm878_vm4 = vcmp.eq.s32.totalorder %v873_v21, 2  ;;  %v12126_v14 = vld [vmem:[#allocation40_spill] sm:$0xff] }
 0x2c1   : > { %v1610_v46 = vsel %vm1599_vm12, nan, %v1609_v44  ;;  %v1289_v48 = vand.u32 3, %v12116_v39  ;;  %v9673_v22 = vpop.eup %7069  ;;  %v880_v50 = vsel %vm878_vm4, %v879_v3, %v12114_v17  ;;  %v1292_v43 = vxor.u32 2147483648, %v12118_v45 }
 0x2c2   : > { %v9675_v54 = vpack.c.bf16 %v1610_v46, %v1194_v20  ;;  %v1295_v59 = vxor.u32 2147483648, %v12119_v29  ;;  %7071 = vcosq.f32 %v9661_v18  ;;  %v6480_v34 = vadd.s32 4294967294, %v2823_v4  ;;  %v12125_v46 = vld [vmem:[#allocation37_spill] sm:$0xff] }
 0x2c3   : > { %vm874_vm10 = vcmp.lt.s32.totalorder %v873_v21, 2  ;;  %vm1291_vm3 = vcmp.eq.s32.totalorder %v1289_v48, 0  ;;  %vm1290_vm12 = vcmp.lt.s32.totalorder %v1289_v48, 2  ;;  %vm1294_vm0 = vcmp.eq.s32.totalorder %v1289_v48, 2  ;;  %v12123_v21 = vld [vmem:[#allocation24_spill] sm:$0xff] }
 0x2c4   : > { %12117 = vst [vmem:[#allocation41_spill] sm:$0xff] %v9675_v54  ;;  %6630 = vmatprep.subr.bf16.mxu1 %v9675_v54  ;;  %v881_v9 = vsel %vm874_vm10, %v877_v25, %v880_v50  ;;  %v1293_v42 = vsel %vm1291_vm3, %v12119_v29, %v1292_v43  ;;  %vm6481_vm2 = vcmp.lt.s32.totalorder %v6480_v34, 0  ;;  %v1296_v12 = vsel %vm1294_vm0, %v1295_v59, %v12118_v45  ;;  %v12127_v50 = vld [vmem:[#allocation39_spill] sm:$0xff]  ;;  %v12128_v59 = vld [vmem:[#allocation44_spill] sm:$0xff] }
 0x2c5   : > { %v1081_v56 = vand.u32 3, %v12120_v61  ;;  %v1084_v27 = vxor.u32 2147483648, %v12121_v58  ;;  %v2826_v62 = vsel %vm6481_vm2, 0, %v6480_v34  ;;  %vm1287_vm13 = vweird.f32 %v12122_v37 }
 0x2c6   : > { %v1297_v51 = vsel %vm1290_vm12, %v1293_v42, %v1296_v12  ;;  %v1087_v17 = vxor.u32 2147483648, %v12123_v21  ;;  %v2827_v36 = vsub.s32 32, %v2826_v62  ;;  %v2831_v5 = vsub.s32 4294967266, %v2826_v62 }
 0x2c7   : > { %v882_v57 = vsel %vm871_vm6, nan, %v881_v9  ;;  %v1298_v32 = vsel %vm1287_vm13, nan, %v1297_v51  ;;  %v2828_v20 = vshll.u32 %v9647_v38, %v2826_v62  ;;  %vm1083_vm4 = vcmp.eq.s32.totalorder %v1081_v56, 0  ;;  %v12130_v9 = vld [vmem:[#allocation17_spill] sm:$0xff] }
 0x2c8   : > { %v9691_v44 = vpack.c.bf16 %v1298_v32, %v882_v57  ;;  %vm1086_vm10 = vcmp.eq.s32.totalorder %v1081_v56, 2  ;;  %v2829_v30 = vshrl.u32 %v2811_v60, %v2827_v36  ;;  %v2832_v25 = vadd.s32 127, %v2831_v5  ;;  %v12129_v60 = vld [vmem:[#allocation14_spill] sm:$0xff] }
 0x2c9   : > { %v1085_v3 = vsel %vm1083_vm4, %v12123_v21, %v1084_v27  ;;  %v1088_v4 = vsel %vm1086_vm10, %v1087_v17, %v12121_v58  ;;  %vm1082_vm3 = vcmp.lt.s32.totalorder %v1081_v56, 2  ;;  %v1497_v39 = vand.u32 3, %v12125_v46  ;;  %v12137_v46 = vld [vmem:[#allocation47_spill] sm:$0xff] }
 0x2ca   : > { %12124 = vst [vmem:[#allocation18_spill] sm:$0xff] %v9691_v44  ;;  %6624 = vmatpush1.bf16.msra.mxu0 %v9691_v44  ;;  %v1500_v48 = vxor.u32 2147483648, %v12126_v14  ;;  %v1503_v45 = vxor.u32 2147483648, %v12127_v50  ;;  %v2830_v38 = vor.u32 %v2829_v30, %v2828_v20  ;;  %v2833_v43 = vshll.u32 %v2832_v25, 23 }
 0x2cb   : > { %v1089_v29 = vsel %vm1082_vm3, %v1085_v3, %v1088_v4  ;;  %v1801_v34 = vsub.s32 4, %v12128_v59  ;;  %vm11888_vm6 = vcmp.lt.s32.totalorder %v9373_v15, 0  ;;  %vm1079_vm12 = vweird.f32 %v12129_v60  ;;  %v12136_v3 = vld [vmem:[#allocation54_spill] sm:$0xff] }
 0x2cc   : > { %vm1495_vm0 = vweird.f32 %v12130_v9  ;;  %vm1499_vm2 = vcmp.eq.s32.totalorder %v1497_v39, 0  ;;  %vm1502_vm13 = vcmp.eq.s32.totalorder %v1497_v39, 2  ;;  %v9703_v42 = vpop.eup %7071  ;;  %v2834_v12 = vor.u32 4788187, %v2833_v43 }
 0x2cd   : > { %vm1498_vm4 = vcmp.lt.s32.totalorder %v1497_v39, 2  ;;  %v1501_v61 = vsel %vm1499_vm2, %v12127_v50, %v1500_v48  ;;  %v1504_v56 = vsel %vm1502_vm13, %v1503_v45, %v12126_v14  ;;  %v2837_v58 = vcvt.s32.f32 %v2830_v38  ;;  %v12139_v14 = vld [vmem:[#allocation46_spill] sm:$0xff] }
 0x2ce   : > { %v1090_v27 = vsel %vm1079_vm12, nan, %v1089_v29  ;;  %v1505_v62 = vsel %vm1498_vm4, %v1501_v61, %v1504_v56  ;;  %vm12131_vm10 = vcmp.lt.s32.totalorder %v8591_v53, 0  ;;  %v12132_v51 = vand.u32 2147483647, %v9373_v15 }
 0x2cf   : > { %v1802_v37 = vsel %vm12131_vm10, %v1801_v34, %v12128_v59  ;;  %v2835_v17 = vand.u32 2147483647, %v2834_v12  ;;  %v1506_v36 = vsel %vm1495_vm0, nan, %v1505_v62  ;;  %v2217_v57 = vsub.s32 4, %v9170_v33  ;;  %v12141_v59 = vld [vmem:[#allocation36_spill] sm:$0xff]  ;;  %v12144_v62 = vld [vmem:[#allocation57_spill] sm:$0xff] }
 0x2d0   : > { %vm9712_vm3 = vcmp.le.f32.partialorder %v12132_v51, 0.7853982  ;;  %v1804_v5 = vsel %vm8983_vm8, 0, %v1802_v37  ;;  %7073 = vsinq.f32 %v9661_v18  ;;  %v9720_v32 = vpack.c.bf16 %v1506_v36, %v1090_v27  ;;  %v12145_v51 = vld [vmem:[#allocation56_spill] sm:$0xff]  ;;  %v12146_v36 = vld [vmem:[#allocation55_spill] sm:$0xff] }
 0x2d1   : > { %v1808_v20 = vadd.s32 3, %v1804_v5  ;;  %v1812_v30 = vxor.u32 2147483648, %v9092_v28  ;;  %v2838_v25 = vmul.f32 %v2837_v58, %v2835_v17  ;;  %v1815_v4 = vxor.u32 2147483648, %v12136_v3  ;;  %v12151_v34 = vld [vmem:[#allocation48_spill] sm:$0xff] }
 0x2d2   : > { %12135 = vst [vmem:[#allocation15_spill] sm:$0xff] %v9720_v32  ;;  %vm12138_vm12 = vcmp.lt.s32.totalorder %v12137_v46, 0  ;;  %v2009_v48 = vsub.s32 4, %v12139_v14  ;;  %6632 = vmatpush1.bf16.msra.mxu1 %v9720_v32  ;;  %vm1807_vm8 = vweird.f32 %v8591_v53  ;;  %v2228_v45 = vxor.u32 2147483648, %v9436_v24 }
 0x2d3   : > { %v2218_v39 = vsel %vm12138_vm12, %v2217_v57, %v9170_v33  ;;  %v1809_v35 = vand.u32 3, %v1808_v20  ;;  %v2839_v38 = vxor.u32 2147483648, %v2838_v25  ;;  %v2231_v29 = vxor.u32 2147483648, %v9431_v19 }
 0x2d4   : > { %v2220_v50 = vsel %vm9290_vm14, 0, %v2218_v39  ;;  %vm12142_vm0 = vcmp.lt.s32.totalorder %v12141_v59, 0  ;;  %vm2223_vm14 = vweird.f32 %v12137_v46  ;;  %v2425_v37 = vsub.s32 4, %v12144_v62  ;;  %v12150_v46 = vld [vmem:[#allocation49_spill] sm:$0xff] }
 0x2d5   : > { %v2224_v43 = vadd.s32 3, %v2220_v50  ;;  %v2010_v33 = vsel %vm12142_vm0, %v2009_v48, %v12139_v14  ;;  %vm1810_vm2 = vcmp.lt.s32.totalorder %v1809_v35, 2  ;;  %vm1811_vm13 = vcmp.eq.s32.totalorder %v1809_v35, 0 }
 0x2d6   : > { %vm1814_vm4 = vcmp.eq.s32.totalorder %v1809_v35, 2  ;;  %v2012_v60 = vsel %vm9063_vm1, 0, %v2010_v33  ;;  %v2840_v9 = vsel %vm11888_vm6, %v2839_v38, %v2838_v25  ;;  %v1813_v12 = vsel %vm1811_vm13, %v12136_v3, %v1812_v30  ;;  %v12149_v38 = vld [vmem:[#allocation43_spill] sm:$0xff] }
 0x2d7   : > { %v1816_v61 = vsel %vm1814_vm4, %v1815_v4, %v9092_v28  ;;  %v2225_v56 = vand.u32 3, %v2224_v43  ;;  %v2016_v27 = vadd.s32 3, %v2012_v60  ;;  %vm2015_vm12 = vweird.f32 %v12141_v59  ;;  %v12152_v60 = vld [vmem:[#allocation61_spill] sm:$0xff]  ;;  %v12154_v59 = vld [vmem:[#allocation26_spill] sm:$0xff] }
 0x2d8   : > { %v1817_v58 = vsel %vm1810_vm2, %v1813_v12, %v1816_v61  ;;  %v2020_v17 = vxor.u32 2147483648, %v12145_v51  ;;  %v2023_v5 = vxor.u32 2147483648, %v12146_v36  ;;  %v2843_v57 = vsel %vm9712_vm3, %v9373_v15, %v2840_v9  ;;  %v12153_v61 = vld [vmem:[#allocation59_spill] sm:$0xff] }
 0x2d9   : > { %vm2227_vm10 = vcmp.eq.s32.totalorder %v2225_v56, 0  ;;  %vm2230_vm1 = vcmp.eq.s32.totalorder %v2225_v56, 2  ;;  %v2017_v20 = vand.u32 3, %v2016_v27  ;;  %v1818_v30 = vsel %vm1807_vm8, nan, %v1817_v58 }
 0x2da   : > { %v2229_v28 = vsel %vm2227_vm10, %v9431_v19, %v2228_v45  ;;  %vm2226_vm0 = vcmp.lt.s32.totalorder %v2225_v56, 2  ;;  %v2232_v25 = vsel %vm2230_vm1, %v2231_v29, %v9436_v24  ;;  %vm12147_vm2 = vcmp.lt.s32.totalorder %v8961_v31, 0  ;;  %v9758_v4 = vpop.eup %7073 }
 0x2db   : > { %v2426_v3 = vsel %vm12147_vm2, %v2425_v37, %v12144_v62  ;;  %v2233_v39 = vsel %vm2226_vm0, %v2229_v28, %v2232_v25  ;;  %vm2018_vm13 = vcmp.lt.s32.totalorder %v2017_v20, 2  ;;  %vm2019_vm4 = vcmp.eq.s32.totalorder %v2017_v20, 0 }
 0x2dc   : > { %vm2022_vm6 = vcmp.eq.s32.totalorder %v2017_v20, 2  ;;  %v2234_v19 = vsel %vm2223_vm14, nan, %v2233_v39  ;;  %v2021_v14 = vsel %vm2019_vm4, %v12146_v36, %v2020_v17  ;;  %v2428_v24 = vsel %vm9402_vm11, 0, %v2426_v3  ;;  %v12155_v36 = vld [vmem:[#allocation58_spill] sm:$0xff]  ;;  %v12157_v20 = vld [vmem:[#allocation51_spill] sm:$0xff] }
 0x2dd   : > { %v2024_v53 = vsel %vm2022_vm6, %v2023_v5, %v12145_v51  ;;  %7075 = vcosq.f32 %v2843_v57  ;;  %v9766_v48 = vpack.c.bf16 %v2234_v19, %v1818_v30  ;;  %v2432_v18 = vadd.s32 3, %v2428_v24  ;;  %v12158_v30 = vld [vmem:[#allocation53_spill] sm:$0xff]  ;;  %v12159_v3 = vld [vmem:[#allocation50_spill] sm:$0xff] }
 0x2de   : > { %v2025_v35 = vsel %vm2018_vm13, %v2021_v14, %v2024_v53  ;;  %v2436_v50 = vxor.u32 2147483648, %v9517_v40  ;;  %v2439_v45 = vxor.u32 2147483648, %v9511_v23  ;;  %v1705_v43 = vand.u32 3, %v12149_v38  ;;  %v12160_v53 = vld [vmem:[#allocation42_spill] sm:$0xff] }
 0x2df   : > { %12148 = vst [vmem:[#allocation32_spill] sm:$0xff] %v9766_v48  ;;  %v1708_v29 = vxor.u32 2147483648, %v12150_v46  ;;  %7077 = vsinq.f32 %v2843_v57  ;;  %6626 = vmatprep.subr.bf16.mxu0 %v9766_v48  ;;  %v2433_v33 = vand.u32 3, %v2432_v18  ;;  %v1711_v16 = vxor.u32 2147483648, %v12151_v34 }
 0x2e0   : > { %v2121_v9 = vand.u32 3, %v12152_v60  ;;  %v2026_v12 = vsel %vm2015_vm12, nan, %v2025_v35  ;;  %vm2431_vm11 = vweird.f32 %v8961_v31  ;;  %vm1707_vm6 = vcmp.eq.s32.totalorder %v1705_v43, 0  ;;  %v12164_v60 = vld [vmem:[#allocation28_spill] sm:$0xff] }
 0x2e1   : > { %v2124_v56 = vxor.u32 2147483648, %v12153_v61  ;;  %vm2435_vm8 = vcmp.eq.s32.totalorder %v2433_v33, 0  ;;  %vm2438_vm14 = vcmp.eq.s32.totalorder %v2433_v33, 2  ;;  %v1709_v58 = vsel %vm1707_vm6, %v12151_v34, %v1708_v29 }
 0x2e2   : > { %vm1710_vm10 = vcmp.eq.s32.totalorder %v1705_v43, 2  ;;  %vm2434_vm1 = vcmp.lt.s32.totalorder %v2433_v33, 2  ;;  %v2437_v27 = vsel %vm2435_vm8, %v9511_v23, %v2436_v50  ;;  %v2440_v62 = vsel %vm2438_vm14, %v2439_v45, %v9517_v40  ;;  %v12163_v33 = vld [vmem:[#allocation62_spill] sm:$0xff] }
 0x2e3   : > { %v1712_v37 = vsel %vm1710_vm10, %v1711_v16, %v12150_v46  ;;  %v2441_v51 = vsel %vm2434_vm1, %v2437_v27, %v2440_v62  ;;  %vm1703_vm12 = vweird.f32 %v12154_v59  ;;  %vm1706_vm0 = vcmp.lt.s32.totalorder %v1705_v43, 2  ;;  %v12162_v43 = vld [vmem:[#allocation63_spill] sm:$0xff] }
 0x2e4   : > { %vm2123_vm2 = vcmp.eq.s32.totalorder %v2121_v9, 0  ;;  %v2442_v31 = vsel %vm2431_vm11, nan, %v2441_v51  ;;  %v1713_v17 = vsel %vm1706_vm0, %v1709_v58, %v1712_v37  ;;  %v2127_v57 = vxor.u32 2147483648, %v12155_v36 }
 0x2e5   : > { %v2125_v5 = vsel %vm2123_vm2, %v12155_v36, %v2124_v56  ;;  %v9786_v28 = vpack.c.bf16 %v2442_v31, %v2026_v12  ;;  %vm2126_vm13 = vcmp.eq.s32.totalorder %v2121_v9, 2  ;;  %v1913_v23 = vand.u32 3, %v12157_v20 }
 0x2e6   : > { %v1916_v40 = vxor.u32 2147483648, %v12158_v30  ;;  %vm2122_vm4 = vcmp.lt.s32.totalorder %v2121_v9, 2  ;;  %v2128_v25 = vsel %vm2126_vm13, %v2127_v57, %v12153_v61  ;;  %v1919_v39 = vxor.u32 2147483648, %v12159_v3 }
 0x2e7   : > { %12156 = vst [vmem:[#allocation27_spill] sm:$0xff] %v9786_v28  ;;  %v2329_v19 = vand.u32 3, %v9497_v7  ;;  %v9793_v14 = vpop.eup %7075  ;;  %6634 = vmatprep.subr.bf16.mxu1 %v9786_v28  ;;  %vm2119_vm11 = vweird.f32 %v12160_v53  ;;  %v2129_v24 = vsel %vm2122_vm4, %v2125_v5, %v2128_v25  ;;  %vm1915_vm6 = vcmp.eq.s32.totalorder %v1913_v23, 0 }
 0x2e8   : > { %vm1918_vm8 = vcmp.eq.s32.totalorder %v1913_v23, 2  ;;  %v1714_v35 = vsel %vm1703_vm12, nan, %v1713_v17  ;;  %v2130_v18 = vsel %vm2119_vm11, nan, %v2129_v24  ;;  %v1917_v50 = vsel %vm1915_vm6, %v12159_v3, %v1916_v40 }
 0x2e9   : > { %v1920_v45 = vsel %vm1918_vm8, %v1919_v39, %v12158_v30  ;;  %v7078_v38 = vpop.eup %7077  ;;  %7079 = vsinq.f32 %v9607_v13  ;;  %v9802_v7 = vpack.c.bf16 %v2130_v18, %v1714_v35  ;;  %vm1914_vm14 = vcmp.lt.s32.totalorder %v1913_v23, 2 }
 0x2ea   : > { %v2332_v46 = vxor.u32 2147483648, %v12162_v43  ;;  %v1921_v29 = vsel %vm1914_vm14, %v1917_v50, %v1920_v45  ;;  %vm2331_vm10 = vcmp.eq.s32.totalorder %v2329_v19, 0  ;;  %v2335_v34 = vxor.u32 2147483648, %v12163_v33 }
 0x2eb   : > { %12161 = vst [vmem:[#allocation30_spill] sm:$0xff] %v9802_v7  ;;  %v2633_v16 = vsub.s32 4, %v9507_v11  ;;  %6628 = vmatpush1.bf16.msra.mxu0 %v9802_v7  ;;  %vm1911_vm1 = vweird.f32 %v12164_v60  ;;  %vm2327_vm12 = vweird.f32 %v8810_v52  ;;  %vm2334_vm0 = vcmp.eq.s32.totalorder %v2329_v19, 2  ;;  %v7530_v60 = vld [vmem:[%s7761_s24 + $0x8] sm:$0x77] }
 0x2ec   : > { %v2333_v9 = vsel %vm2331_vm10, %v12163_v33, %v2332_v46  ;;  %vm2330_vm2 = vcmp.lt.s32.totalorder %v2329_v19, 2  ;;  %v2336_v13 = vsel %vm2334_vm0, %v2335_v34, %v12162_v43  ;;  %v2841_v61 = vsub.s32 4, %v9631_v2  ;;  %v2867_v43 = vld [vmem:[%s11773_s4] sm:$0xff] }
 0x2ed   : > { %v2634_v12 = vsel %vm2549_vm9, %v2633_v16, %v9507_v11  ;;  %v1922_v56 = vsel %vm1911_vm1, nan, %v1921_v29  ;;  %v2337_v58 = vsel %vm2330_vm2, %v2333_v9, %v2336_v13  ;;  %vm2639_vm13 = vweird.f32 %v9274_v1  ;;  %v12173_v33 = vld [vmem:[#allocation11_spill] sm:$0xff]  ;;  %v2869_v9 = vld [vmem:[%s11773_s4 + $0x10] sm:$0xff]  ;;  %v2870_v13 = vld [vmem:[%s11773_s4 + $0x18] sm:$0xff] }
 0x2ee   : > { %v2636_v27 = vsel %vm9622_vm15, 0, %v2634_v12  ;;  %v2338_v52 = vsel %vm2327_vm12, nan, %v2337_v58  ;;  %v2644_v37 = vxor.u32 2147483648, %v9758_v4  ;;  %vm12165_vm4 = vcmp.lt.s32.totalorder %v9373_v15, 0  ;;  %v7529_v16 = vld [vmem:[%s7761_s24] sm:$0x77] }
 0x2ef   : > { %v2640_v62 = vadd.s32 3, %v2636_v27  ;;  %v2842_v51 = vsel %vm12165_vm4, %v2841_v61, %v9631_v2  ;;  %v9823_v59 = vpack.c.bf16 %v2338_v52, %v1922_v56  ;;  %v2647_v11 = vxor.u32 2147483648, %v9703_v42  ;;  %v2871_v12 = vld [vmem:[%s11773_s4 + $0x20] sm:$0xff]  ;;  %v2872_v61 = vld [vmem:[%s11773_s4 + $0x28] sm:$0xff]  ;;  %v2873_v56 = vld [vmem:[%s11773_s4 + $0x30] sm:$0xff] }
 0x2f0   : > { %v2844_v31 = vsel %vm9712_vm3, 0, %v2842_v51  ;;  %v2529_v49 = vsub.s32 4, %v9352_v63  ;;  %vm2908_vm9 = vcmask 1043456   ;;  %vm2847_vm15 = vweird.f32 %v9373_v15  ;;  %v2874_v58 = vld [vmem:[%s11773_s4 + $0x38] sm:$0xff]  ;;  %v2859_v27 = vld [vmem:[%s11772_s3] sm:$0xff]  ;;  %v2860_v52 = vld [vmem:[%s11772_s3 + $0x8] sm:$0xff] }
 0x2f1   : > { %12166 = vst [vmem:[#allocation31_spill] sm:$0xff] %v9823_v59  ;;  %v2641_v17 = vand.u32 3, %v2640_v62  ;;  %v2848_v36 = vadd.s32 3, %v2844_v31  ;;  %6636 = vmatpush1.bf16.msra.mxu1 %v9823_v59  ;;  %v2852_v5 = vxor.u32 2147483648, %v7078_v38  ;;  %v2855_v57 = vxor.u32 2147483648, %v9793_v14  ;;  %v2861_v62 = vld [vmem:[%s11772_s3 + $0x10] sm:$0xff] }
 0x2f2   : > { %vm12167_vm11 = vcmp.lt.s32.totalorder %v9120_v41, 0  ;;  %v2737_v20 = vsub.s32 4, %v9433_v8  ;;  %vm12168_vm14 = vcmp.lt.s32.totalorder %v9207_v47, 0  ;;  %v2751_v50 = vxor.u32 2147483648, %v9673_v22  ;;  %v2863_v51 = vld [vmem:[%s11772_s3 + $0x20] sm:$0xff]  ;;  %v2865_v31 = vld [vmem:[%s11772_s3 + $0x30] sm:$0xff] }
 0x2f3   : > { %v2530_v2 = vsel %vm12167_vm11, %v2529_v49, %v9352_v63  ;;  %vm2642_vm6 = vcmp.lt.s32.totalorder %v2641_v17, 2  ;;  %vm2643_vm3 = vcmp.eq.s32.totalorder %v2641_v17, 0  ;;  %vm2646_vm8 = vcmp.eq.s32.totalorder %v2641_v17, 2  ;;  %v7080_v23 = vpop.eup %7079  ;;  %v2866_v49 = vld [vmem:[%s11772_s3 + $0x38] sm:$0xff]  ;;  %v3400_v17 = vpop.permute.xlu1 %3399 }
 0x2f4   : > { %v2849_v21 = vand.u32 3, %v2848_v36  ;;  %v2645_v30 = vsel %vm2643_vm3, %v9703_v42, %v2644_v37  ;;  %v2648_v40 = vsel %vm2646_vm8, %v2647_v11, %v9758_v4  ;;  %v2532_v25 = vsel %vm9447_vm7, 0, %v2530_v2  ;;  %v2862_v37 = vld [vmem:[%s11772_s3 + $0x18] sm:$0xff]  ;;  %v2864_v11 = vld [vmem:[%s11772_s3 + $0x28] sm:$0xff] }
 0x2f5   : > { %v2738_v3 = vsel %vm12168_vm14, %v2737_v20, %v9433_v8  ;;  %v2649_v39 = vsel %vm2642_vm6, %v2645_v30, %v2648_v40  ;;  %v2536_v53 = vadd.s32 3, %v2532_v25  ;;  %v2540_v4 = vxor.u32 2147483648, %v9535_v0  ;;  %v3405_v40 = vpop.permute.xlu0 %3404 }
 0x2f6   : > { %vm2850_vm10 = vcmp.lt.s32.totalorder %v2849_v21, 2  ;;  %vm2851_vm1 = vcmp.eq.s32.totalorder %v2849_v21, 0  ;;  %vm2854_vm12 = vcmp.eq.s32.totalorder %v2849_v21, 2  ;;  %v9845_v63 = vsel %vm2639_vm13, nan, %v2649_v39 }
 0x2f7   : > { %12169 = vst [vmem:[#allocation23_spill] sm:$0xff] %v9845_v63  ;;  %v2853_v19 = vsel %vm2851_vm1, %v9793_v14, %v2852_v5  ;;  %v2856_v42 = vsel %vm2854_vm12, %v2855_v57, %v7078_v38  ;;  %6482 = vmatprep.subr.msk.mxu0 %vm2908_vm9, %v9845_v63  ;;  %v2543_v8 = vxor.u32 2147483648, %v9529_v26  ;;  %v2740_v24 = vsel %vm9549_vm5, 0, %v2738_v3 }
 0x2f8   : > { %v2857_v6 = vsel %vm2850_vm10, %v2853_v19, %v2856_v42  ;;  %v2537_v35 = vand.u32 3, %v2536_v53  ;;  %v2744_v18 = vadd.s32 3, %v2740_v24  ;;  %v2748_v14 = vxor.u32 2147483648, %v7080_v23 }
 0x2f9   : > { %v9856_v1 = vsel %vm2847_vm15, nan, %v2857_v6  ;;  %vm2535_vm2 = vweird.f32 %v9120_v41  ;;  %vm2883_vm15 = vcmask 293888   ;;  %vm2743_vm6 = vweird.f32 %v9207_v47  ;;  %v12176_v47 = vld [vmem:[#allocation12_spill] sm:$0xff] }
 0x2fa   : > { %12170 = vst [vmem:[#allocation35_spill] sm:$0xff] %v9856_v1  ;;  %6492 = vmatprep.subr.msk.mxu1 %vm2908_vm9, %v9856_v1  ;;  %vm2539_vm7 = vcmp.eq.s32.totalorder %v2537_v35, 0  ;;  %vm2542_vm0 = vcmp.eq.s32.totalorder %v2537_v35, 2  ;;  %v2745_v45 = vand.u32 3, %v2744_v18  ;;  %vm2538_vm13 = vcmp.lt.s32.totalorder %v2537_v35, 2 }
 0x2fb   : > { %v2541_v55 = vsel %vm2539_vm7, %v9529_v26, %v2540_v4  ;;  %v2544_v15 = vsel %vm2542_vm0, %v2543_v8, %v9535_v0  ;;  %vm12174_vm3 = vcmask 1042432   ;;  %v12175_v34 = vmov 0.0  }
 0x2fc   : > { %v2545_v38 = vsel %vm2538_vm13, %v2541_v55, %v2544_v15  ;;  %vm2747_vm5 = vcmp.eq.s32.totalorder %v2745_v45, 0  ;;  %vm2750_vm4 = vcmp.eq.s32.totalorder %v2745_v45, 2  ;;  %vm2746_vm11 = vcmp.lt.s32.totalorder %v2745_v45, 2  ;;  %vm12177_vm8 = vmmov %vm12174_vm3 }
 0x2fd   : > { %v9867_v46 = vsel %vm2535_vm2, nan, %v2545_v38  ;;  %v2749_v29 = vsel %vm2747_vm5, %v9673_v22, %v2748_v14  ;;  %v2752_v41 = vsel %vm2750_vm4, %v2751_v50, %v7080_v23  ;;  %v2868_v22 = vld [vmem:[%s11773_s4 + $0x8] sm:$0xff]  ;;  %vm12178_vm14 = vmmov %vm12174_vm3  ;;  %vm12180_vm1 = vcmask 23552  }
 0x2fe   : > { %12171 = vst [vmem:[#allocation19_spill] sm:$0xff] %v9867_v46  ;;  %6483 = vmatpush1.msk.msra.mxu0 %vm2908_vm9, %v9867_v46  ;;  %v2753_v26 = vsel %vm2746_vm11, %v2749_v29, %v2752_v41  ;;  %vm12179_vm10 = vmmov %vm12174_vm3 }
 0x2ff   : > { %v9873_v0 = vsel %vm2743_vm6, nan, %v2753_v26  ;;  %6484 = vmatmul.mubr.msk.f32.vlgmr.msra.gmra.mrb[10].mxu0 %vm2883_vm15, %v2867_v43  ;;  %6502 = vmatprep.subr.msk.mxu0 %vm12174_vm3, %v12173_v33  ;;  %vm12181_vm12 = vmmov %vm12180_vm1 }
 0x300   : > { %12172 = vst [vmem:[#allocation45_spill] sm:$0xff] %v9873_v0  ;;  %6493 = vmatpush1.msk.msra.mxu1 %vm2908_vm9, %v9873_v0  ;;  %2991 = vmatprep.mubr.f32.mxu0 %v12175_v34  ;;  %vm12182_vm7 = vmmov %vm12180_vm1 }
 0x301   : > { %6494 = vmatmul.mubr.msk.f32.vlgmr.msra.gmra.mrb[10].mxu1 %vm2883_vm15, %v2867_v43  ;;  %6512 = vmatprep.subr.msk.mxu1 %vm12177_vm8, %v12176_v47  ;;  %vm12183_vm0 = vmmov %vm12180_vm1 }
 0x302   : > { %3104 = vmatprep.mubr.f32.mxu1 %v12175_v34  ;;  %6503 = vmatpush1.msk.msra.mxu0 %vm12178_vm14, %v7529_v16  ;;  %vm12184_vm2 = vmmov %vm12183_vm0 }
 0x303   : > { %6485 = vmatmul.mubr.msk.f32.gmra.mrb[12].mxu0 %vm2883_vm15, %v2868_v22  ;;  %6513 = vmatpush1.msk.msra.mxu1 %vm12179_vm10, %v7530_v60  ;;  %vm12185_vm13 = vmmov %vm12183_vm0 }
 0x304   : > { %2997 = vmatprep.mubr.f32.mxu0 %v12175_v34  ;;  %vm12186_vm5 = vmmov %vm12183_vm0 }
 0x305   : > { %6495 = vmatmul.mubr.msk.f32.gmra.mrb[12].mxu1 %vm2883_vm15, %v2868_v22  ;;  %vm12187_vm4 = vmmov %vm12183_vm0  ;;  %v3410_v22 = vpop.permute.xlu1 %3409 }
 0x306   : > { %3110 = vmatprep.mubr.f32.mxu1 %v12175_v34  ;;  %vm12188_vm11 = vmmov %vm12183_vm0 }
 0x307   : > { %6486 = vmatmul.mubr.msk.f32.gmra.mrb[14].mxu0 %vm2883_vm15, %v2869_v9  ;;  %vm12189_vm6 = vmmov %vm12183_vm0 }
 0x308   : > { %3003 = vmatprep.mubr.f32.mxu0 %v12175_v34  ;;  %vm12190_vm3 = vmmov %vm12183_vm0 }
 0x309   : > { %6496 = vmatmul.mubr.msk.f32.gmra.mrb[14].mxu1 %vm2883_vm15, %v2869_v9  ;;  %vm12191_vm8 = vmmov %vm12183_vm0 }
 0x30a   : > { %3116 = vmatprep.mubr.f32.mxu1 %v12175_v34  ;;  %vm12192_vm14 = vmmov %vm12183_vm0 }
 0x30b   : > { %6487 = vmatmul.mubr.msk.f32.gmra.mrb[16].mxu0 %vm2883_vm15, %v2870_v13  ;;  %vm12193_vm10 = vmmov %vm12183_vm0 }
 0x30c   : > { %3009 = vmatprep.mubr.f32.mxu0 %v12175_v34 }
 0x30d   : > { %6497 = vmatmul.mubr.msk.f32.gmra.mrb[16].mxu1 %vm2883_vm15, %v2870_v13 }
 0x30e   : > { %3122 = vmatprep.mubr.f32.mxu1 %v12175_v34 }
 0x30f   : > { %6488 = vmatmul.mubr.msk.f32.gmra.mrb[18].mxu0 %vm2883_vm15, %v2871_v12 }
 0x310   : > { %3015 = vmatprep.mubr.f32.mxu0 %v12175_v34 }
 0x311   : > { %6498 = vmatmul.mubr.msk.f32.gmra.mrb[18].mxu1 %vm2883_vm15, %v2871_v12 }
 0x312   : > { %3128 = vmatprep.mubr.f32.mxu1 %v12175_v34 }
 0x313   : > { %6489 = vmatmul.mubr.msk.f32.gmra.mrb[20].mxu0 %vm2883_vm15, %v2872_v61 }
 0x314   : > { %3021 = vmatprep.mubr.f32.mxu0 %v12175_v34 }
 0x315   : > { %6499 = vmatmul.mubr.msk.f32.gmra.mrb[20].mxu1 %vm2883_vm15, %v2872_v61 }
 0x316   : > { %3134 = vmatprep.mubr.f32.mxu1 %v12175_v34 }
 0x317   : > { %6490 = vmatmul.mubr.msk.f32.gmra.mrb[22].mxu0 %vm2883_vm15, %v2873_v56 }
 0x318   : > { %3027 = vmatprep.mubr.f32.mxu0 %v12175_v34 }
 0x319   : > { %6500 = vmatmul.mubr.msk.f32.gmra.mrb[22].mxu1 %vm2883_vm15, %v2873_v56 }
 0x31a   : > { %3140 = vmatprep.mubr.f32.mxu1 %v12175_v34 }
 0x31b   : > { %6491 = vmatmul.mubr.msk.f32.gmra.mrb[24].mxu0 %vm2883_vm15, %v2874_v58 }
 0x31c   : > { %3235 = vmatprep.mubr.f32.mxu0 %v12175_v34 }
 0x31d   : > { %6501 = vmatmul.mubr.msk.f32.gmra.mrb[24].mxu1 %vm2883_vm15, %v2874_v58 }
 0x31e   : > { %3348 = vmatprep.mubr.f32.mxu1 %v12175_v34 }
 0x31f   : > { %6504 = vmatmul.mubr.msk.f32.vlgmr.msra.gmra.mrb[10].mxu0 %vm12180_vm1, %v2859_v27  ;;  %vm12194_vm1 = vmmov %vm12183_vm0 }
 0x320   : > { %3241 = vmatprep.mubr.f32.mxu0 %v12175_v34 }
 0x321   : > { %6514 = vmatmul.mubr.msk.f32.vlgmr.msra.gmra.mrb[10].mxu1 %vm12181_vm12, %v2859_v27  ;;  %vm12195_vm12 = vmmov %vm12183_vm0 }
 0x322   : > { %3354 = vmatprep.mubr.f32.mxu1 %v12175_v34 }
 0x323   : > { %6505 = vmatmul.mubr.msk.f32.gmra.mrb[12].mxu0 %vm12182_vm7, %v2860_v52 }
 0x324   : > { %3247 = vmatprep.mubr.f32.mxu0 %v12175_v34 }
 0x325   : > { %6515 = vmatmul.mubr.msk.f32.gmra.mrb[12].mxu1 %vm12183_vm0, %v2860_v52 }
 0x326   : > { %3360 = vmatprep.mubr.f32.mxu1 %v12175_v34 }
 0x327   : > { %6506 = vmatmul.mubr.msk.f32.gmra.mrb[14].mxu0 %vm12184_vm2, %v2861_v62 }
 0x328   : > { %3253 = vmatprep.mubr.f32.mxu0 %v12175_v34 }
 0x329   : > { %6516 = vmatmul.mubr.msk.f32.gmra.mrb[14].mxu1 %vm12185_vm13, %v2861_v62 }
 0x32a   : > { %3366 = vmatprep.mubr.f32.mxu1 %v12175_v34 }
 0x32b   : > { %6507 = vmatmul.mubr.msk.f32.gmra.mrb[16].mxu0 %vm12186_vm5, %v2862_v37 }
 0x32c   : > { %3259 = vmatprep.mubr.f32.mxu0 %v12175_v34 }
 0x32d   : > { %6517 = vmatmul.mubr.msk.f32.gmra.mrb[16].mxu1 %vm12187_vm4, %v2862_v37 }
 0x32e   : > { %3372 = vmatprep.mubr.f32.mxu1 %v12175_v34 }
 0x32f   : > { %6508 = vmatmul.mubr.msk.f32.gmra.mrb[18].mxu0 %vm12188_vm11, %v2863_v51 }
 0x330   : > { %3265 = vmatprep.mubr.f32.mxu0 %v12175_v34 }
 0x331   : > { %6518 = vmatmul.mubr.msk.f32.gmra.mrb[18].mxu1 %vm12189_vm6, %v2863_v51 }
 0x332   : > { %3378 = vmatprep.mubr.f32.mxu1 %v12175_v34 }
 0x333   : > { %6509 = vmatmul.mubr.msk.f32.gmra.mrb[20].mxu0 %vm12190_vm3, %v2864_v11 }
 0x334   : > { %3271 = vmatprep.mubr.f32.mxu0 %v12175_v34 }
 0x335   : > { %6519 = vmatmul.mubr.msk.f32.gmra.mrb[20].mxu1 %vm12191_vm8, %v2864_v11 }
 0x336   : > { %3384 = vmatprep.mubr.f32.mxu1 %v12175_v34 }
 0x337   : > { %6510 = vmatmul.mubr.msk.f32.gmra.mrb[22].mxu0 %vm12192_vm14, %v2865_v31 }
 0x338   : > { %3277 = vmatprep.mubr.f32.mxu0 %v12175_v34 }
 0x339   : > { %6520 = vmatmul.mubr.msk.f32.gmra.mrb[22].mxu1 %vm12193_vm10, %v2865_v31 }
 0x33a   : > { %3390 = vmatprep.mubr.f32.mxu1 %v12175_v34 }
 0x33b   : > { %6511 = vmatmul.mubr.msk.f32.gmra.mrb[24].mxu0 %vm12194_vm1, %v2866_v49 }
 0x33c   : > { %3894 = vmatprep.mubr.f32.mxu0 %v12175_v34 }
 0x33d   : > { %6521 = vmatmul.mubr.msk.f32.gmra.mrb[24].mxu1 %vm12195_vm12, %v2866_v49 }
 0x33e   : > { %3983 = vmatprep.mubr.f32.mxu1 %v12175_v34 }
 0x3f2   : > { %v3237_v36 = vpop.f32.mrb[10].mxu0 }
 0x3f3   : > { %v9994_v5 = vadd.f32 %v3400_v17, %v3237_v36  ;;  %v3239_v57 = vpop.f32.mrb[11].mxu0 }
 0x3f4   : > { %v3350_v2 = vpop.f32.mrb[10].mxu1  ;;  %v9996_v20 = vadd.f32 %v3400_v17, %v3239_v57 }
 0x3f5   : > { %v9999_v21 = vmul.f32 100.0, %v9994_v5  ;;  %v10001_v23 = vadd.f32 %v3400_v17, %v3350_v2  ;;  %v3352_v30 = vpop.f32.mrb[11].mxu1 }
 0x3f6   : > { %12196 = vst [vmem:[#allocation13_spill] sm:$0xff] %v9996_v20  ;;  %v10004_v25 = vmul.f32 100.0, %v9996_v20  ;;  %v10006_v3 = vadd.f32 %v3400_v17, %v3352_v30  ;;  %v3243_v39 = vpop.f32.mrb[12].mxu0 }
 0x3f7   : > { %v3533_v19 = vmin.f32 %v9999_v21, 20.0  ;;  %v10010_v42 = vmul.f32 100.0, %v10001_v23  ;;  %v10012_v53 = vadd.f32 %v3405_v40, %v3243_v39  ;;  %v3245_v6 = vpop.f32.mrb[13].mxu0  ;;  %v3415_v39 = vpop.permute.xlu0 %3414  ;;  %vm3501_vm7 = vcmp.gt.f32.partialorder %v9999_v21, 20.0 }
 0x3f8   : > { %12197 = vst [vmem:[#allocation22_spill] sm:$0xff] %v10006_v3  ;;  %v3534_v4 = vmin.f32 %v10004_v25, 20.0  ;;  %v10016_v8 = vmul.f32 100.0, %v10006_v3  ;;  %v3356_v24 = vpop.f32.mrb[12].mxu1  ;;  %v10018_v35 = vadd.f32 %v3405_v40, %v3245_v6  ;;  %vm3502_vm8 = vcmp.gt.f32.partialorder %v10004_v25, 20.0 }
 0x3f9   : > { %v3565_v18 = vmul.f32 1.442695, %v3533_v19  ;;  %v3535_v14 = vmin.f32 %v10010_v42, 20.0  ;;  %v10022_v50 = vmul.f32 100.0, %v10012_v53  ;;  %v3358_v45 = vpop.f32.mrb[13].mxu1  ;;  %v10025_v38 = vadd.f32 %v3405_v40, %v3356_v24 }
 0x3fa   : > { %12198 = vst [vmem:[#allocation21_spill] sm:$0xff] %v10018_v35  ;;  %v3567_v55 = vmul.f32 1.442695, %v3534_v4  ;;  %v3536_v15 = vmin.f32 %v10016_v8, 20.0  ;;  %v3249_v43 = vpop.f32.mrb[14].mxu0  ;;  %v10032_v9 = vmul.f32 100.0, %v10018_v35  ;;  %v10034_v61 = vadd.f32 %v3405_v40, %v3358_v45 }
 0x3fb   : > { %7081 = vpow2.f32 %v3565_v18  ;;  %v3569_v29 = vmul.f32 1.442695, %v3535_v14  ;;  %v3537_v41 = vmin.f32 %v10022_v50, 20.0  ;;  %v3251_v26 = vpop.f32.mrb[15].mxu0  ;;  %v10029_v60 = vmul.f32 100.0, %v10025_v38 }
 0x3fc   : > { %7083 = vpow2.f32 %v3567_v55  ;;  %v3571_v16 = vmul.f32 1.442695, %v3536_v15  ;;  %v3362_v13 = vpop.f32.mrb[14].mxu1  ;;  %12199 = vst [vmem:[#allocation29_spill] sm:$0xff] %v10034_v61  ;;  %v10036_v56 = vadd.f32 %v3410_v22, %v3249_v43  ;;  %v3538_v62 = vmin.f32 %v10032_v9, 20.0 }
 0x3fd   : > { %7085 = vpow2.f32 %v3569_v29  ;;  %v3573_v12 = vmul.f32 1.442695, %v3537_v41  ;;  %v3364_v58 = vpop.f32.mrb[15].mxu1  ;;  %v3539_v27 = vmin.f32 %v10029_v60, 20.0  ;;  %v10041_v37 = vmul.f32 100.0, %v10034_v61 }
 0x3fe   : > { %7087 = vpow2.f32 %v3571_v16  ;;  %v3255_v52 = vpop.f32.mrb[16].mxu0  ;;  %v10044_v51 = vmul.f32 100.0, %v10036_v56  ;;  %v10046_v49 = vadd.f32 %v3410_v22, %v3362_v13  ;;  %v10048_v17 = vadd.f32 %v3410_v22, %v3251_v26 }
 0x3ff   : > { %7089 = vpow2.f32 %v3573_v12  ;;  %v3257_v11 = vpop.f32.mrb[17].mxu0  ;;  %v3577_v31 = vmul.f32 1.442695, %v3539_v27  ;;  %v10050_v36 = vadd.f32 %v3410_v22, %v3364_v58  ;;  %v3575_v2 = vmul.f32 1.442695, %v3538_v62  ;;  %v12216_v25 = vld [vmem:[#allocation22_spill] sm:$0xff] }
 0x400   : > { %12200 = vst [vmem:[#allocation38_spill] sm:$0xff] %v10048_v17  ;;  %v3368_v57 = vpop.f32.mrb[16].mxu1  ;;  %v3540_v30 = vmin.f32 %v10041_v37, 20.0  ;;  %v3541_v19 = vmin.f32 %v10044_v51, 20.0  ;;  %v10055_v6 = vmul.f32 100.0, %v10046_v49  ;;  %v10058_v4 = vmul.f32 100.0, %v10048_v17 }
 0x401   : > { %12201 = vst [vmem:[#allocation33_spill] sm:$0xff] %v10050_v36  ;;  %v3370_v40 = vpop.f32.mrb[17].mxu1  ;;  %7091 = vpow2.f32 %v3577_v31  ;;  %v10060_v14 = vadd.f32 %v3415_v39, %v3255_v52  ;;  %v10066_v43 = vmul.f32 100.0, %v10050_v36  ;;  %v10076_v62 = vadd.f32 %v3415_v39, %v3368_v57 }
 0x402   : > { %v3261_v24 = vpop.f32.mrb[18].mxu0  ;;  %7093 = vpow2.f32 %v3575_v2  ;;  %v3579_v18 = vmul.f32 1.442695, %v3540_v30  ;;  %v3581_v55 = vmul.f32 1.442695, %v3541_v19  ;;  %v3543_v15 = vmin.f32 %v10055_v6, 20.0 }
 0x403   : > { %v10062_v45 = vpop.f32.mrb[19].mxu0  ;;  %v3542_v13 = vmin.f32 %v10058_v4, 20.0  ;;  %v10074_v52 = vmul.f32 100.0, %v10060_v14  ;;  %vm3503_vm0 = vcmp.gt.f32.partialorder %v10010_v42, 20.0  ;;  %vm3505_vm2 = vcmp.gt.f32.partialorder %v10022_v50, 20.0 }
 0x404   : > { %v3374_v29 = vpop.f32.mrb[18].mxu1  ;;  %7095 = vpow2.f32 %v3581_v55  ;;  %v3585_v19 = vmul.f32 1.442695, %v3543_v15  ;;  %v3544_v55 = vmin.f32 %v10066_v43, 20.0  ;;  %vm3507_vm13 = vcmp.gt.f32.partialorder %v10029_v60, 20.0 }
 0x405   : > { %v7082_v41 = vpop.eup %7081  ;;  %v10068_v26 = vpop.f32.mrb[19].mxu1  ;;  %7097 = vpow2.f32 %v3579_v18  ;;  %v10084_v18 = vmul.f32 100.0, %v10076_v62  ;;  %v3583_v63 = vmul.f32 1.442695, %v3542_v13  ;;  %v3545_v59 = vmin.f32 %v10074_v52, 20.0 }
 0x406   : > { %v7084_v22 = vpop.eup %7083  ;;  %v3629_v16 = vadd.f32 1.0, %v7082_v41  ;;  %v10071_v12 = vpop.f32.mrb[20].mxu0  ;;  %vm3509_vm5 = vcmp.gt.f32.partialorder %v10044_v51, 20.0  ;;  %vm3511_vm4 = vcmp.gt.f32.partialorder %v10055_v6, 20.0  ;;  %vm3513_vm11 = vcmp.gt.f32.partialorder %v10074_v52, 20.0 }
 0x407   : > { %v7086_v58 = vpop.eup %7085  ;;  %v3630_v27 = vadd.f32 1.0, %v7084_v22  ;;  %v10078_v31 = vpop.f32.mrb[21].mxu0  ;;  %v10086_v22 = vadd.f32 %v3415_v39, %v3257_v11  ;;  %v3547_v28 = vmin.f32 %v10084_v18, 20.0  ;;  %v3589_v54 = vmul.f32 1.442695, %v3545_v59 }
 0x408   : > { %v7088_v2 = vpop.eup %7087  ;;  %7099 = vlog2.f32 %v3629_v16  ;;  %v3631_v30 = vadd.f32 1.0, %v7086_v58  ;;  %v10081_v41 = vpop.f32.mrb[20].mxu1  ;;  %v10090_v16 = vadd.f32 %v3415_v39, %v3370_v40  ;;  %vm3515_vm6 = vcmp.gt.f32.partialorder %v10084_v18, 20.0 }
 0x409   : > { %v7090_v0 = vpop.eup %7089  ;;  %7101 = vlog2.f32 %v3630_v27  ;;  %v3632_v46 = vadd.f32 1.0, %v7088_v2  ;;  %12202 = vst [vmem:[#allocation20_spill] sm:$0xff] %v10086_v22  ;;  %v10088_v57 = vpop.f32.mrb[21].mxu1  ;;  %v10096_v27 = vmul.f32 100.0, %v10086_v22  ;;  %v3593_v34 = vmul.f32 1.442695, %v3547_v28 }
 0x40a   : > { %7103 = vlog2.f32 %v3631_v30  ;;  %v3633_v1 = vadd.f32 1.0, %v7090_v0  ;;  %12203 = vst [vmem:[#allocation25_spill] sm:$0xff] %v10090_v16  ;;  %v10092_v15 = vpop.f32.mrb[22].mxu0  ;;  %v3420_v58 = vpop.permute.xlu1 %3419  ;;  %v10101_v7 = vmul.f32 100.0, %v10090_v16  ;;  %v3587_v30 = vmul.f32 1.442695, %v3544_v55 }
 0x40b   : > { %7105 = vlog2.f32 %v3632_v46  ;;  %v10098_v2 = vpop.f32.mrb[23].mxu0  ;;  %v7092_v11 = vpop.eup %7091  ;;  %v10103_v0 = vadd.f32 %v3420_v58, %v3261_v24  ;;  %v10105_v40 = vadd.f32 %v3420_v58, %v3374_v29  ;;  %vm3506_vm10 = vcmp.gt.f32.partialorder %v10032_v9, 20.0 }
 0x40c   : > { %7107 = vlog2.f32 %v3633_v1  ;;  %12204 = vst [vmem:[#allocation16_spill] sm:$0xff] %v10101_v7  ;;  %v10107_v39 = vpop.f32.mrb[22].mxu1  ;;  %v7094_v13 = vpop.eup %7093  ;;  %v3635_v46 = vadd.f32 1.0, %v7092_v11  ;;  %v3546_v1 = vmin.f32 %v10096_v27, 20.0  ;;  %v3548_v24 = vmin.f32 %v10101_v7, 20.0 }
 0x40d   : > { %7109 = vpow2.f32 %v3585_v19  ;;  %v10110_v48 = vpop.f32.mrb[23].mxu1  ;;  %v3634_v32 = vadd.f32 1.0, %v7094_v13  ;;  %v10117_v29 = vmul.f32 100.0, %v10103_v0  ;;  %v10120_v11 = vmul.f32 100.0, %v10105_v40  ;;  %v3425_v59 = vpop.permute.xlu0 %3424 }
 0x40e   : > { %7111 = vpow2.f32 %v3583_v63  ;;  %v10113_v44 = vpop.f32.mrb[24].mxu0  ;;  %v7096_v55 = vpop.eup %7095  ;;  %v10125_v63 = vadd.f32 %v3420_v58, %v10062_v45  ;;  %v3591_v16 = vmul.f32 1.442695, %v3546_v1  ;;  %v3595_v36 = vmul.f32 1.442695, %v3548_v24 }
 0x40f   : > { %7113 = vlog2.f32 %v3635_v46  ;;  %v10122_v19 = vpop.f32.mrb[25].mxu0  ;;  %v7098_v10 = vpop.eup %7097  ;;  %v3637_v46 = vadd.f32 1.0, %v7096_v55  ;;  %v3549_v22 = vmin.f32 %v10117_v29, 20.0  ;;  %v3551_v17 = vmin.f32 %v10120_v11, 20.0 }
 0x410   : > { %7115 = vlog2.f32 %v3634_v32  ;;  %12205 = vst [vmem:[#allocation24_spill] sm:$0xff] %v10125_v63  ;;  %v10127_v13 = vpop.f32.mrb[24].mxu1  ;;  %v10136_v61 = vmul.f32 100.0, %v10125_v63  ;;  %v10143_v24 = vadd.f32 %v3425_v59, %v10071_v12  ;;  %v10172_v21 = vadd.f32 %v3425_v59, %v10081_v41 }
 0x411   : > { %7117 = vpow2.f32 %v3587_v30  ;;  %v10129_v47 = vpop.f32.mrb[25].mxu1  ;;  %v10139_v30 = vadd.f32 %v3420_v58, %v10068_v26  ;;  %v3597_v1 = vmul.f32 1.442695, %v3549_v22  ;;  %vm3517_vm3 = vcmp.gt.f32.partialorder %v10117_v29, 20.0 }
 0x412   : > { %v7100_v33 = vpop.eup %7099  ;;  %7119 = vlog2.f32 %v3637_v46  ;;  %12206 = vst [vmem:[#allocation37_spill] sm:$0xff] %v10136_v61  ;;  %v3550_v26 = vmin.f32 %v10136_v61, 20.0  ;;  %v10154_v22 = vmul.f32 100.0, %v10143_v24  ;;  %v10177_v50 = vmul.f32 100.0, %v10172_v21 }
 0x413   : > { %v10133_v32 = vpop.eup %7101  ;;  %v3662_v45 = vmul.f32 0.6931472, %v7100_v33  ;;  %12207 = vst [vmem:[#allocation40_spill] sm:$0xff] %v10139_v30  ;;  %7121 = vpow2.f32 %v3589_v54  ;;  %v3601_v33 = vmul.f32 1.442695, %v3551_v17  ;;  %v10151_v12 = vmul.f32 100.0, %v10139_v30 }
 0x414   : > { %v7104_v28 = vpop.eup %7103  ;;  %7123 = vpow2.f32 %v3593_v34  ;;  %v3636_v34 = vadd.f32 1.0, %v7098_v10  ;;  %v3599_v20 = vmul.f32 1.442695, %v3550_v26  ;;  %vm3519_vm14 = vcmp.gt.f32.partialorder %v10120_v11, 20.0  ;;  %v12214_v11 = vld [vmem:[#allocation13_spill] sm:$0xff] }
 0x415   : > { %v10145_v55 = vpop.eup %7105  ;;  %v3725_v3 = vmul.f32 0.01, %v3662_v45  ;;  %v3666_v63 = vmul.f32 0.6931472, %v7104_v28  ;;  %7125 = vpow2.f32 %v3591_v16  ;;  %vm3521_vm1 = vcmp.gt.f32.partialorder %v10154_v22, 20.0 }
 0x416   : > { %v7108_v46 = vpop.eup %7107  ;;  %7127 = vpow2.f32 %v3595_v36  ;;  %vm3504_vm12 = vcmp.gt.f32.partialorder %v10016_v8, 20.0 }
 0x417   : > { %v7110_v58 = vpop.eup %7109  ;;  %v3670_v54 = vmul.f32 0.6931472, %v7108_v46  ;;  %7129 = vpow2.f32 %v3597_v1  ;;  %v10160_v16 = vsel %vm3501_vm7, %v9994_v5, %v3725_v3  ;;  %v3727_v61 = vmul.f32 0.01, %v3666_v63 }
 0x418   : > { %v7112_v45 = vpop.eup %7111  ;;  %v3639_v17 = vadd.f32 1.0, %v7110_v58  ;;  %7131 = vpow2.f32 %v3601_v33  ;;  %v3552_v1 = vmin.f32 %v10151_v12, 20.0  ;;  %v3553_v5 = vmin.f32 %v10154_v22, 20.0 }
 0x419   : > { %v7114_v28 = vpop.eup %7113  ;;  %v3729_v46 = vmul.f32 0.01, %v3670_v54  ;;  %v3638_v36 = vadd.f32 1.0, %v7112_v45  ;;  %v10185_v41 = vsel %vm3503_vm0, %v10001_v23, %v3727_v61  ;;  %v3555_v61 = vmin.f32 %v10177_v50, 20.0 }
 0x41a   : > { %v10162_v30 = vpop.eup %7115  ;;  %v3674_v35 = vmul.f32 0.6931472, %v7114_v28  ;;  %7133 = vlog2.f32 %v3639_v17  ;;  %v3605_v58 = vmul.f32 1.442695, %v3553_v5  ;;  %v3603_v17 = vmul.f32 1.442695, %v3552_v1 }
 0x41b   : > { %v7118_v7 = vpop.eup %7117  ;;  %v10167_v10 = vsel %vm3505_vm2, %v10012_v53, %v3729_v46  ;;  %7135 = vlog2.f32 %v3636_v34  ;;  %v10180_v53 = vadd.f32 %v3425_v59, %v10078_v31  ;;  %vm3508_vm7 = vcmp.gt.f32.partialorder %v10041_v37, 20.0 }
 0x41c   : > { %v3731_v63 = vmul.f32 0.01, %v3674_v35  ;;  %v3640_v33 = vadd.f32 1.0, %v7118_v7  ;;  %v7120_v26 = vpop.eup %7119  ;;  %7137 = vlog2.f32 %v3638_v36  ;;  %v10193_v7 = vadd.f32 %v3425_v59, %v10088_v57 }
 0x41d   : > { %v7122_v54 = vpop.eup %7121  ;;  %7139 = vpow2.f32 %v3599_v20  ;;  %v3678_v42 = vmul.f32 0.6931472, %v7120_v26  ;;  %v10199_v20 = vmul.f32 100.0, %v10180_v53  ;;  %v3609_v36 = vmul.f32 1.442695, %v3555_v61 }
 0x41e   : > { %v10190_v35 = vsel %vm3507_vm13, %v10025_v38, %v3731_v63  ;;  %12208 = vst [vmem:[#allocation39_spill] sm:$0xff] %v10193_v7  ;;  %v7124_v45 = vpop.eup %7123  ;;  %7141 = vlog2.f32 %v3640_v33  ;;  %v3641_v34 = vadd.f32 1.0, %v7122_v54  ;;  %v10202_v38 = vmul.f32 100.0, %v10193_v7  ;;  %v3430_v63 = vpop.permute.xlu1 %3429 }
 0x41f   : > { %v7126_v28 = vpop.eup %7125  ;;  %v3643_v23 = vadd.f32 1.0, %v7124_v45  ;;  %7143 = vpow2.f32 %v3605_v58  ;;  %v3554_v1 = vmin.f32 %v10199_v20, 20.0  ;;  %v3733_v33 = vmul.f32 0.01, %v3678_v42 }
 0x420   : > { %v7128_v60 = vpop.eup %7127  ;;  %7145 = vlog2.f32 %v3641_v34  ;;  %v3642_v26 = vadd.f32 1.0, %v7126_v28  ;;  %v3556_v54 = vmin.f32 %v10202_v38, 20.0  ;;  %v10208_v31 = vadd.f32 %v3430_v63, %v10092_v15 }
 0x421   : > { %v7130_v57 = vpop.eup %7129  ;;  %7147 = vlog2.f32 %v3643_v23  ;;  %v3607_v34 = vmul.f32 1.442695, %v3554_v1  ;;  %v10213_v61 = vadd.f32 %v3430_v63, %v10107_v39  ;;  %v3644_v42 = vadd.f32 1.0, %v7128_v60 }
 0x422   : > { %v7132_v59 = vpop.eup %7131  ;;  %v3645_v46 = vadd.f32 1.0, %v7130_v57  ;;  %7149 = vpow2.f32 %v3603_v17  ;;  %12209 = vst [vmem:[#allocation44_spill] sm:$0xff] %v10208_v31  ;;  %v3611_v17 = vmul.f32 1.442695, %v3556_v54  ;;  %v10216_v57 = vadd.f32 %v3430_v63, %v10098_v2 }
 0x423   : > { %v3647_v58 = vadd.f32 1.0, %v7132_v59  ;;  %12210 = vst [vmem:[#allocation14_spill] sm:$0xff] %v10213_v61  ;;  %v10222_v59 = vmul.f32 100.0, %v10208_v31  ;;  %v10231_v2 = vadd.f32 %v3430_v63, %v10110_v48  ;;  %vm3510_vm0 = vcmp.gt.f32.partialorder %v10058_v4, 20.0 }
 0x424   : > { %v7134_v5 = vpop.eup %7133  ;;  %7151 = vlog2.f32 %v3645_v46  ;;  %12211 = vst [vmem:[#allocation17_spill] sm:$0xff] %v10216_v57  ;;  %v10225_v46 = vmul.f32 100.0, %v10213_v61  ;;  %v10228_v39 = vmul.f32 100.0, %v10216_v57  ;;  %vm3523_vm2 = vcmp.gt.f32.partialorder %v10177_v50, 20.0 }
 0x425   : > { %v3682_v45 = vmul.f32 0.6931472, %v7134_v5  ;;  %v10210_v23 = vpop.eup %7135  ;;  %7153 = vlog2.f32 %v3647_v58  ;;  %12212 = vst [vmem:[#allocation54_spill] sm:$0xff] %v10222_v59  ;;  %v3557_v60 = vmin.f32 %v10222_v59, 20.0  ;;  %v10241_v5 = vsel %vm3509_vm5, %v10036_v56, %v3733_v33 }
 0x426   : > { %v10218_v28 = vpop.eup %7137  ;;  %7155 = vpow2.f32 %v3609_v36  ;;  %v3559_v48 = vmin.f32 %v10225_v46, 20.0  ;;  %v3558_v3 = vmin.f32 %v10228_v39, 20.0  ;;  %v10246_v7 = vmul.f32 100.0, %v10231_v2 }
 0x427   : > { %v7140_v15 = vpop.eup %7139  ;;  %7157 = vpow2.f32 %v3607_v34  ;;  %v3735_v58 = vmul.f32 0.01, %v3682_v45  ;;  %v3613_v34 = vmul.f32 1.442695, %v3557_v60  ;;  %vm3514_vm13 = vcmp.gt.f32.partialorder %v10096_v27, 20.0  ;;  %v12224_v27 = vld [vmem:[#allocation25_spill] sm:$0xff] }
 0x428   : > { %v10233_v1 = vpop.eup %7141  ;;  %7159 = vlog2.f32 %v3642_v26  ;;  %v3435_v26 = vpop.permute.xlu0 %3434  ;;  %v3646_v31 = vadd.f32 1.0, %v7140_v15  ;;  %v3617_v59 = vmul.f32 1.442695, %v3559_v48  ;;  %v3615_v33 = vmul.f32 1.442695, %v3558_v3 }
 0x429   : > { %v7144_v36 = vpop.eup %7143  ;;  %7161 = vpow2.f32 %v3611_v17  ;;  %v10249_v45 = vadd.f32 %v3435_v26, %v10113_v44  ;;  %v10254_v17 = vsel %vm3511_vm4, %v10046_v49, %v3735_v58  ;;  %v3560_v15 = vmin.f32 %v10246_v7, 20.0 }
 0x42a   : > { %v7146_v63 = vpop.eup %7145  ;;  %7163 = vlog2.f32 %v3644_v42  ;;  %v3649_v54 = vadd.f32 1.0, %v7144_v36  ;;  %v10262_v44 = vadd.f32 %v3435_v26, %v10127_v13  ;;  %v10287_v18 = vadd.f32 %v3435_v26, %v10122_v19 }
 0x42b   : > { %v7148_v57 = vpop.eup %7147  ;;  %v3686_v61 = vmul.f32 0.6931472, %v7146_v63  ;;  %vm3512_vm5 = vcmp.gt.f32.partialorder %v10066_v43, 20.0  ;;  %v12218_v8 = vpack.c.bf16 %v10167_v10, %v10160_v16 }
 0x42c   : > { %v7150_v56 = vpop.eup %7149  ;;  %v3690_v51 = vmul.f32 0.6931472, %v7148_v57  ;;  %7165 = vlog2.f32 %v3649_v54  ;;  %v10259_v57 = vmul.f32 100.0, %v10249_v45 }
 0x42d   : > { %v3737_v42 = vmul.f32 0.01, %v3686_v61  ;;  %7167 = vpow2.f32 %v3613_v34  ;;  %v3619_v61 = vmul.f32 1.442695, %v3560_v15  ;;  %v3648_v13 = vadd.f32 1.0, %v7150_v56 }
 0x42e   : > { %v7152_v60 = vpop.eup %7151  ;;  %v3739_v36 = vmul.f32 0.01, %v3690_v51  ;;  %7169 = vpow2.f32 %v3617_v59  ;;  %v10282_v15 = vmul.f32 100.0, %v10262_v44 }
 0x42f   : > { %v7154_v3 = vpop.eup %7153  ;;  %v10267_v49 = vsel %vm3513_vm11, %v10060_v14, %v3737_v42  ;;  %v3694_v6 = vmul.f32 0.6931472, %v7152_v60  ;;  %7171 = vpow2.f32 %v3615_v33  ;;  %v3561_v42 = vmin.f32 %v10259_v57, 20.0 }
 0x430   : > { %v7156_v58 = vpop.eup %7155  ;;  %v6643_v48 = vpack.c.bf16 %v10267_v49, %v10241_v5  ;;  %v10274_v59 = vsel %vm3515_vm6, %v10076_v62, %v3739_v36  ;;  %7173 = vlog2.f32 %v3646_v31  ;;  %v3698_v14 = vmul.f32 0.6931472, %v7154_v3 }
 0x431   : > { %v7158_v63 = vpop.eup %7157  ;;  %v3651_v54 = vadd.f32 1.0, %v7156_v58  ;;  %7175 = vpow2.f32 %v3619_v61  ;;  %v3741_v51 = vmul.f32 0.01, %v3694_v6  ;;  %v10290_v31 = vadd.f32 %v3435_v26, %v10129_v47 }
 0x432   : > { %v10278_v34 = vpop.eup %7159  ;;  %v3650_v33 = vadd.f32 1.0, %v7158_v63  ;;  %v3621_v36 = vmul.f32 1.442695, %v3561_v42  ;;  %v3563_v3 = vmin.f32 %v10282_v15, 20.0  ;;  %v10298_v6 = vmul.f32 100.0, %v10287_v18 }
 0x433   : > { %v7162_v62 = vpop.eup %7161  ;;  %7177 = vlog2.f32 %v3651_v54  ;;  %v10301_v19 = vmul.f32 100.0, %v10290_v31  ;;  %v10307_v26 = vsel %vm3517_vm3, %v10103_v0, %v3741_v51  ;;  %v3743_v61 = vmul.f32 0.01, %v3698_v14 }
 0x434   : > { %v10292_v56 = vpop.eup %7163  ;;  %7179 = vlog2.f32 %v3648_v13  ;;  %v3652_v60 = vadd.f32 1.0, %v7162_v62  ;;  %v3664_v58 = vmul.f32 0.6931472, %v10133_v32  ;;  %v3625_v54 = vmul.f32 1.442695, %v3563_v3 }
 0x435   : > { %7181 = vlog2.f32 %v3650_v33  ;;  %v3672_v33 = vmul.f32 0.6931472, %v10162_v30  ;;  %v3562_v29 = vmin.f32 %v10298_v6, 20.0  ;;  %v3564_v0 = vmin.f32 %v10301_v19, 20.0 }
 0x436   : > { %v7166_v47 = vpop.eup %7165  ;;  %7183 = vlog2.f32 %v3652_v60  ;;  %v3668_v14 = vmul.f32 0.6931472, %v10145_v55  ;;  %v10321_v30 = vsel %vm3519_vm14, %v10105_v40, %v3743_v61  ;;  %vm3522_vm6 = vcmp.gt.f32.partialorder %v10199_v20, 20.0 }
 0x437   : > { %v7168_v13 = vpop.eup %7167  ;;  %v3702_v63 = vmul.f32 0.6931472, %v7166_v47  ;;  %7185 = vpow2.f32 %v3621_v36  ;;  %v3726_v36 = vmul.f32 0.01, %v3664_v58  ;;  %v3730_v58 = vmul.f32 0.01, %v3672_v33 }
 0x438   : > { %v7170_v42 = vpop.eup %7169  ;;  %v3653_v62 = vadd.f32 1.0, %v7168_v13  ;;  %7187 = vpow2.f32 %v3625_v54  ;;  %v3623_v13 = vmul.f32 1.442695, %v3562_v29  ;;  %v12213_v54 = vld [vmem:[#allocation16_spill] sm:$0xff]  ;;  %v3680_v29 = vmul.f32 0.6931472, %v10218_v28 }
 0x439   : > { %v7172_v51 = vpop.eup %7171  ;;  %v3745_v32 = vmul.f32 0.01, %v3702_v63  ;;  %v3655_v60 = vadd.f32 1.0, %v7170_v42  ;;  %v3627_v63 = vmul.f32 1.442695, %v3564_v0  ;;  %vm3516_vm4 = vcmp.gt.f32.partialorder %v12213_v54, 20.0 }
 0x43a   : > { %v7174_v3 = vpop.eup %7173  ;;  %7189 = vlog2.f32 %v3653_v62  ;;  %v3654_v47 = vadd.f32 1.0, %v7172_v51  ;;  %v3758_v61 = vsel %vm3502_vm8, %v12214_v11, %v3726_v36  ;;  %v3676_v42 = vmul.f32 0.6931472, %v10210_v23 }
 0x43b   : > { %v7176_v52 = vpop.eup %7175  ;;  %v10326_v55 = vsel %vm3521_vm1, %v10143_v24, %v3745_v32  ;;  %7191 = vlog2.f32 %v3655_v60  ;;  %v12215_v24 = vld [vmem:[#allocation21_spill] sm:$0xff]  ;;  %v3728_v62 = vmul.f32 0.01, %v3668_v14  ;;  %v3688_v36 = vmul.f32 0.6931472, %v10278_v34  ;;  %v12219_v34 = vld [vmem:[#allocation38_spill] sm:$0xff] }
 0x43c   : > { %7193 = vlog2.f32 %v3654_v47  ;;  %v3762_v33 = vsel %vm3506_vm10, %v12215_v24, %v3730_v58  ;;  %v3656_v32 = vadd.f32 1.0, %v7176_v52  ;;  %v3732_v47 = vmul.f32 0.01, %v3676_v42  ;;  %v12217_v14 = vld [vmem:[#allocation29_spill] sm:$0xff] }
 0x43d   : > { %v7178_v22 = vpop.eup %7177  ;;  %7195 = vpow2.f32 %v3623_v13  ;;  %v6637_v60 = vpack.c.bf16 %v3762_v33, %v3758_v61  ;;  %v3760_v23 = vsel %vm3504_vm12, %v12216_v25, %v3728_v62  ;;  %v3734_v13 = vmul.f32 0.01, %v3680_v29 }
 0x43e   : > { %v7180_v0 = vpop.eup %7179  ;;  %v3706_v51 = vmul.f32 0.6931472, %v7178_v22  ;;  %7197 = vpow2.f32 %v3627_v63  ;;  %v3764_v28 = vsel %vm3508_vm7, %v12217_v14, %v3732_v47  ;;  %v3684_v52 = vmul.f32 0.6931472, %v10233_v1  ;;  %v12221_v47 = vld [vmem:[#allocation37_spill] sm:$0xff] }
 0x43f   : > { %v7182_v40 = vpop.eup %7181  ;;  %6638 = vmatprep.subr.bf16.mxu0 %v6637_v60  ;;  %v3692_v58 = vmul.f32 0.6931472, %v10292_v56  ;;  %v6653_v63 = vpack.c.bf16 %v3764_v28, %v3760_v23  ;;  %v3738_v42 = vmul.f32 0.01, %v3688_v36  ;;  %v3766_v22 = vsel %vm3510_vm0, %v12219_v34, %v3734_v13 }
 0x440   : > { %v7184_v11 = vpop.eup %7183  ;;  %v3747_v9 = vmul.f32 0.01, %v3706_v51  ;;  %6640 = vmatpush1.bf16.msra.mxu0 %v12218_v8  ;;  %v3696_v24 = vmul.f32 0.6931472, %v7174_v3  ;;  %v3736_v1 = vmul.f32 0.01, %v3684_v52  ;;  %v12229_v8 = vpack.c.bf16 %v10326_v55, %v10307_v26 }
 0x441   : > { %v7186_v61 = vpop.eup %7185  ;;  %v3740_v62 = vmul.f32 0.01, %v3692_v58  ;;  %6654 = vmatprep.subr.bf16.mxu1 %v6653_v63  ;;  %v12220_v51 = vld [vmem:[#allocation20_spill] sm:$0xff]  ;;  %v3704_v10 = vmul.f32 0.6931472, %v7182_v40  ;;  %vm3518_vm11 = vcmp.gt.f32.partialorder %v12221_v47, 20.0 }
 0x442   : > { %v3779_v37 = vsel %vm3523_vm2, %v10172_v21, %v3747_v9  ;;  %v3657_v33 = vadd.f32 1.0, %v7186_v61  ;;  %v7188_v56 = vpop.eup %7187  ;;  %v3770_v16 = vsel %vm3514_vm13, %v12220_v51, %v3738_v42  ;;  %v3742_v60 = vmul.f32 0.01, %v3696_v24  ;;  %v12231_v26 = vld [vmem:[#allocation44_spill] sm:$0xff] }
 0x443   : > { %v6663_v29 = vpack.c.bf16 %v3779_v37, %v10321_v30  ;;  %v3659_v3 = vadd.f32 1.0, %v7188_v56  ;;  %v12222_v21 = vpack.c.bf16 %v10190_v35, %v10185_v41  ;;  %v6641_v50 = vpack.c.bf16 %v3770_v16, %v3766_v22  ;;  %v12223_v30 = vld [vmem:[#allocation33_spill] sm:$0xff] }
 0x444   : > { %v7190_v4 = vpop.eup %7189  ;;  %7199 = vlog2.f32 %v3657_v33  ;;  %v3768_v23 = vsel %vm3512_vm5, %v12223_v30, %v3736_v1  ;;  %v3772_v40 = vsel %vm3516_vm4, %v12224_v27, %v3740_v62  ;;  %v3746_v36 = vmul.f32 0.01, %v3704_v10  ;;  %v12230_v62 = vld [vmem:[#allocation54_spill] sm:$0xff] }
 0x445   : > { %6656 = vmatpush1.bf16.msra.mxu1 %v12222_v21  ;;  %v7192_v25 = vpop.eup %7191  ;;  %7201 = vlog2.f32 %v3656_v32  ;;  %6642 = vmatprep.subr.bf16.mxu0 %v6641_v50  ;;  %v6657_v9 = vpack.c.bf16 %v3772_v40, %v3768_v23  ;;  %v3700_v41 = vmul.f32 0.6931472, %v7180_v0  ;;  %v12225_v32 = vld [vmem:[#allocation24_spill] sm:$0xff]  ;;  %v3708_v14 = vmul.f32 0.6931472, %v7184_v11  ;;  %v12228_v11 = vld [vmem:[#allocation39_spill] sm:$0xff] }
 0x446   : > { %v7194_v13 = vpop.eup %7193  ;;  %7203 = vlog2.f32 %v3659_v3  ;;  %6644 = vmatpush1.bf16.msra.mxu0 %v6643_v48  ;;  %v3774_v43 = vsel %vm3518_vm11, %v12225_v32, %v3742_v60  ;;  %v3778_v54 = vsel %vm3522_vm6, %v10180_v53, %v3746_v36  ;;  %v12226_v0 = vpack.c.bf16 %v10274_v59, %v10254_v17  ;;  %v12227_v53 = vld [vmem:[#allocation40_spill] sm:$0xff] }
 0x447   : > { %v7196_v35 = vpop.eup %7195  ;;  %6658 = vmatprep.subr.bf16.mxu1 %v6657_v9  ;;  %v6645_v52 = vpack.c.bf16 %v3778_v54, %v3774_v43  ;;  %v3744_v20 = vmul.f32 0.01, %v3700_v41  ;;  %v3748_v61 = vmul.f32 0.01, %v3708_v14  ;;  %vm3520_vm3 = vcmp.gt.f32.partialorder %v10151_v12, 20.0  ;;  %v3791_v9 = vld [vmem:[%s11775_s6 + $0x10] sm:$0xff] }
 0x448   : > { %v3658_v28 = vadd.f32 1.0, %v7196_v35  ;;  %v7198_v58 = vpop.eup %7197  ;;  %vm3524_vm8 = vcmp.gt.f32.partialorder %v10202_v38, 20.0  ;;  %v3710_v49 = vmul.f32 0.6931472, %v7190_v4  ;;  %v3714_v59 = vmul.f32 0.6931472, %v7192_v25 }
 0x449   : > { %6660 = vmatpush1.bf16.msra.mxu1 %v12226_v0  ;;  %v3660_v5 = vadd.f32 1.0, %v7198_v58  ;;  %6646 = vmatprep.subr.bf16.mxu0 %v6645_v52  ;;  %v3776_v48 = vsel %vm3520_vm3, %v12227_v53, %v3744_v20  ;;  %v3780_v63 = vsel %vm3524_vm8, %v12228_v11, %v3748_v61  ;;  %v3712_v24 = vmul.f32 0.6931472, %v7194_v13  ;;  %v7532_v13 = vld [vmem:[%s7761_s24 + $0x8] sm:$0x77]  ;;  %v4176_v35 = vld [vmem:[%s11778_s9] sm:$0xff]  ;;  %v3800_v58 = vpop.permute.xlu1 %3799 }
 0x44a   : > { %7205 = vlog2.f32 %v3658_v28  ;;  %6648 = vmatpush1.bf16.msra.mxu0 %v12229_v8  ;;  %v6661_v17 = vpack.c.bf16 %v3780_v63, %v3776_v48  ;;  %v3749_v34 = vmul.f32 0.01, %v3710_v49  ;;  %v3751_v37 = vmul.f32 0.01, %v3714_v59  ;;  %v3792_v41 = vld [vmem:[%s11775_s6 + $0x18] sm:$0x1]  ;;  %v3805_v8 = vpop.permute.xlu0 %3804 }
 0x44b   : > { %7207 = vlog2.f32 %v3660_v5  ;;  %vm3525_vm14 = vcmp.gt.f32.partialorder %v12230_v62, 20.0  ;;  %vm3529_vm10 = vcmp.gt.f32.partialorder %v10259_v57, 20.0  ;;  %vm3527_vm1 = vcmp.gt.f32.partialorder %v10225_v46, 20.0  ;;  %v4177_v32 = vld [vmem:[%s11778_s9 + $0x8] sm:$0xff]  ;;  %v4178_v43 = vld [vmem:[%s11778_s9 + $0x10] sm:$0xff]  ;;  %v4179_v54 = vld [vmem:[%s11778_s9 + $0x18] sm:$0xff] }
 0x44c   : > { %6662 = vmatprep.subr.bf16.mxu1 %v6661_v17  ;;  %v3781_v55 = vsel %vm3525_vm14, %v12231_v26, %v3749_v34  ;;  %vm3531_vm12 = vcmp.gt.f32.partialorder %v10282_v15, 20.0  ;;  %v3750_v21 = vmul.f32 0.01, %v3712_v24  ;;  %vm3526_vm7 = vcmp.gt.f32.partialorder %v10228_v39, 20.0  ;;  %v4180_v14 = vld [vmem:[%s11778_s9 + $0x20] sm:$0xff]  ;;  %v4181_v28 = vld [vmem:[%s11778_s9 + $0x28] sm:$0xff] }
 0x44d   : > { %6664 = vmatpush1.bf16.msra.mxu1 %v6663_v29  ;;  %v12232_v29 = vld [vmem:[#allocation14_spill] sm:$0xff]  ;;  %vm3530_vm0 = vcmp.gt.f32.partialorder %v10298_v6, 20.0  ;;  %vm3528_vm2 = vcmp.gt.f32.partialorder %v10246_v7, 20.0  ;;  %vm3532_vm13 = vcmp.gt.f32.partialorder %v10301_v19, 20.0  ;;  %v3789_v6 = vld [vmem:[%s11775_s6] sm:$0xff]  ;;  %vm3817_vm5 = vcmask 523264  }
 0x44e   : > { %v7200_v42 = vpop.eup %7199  ;;  %v3783_v4 = vsel %vm3527_vm1, %v12232_v29, %v3751_v37  ;;  %vm12235_vm4 = vcmask 1042432   ;;  %v12236_v7 = vld [vmem:[#allocation12_spill] sm:$0xff]  ;;  %v7531_v19 = vld [vmem:[%s7761_s24] sm:$0x77]  ;;  %vm12241_vm8 = vcmask 23552   ;;  %v4182_v52 = vld [vmem:[%s11778_s9 + $0x30] sm:$0xff] }
 0x44f   : > { %v7202_v12 = vpop.eup %7201  ;;  %v3718_v38 = vmul.f32 0.6931472, %v7200_v42  ;;  %vm12237_vm11 = vmmov %vm12235_vm4  ;;  %v4183_v20 = vld [vmem:[%s11778_s9 + $0x38] sm:$0xff]  ;;  %s7606_s24 = smov [#allocation2]  }
 0x450   : > { %v7204_v22 = vpop.eup %7203  ;;  %v3716_v16 = vmul.f32 0.6931472, %v7202_v12  ;;  %vm12239_vm6 = vmmov %vm12235_vm4  ;;  %s7537_s28 = sshll.u32 %s7606_s24, 4  ;;  %s7538_s28 = int_to_ptr.vmem [resolvable:$false] %s7537_s28 }
 0x451   : > { %v3753_v33 = vmul.f32 0.01, %v3718_v38  ;;  %v3722_v1 = vmul.f32 0.6931472, %v7204_v22  ;;  %vm12240_vm3 = vmmov %vm12235_vm4  ;;  %s7539_s29 = scalar_lea.vmem %s7538_s28, 5120  ;;  %p7540_p0 = scmp.lt.s32.totalorder %s11720_s21, %s7538_s28 }
 0x452   : > { %v3752_v23 = vmul.f32 0.01, %v3716_v16  ;;  %vm12242_vm14 = vmmov %vm12241_vm8  ;;  %p7541_p1 = scmp.lt.s32.totalorder %s7539_s29, %s7533_s26 }
 0x453   : > { %v3785_v56 = vsel %vm3529_vm10, %v10249_v45, %v3753_v33  ;;  %v3755_v51 = vmul.f32 0.01, %v3722_v1  ;;  %v12233_v45 = vld [vmem:[#allocation17_spill] sm:$0xff]  ;;  %vm12243_vm10 = vmmov %vm12241_vm8 }
 0x454   : > { %v7206_v10 = vpop.eup %7205  ;;  %v6651_v60 = vpack.c.bf16 %v3785_v56, %v3781_v55  ;;  %v3782_v46 = vsel %vm3526_vm7, %v12233_v45, %v3750_v21  ;;  %v3784_v40 = vsel %vm3528_vm2, %v10231_v2, %v3752_v23  ;;  %v12238_v2 = vmov 0.0   ;;  %vm12244_vm1 = vmmov %vm12241_vm8  ;;  %p7542_p2 = por %p7541_p1, %p7540_p0 }
 0x455   : > { %v3787_v47 = vsel %vm3531_vm12, %v10262_v44, %v3755_v51  ;;  %v3720_v3 = vmul.f32 0.6931472, %v7206_v10  ;;  %v7208_v50 = vpop.eup %7207  ;;  %vm12245_vm12 = vmmov %vm12244_vm1 }
 0x456   : > { %v6667_v57 = vpack.c.bf16 %v3787_v47, %v3783_v4  ;;  %v3724_v30 = vmul.f32 0.6931472, %v7208_v50  ;;  %vm12246_vm7 = vmmov %vm12244_vm1  ;;  %p7543_p3 = pnand %p7542_p2, %p7536_p13 }
 0x457   : > { %v3754_v25 = vmul.f32 0.01, %v3720_v3  ;;  %v3810_v3 = vpop.permute.xlu1 %3809 }
 0x458   : > { %v3756_v15 = vmul.f32 0.01, %v3724_v30 }
 0x459   : > { %v3786_v27 = vsel %vm3530_vm0, %v10287_v18, %v3754_v25  ;;  %v12234_v18 = vld [vmem:[#allocation11_spill] sm:$0xff]  ;;  %vm12247_vm0 = vmmov %vm12244_vm1 }
 0x45a   : > { %v6649_v44 = vpack.c.bf16 %v3786_v27, %v3782_v46  ;;  %v3788_v36 = vsel %vm3532_vm13, %v10290_v31, %v3756_v15  ;;  %v3790_v31 = vld [vmem:[%s11775_s6 + $0x8] sm:$0xff]  ;;  %vm12248_vm2 = vmmov %vm12247_vm0 }
 0x45b   : > { %v6665_v39 = vpack.c.bf16 %v3788_v36, %v3784_v40  ;;  %vm12249_vm13 = vmmov %vm12247_vm0 }
 0x45c   : > { %6650 = vmatprep.subr.bf16.mxu0 %v6649_v44 }
 0x45d   : > { %6652 = vmatpush1.bf16.msra.mxu0 %v6651_v60  ;;  %6666 = vmatprep.subr.bf16.mxu1 %v6665_v39 }
 0x45e   : > { %6530 = vmatprep.subr.msk.mxu0 %vm12235_vm4, %v12234_v18  ;;  %6668 = vmatpush1.bf16.msra.mxu1 %v6667_v57  ;;  %vm12250_vm4 = vmmov %vm12247_vm0 }
 0x45f   : > { %6540 = vmatprep.subr.msk.mxu1 %vm12237_vm11, %v12236_v7  ;;  %vm12251_vm11 = vmmov %vm12247_vm0 }
 0x460   : > { %6522 = vmatmul.mubr.msk.f32.vlgmr.msra.gmra.mrb[26].mxu0 %vm3817_vm5, %v3789_v6 }
 0x461   : > { %3900 = vmatprep.mubr.f32.mxu0 %v12238_v2  ;;  %6531 = vmatpush1.msk.msra.mxu0 %vm12239_vm6, %v7531_v19  ;;  %vm12252_vm6 = vmmov %vm12247_vm0 }
 0x462   : > { %6526 = vmatmul.mubr.msk.f32.vlgmr.msra.gmra.mrb[26].mxu1 %vm3817_vm5, %v3789_v6 }
 0x463   : > { %3989 = vmatprep.mubr.f32.mxu1 %v12238_v2  ;;  %6541 = vmatpush1.msk.msra.mxu1 %vm12240_vm3, %v7532_v13  ;;  %vm12253_vm3 = vmmov %vm12247_vm0 }
 0x464   : > { %6523 = vmatmul.mubr.msk.f32.gmra.mrb[28].mxu0 %vm3817_vm5, %v3790_v31 }
 0x465   : > { %3906 = vmatprep.mubr.f32.mxu0 %v12238_v2 }
 0x466   : > { %6527 = vmatmul.mubr.msk.f32.gmra.mrb[28].mxu1 %vm3817_vm5, %v3790_v31 }
 0x467   : > { %3995 = vmatprep.mubr.f32.mxu1 %v12238_v2 }
 0x468   : > { %6524 = vmatmul.mubr.msk.f32.gmra.mrb[30].mxu0 %vm3817_vm5, %v3791_v9 }
 0x469   : > { %3912 = vmatprep.mubr.f32.mxu0 %v12238_v2 }
 0x46a   : > { %6528 = vmatmul.mubr.msk.f32.gmra.mrb[30].mxu1 %vm3817_vm5, %v3791_v9 }
 0x46b   : > { %4001 = vmatprep.mubr.f32.mxu1 %v12238_v2 }
 0x46c   : > { %6525 = vmatmul.mubr.msk.f32.gmra.mrb[32].mxu0 %vm3817_vm5, %v3792_v41 }
 0x46d   : > { %4288 = vmatprep.mubr.f32.mxu0 %v12238_v2 }
 0x46e   : > { %6529 = vmatmul.mubr.msk.f32.gmra.mrb[32].mxu1 %vm3817_vm5, %v3792_v41 }
 0x46f   : > { %4401 = vmatprep.mubr.f32.mxu1 %v12238_v2 }
 0x470   : > { %6532 = vmatmul.mubr.msk.f32.vlgmr.msra.gmra.mrb[34].mxu0 %vm12241_vm8, %v4176_v35  ;;  %vm12254_vm8 = vmmov %vm12247_vm0 }
 0x471   : > { %4294 = vmatprep.mubr.f32.mxu0 %v12238_v2 }
 0x472   : > { %6542 = vmatmul.mubr.msk.f32.vlgmr.msra.gmra.mrb[34].mxu1 %vm12242_vm14, %v4176_v35  ;;  %vm12255_vm14 = vmmov %vm12247_vm0 }
 0x473   : > { %4407 = vmatprep.mubr.f32.mxu1 %v12238_v2 }
 0x474   : > { %6533 = vmatmul.mubr.msk.f32.gmra.mrb[36].mxu0 %vm12243_vm10, %v4177_v32  ;;  %vm12256_vm10 = vmmov %vm12247_vm0 }
 0x475   : > { %4300 = vmatprep.mubr.f32.mxu0 %v12238_v2 }
 0x476   : > { %6543 = vmatmul.mubr.msk.f32.gmra.mrb[36].mxu1 %vm12244_vm1, %v4177_v32 }
 0x477   : > { %4413 = vmatprep.mubr.f32.mxu1 %v12238_v2 }
 0x478   : > { %6534 = vmatmul.mubr.msk.f32.gmra.mrb[38].mxu0 %vm12245_vm12, %v4178_v43 }
 0x479   : > { %4306 = vmatprep.mubr.f32.mxu0 %v12238_v2 }
 0x47a   : > { %6544 = vmatmul.mubr.msk.f32.gmra.mrb[38].mxu1 %vm12246_vm7, %v4178_v43 }
 0x47b   : > { %4419 = vmatprep.mubr.f32.mxu1 %v12238_v2 }
 0x47c   : > { %6535 = vmatmul.mubr.msk.f32.gmra.mrb[40].mxu0 %vm12247_vm0, %v4179_v54 }
 0x47d   : > { %4312 = vmatprep.mubr.f32.mxu0 %v12238_v2 }
 0x47e   : > { %6545 = vmatmul.mubr.msk.f32.gmra.mrb[40].mxu1 %vm12248_vm2, %v4179_v54  ;;  %v3815_v54 = vpop.permute.xlu0 %3814 }
 0x47f   : > { %4425 = vmatprep.mubr.f32.mxu1 %v12238_v2 }
 0x480   : > { %6536 = vmatmul.mubr.msk.f32.gmra.mrb[42].mxu0 %vm12249_vm13, %v4180_v14 }
 0x481   : > { %4318 = vmatprep.mubr.f32.mxu0 %v12238_v2 }
 0x482   : > { %6546 = vmatmul.mubr.msk.f32.gmra.mrb[42].mxu1 %vm12250_vm4, %v4180_v14 }
 0x483   : > { %4431 = vmatprep.mubr.f32.mxu1 %v12238_v2 }
 0x484   : > { %6537 = vmatmul.mubr.msk.f32.gmra.mrb[44].mxu0 %vm12251_vm11, %v4181_v28 }
 0x485   : > { %4324 = vmatprep.mubr.f32.mxu0 %v12238_v2 }
 0x486   : > { %6547 = vmatmul.mubr.msk.f32.gmra.mrb[44].mxu1 %vm12252_vm6, %v4181_v28  ;;  %vm4475_vm6 = vcmask 1040384  }
 0x487   : > { %4437 = vmatprep.mubr.f32.mxu1 %v12238_v2 }
 0x488   : > { %6538 = vmatmul.mubr.msk.f32.gmra.mrb[46].mxu0 %vm12253_vm3, %v4182_v52 }
 0x489   : > { %4330 = vmatprep.mubr.f32.mxu0 %v12238_v2 }
 0x48a   : > { %6548 = vmatmul.mubr.msk.f32.gmra.mrb[46].mxu1 %vm12254_vm8, %v4182_v52 }
 0x48b   : > { %4443 = vmatprep.mubr.f32.mxu1 %v12238_v2 }
 0x48c   : > { %6539 = vmatmul.mubr.msk.f32.gmra.mrb[48].mxu0 %vm12255_vm14, %v4183_v20 }
 0x48d   : > { %4552 = vmatprep.mubr.f32.mxu0 %v12238_v2 }
 0x48e   : > { %6549 = vmatmul.mubr.msk.f32.gmra.mrb[48].mxu1 %vm12256_vm10, %v4183_v20 }
 0x48f   : > { %4665 = vmatprep.mubr.f32.mxu1 %v12238_v2 }
 0x533   : > { %v3896_v0 = vpop.f32.mrb[26].mxu0 }
 0x534   : > { %v10498_v61 = vadd.f32 %v3896_v0, %v3800_v58  ;;  %v3898_v5 = vpop.f32.mrb[27].mxu0 }
 0x535   : > { %v3985_v49 = vpop.f32.mrb[26].mxu1  ;;  %v10500_v53 = vadd.f32 %v3898_v5, %v3800_v58 }
 0x536   : > { %v10503_v48 = vmul.f32 100.0, %v10498_v61  ;;  %v10505_v11 = vadd.f32 %v3985_v49, %v3800_v58  ;;  %v3987_v63 = vpop.f32.mrb[27].mxu1 }
 0x537   : > { %v10508_v17 = vmul.f32 100.0, %v10500_v53  ;;  %v10510_v59 = vadd.f32 %v3987_v63, %v3800_v58  ;;  %v3902_v42 = vpop.f32.mrb[28].mxu0 }
 0x538   : > { %v4040_v12 = vmin.f32 %v10503_v48, 20.0  ;;  %v10514_v34 = vmul.f32 100.0, %v10505_v11  ;;  %v10516_v38 = vadd.f32 %v3902_v42, %v3805_v8  ;;  %v3904_v22 = vpop.f32.mrb[29].mxu0  ;;  %vm4024_vm1 = vcmp.gt.f32.partialorder %v10503_v48, 20.0 }
 0x539   : > { %v4041_v24 = vmin.f32 %v10508_v17, 20.0  ;;  %v10520_v37 = vmul.f32 100.0, %v10510_v59  ;;  %v3991_v33 = vpop.f32.mrb[28].mxu1  ;;  %v10522_v1 = vadd.f32 %v3904_v22, %v3805_v8  ;;  %vm4025_vm12 = vcmp.gt.f32.partialorder %v10508_v17, 20.0 }
 0x53a   : > { %v4056_v62 = vmul.f32 1.442695, %v4040_v12  ;;  %v4042_v26 = vmin.f32 %v10514_v34, 20.0  ;;  %v10526_v55 = vmul.f32 100.0, %v10516_v38  ;;  %v3993_v56 = vpop.f32.mrb[29].mxu1  ;;  %v10529_v10 = vadd.f32 %v3991_v33, %v3805_v8 }
 0x53b   : > { %v4058_v51 = vmul.f32 1.442695, %v4041_v24  ;;  %v4043_v16 = vmin.f32 %v10520_v37, 20.0  ;;  %v3908_v60 = vpop.f32.mrb[30].mxu0  ;;  %v10536_v57 = vmul.f32 100.0, %v10522_v1  ;;  %v10538_v23 = vadd.f32 %v3993_v56, %v3805_v8 }
 0x53c   : > { %7209 = vpow2.f32 %v4056_v62  ;;  %v4060_v29 = vmul.f32 1.442695, %v4042_v26  ;;  %v4044_v4 = vmin.f32 %v10526_v55, 20.0  ;;  %v3910_v47 = vpop.f32.mrb[31].mxu0  ;;  %v10533_v50 = vmul.f32 100.0, %v10529_v10 }
 0x53d   : > { %7211 = vpow2.f32 %v4058_v51  ;;  %v4062_v21 = vmul.f32 1.442695, %v4043_v16  ;;  %v3997_v25 = vpop.f32.mrb[30].mxu1  ;;  %v10540_v45 = vadd.f32 %v3908_v60, %v3810_v3  ;;  %v4045_v44 = vmin.f32 %v10536_v57, 20.0 }
 0x53e   : > { %7213 = vpow2.f32 %v4060_v29  ;;  %v4064_v30 = vmul.f32 1.442695, %v4044_v4  ;;  %v3999_v46 = vpop.f32.mrb[31].mxu1  ;;  %v4046_v27 = vmin.f32 %v10533_v50, 20.0  ;;  %v10545_v40 = vmul.f32 100.0, %v10538_v23 }
 0x53f   : > { %7215 = vpow2.f32 %v4062_v21  ;;  %v3914_v15 = vpop.f32.mrb[32].mxu0  ;;  %v10548_v36 = vmul.f32 100.0, %v10540_v45  ;;  %v10550_v18 = vadd.f32 %v3997_v25, %v3810_v3  ;;  %v10552_v7 = vadd.f32 %v3910_v47, %v3810_v3 }
 0x540   : > { %7217 = vpow2.f32 %v4064_v30  ;;  %v3916_v39 = vpop.f32.mrb[33].mxu0  ;;  %v4068_v6 = vmul.f32 1.442695, %v4046_v27  ;;  %v10554_v31 = vadd.f32 %v3999_v46, %v3810_v3  ;;  %v4066_v13 = vmul.f32 1.442695, %v4045_v44 }
 0x541   : > { %v4003_v19 = vpop.f32.mrb[32].mxu1  ;;  %v4047_v9 = vmin.f32 %v10545_v40, 20.0  ;;  %v4048_v35 = vmin.f32 %v10548_v36, 20.0  ;;  %v10559_v32 = vmul.f32 100.0, %v10550_v18  ;;  %v10562_v43 = vmul.f32 100.0, %v10552_v7 }
 0x542   : > { %v4005_v41 = vpop.f32.mrb[33].mxu1  ;;  %7219 = vpow2.f32 %v4068_v6  ;;  %v10565_v28 = vmul.f32 100.0, %v10554_v31  ;;  %v10568_v58 = vadd.f32 %v3914_v15, %v3815_v54  ;;  %v10572_v22 = vadd.f32 %v4003_v19, %v3815_v54 }
 0x543   : > { %7221 = vpow2.f32 %v4066_v13  ;;  %v4070_v14 = vmul.f32 1.442695, %v4047_v9  ;;  %v4072_v52 = vmul.f32 1.442695, %v4048_v35  ;;  %v4050_v20 = vmin.f32 %v10559_v32, 20.0 }
 0x544   : > { %v4049_v63 = vmin.f32 %v10562_v43, 20.0  ;;  %v4051_v12 = vmin.f32 %v10565_v28, 20.0  ;;  %v10575_v26 = vmul.f32 100.0, %v10568_v58  ;;  %v10578_v16 = vmul.f32 100.0, %v10572_v22 }
 0x545   : > { %7223 = vpow2.f32 %v4070_v14  ;;  %v4076_v62 = vmul.f32 1.442695, %v4050_v20  ;;  %v10580_v60 = vadd.f32 %v3916_v39, %v3815_v54  ;;  %v10582_v47 = vadd.f32 %v4005_v41, %v3815_v54 }
 0x546   : > { %v7210_v0 = vpop.eup %7209  ;;  %7225 = vpow2.f32 %v4072_v52  ;;  %v4074_v4 = vmul.f32 1.442695, %v4049_v63  ;;  %v4052_v25 = vmin.f32 %v10575_v26, 20.0  ;;  %v4078_v15 = vmul.f32 1.442695, %v4051_v12 }
 0x547   : > { %v7212_v5 = vpop.eup %7211  ;;  %v4088_v49 = vadd.f32 1.0, %v7210_v0  ;;  %v10585_v3 = vmul.f32 100.0, %v10580_v60  ;;  %v10589_v30 = vmul.f32 100.0, %v10582_v47  ;;  %v4054_v44 = vmin.f32 %v10578_v16, 20.0 }
 0x548   : > { %v7214_v8 = vpop.eup %7213  ;;  %v4089_v42 = vadd.f32 1.0, %v7212_v5  ;;  %v4080_v41 = vmul.f32 1.442695, %v4052_v25  ;;  %vm4026_vm7 = vcmp.gt.f32.partialorder %v10514_v34, 20.0  ;;  %vm4028_vm0 = vcmp.gt.f32.partialorder %v10526_v55, 20.0 }
 0x549   : > { %v7216_v24 = vpop.eup %7215  ;;  %7227 = vlog2.f32 %v4088_v49  ;;  %v4090_v33 = vadd.f32 1.0, %v7214_v8  ;;  %v4053_v6 = vmin.f32 %v10585_v3, 20.0  ;;  %v4055_v13 = vmin.f32 %v10589_v30, 20.0 }
 0x54a   : > { %v7218_v56 = vpop.eup %7217  ;;  %7229 = vlog2.f32 %v4089_v42  ;;  %v4091_v51 = vadd.f32 1.0, %v7216_v24  ;;  %v4084_v54 = vmul.f32 1.442695, %v4054_v44  ;;  %vm4030_vm2 = vcmp.gt.f32.partialorder %v10533_v50, 20.0 }
 0x54b   : > { %7231 = vlog2.f32 %v4090_v33  ;;  %v4092_v29 = vadd.f32 1.0, %v7218_v56  ;;  %v4082_v52 = vmul.f32 1.442695, %v4053_v6  ;;  %v4086_v5 = vmul.f32 1.442695, %v4055_v13 }
 0x54c   : > { %7233 = vlog2.f32 %v4091_v51  ;;  %v7220_v21 = vpop.eup %7219  ;;  %vm4029_vm13 = vcmp.gt.f32.partialorder %v10536_v57, 20.0  ;;  %vm4027_vm4 = vcmp.gt.f32.partialorder %v10520_v37, 20.0  ;;  %vm4031_vm11 = vcmp.gt.f32.partialorder %v10545_v40, 20.0 }
 0x54d   : > { %7235 = vlog2.f32 %v4092_v29  ;;  %v7222_v46 = vpop.eup %7221  ;;  %v4094_v27 = vadd.f32 1.0, %v7220_v21  ;;  %vm4032_vm3 = vcmp.gt.f32.partialorder %v10548_v36, 20.0  ;;  %vm4034_vm8 = vcmp.gt.f32.partialorder %v10559_v32, 20.0 }
 0x54e   : > { %7237 = vpow2.f32 %v4076_v62  ;;  %v4093_v39 = vadd.f32 1.0, %v7222_v46  ;;  %vm4033_vm14 = vcmp.gt.f32.partialorder %v10562_v43, 20.0  ;;  %vm4035_vm10 = vcmp.gt.f32.partialorder %v10565_v28, 20.0  ;;  %v12257_v43 = vld [vmem:[#allocation34_spill] sm:$0xff]  ;;  %v4169_v28 = vld [vmem:[%s11777_s8 + $0x8] sm:$0xff] }
 0x54f   : > { %7239 = vpow2.f32 %v4074_v4  ;;  %v7224_v19 = vpop.eup %7223 }
 0x550   : > { %7241 = vlog2.f32 %v4094_v27  ;;  %v4095_v9 = vadd.f32 1.0, %v7224_v19  ;;  %v7226_v35 = vpop.eup %7225 }
 0x551   : > { %7243 = vlog2.f32 %v4093_v39  ;;  %v4096_v56 = vadd.f32 1.0, %v7226_v35 }
 0x552   : > { %7245 = vpow2.f32 %v4078_v15 }
 0x553   : > { %v7228_v14 = vpop.eup %7227  ;;  %7247 = vlog2.f32 %v4095_v9 }
 0x554   : > { %v7230_v20 = vpop.eup %7229  ;;  %v4105_v0 = vmul.f32 0.6931472, %v7228_v14  ;;  %7249 = vpow2.f32 %v4080_v41 }
 0x555   : > { %v7232_v49 = vpop.eup %7231  ;;  %7251 = vpow2.f32 %v4084_v54  ;;  %v4107_v12 = vmul.f32 0.6931472, %v7230_v20 }
 0x556   : > { %v7234_v63 = vpop.eup %7233  ;;  %v4109_v42 = vmul.f32 0.6931472, %v7232_v49  ;;  %7253 = vpow2.f32 %v4082_v52  ;;  %v4136_v33 = vmul.f32 0.01, %v4105_v0 }
 0x557   : > { %v7236_v8 = vpop.eup %7235  ;;  %7255 = vpow2.f32 %v4086_v5  ;;  %v4111_v46 = vmul.f32 0.6931472, %v7234_v63  ;;  %v4137_v39 = vmul.f32 0.01, %v4107_v12 }
 0x558   : > { %v7238_v24 = vpop.eup %7237  ;;  %v4113_v62 = vmul.f32 0.6931472, %v7236_v8  ;;  %v4138_v15 = vmul.f32 0.01, %v4109_v42  ;;  %v4152_v19 = vsel %vm4024_vm1, %v10498_v61, %v4136_v33  ;;  %7257 = vlog2.f32 %v4096_v56 }
 0x559   : > { %v7240_v51 = vpop.eup %7239  ;;  %v4098_v29 = vadd.f32 1.0, %v7238_v24  ;;  %v4139_v20 = vmul.f32 0.01, %v4111_v46  ;;  %v4153_v48 = vsel %vm4025_vm12, %v10500_v53, %v4137_v39  ;;  %vm4036_vm1 = vcmp.gt.f32.partialorder %v10575_v26, 20.0 }
 0x55a   : > { %v7242_v4 = vpop.eup %7241  ;;  %v4140_v21 = vmul.f32 0.01, %v4113_v62  ;;  %v4097_v25 = vadd.f32 1.0, %v7240_v51  ;;  %v4154_v5 = vsel %vm4026_vm7, %v10505_v11, %v4138_v15  ;;  %vm4038_vm12 = vcmp.gt.f32.partialorder %v10578_v16, 20.0 }
 0x55b   : > { %v7244_v27 = vpop.eup %7243  ;;  %v4117_v44 = vmul.f32 0.6931472, %v7242_v4  ;;  %7259 = vlog2.f32 %v4098_v29  ;;  %v4155_v53 = vsel %vm4027_vm4, %v10510_v59, %v4139_v20  ;;  %vm4037_vm7 = vcmp.gt.f32.partialorder %v10585_v3, 20.0  ;;  %v12262_v3 = vld [vmem:[#allocation27_spill] sm:$0xff] }
 0x55c   : > { %v7246_v6 = vpop.eup %7245  ;;  %v4156_v55 = vsel %vm4028_vm0, %v10516_v38, %v4140_v21  ;;  %v4115_v13 = vmul.f32 0.6931472, %v7244_v27  ;;  %7261 = vlog2.f32 %v4097_v25  ;;  %vm4039_vm0 = vcmp.gt.f32.partialorder %v10589_v30, 20.0  ;;  %v12263_v30 = vld [vmem:[#allocation30_spill] sm:$0xff] }
 0x55d   : > { %v7248_v9 = vpop.eup %7247  ;;  %v6671_v41 = vpack.c.bf16 %v4156_v55, %v4152_v19  ;;  %v4142_v35 = vmul.f32 0.01, %v4117_v44  ;;  %v4099_v54 = vadd.f32 1.0, %v7246_v6  ;;  %vm4450_vm4 = vcmask 203776  }
 0x55e   : > { %v4141_v14 = vmul.f32 0.01, %v4115_v13  ;;  %v4119_v52 = vmul.f32 0.6931472, %v7248_v9  ;;  %v7250_v0 = vpop.eup %7249 }
 0x55f   : > { %v4158_v61 = vsel %vm4030_vm2, %v10529_v10, %v4142_v35  ;;  %7263 = vlog2.f32 %v4099_v54  ;;  %v7252_v38 = vpop.eup %7251  ;;  %v4100_v63 = vadd.f32 1.0, %v7250_v0  ;;  %vm7605_vm2 = vmmov 1   ;;  %v4170_v0 = vld [vmem:[%s11777_s8 + $0x10] sm:$0xff] }
 0x560   : > { %v6681_v49 = vpack.c.bf16 %v4158_v61, %v4154_v5  ;;  %v4157_v8 = vsel %vm4029_vm13, %v10522_v1, %v4141_v14  ;;  %v4143_v42 = vmul.f32 0.01, %v4119_v52  ;;  %v7254_v12 = vpop.eup %7253  ;;  %v4102_v11 = vadd.f32 1.0, %v7252_v38  ;;  %vm6674_vm13 = vmpackc.low %vm4475_vm6, %vm7605_vm2  ;;  %v12264_v5 = vld [vmem:[#allocation31_spill] sm:$0xff] }
 0x561   : > { %v6669_v34 = vpack.c.bf16 %v4157_v8, %v4153_v48  ;;  %v7256_v10 = vpop.eup %7255  ;;  %7265 = vlog2.f32 %v4100_v63  ;;  %v4101_v50 = vadd.f32 1.0, %v7254_v12  ;;  %v12265_v61 = vld [vmem:[#allocation23_spill] sm:$0xff]  ;;  %v12268_v63 = vld [vmem:[#allocation45_spill] sm:$0xff] }
 0x562   : > { %v4159_v17 = vsel %vm4031_vm11, %v10538_v23, %v4143_v42  ;;  %7267 = vlog2.f32 %v4102_v11  ;;  %v4103_v24 = vadd.f32 1.0, %v7256_v10  ;;  %v7258_v37 = vpop.eup %7257  ;;  %v12266_v48 = vld [vmem:[#allocation35_spill] sm:$0xff]  ;;  %v4173_v42 = vld [vmem:[%s11777_s8 + $0x28] sm:$0xff]  ;;  %v4174_v12 = vld [vmem:[%s11777_s8 + $0x30] sm:$0xff] }
 0x563   : > { %6670 = vmatprep.subr.bf16.mxu0 %v6669_v34  ;;  %v6679_v57 = vpack.c.bf16 %v4159_v17, %v4155_v53  ;;  %7269 = vlog2.f32 %v4101_v50  ;;  %v4121_v62 = vmul.f32 0.6931472, %v7258_v37  ;;  %v12267_v38 = vld [vmem:[#allocation19_spill] sm:$0xff]  ;;  %v4175_v11 = vld [vmem:[%s11777_s8 + $0x38] sm:$0xff]  ;;  %v4185_v10 = vld [vmem:[%s11779_s10 + $0x8] sm:$0xff] }
 0x564   : > { %6672 = vmatpush1.bf16.msra.mxu0 %v6671_v41  ;;  %7271 = vlog2.f32 %v4103_v24  ;;  %v4172_v8 = vld [vmem:[%s11777_s8 + $0x20] sm:$0xff]  ;;  %v4186_v50 = vld [vmem:[%s11779_s10 + $0x10] sm:$0xff]  ;;  %v4187_v53 = vld [vmem:[%s11779_s10 + $0x18] sm:$0xff] }
 0x565   : > { %6680 = vmatprep.subr.bf16.mxu1 %v6679_v57  ;;  %v7260_v1 = vpop.eup %7259  ;;  %v4144_v4 = vmul.f32 0.01, %v4121_v62  ;;  %v4184_v34 = vld [vmem:[%s11779_s10] sm:$0xff]  ;;  %v4189_v24 = vld [vmem:[%s11779_s10 + $0x28] sm:$0xff]  ;;  %v4190_v57 = vld [vmem:[%s11779_s10 + $0x30] sm:$0xff] }
 0x566   : > { %6682 = vmatpush1.bf16.msra.mxu1 %v6681_v49  ;;  %v7262_v40 = vpop.eup %7261  ;;  %v4125_v56 = vmul.f32 0.6931472, %v7260_v1  ;;  %v4171_v49 = vld [vmem:[%s11777_s8 + $0x18] sm:$0xff]  ;;  %v4188_v17 = vld [vmem:[%s11779_s10 + $0x20] sm:$0xff] }
 0x567   : > { %v4123_v51 = vmul.f32 0.6931472, %v7262_v40  ;;  %v4160_v9 = vsel %vm4032_vm3, %v10540_v45, %v4144_v4  ;;  %v4191_v37 = vld [vmem:[%s11779_s10 + $0x38] sm:$0xff] }
 0x568   : > { %v4146_v46 = vmul.f32 0.01, %v4125_v56  ;;  %v5031_v56 = vpop.permute.xlu1 %5030 }
 0x569   : > { %v7264_v33 = vpop.eup %7263  ;;  %v4145_v44 = vmul.f32 0.01, %v4123_v51 }
 0x56a   : > { %v4127_v23 = vmul.f32 0.6931472, %v7264_v33  ;;  %v4162_v26 = vsel %vm4034_vm8, %v10550_v18, %v4146_v46 }
 0x56b   : > { %v7266_v59 = vpop.eup %7265  ;;  %v4161_v52 = vsel %vm4033_vm14, %v10552_v7, %v4145_v44  ;;  %v4168_v7 = vld [vmem:[%s11777_s8] sm:$0xff] }
 0x56c   : > { %v7268_v29 = vpop.eup %7267  ;;  %v4129_v21 = vmul.f32 0.6931472, %v7266_v59  ;;  %v4147_v19 = vmul.f32 0.01, %v4127_v23 }
 0x56d   : > { %v7270_v25 = vpop.eup %7269  ;;  %v4133_v27 = vmul.f32 0.6931472, %v7268_v29 }
 0x56e   : > { %v7272_v15 = vpop.eup %7271  ;;  %v4148_v39 = vmul.f32 0.01, %v4129_v21  ;;  %v4131_v6 = vmul.f32 0.6931472, %v7270_v25  ;;  %v4163_v36 = vsel %vm4035_vm10, %v10554_v31, %v4147_v19  ;;  %v12259_v31 = vld [vmem:[#allocation18_spill] sm:$0xff] }
 0x56f   : > { %v4150_v55 = vmul.f32 0.01, %v4133_v27  ;;  %v4135_v13 = vmul.f32 0.6931472, %v7272_v15 }
 0x570   : > { %v4164_v41 = vsel %vm4036_vm1, %v10568_v58, %v4148_v39  ;;  %v4149_v35 = vmul.f32 0.01, %v4131_v6  ;;  %v5036_v39 = vpop.permute.xlu0 %5035 }
 0x571   : > { %v6676_v16 = vpack.c.bf16 %v4164_v41, %v4160_v9  ;;  %v4166_v54 = vsel %vm4038_vm12, %v10572_v22, %v4150_v55  ;;  %v4151_v14 = vmul.f32 0.01, %v4135_v13  ;;  %v12258_v22 = vld [vmem:[#allocation41_spill] sm:$0xff] }
 0x572   : > { %v6686_v20 = vpack.c.bf16 %v4166_v54, %v4162_v26  ;;  %v4165_v45 = vsel %vm4037_vm7, %v10580_v60, %v4149_v35  ;;  %v12260_v60 = vld [vmem:[#allocation15_spill] sm:$0xff] }
 0x573   : > { %v6673_v18 = vpack.c.bf16 %v4165_v45, %v4161_v52  ;;  %v4167_v32 = vsel %vm4039_vm0, %v10582_v47, %v4151_v14  ;;  %v12261_v47 = vld [vmem:[#allocation32_spill] sm:$0xff] }
 0x574   : > { %v6683_v58 = vpack.c.bf16 %v4167_v32, %v4163_v36 }
 0x575   : > { %6675 = vmatprep.subr.msk.bf16.mxu0 %vm6674_vm13, %v6673_v18 }
 0x576   : > { %6685 = vmatprep.subr.msk.bf16.mxu1 %vm6674_vm13, %v6683_v58  ;;  %6678 = vmatpush1.bf16.msk.msra.mxu0 %vm6674_vm13, %v6676_v16 }
 0x577   : > { %6688 = vmatpush1.bf16.msk.msra.mxu1 %vm6674_vm13, %v6686_v20  ;;  %6690 = vmatprep.subr.bf16.mxu0 %v12257_v43 }
 0x578   : > { %6698 = vmatprep.subr.bf16.mxu1 %v12258_v22 }
 0x579   : > { %6552 = vmatmul.mubr.msk.f32.vlgmr.msra.gmra.mrb[34].mxu0 %vm4450_vm4, %v4168_v7 }
 0x57a   : > { %6562 = vmatmul.mubr.msk.f32.vlgmr.msra.gmra.mrb[34].mxu1 %vm4450_vm4, %v4168_v7  ;;  %6692 = vmatpush1.bf16.msra.mxu0 %v12259_v31 }
 0x57b   : > { %6700 = vmatpush1.bf16.msra.mxu1 %v12260_v60  ;;  %6694 = vmatprep.subr.bf16.mxu0 %v12261_v47 }
 0x57c   : > { %6702 = vmatprep.subr.bf16.mxu1 %v12262_v3  ;;  %4558 = vmatprep.mubr.f32.mxu0 %v12238_v2  ;;  %v5041_v3 = vpop.permute.xlu1 %5040 }
 0x57d   : > { %4671 = vmatprep.mubr.f32.mxu1 %v12238_v2  ;;  %6553 = vmatmul.mubr.msk.f32.gmra.mrb[36].mxu0 %vm4450_vm4, %v4169_v28 }
 0x57e   : > { %6563 = vmatmul.mubr.msk.f32.gmra.mrb[36].mxu1 %vm4450_vm4, %v4169_v28  ;;  %6696 = vmatpush1.bf16.msra.mxu0 %v12263_v30 }
 0x57f   : > { %6704 = vmatpush1.bf16.msra.mxu1 %v12264_v5  ;;  %6570 = vmatprep.subr.msk.mxu0 %vm2908_vm9, %v12265_v61 }
 0x580   : > { %6580 = vmatprep.subr.msk.mxu1 %vm2908_vm9, %v12266_v48  ;;  %4564 = vmatprep.mubr.f32.mxu0 %v12238_v2 }
 0x581   : > { %4677 = vmatprep.mubr.f32.mxu1 %v12238_v2  ;;  %6554 = vmatmul.mubr.msk.f32.gmra.mrb[38].mxu0 %vm4450_vm4, %v4170_v0 }
 0x582   : > { %6564 = vmatmul.mubr.msk.f32.gmra.mrb[38].mxu1 %vm4450_vm4, %v4170_v0  ;;  %6571 = vmatpush1.msk.msra.mxu0 %vm2908_vm9, %v12267_v38 }
 0x583   : > { %6581 = vmatpush1.msk.msra.mxu1 %vm2908_vm9, %v12268_v63  ;;  %4570 = vmatprep.mubr.f32.mxu0 %v12238_v2 }
 0x584   : > { %4683 = vmatprep.mubr.f32.mxu1 %v12238_v2 }
 0x585   : > { %6555 = vmatmul.mubr.msk.f32.gmra.mrb[40].mxu0 %vm4450_vm4, %v4171_v49 }
 0x586   : > { %6565 = vmatmul.mubr.msk.f32.gmra.mrb[40].mxu1 %vm4450_vm4, %v4171_v49  ;;  %4576 = vmatprep.mubr.f32.mxu0 %v12238_v2 }
 0x587   : > { %4689 = vmatprep.mubr.f32.mxu1 %v12238_v2 }
 0x589   : > { %6556 = vmatmul.mubr.msk.f32.gmra.mrb[42].mxu0 %vm4450_vm4, %v4172_v8 }
 0x58a   : > { %6566 = vmatmul.mubr.msk.f32.gmra.mrb[42].mxu1 %vm4450_vm4, %v4172_v8  ;;  %4582 = vmatprep.mubr.f32.mxu0 %v12238_v2 }
 0x58b   : > { %4695 = vmatprep.mubr.f32.mxu1 %v12238_v2 }
 0x58d   : > { %6557 = vmatmul.mubr.msk.f32.gmra.mrb[44].mxu0 %vm4450_vm4, %v4173_v42 }
 0x58e   : > { %6567 = vmatmul.mubr.msk.f32.gmra.mrb[44].mxu1 %vm4450_vm4, %v4173_v42  ;;  %4588 = vmatprep.mubr.f32.mxu0 %v12238_v2 }
 0x58f   : > { %4701 = vmatprep.mubr.f32.mxu1 %v12238_v2 }
 0x591   : > { %6558 = vmatmul.mubr.msk.f32.gmra.mrb[46].mxu0 %vm4450_vm4, %v4174_v12 }
 0x592   : > { %6568 = vmatmul.mubr.msk.f32.gmra.mrb[46].mxu1 %vm4450_vm4, %v4174_v12  ;;  %4594 = vmatprep.mubr.f32.mxu0 %v12238_v2 }
 0x593   : > { %4707 = vmatprep.mubr.f32.mxu1 %v12238_v2 }
 0x595   : > { %6559 = vmatmul.mubr.msk.f32.gmra.mrb[48].mxu0 %vm4450_vm4, %v4175_v11 }
 0x596   : > { %6569 = vmatmul.mubr.msk.f32.gmra.mrb[48].mxu1 %vm4450_vm4, %v4175_v11  ;;  %4802 = vmatprep.mubr.f32.mxu0 %v12238_v2 }
 0x597   : > { %4915 = vmatprep.mubr.f32.mxu1 %v12238_v2 }
 0x599   : > { %6572 = vmatmul.mubr.msk.f32.vlgmr.msra.gmra.mrb[34].mxu0 %vm2883_vm15, %v4184_v34 }
 0x59a   : > { %6582 = vmatmul.mubr.msk.f32.vlgmr.msra.gmra.mrb[34].mxu1 %vm2883_vm15, %v4184_v34  ;;  %4808 = vmatprep.mubr.f32.mxu0 %v12238_v2 }
 0x59b   : > { %4921 = vmatprep.mubr.f32.mxu1 %v12238_v2 }
 0x59d   : > { %6573 = vmatmul.mubr.msk.f32.gmra.mrb[36].mxu0 %vm2883_vm15, %v4185_v10 }
 0x59e   : > { %6583 = vmatmul.mubr.msk.f32.gmra.mrb[36].mxu1 %vm2883_vm15, %v4185_v10  ;;  %4814 = vmatprep.mubr.f32.mxu0 %v12238_v2 }
 0x59f   : > { %4927 = vmatprep.mubr.f32.mxu1 %v12238_v2 }
 0x5a1   : > { %6574 = vmatmul.mubr.msk.f32.gmra.mrb[38].mxu0 %vm2883_vm15, %v4186_v50 }
 0x5a2   : > { %6584 = vmatmul.mubr.msk.f32.gmra.mrb[38].mxu1 %vm2883_vm15, %v4186_v50  ;;  %4820 = vmatprep.mubr.f32.mxu0 %v12238_v2 }
 0x5a3   : > { %4933 = vmatprep.mubr.f32.mxu1 %v12238_v2 }
 0x5a5   : > { %6575 = vmatmul.mubr.msk.f32.gmra.mrb[40].mxu0 %vm2883_vm15, %v4187_v53 }
 0x5a6   : > { %6585 = vmatmul.mubr.msk.f32.gmra.mrb[40].mxu1 %vm2883_vm15, %v4187_v53  ;;  %4826 = vmatprep.mubr.f32.mxu0 %v12238_v2 }
 0x5a7   : > { %4939 = vmatprep.mubr.f32.mxu1 %v12238_v2 }
 0x5a9   : > { %6576 = vmatmul.mubr.msk.f32.gmra.mrb[42].mxu0 %vm2883_vm15, %v4188_v17 }
 0x5aa   : > { %6586 = vmatmul.mubr.msk.f32.gmra.mrb[42].mxu1 %vm2883_vm15, %v4188_v17  ;;  %4832 = vmatprep.mubr.f32.mxu0 %v12238_v2 }
 0x5ab   : > { %4945 = vmatprep.mubr.f32.mxu1 %v12238_v2 }
 0x5ad   : > { %6577 = vmatmul.mubr.msk.f32.gmra.mrb[44].mxu0 %vm2883_vm15, %v4189_v24 }
 0x5ae   : > { %6587 = vmatmul.mubr.msk.f32.gmra.mrb[44].mxu1 %vm2883_vm15, %v4189_v24  ;;  %4838 = vmatprep.mubr.f32.mxu0 %v12238_v2 }
 0x5af   : > { %4951 = vmatprep.mubr.f32.mxu1 %v12238_v2 }
 0x5b1   : > { %6578 = vmatmul.mubr.msk.f32.gmra.mrb[46].mxu0 %vm2883_vm15, %v4190_v57 }
 0x5b2   : > { %6588 = vmatmul.mubr.msk.f32.gmra.mrb[46].mxu1 %vm2883_vm15, %v4190_v57  ;;  %4844 = vmatprep.mubr.f32.mxu0 %v12238_v2 }
 0x5b3   : > { %4957 = vmatprep.mubr.f32.mxu1 %v12238_v2 }
 0x5b5   : > { %6579 = vmatmul.mubr.msk.f32.gmra.mrb[48].mxu0 %vm2883_vm15, %v4191_v37 }
 0x5b6   : > { %6589 = vmatmul.mubr.msk.f32.gmra.mrb[48].mxu1 %vm2883_vm15, %v4191_v37  ;;  %5564 = vmatprep.mubr.f32.mxu0 %v12238_v2 }
 0x5b7   : > { %5677 = vmatprep.mubr.f32.mxu1 %v12238_v2 }
 0x66c   : > { %v4804_v1 = vpop.f32.mrb[34].mxu0 }
 0x66d   : > { %v4996_v40 = vmul.f32 0.70710677, %v4804_v1  ;;  %v4917_v33 = vpop.f32.mrb[34].mxu1  ;;  %v4806_v62 = vpop.f32.mrb[35].mxu0 }
 0x66e   : > { %v4998_v51 = vmul.f32 0.70710677, %v4917_v33  ;;  %v4997_v59 = vmul.f32 0.70710677, %v4806_v62  ;;  %v4919_v23 = vpop.f32.mrb[35].mxu1 }
 0x66f   : > { %v10773_v29 = vadd.f32 %v5031_v56, %v4996_v40  ;;  %v4999_v4 = vmul.f32 0.70710677, %v4919_v23  ;;  %v5046_v23 = vpop.permute.xlu0 %5045 }
 0x670   : > { %v10775_v21 = vadd.f32 %v5031_v56, %v4998_v51  ;;  %v4810_v25 = vpop.f32.mrb[36].mxu0  ;;  %v10783_v19 = vadd.f32 %v5031_v56, %v4997_v59 }
 0x671   : > { %v10778_v46 = vmul.f32 100.0, %v10773_v29  ;;  %v5000_v27 = vmul.f32 0.70710677, %v4810_v25  ;;  %v4923_v15 = vpop.f32.mrb[36].mxu1  ;;  %v4812_v44 = vpop.f32.mrb[37].mxu0  ;;  %v10786_v41 = vadd.f32 %v5031_v56, %v4999_v4 }
 0x672   : > { %v10781_v6 = vmul.f32 100.0, %v10775_v21  ;;  %v5002_v55 = vmul.f32 0.70710677, %v4923_v15  ;;  %v5001_v13 = vmul.f32 0.70710677, %v4812_v44  ;;  %v4925_v26 = vpop.f32.mrb[37].mxu1 }
 0x673   : > { %v5164_v9 = vmin.f32 %v10778_v46, 20.0  ;;  %12269 = vst [vmem:[#allocation47_spill] sm:$0xff] %v10786_v41  ;;  %v10788_v35 = vadd.f32 %v5036_v39, %v5000_v27  ;;  %v10795_v36 = vmul.f32 100.0, %v10783_v19  ;;  %v10802_v43 = vmul.f32 100.0, %v10786_v41 }
 0x674   : > { %v5166_v16 = vmin.f32 %v10781_v6, 20.0  ;;  %v4816_v54 = vpop.f32.mrb[38].mxu0  ;;  %v10797_v18 = vadd.f32 %v5036_v39, %v5002_v55  ;;  %v10799_v32 = vadd.f32 %v5036_v39, %v5001_v13  ;;  %v5003_v60 = vmul.f32 0.70710677, %v4925_v26 }
 0x675   : > { %v5196_v14 = vmul.f32 1.442695, %v5164_v9  ;;  %v10792_v52 = vmul.f32 100.0, %v10788_v35  ;;  %v4929_v20 = vpop.f32.mrb[38].mxu1  ;;  %v4818_v58 = vpop.f32.mrb[39].mxu0  ;;  %v5165_v61 = vmin.f32 %v10795_v36, 20.0 }
 0x676   : > { %v5200_v45 = vmul.f32 1.442695, %v5166_v16  ;;  %v4931_v7 = vpop.f32.mrb[39].mxu1  ;;  %v10806_v31 = vmul.f32 100.0, %v10797_v18  ;;  %v10809_v28 = vmul.f32 100.0, %v10799_v32  ;;  %v5167_v63 = vmin.f32 %v10802_v43, 20.0 }
 0x677   : > { %7273 = vpow2.f32 %v5196_v14  ;;  %v5168_v22 = vmin.f32 %v10792_v52, 20.0  ;;  %v5004_v0 = vmul.f32 0.70710677, %v4816_v54  ;;  %v5006_v5 = vmul.f32 0.70710677, %v4929_v20 }
 0x678   : > { %v4822_v47 = vpop.f32.mrb[40].mxu0  ;;  %7275 = vpow2.f32 %v5200_v45  ;;  %v5170_v48 = vmin.f32 %v10806_v31, 20.0  ;;  %v10814_v8 = vadd.f32 %v5036_v39, %v5003_v60  ;;  %v5169_v11 = vmin.f32 %v10809_v28, 20.0 }
 0x679   : > { %v5204_v30 = vmul.f32 1.442695, %v5168_v22  ;;  %v4935_v38 = vpop.f32.mrb[40].mxu1  ;;  %v4824_v49 = vpop.f32.mrb[41].mxu0  ;;  %v10816_v42 = vadd.f32 %v5041_v3, %v5004_v0  ;;  %v10819_v34 = vadd.f32 %v5041_v3, %v5006_v5  ;;  %v5005_v10 = vmul.f32 0.70710677, %v4818_v58 }
 0x67a   : > { %12270 = vst [vmem:[#allocation46_spill] sm:$0xff] %v10814_v8  ;;  %v4937_v12 = vpop.f32.mrb[41].mxu1  ;;  %v5208_v50 = vmul.f32 1.442695, %v5170_v48  ;;  %v10822_v53 = vmul.f32 100.0, %v10814_v8  ;;  %vm5132_vm9 = vcmp.gt.f32.partialorder %v10778_v46, 20.0 }
 0x67b   : > { %7277 = vpow2.f32 %v5204_v30  ;;  %v10825_v17 = vmul.f32 100.0, %v10816_v42  ;;  %v5008_v24 = vmul.f32 0.70710677, %v4822_v47  ;;  %v5198_v57 = vmul.f32 1.442695, %v5165_v61 }
 0x67c   : > { %v10828_v37 = vmul.f32 100.0, %v10819_v34  ;;  %v4828_v1 = vpop.f32.mrb[42].mxu0  ;;  %v5202_v33 = vmul.f32 1.442695, %v5167_v63  ;;  %v5171_v62 = vmin.f32 %v10822_v53, 20.0  ;;  %v10831_v56 = vadd.f32 %v5041_v3, %v5005_v10 }
 0x67d   : > { %v4941_v40 = vpop.f32.mrb[42].mxu1  ;;  %v10833_v51 = vpop.f32.mrb[43].mxu0  ;;  %v5206_v4 = vmul.f32 1.442695, %v5169_v11  ;;  %7279 = vpow2.f32 %v5208_v50  ;;  %v5172_v15 = vmin.f32 %v10825_v17, 20.0  ;;  %v10840_v44 = vadd.f32 %v5046_v23, %v5008_v24 }
 0x67e   : > { %12271 = vst [vmem:[#allocation60_spill] sm:$0xff] %v10831_v56  ;;  %v10835_v59 = vpop.f32.mrb[43].mxu1  ;;  %v5010_v39 = vmul.f32 0.70710677, %v4935_v38  ;;  %7281 = vpow2.f32 %v5198_v57  ;;  %v5210_v13 = vmul.f32 1.442695, %v5171_v62  ;;  %v10872_v24 = vpop.permute.xlu1 %5050 }
 0x67f   : > { %v5174_v9 = vmin.f32 %v10828_v37, 20.0  ;;  %v5007_v26 = vmul.f32 0.70710677, %v4931_v7  ;;  %7283 = vpow2.f32 %v5202_v33  ;;  %v10846_v54 = vmul.f32 100.0, %v10831_v56 }
 0x680   : > { %v10837_v25 = vpop.f32.mrb[44].mxu0  ;;  %v10853_v58 = vmul.f32 100.0, %v10840_v44  ;;  %7285 = vpow2.f32 %v5206_v4  ;;  %v5212_v60 = vmul.f32 1.442695, %v5172_v15  ;;  %v10857_v47 = vadd.f32 %v5046_v23, %v5010_v39 }
 0x681   : > { %v7274_v27 = vpop.eup %7273  ;;  %v10842_v55 = vpop.f32.mrb[44].mxu1  ;;  %7287 = vpow2.f32 %v5210_v13  ;;  %v5216_v61 = vmul.f32 1.442695, %v5174_v9  ;;  %v10863_v48 = vadd.f32 %v5041_v3, %v5007_v26  ;;  %v5173_v63 = vmin.f32 %v10846_v54, 20.0 }
 0x682   : > { %v7276_v16 = vpop.eup %7275  ;;  %v10848_v14 = vpop.f32.mrb[45].mxu0  ;;  %v5260_v45 = vadd.f32 1.0, %v7274_v27  ;;  %v5176_v11 = vmin.f32 %v10853_v58, 20.0  ;;  %v10870_v10 = vmul.f32 100.0, %v10857_v47  ;;  %v5009_v50 = vmul.f32 0.70710677, %v4824_v49 }
 0x683   : > { %v10850_v20 = vpop.f32.mrb[45].mxu1  ;;  %v5262_v5 = vadd.f32 1.0, %v7276_v16  ;;  %12272 = vst [vmem:[#allocation36_spill] sm:$0xff] %v10863_v48  ;;  %v5011_v57 = vmul.f32 0.70710677, %v4937_v12  ;;  %v10879_v15 = vmul.f32 100.0, %v10863_v48 }
 0x684   : > { %v10855_v22 = vpop.f32.mrb[46].mxu0  ;;  %7289 = vlog2.f32 %v5260_v45  ;;  %v5012_v33 = vmul.f32 0.70710677, %v4828_v1  ;;  %v5014_v62 = vmul.f32 0.70710677, %v4941_v40  ;;  %v5178_v39 = vmin.f32 %v10870_v10, 20.0 }
 0x685   : > { %v10859_v7 = vpop.f32.mrb[46].mxu1  ;;  %v10861_v30 = vpop.f32.mrb[47].mxu0  ;;  %7291 = vpow2.f32 %v5212_v60  ;;  %v10882_v13 = vadd.f32 %v5046_v23, %v5009_v50  ;;  %v5220_v1 = vmul.f32 1.442695, %v5176_v11  ;;  %v10888_v40 = vadd.f32 %v5046_v23, %v5011_v57 }
 0x686   : > { %v7278_v0 = vpop.eup %7277  ;;  %v10865_v38 = vpop.f32.mrb[47].mxu1  ;;  %7293 = vpow2.f32 %v5216_v61  ;;  %v10891_v26 = vadd.f32 %v10872_v24, %v5012_v33  ;;  %v10894_v16 = vadd.f32 %v10872_v24, %v5014_v62  ;;  %v5214_v60 = vmul.f32 1.442695, %v5173_v63 }
 0x687   : > { %v5264_v4 = vadd.f32 1.0, %v7278_v0  ;;  %12273 = vst [vmem:[#allocation52_spill] sm:$0xff] %v10882_v13  ;;  %v7280_v12 = vpop.eup %7279  ;;  %12274 = vst [vmem:[#allocation57_spill] sm:$0xff] %v10888_v40  ;;  %7295 = vlog2.f32 %v5262_v5  ;;  %v10897_v0 = vmul.f32 100.0, %v10882_v13  ;;  %v5224_v50 = vmul.f32 1.442695, %v5178_v39 }
 0x688   : > { %v10874_v3 = vpop.f32.mrb[48].mxu0  ;;  %12275 = vst [vmem:[#allocation56_spill] sm:$0xff] %v10891_v26  ;;  %12276 = vst [vmem:[#allocation55_spill] sm:$0xff] %v10894_v16  ;;  %v7282_v45 = vpop.eup %7281  ;;  %v10900_v2 = vmul.f32 100.0, %v10891_v26  ;;  %v5266_v23 = vadd.f32 1.0, %v7280_v12  ;;  %v5175_v11 = vmin.f32 %v10879_v15, 20.0 }
 0x689   : > { %v10876_v27 = vpop.f32.mrb[48].mxu1  ;;  %v10884_v49 = vpop.f32.mrb[49].mxu0  ;;  %7297 = vlog2.f32 %v5264_v4  ;;  %v10904_v57 = vmul.f32 100.0, %v10888_v40  ;;  %v10907_v33 = vmul.f32 100.0, %v10894_v16  ;;  %v5261_v63 = vadd.f32 1.0, %v7282_v45 }
 0x68a   : > { %v10886_v9 = vpop.f32.mrb[49].mxu1  ;;  %v7284_v61 = vpop.eup %7283  ;;  %7299 = vpow2.f32 %v5220_v1  ;;  %v5177_v62 = vmin.f32 %v10897_v0, 20.0  ;;  %v5013_v39 = vmul.f32 0.70710677, %v10833_v51  ;;  %v5180_v12 = vmin.f32 %v10900_v2, 20.0 }
 0x68b   : > { %v7286_v5 = vpop.eup %7285  ;;  %v5263_v4 = vadd.f32 1.0, %v7284_v61  ;;  %7301 = vpow2.f32 %v5214_v60  ;;  %v5218_v40 = vmul.f32 1.442695, %v5175_v11  ;;  %v5179_v56 = vmin.f32 %v10904_v57, 20.0 }
 0x68c   : > { %v7288_v48 = vpop.eup %7287  ;;  %7303 = vpow2.f32 %v5224_v50  ;;  %v5182_v16 = vmin.f32 %v10907_v33, 20.0  ;;  %v5222_v1 = vmul.f32 1.442695, %v5177_v62  ;;  %v5228_v45 = vmul.f32 1.442695, %v5180_v12 }
 0x68d   : > { %7305 = vlog2.f32 %v5266_v23  ;;  %v10915_v60 = vadd.f32 %v10872_v24, %v5013_v39  ;;  %v5015_v50 = vmul.f32 0.70710677, %v10835_v59  ;;  %v5226_v11 = vmul.f32 1.442695, %v5179_v56  ;;  %v5056_v39 = vpop.permute.xlu0 %5055 }
 0x68e   : > { %v7290_v13 = vpop.eup %7289  ;;  %7307 = vlog2.f32 %v5261_v63  ;;  %v5232_v51 = vmul.f32 1.442695, %v5182_v16  ;;  %v5016_v63 = vmul.f32 0.70710677, %v10837_v25  ;;  %v5018_v16 = vmul.f32 0.70710677, %v10842_v55 }
 0x68f   : > { %v7292_v8 = vpop.eup %7291  ;;  %7309 = vlog2.f32 %v5263_v4  ;;  %12277 = vst [vmem:[#allocation43_spill] sm:$0xff] %v10915_v60  ;;  %v10919_v26 = vmul.f32 100.0, %v10915_v60  ;;  %v5293_v59 = vmul.f32 0.6931472, %v7290_v13  ;;  %vm5134_vm15 = vcmp.gt.f32.partialorder %v10781_v6, 20.0 }
 0x690   : > { %v7294_v41 = vpop.eup %7293  ;;  %v5268_v61 = vadd.f32 1.0, %v7292_v8  ;;  %7311 = vpow2.f32 %v5228_v45  ;;  %v10924_v8 = vadd.f32 %v10872_v24, %v5015_v50  ;;  %v5265_v56 = vadd.f32 1.0, %v7286_v5 }
 0x691   : > { %v7296_v23 = vpop.eup %7295  ;;  %7313 = vpow2.f32 %v5218_v40  ;;  %12278 = vst [vmem:[#allocation49_spill] sm:$0xff] %v10919_v26  ;;  %v5270_v4 = vadd.f32 1.0, %v7294_v41  ;;  %v5181_v25 = vmin.f32 %v10919_v26, 20.0  ;;  %v10929_v45 = vadd.f32 %v5056_v39, %v5016_v63 }
 0x692   : > { %7315 = vpow2.f32 %v5222_v1  ;;  %12279 = vst [vmem:[#allocation48_spill] sm:$0xff] %v10924_v8  ;;  %v5297_v12 = vmul.f32 0.6931472, %v7296_v23  ;;  %vm5136_vm11 = vcmp.gt.f32.partialorder %v10792_v52, 20.0  ;;  %v10932_v55 = vadd.f32 %v5056_v39, %v5018_v16 }
 0x693   : > { %v7298_v62 = vpop.eup %7297  ;;  %7317 = vlog2.f32 %v5268_v61  ;;  %12280 = vst [vmem:[#allocation61_spill] sm:$0xff] %v10929_v45  ;;  %v5267_v50 = vadd.f32 1.0, %v7288_v48  ;;  %v5230_v5 = vmul.f32 1.442695, %v5181_v25  ;;  %v10935_v61 = vmul.f32 100.0, %v10924_v8 }
 0x694   : > { %v7300_v40 = vpop.eup %7299  ;;  %7319 = vpow2.f32 %v5232_v51  ;;  %v5301_v24 = vmul.f32 0.6931472, %v7298_v62  ;;  %12281 = vst [vmem:[#allocation59_spill] sm:$0xff] %v10932_v55  ;;  %v5356_v23 = vmul.f32 0.01, %v5293_v59  ;;  %v10938_v63 = vmul.f32 100.0, %v10929_v45 }
 0x695   : > { %v7302_v41 = vpop.eup %7301  ;;  %v5272_v1 = vadd.f32 1.0, %v7300_v40  ;;  %7321 = vpow2.f32 %v5226_v11  ;;  %v10941_v60 = vmul.f32 100.0, %v10932_v55  ;;  %v5358_v11 = vmul.f32 0.01, %v5297_v12 }
 0x696   : > { %v7304_v13 = vpop.eup %7303  ;;  %7323 = vlog2.f32 %v5270_v4  ;;  %v5017_v48 = vmul.f32 0.70710677, %v10848_v14  ;;  %v5360_v40 = vmul.f32 0.01, %v5301_v24  ;;  %v5269_v25 = vadd.f32 1.0, %v7302_v41 }
 0x697   : > { %v7306_v51 = vpop.eup %7305  ;;  %7325 = vlog2.f32 %v5272_v1  ;;  %v5274_v16 = vadd.f32 1.0, %v7304_v13  ;;  %v5184_v59 = vmin.f32 %v10938_v63, 20.0  ;;  %v5183_v45 = vmin.f32 %v10935_v61, 20.0 }
 0x698   : > { %v10943_v62 = vpop.eup %7307  ;;  %7327 = vlog2.f32 %v5265_v56  ;;  %v5305_v8 = vmul.f32 0.6931472, %v7306_v51  ;;  %v5186_v55 = vmin.f32 %v10941_v60, 20.0  ;;  %v10951_v26 = vadd.f32 %v5056_v39, %v5017_v48 }
 0x699   : > { %v10946_v4 = vpop.eup %7309  ;;  %7329 = vpow2.f32 %v5230_v5  ;;  %v10956_v14 = vsel %vm5132_vm9, %v10773_v29, %v5356_v23  ;;  %v5236_v56 = vmul.f32 1.442695, %v5184_v59  ;;  %v5019_v41 = vmul.f32 0.70710677, %v10850_v20 }
 0x69a   : > { %v7312_v1 = vpop.eup %7311  ;;  %7331 = vlog2.f32 %v5267_v50  ;;  %v10962_v13 = vsel %vm5134_vm15, %v10775_v21, %v5358_v11  ;;  %v5240_v5 = vmul.f32 1.442695, %v5186_v55  ;;  %v10965_v51 = vmul.f32 100.0, %v10951_v26  ;;  %v5061_v11 = vpop.permute.xlu1 %5060 }
 0x69b   : > { %v7314_v12 = vpop.eup %7313  ;;  %7333 = vlog2.f32 %v5274_v16  ;;  %v5276_v46 = vadd.f32 1.0, %v7312_v1  ;;  %v10967_v29 = vadd.f32 %v5056_v39, %v5019_v41  ;;  %v5020_v50 = vmul.f32 0.70710677, %v10855_v22 }
 0x69c   : > { %v7316_v24 = vpop.eup %7315  ;;  %7335 = vlog2.f32 %v5269_v25  ;;  %v10973_v20 = vsel %vm5136_vm11, %v10788_v35, %v5360_v40  ;;  %v5362_v21 = vmul.f32 0.01, %v5305_v8  ;;  %v5234_v6 = vmul.f32 1.442695, %v5183_v45 }
 0x69d   : > { %v7318_v48 = vpop.eup %7317  ;;  %12282 = vst [vmem:[#allocation26_spill] sm:$0xff] %v10967_v29  ;;  %7337 = vpow2.f32 %v5236_v56  ;;  %vm5138_vm6 = vcmp.gt.f32.partialorder %v10806_v31, 20.0  ;;  %v5271_v16 = vadd.f32 1.0, %v7314_v12  ;;  %v5185_v39 = vmin.f32 %v10965_v51, 20.0 }
 0x69e   : > { %v7320_v23 = vpop.eup %7319  ;;  %7339 = vpow2.f32 %v5240_v5  ;;  %v10978_v25 = vmul.f32 100.0, %v10967_v29  ;;  %v5309_v59 = vmul.f32 0.6931472, %v7318_v48  ;;  %v5273_v1 = vadd.f32 1.0, %v7316_v24 }
 0x69f   : > { %v7322_v55 = vpop.eup %7321  ;;  %v10980_v52 = vadd.f32 %v5061_v11, %v5020_v50  ;;  %v5022_v35 = vmul.f32 0.70710677, %v10859_v7  ;;  %vm5140_vm3 = vcmp.gt.f32.partialorder %v10825_v17, 20.0  ;;  %7341 = vlog2.f32 %v5276_v46 }
 0x6a0   : > { %v7324_v22 = vpop.eup %7323  ;;  %v5278_v45 = vadd.f32 1.0, %v7320_v23  ;;  %v5238_v40 = vmul.f32 1.442695, %v5185_v39  ;;  %v5187_v12 = vmin.f32 %v10978_v25, 20.0  ;;  %vm5142_vm8 = vcmp.gt.f32.partialorder %v10828_v37, 20.0 }
 0x6a1   : > { %12283 = vst [vmem:[#allocation58_spill] sm:$0xff] %v10980_v52  ;;  %v7326_v8 = vpop.eup %7325  ;;  %7343 = vpow2.f32 %v5234_v6  ;;  %v10989_v41 = vmul.f32 100.0, %v10980_v52  ;;  %v10991_v24 = vadd.f32 %v5061_v11, %v5022_v35  ;;  %v5021_v7 = vmul.f32 0.70710677, %v10861_v30 }
 0x6a2   : > { %v10985_v56 = vpop.eup %7327  ;;  %v5313_v48 = vmul.f32 0.6931472, %v7324_v22  ;;  %vm5144_vm14 = vcmp.gt.f32.partialorder %v10853_v58, 20.0  ;;  %7345 = vpow2.f32 %v5238_v40  ;;  %v5242_v46 = vmul.f32 1.442695, %v5187_v12 }
 0x6a3   : > { %12284 = vst [vmem:[#allocation51_spill] sm:$0xff] %v10991_v24  ;;  %v7330_v5 = vpop.eup %7329  ;;  %v5023_v50 = vmul.f32 0.70710677, %v10865_v38  ;;  %7347 = vlog2.f32 %v5271_v16  ;;  %v5317_v23 = vmul.f32 0.6931472, %v7326_v8  ;;  %v5275_v39 = vadd.f32 1.0, %v7322_v55 }
 0x6a4   : > { %v5188_v6 = vmin.f32 %v10989_v41, 20.0  ;;  %v10997_v29 = vpop.eup %7331  ;;  %7349 = vlog2.f32 %v5278_v45  ;;  %v11000_v35 = vmul.f32 100.0, %v10991_v24  ;;  %v11002_v30 = vadd.f32 %v5061_v11, %v5021_v7 }
 0x6a5   : > { %v11004_v22 = vadd.f32 %v5061_v11, %v5023_v50  ;;  %v7334_v52 = vpop.eup %7333  ;;  %v5364_v40 = vmul.f32 0.01, %v5309_v59  ;;  %v5277_v12 = vadd.f32 1.0, %v7330_v5  ;;  %7351 = vpow2.f32 %v5242_v46 }
 0x6a6   : > { %v5244_v38 = vmul.f32 1.442695, %v5188_v6  ;;  %v11006_v16 = vpop.eup %7335  ;;  %v5366_v55 = vmul.f32 0.01, %v5313_v48  ;;  %7353 = vlog2.f32 %v5273_v1  ;;  %v5190_v8 = vmin.f32 %v11000_v35, 20.0  ;;  %v5066_v6 = vpop.permute.xlu0 %5065 }
 0x6a7   : > { %12285 = vst [vmem:[#allocation53_spill] sm:$0xff] %v11004_v22  ;;  %v11010_v45 = vmul.f32 100.0, %v11002_v30  ;;  %v7338_v24 = vpop.eup %7337  ;;  %v11015_v11 = vsel %vm5138_vm6, %v10797_v18, %v5362_v21  ;;  %v5368_v7 = vmul.f32 0.01, %v5317_v23  ;;  %vm5146_vm10 = vcmp.gt.f32.partialorder %v10870_v10, 20.0 }
 0x6a8   : > { %7355 = vpow2.f32 %v5244_v38  ;;  %v11019_v59 = vmul.f32 100.0, %v11004_v22  ;;  %v7340_v5 = vpop.eup %7339  ;;  %v5321_v1 = vmul.f32 0.6931472, %v7334_v52  ;;  %v5280_v48 = vadd.f32 1.0, %v7338_v24 }
 0x6a9   : > { %7357 = vlog2.f32 %v5275_v39  ;;  %v5248_v46 = vmul.f32 1.442695, %v5190_v8  ;;  %v11024_v50 = vsel %vm5140_vm3, %v10816_v42, %v5364_v40  ;;  %v5282_v18 = vadd.f32 1.0, %v7340_v5  ;;  %v7342_v21 = vpop.eup %7341 }
 0x6aa   : > { %7359 = vlog2.f32 %v5277_v12  ;;  %v5189_v31 = vmin.f32 %v11010_v45, 20.0  ;;  %v11030_v23 = vsel %vm5142_vm8, %v10819_v34, %v5366_v55  ;;  %v5191_v52 = vmin.f32 %v11019_v59, 20.0 }
 0x6ab   : > { %7361 = vlog2.f32 %v5280_v48  ;;  %v5024_v24 = vmul.f32 0.70710677, %v10874_v3  ;;  %v7344_v39 = vpop.eup %7343  ;;  %v11037_v42 = vsel %vm5144_vm14, %v10840_v44, %v5368_v7  ;;  %v5026_v40 = vmul.f32 0.70710677, %v10876_v27 }
 0x6ac   : > { %7363 = vlog2.f32 %v5282_v18  ;;  %v5246_v17 = vmul.f32 1.442695, %v5189_v31  ;;  %v7346_v12 = vpop.eup %7345  ;;  %vm5133_vm1 = vcmp.gt.f32.partialorder %v10795_v36, 20.0  ;;  %v5370_v34 = vmul.f32 0.01, %v5321_v1 }
 0x6ad   : > { %7365 = vpow2.f32 %v5248_v46  ;;  %v5250_v37 = vmul.f32 1.442695, %v5191_v52  ;;  %v11041_v38 = vadd.f32 %v5066_v6, %v5024_v24  ;;  %v11043_v3 = vpop.eup %7347  ;;  %vm5137_vm12 = vcmp.gt.f32.partialorder %v10809_v28, 20.0 }
 0x6ae   : > { %v5325_v55 = vmul.f32 0.6931472, %v7342_v21  ;;  %7367 = vpow2.f32 %v5246_v17  ;;  %v11046_v44 = vadd.f32 %v5066_v6, %v5026_v40  ;;  %v5025_v58 = vmul.f32 0.70710677, %v10884_v49  ;;  %v7350_v8 = vpop.eup %7349 }
 0x6af   : > { %vm5148_vm7 = vcmp.gt.f32.partialorder %v10900_v2, 20.0  ;;  %v5281_v27 = vadd.f32 1.0, %v7346_v12  ;;  %7369 = vpow2.f32 %v5250_v37  ;;  %v11051_v7 = vmul.f32 100.0, %v11041_v38  ;;  %v7352_v1 = vpop.eup %7351 }
 0x6b0   : > { %v5027_v5 = vmul.f32 0.70710677, %v10886_v9  ;;  %v5279_v48 = vadd.f32 1.0, %v7344_v39  ;;  %v11055_v46 = vmul.f32 100.0, %v11046_v44  ;;  %v11057_v18 = vadd.f32 %v5066_v6, %v5025_v58  ;;  %v11060_v49 = vpop.eup %7353 }
 0x6b1   : > { %v5295_v31 = vmul.f32 0.6931472, %v10943_v62  ;;  %v11065_v21 = vsel %vm5146_vm10, %v10857_v47, %v5370_v34  ;;  %v5283_v52 = vadd.f32 1.0, %v7352_v1  ;;  %v5192_v24 = vmin.f32 %v11051_v7, 20.0 }
 0x6b2   : > { %12286 = vst [vmem:[#allocation50_spill] sm:$0xff] %v11057_v18  ;;  %v11068_v9 = vadd.f32 %v5066_v6, %v5027_v5  ;;  %v7356_v39 = vpop.eup %7355  ;;  %v5372_v17 = vmul.f32 0.01, %v5325_v55  ;;  %v5194_v40 = vmin.f32 %v11055_v46, 20.0  ;;  %v11072_v12 = vmul.f32 100.0, %v11057_v18 }
 0x6b3   : > { %v5303_v62 = vmul.f32 0.6931472, %v10985_v56  ;;  %v11075_v37 = vpop.eup %7357  ;;  %v5329_v58 = vmul.f32 0.6931472, %v7350_v8  ;;  %7371 = vlog2.f32 %v5281_v27  ;;  %v5252_v47 = vmul.f32 1.442695, %v5192_v24 }
 0x6b4   : > { %12287 = vst [vmem:[#allocation42_spill] sm:$0xff] %v11068_v9  ;;  %v11078_v10 = vmul.f32 100.0, %v11068_v9  ;;  %v11080_v34 = vpop.eup %7359  ;;  %vm5135_vm0 = vcmp.gt.f32.partialorder %v10802_v43, 20.0  ;;  %7373 = vlog2.f32 %v5279_v48  ;;  %v5256_v6 = vmul.f32 1.442695, %v5194_v40 }
 0x6b5   : > { %v5193_v55 = vmin.f32 %v11072_v12, 20.0  ;;  %v5357_v5 = vmul.f32 0.01, %v5295_v31  ;;  %v7362_v1 = vpop.eup %7361  ;;  %vm5139_vm2 = vcmp.gt.f32.partialorder %v10822_v53, 20.0  ;;  %7375 = vlog2.f32 %v5283_v52 }
 0x6b6   : > { %v5284_v56 = vadd.f32 1.0, %v7356_v39  ;;  %v5195_v8 = vmin.f32 %v11078_v10, 20.0  ;;  %v5361_v27 = vmul.f32 0.01, %v5303_v62  ;;  %v7364_v24 = vpop.eup %7363  ;;  %v5333_v9 = vmul.f32 0.6931472, %v7362_v1 }
 0x6b7   : > { %7377 = vpow2.f32 %v5252_v47  ;;  %v5254_v22 = vmul.f32 1.442695, %v5193_v55  ;;  %v5389_v48 = vsel %vm5133_vm1, %v10783_v19, %v5357_v5  ;;  %v7366_v40 = vpop.eup %7365  ;;  %vm5141_vm13 = vcmp.gt.f32.partialorder %v10846_v54, 20.0  ;;  %v12288_v62 = vld [vmem:[#allocation56_spill] sm:$0xff] }
 0x6b8   : > { %v5337_v31 = vmul.f32 0.6931472, %v7364_v24  ;;  %7379 = vpow2.f32 %v5256_v6  ;;  %v5258_v18 = vmul.f32 1.442695, %v5195_v8  ;;  %v5393_v52 = vsel %vm5137_vm12, %v10799_v32, %v5361_v27  ;;  %v7368_v39 = vpop.eup %7367  ;;  %v12289_v8 = vld [vmem:[#allocation49_spill] sm:$0xff] }
 0x6b9   : > { %vm5143_vm4 = vcmp.gt.f32.partialorder %v10879_v15, 20.0  ;;  %vm5145_vm9 = vcmp.gt.f32.partialorder %v10897_v0, 20.0  ;;  %vm5147_vm15 = vcmp.gt.f32.partialorder %v10904_v57, 20.0  ;;  %v11099_v19 = vsel %vm5148_vm7, %v12288_v62, %v5372_v17  ;;  %v7370_v6 = vpop.eup %7369 }
 0x6ba   : > { %v5286_v36 = vadd.f32 1.0, %v7366_v40  ;;  %7381 = vpow2.f32 %v5254_v22  ;;  %v6705_v47 = vpack.c.bf16 %v5393_v52, %v5389_v48  ;;  %v11101_v55 = vmul.f32 0.01, %v5329_v58  ;;  %v12291_v40 = vld [vmem:[#allocation46_spill] sm:$0xff] }
 0x6bb   : > { %vm5152_vm11 = vcmp.gt.f32.partialorder %v10938_v63, 20.0  ;;  %v5285_v32 = vadd.f32 1.0, %v7368_v39  ;;  %7383 = vpow2.f32 %v5258_v18  ;;  %v5299_v28 = vmul.f32 0.6931472, %v10946_v4 }
 0x6bc   : > { %v5376_v5 = vmul.f32 0.01, %v5333_v9  ;;  %v5378_v1 = vmul.f32 0.01, %v5337_v31  ;;  %7385 = vlog2.f32 %v5284_v56  ;;  %6706 = vmatprep.subr.bf16.mxu0 %v6705_v47  ;;  %v5307_v2 = vmul.f32 0.6931472, %v10997_v29 }
 0x6bd   : > { %vm5154_vm6 = vcmp.gt.f32.partialorder %v10941_v60, 20.0  ;;  %7387 = vlog2.f32 %v5286_v36  ;;  %v5287_v22 = vadd.f32 1.0, %v7370_v6  ;;  %v5359_v17 = vmul.f32 0.01, %v5299_v28  ;;  %v7372_v9 = vpop.eup %7371  ;;  %v12290_v56 = vld [vmem:[#allocation47_spill] sm:$0xff]  ;;  %v12295_v28 = vld [vmem:[#allocation57_spill] sm:$0xff] }
 0x6be   : > { %v6707_v58 = vpack.c.bf16 %v10973_v20, %v10956_v14  ;;  %vm5150_vm3 = vcmp.gt.f32.partialorder %v10907_v33, 20.0  ;;  %vm5149_vm8 = vcmp.gt.f32.partialorder %v12289_v8, 20.0  ;;  %vm5153_vm14 = vcmp.gt.f32.partialorder %v10965_v51, 20.0  ;;  %v7374_v48 = vpop.eup %7373  ;;  %v12300_v51 = vld [vmem:[#allocation48_spill] sm:$0xff] }
 0x6bf   : > { %7389 = vlog2.f32 %v5285_v32  ;;  %v5363_v4 = vmul.f32 0.01, %v5307_v2  ;;  %v6723_v18 = vpack.c.bf16 %v11015_v11, %v10962_v13  ;;  %v5311_v29 = vmul.f32 0.6931472, %v11006_v16  ;;  %v7376_v11 = vpop.eup %7375 }
 0x6c0   : > { %v5391_v27 = vsel %vm5135_vm0, %v12290_v56, %v5359_v17  ;;  %6708 = vmatpush1.bf16.msra.mxu0 %v6707_v58  ;;  %v5319_v14 = vmul.f32 0.6931472, %v11060_v49  ;;  %v5315_v20 = vmul.f32 0.6931472, %v11043_v3  ;;  %v5323_v24 = vmul.f32 0.6931472, %v11075_v37 }
 0x6c1   : > { %v5395_v31 = vsel %vm5139_vm2, %v12291_v40, %v5363_v4  ;;  %v5365_v13 = vmul.f32 0.01, %v5311_v29  ;;  %v6711_v16 = vpack.c.bf16 %v11037_v42, %v11024_v50  ;;  %v6727_v43 = vpack.c.bf16 %v11065_v21, %v11030_v23  ;;  %v7378_v3 = vpop.eup %7377  ;;  %v12292_v37 = vld [vmem:[#allocation60_spill] sm:$0xff] }
 0x6c2   : > { %v6721_v52 = vpack.c.bf16 %v5395_v31, %v5391_v27  ;;  %v5369_v39 = vmul.f32 0.01, %v5319_v14  ;;  %v5367_v49 = vmul.f32 0.01, %v5315_v20  ;;  %v5371_v62 = vmul.f32 0.01, %v5323_v24  ;;  %v7380_v6 = vpop.eup %7379 }
 0x6c3   : > { %7391 = vlog2.f32 %v5287_v22  ;;  %v5397_v36 = vsel %vm5141_vm13, %v12292_v37, %v5365_v13  ;;  %v5327_v53 = vmul.f32 0.6931472, %v11080_v34  ;;  %v5335_v47 = vmul.f32 0.6931472, %v7372_v9  ;;  %v12293_v50 = vld [vmem:[#allocation52_spill] sm:$0xff]  ;;  %v12296_v22 = vld [vmem:[#allocation61_spill] sm:$0xff] }
 0x6c4   : > { %v5288_v32 = vadd.f32 1.0, %v7378_v3  ;;  %6722 = vmatprep.subr.bf16.mxu1 %v6721_v52  ;;  %v5401_v23 = vsel %vm5145_vm9, %v12293_v50, %v5369_v39  ;;  %v12294_v42 = vld [vmem:[#allocation36_spill] sm:$0xff]  ;;  %v5403_v2 = vsel %vm5147_vm15, %v12295_v28, %v5371_v62  ;;  %v7382_v54 = vpop.eup %7381  ;;  %v5408_v34 = vsel %vm5152_vm11, %v12296_v22, %v5376_v5  ;;  %v12297_v27 = vld [vmem:[#allocation59_spill] sm:$0xff]  ;;  %v12301_v39 = vld [vmem:[#allocation26_spill] sm:$0xff] }
 0x6c5   : > { %v5399_v21 = vsel %vm5143_vm4, %v12294_v42, %v5367_v49  ;;  %v5290_v17 = vadd.f32 1.0, %v7380_v6  ;;  %6724 = vmatpush1.bf16.msra.mxu1 %v6723_v18  ;;  %v6709_v58 = vpack.c.bf16 %v5401_v23, %v5397_v36  ;;  %v7384_v29 = vpop.eup %7383  ;;  %v5289_v0 = vadd.f32 1.0, %v7382_v54  ;;  %v12298_v18 = vld [vmem:[#allocation55_spill] sm:$0xff] }
 0x6c6   : > { %v6725_v4 = vpack.c.bf16 %v5403_v2, %v5399_v21  ;;  %7393 = vlog2.f32 %v5288_v32  ;;  %v5373_v9 = vmul.f32 0.01, %v5327_v53  ;;  %v5377_v56 = vmul.f32 0.01, %v5335_v47  ;;  %v7386_v15 = vpop.eup %7385  ;;  %v12299_v24 = vld [vmem:[#allocation43_spill] sm:$0xff]  ;;  %v12302_v2 = vld [vmem:[#allocation58_spill] sm:$0xff] }
 0x6c7   : > { %v5410_v57 = vsel %vm5154_vm6, %v12297_v27, %v5378_v1  ;;  %7395 = vlog2.f32 %v5290_v17  ;;  %v5291_v14 = vadd.f32 1.0, %v7384_v29  ;;  %6710 = vmatprep.subr.bf16.mxu0 %v6709_v58  ;;  %v5331_v63 = vmul.f32 0.6931472, %v7374_v48  ;;  %v7388_v5 = vpop.eup %7387  ;;  %v12304_v29 = vld [vmem:[#allocation50_spill] sm:$0xff] }
 0x6c8   : > { %6726 = vmatprep.subr.bf16.mxu1 %v6725_v4  ;;  %v5406_v20 = vsel %vm5150_vm3, %v12298_v18, %v11101_v55  ;;  %7397 = vlog2.f32 %v5289_v0  ;;  %6712 = vmatpush1.bf16.msra.mxu0 %v6711_v16  ;;  %v5405_v40 = vsel %vm5149_vm8, %v12299_v24, %v5373_v9  ;;  %v5409_v60 = vsel %vm5153_vm14, %v10951_v26, %v5377_v56  ;;  %v5439_v18 = vpop.permute.xlu1 %5438 }
 0x6c9   : > { %v7390_v1 = vpop.eup %7389  ;;  %7399 = vlog2.f32 %v5291_v14  ;;  %6728 = vmatpush1.bf16.msra.mxu1 %v6727_v43  ;;  %v6713_v48 = vpack.c.bf16 %v5409_v60, %v5405_v40  ;;  %v5339_v31 = vmul.f32 0.6931472, %v7376_v11  ;;  %v5375_v13 = vmul.f32 0.01, %v5331_v63  ;;  %v5425_v14 = vld [vmem:[%s11781_s12 + $0x28] sm:$0xff]  ;;  %v5426_v63 = vld [vmem:[%s11781_s12 + $0x30] sm:$0xff] }
 0x6ca   : > { %v6715_v52 = vpack.c.bf16 %v5408_v34, %v11099_v19  ;;  %v6731_v33 = vpack.c.bf16 %v5410_v57, %v5406_v20  ;;  %vm5151_vm10 = vcmp.gt.f32.partialorder %v10935_v61, 20.0  ;;  %vm5155_vm1 = vcmp.gt.f32.partialorder %v10978_v25, 20.0  ;;  %v5424_v57 = vld [vmem:[%s11781_s12 + $0x20] sm:$0xff] }
 0x6cb   : > { %6714 = vmatprep.subr.bf16.mxu0 %v6713_v48  ;;  %v5379_v55 = vmul.f32 0.01, %v5339_v31  ;;  %v5341_v16 = vmul.f32 0.6931472, %v7386_v15  ;;  %v5407_v26 = vsel %vm5151_vm10, %v12300_v51, %v5375_v13  ;;  %v5345_v43 = vmul.f32 0.6931472, %v7388_v5 }
 0x6cc   : > { %6716 = vmatpush1.bf16.msra.mxu0 %v6715_v52  ;;  %v5343_v11 = vmul.f32 0.6931472, %v7390_v1  ;;  %vm5156_vm12 = vcmp.gt.f32.partialorder %v10989_v41, 20.0  ;;  %vm5158_vm7 = vcmp.gt.f32.partialorder %v11000_v35, 20.0  ;;  %vm5157_vm0 = vcmp.gt.f32.partialorder %v11010_v45, 20.0  ;;  %v12306_v35 = vld [vmem:[#allocation42_spill] sm:$0xff] }
 0x6cd   : > { %v7392_v8 = vpop.eup %7391  ;;  %v5411_v49 = vsel %vm5155_vm1, %v12301_v39, %v5379_v55  ;;  %v5380_v37 = vmul.f32 0.01, %v5341_v16  ;;  %vm5159_vm2 = vcmp.gt.f32.partialorder %v11019_v59, 20.0  ;;  %v5382_v53 = vmul.f32 0.01, %v5345_v43  ;;  %v5421_v45 = vld [vmem:[%s11781_s12 + $0x8] sm:$0xff] }
 0x6ce   : > { %v6729_v62 = vpack.c.bf16 %v5411_v49, %v5407_v26  ;;  %v5347_v19 = vmul.f32 0.6931472, %v7392_v8  ;;  %vm5160_vm13 = vcmp.gt.f32.partialorder %v11051_v7, 20.0  ;;  %vm5162_vm4 = vcmp.gt.f32.partialorder %v11055_v46, 20.0  ;;  %v12303_v7 = vld [vmem:[#allocation51_spill] sm:$0xff]  ;;  %v5422_v59 = vld [vmem:[%s11781_s12 + $0x10] sm:$0xff] }
 0x6cf   : > { %v5381_v23 = vmul.f32 0.01, %v5343_v11  ;;  %v5412_v54 = vsel %vm5156_vm12, %v12302_v2, %v5380_v37  ;;  %vm5161_vm9 = vcmp.gt.f32.partialorder %v11072_v12, 20.0  ;;  %v5414_v46 = vsel %vm5158_vm7, %v12303_v7, %v5382_v53  ;;  %v12305_v12 = vld [vmem:[#allocation53_spill] sm:$0xff]  ;;  %v5427_v5 = vld [vmem:[%s11781_s12 + $0x38] sm:$0xff] }
 0x6d0   : > { %v7394_v3 = vpop.eup %7393  ;;  %6730 = vmatprep.subr.bf16.mxu1 %v6729_v62  ;;  %v5383_v28 = vmul.f32 0.01, %v5347_v19  ;;  %vm5163_vm15 = vcmp.gt.f32.partialorder %v11078_v10, 20.0  ;;  %v5423_v10 = vld [vmem:[%s11781_s12 + $0x18] sm:$0xff] }
 0x6d1   : > { %v7396_v61 = vpop.eup %7395  ;;  %v5349_v25 = vmul.f32 0.6931472, %v7394_v3  ;;  %6732 = vmatpush1.bf16.msra.mxu1 %v6731_v33  ;;  %v5413_v41 = vsel %vm5157_vm0, %v11002_v30, %v5381_v23  ;;  %v12307_v30 = vmov 0.0   ;;  %v5444_v33 = vpop.permute.xlu0 %5443 }
 0x6d2   : > { %v7398_v36 = vpop.eup %7397  ;;  %v5353_v47 = vmul.f32 0.6931472, %v7396_v61  ;;  %v5415_v56 = vsel %vm5159_vm2, %v12305_v12, %v5383_v28 }
 0x6d3   : > { %v7400_v6 = vpop.eup %7399  ;;  %v5384_v32 = vmul.f32 0.01, %v5349_v25  ;;  %v5351_v50 = vmul.f32 0.6931472, %v7398_v36 }
 0x6d4   : > { %v5386_v42 = vmul.f32 0.01, %v5353_v47  ;;  %v5355_v21 = vmul.f32 0.6931472, %v7400_v6 }
 0x6d5   : > { %v5416_v22 = vsel %vm5160_vm13, %v11041_v38, %v5384_v32  ;;  %v5385_v34 = vmul.f32 0.01, %v5351_v50 }
 0x6d6   : > { %v5418_v17 = vsel %vm5162_vm4, %v11046_v44, %v5386_v42  ;;  %v5387_v58 = vmul.f32 0.01, %v5355_v21  ;;  %v6719_v4 = vpack.c.bf16 %v5416_v22, %v5412_v54  ;;  %v5420_v44 = vld [vmem:[%s11781_s12] sm:$0xff]  ;;  %v5449_v21 = vpop.permute.xlu1 %5448 }
 0x6d7   : > { %v5417_v0 = vsel %vm5161_vm9, %v12304_v29, %v5385_v34  ;;  %v6735_v38 = vpack.c.bf16 %v5418_v17, %v5414_v46 }
 0x6d8   : > { %v6717_v9 = vpack.c.bf16 %v5417_v0, %v5413_v41  ;;  %v5419_v15 = vsel %vm5163_vm15, %v12306_v35, %v5387_v58 }
 0x6d9   : > { %v6733_v27 = vpack.c.bf16 %v5419_v15, %v5415_v56 }
 0x6da   : > { %6718 = vmatprep.subr.bf16.mxu0 %v6717_v9 }
 0x6db   : > { %6734 = vmatprep.subr.bf16.mxu1 %v6733_v27  ;;  %6720 = vmatpush1.bf16.msra.mxu0 %v6719_v4 }
 0x6dc   : > { %6736 = vmatpush1.bf16.msra.mxu1 %v6735_v38 }
 0x6de   : > { %6590 = vmatmul.mubr.msk.f32.vlgmr.msra.gmra.mrb[50].mxu0 %vm3817_vm5, %v5420_v44 }
 0x6df   : > { %6598 = vmatmul.mubr.msk.f32.vlgmr.msra.gmra.mrb[50].mxu1 %vm3817_vm5, %v5420_v44  ;;  %5570 = vmatprep.mubr.f32.mxu0 %v12307_v30 }
 0x6e0   : > { %5683 = vmatprep.mubr.f32.mxu1 %v12307_v30 }
 0x6e2   : > { %6591 = vmatmul.mubr.msk.f32.gmra.mrb[52].mxu0 %vm3817_vm5, %v5421_v45 }
 0x6e3   : > { %6599 = vmatmul.mubr.msk.f32.gmra.mrb[52].mxu1 %vm3817_vm5, %v5421_v45  ;;  %5576 = vmatprep.mubr.f32.mxu0 %v12307_v30  ;;  %v5454_v45 = vpop.permute.xlu0 %5453 }
 0x6e4   : > { %5689 = vmatprep.mubr.f32.mxu1 %v12307_v30 }
 0x6e6   : > { %6592 = vmatmul.mubr.msk.f32.gmra.mrb[54].mxu0 %vm3817_vm5, %v5422_v59 }
 0x6e7   : > { %6600 = vmatmul.mubr.msk.f32.gmra.mrb[54].mxu1 %vm3817_vm5, %v5422_v59  ;;  %5582 = vmatprep.mubr.f32.mxu0 %v12307_v30 }
 0x6e8   : > { %5695 = vmatprep.mubr.f32.mxu1 %v12307_v30 }
 0x6ea   : > { %6593 = vmatmul.mubr.msk.f32.gmra.mrb[56].mxu0 %vm3817_vm5, %v5423_v10 }
 0x6eb   : > { %6601 = vmatmul.mubr.msk.f32.gmra.mrb[56].mxu1 %vm3817_vm5, %v5423_v10  ;;  %5588 = vmatprep.mubr.f32.mxu0 %v12307_v30 }
 0x6ec   : > { %5701 = vmatprep.mubr.f32.mxu1 %v12307_v30 }
 0x6ee   : > { %6594 = vmatmul.mubr.msk.f32.gmra.mrb[58].mxu0 %vm3817_vm5, %v5424_v57 }
 0x6ef   : > { %6602 = vmatmul.mubr.msk.f32.gmra.mrb[58].mxu1 %vm3817_vm5, %v5424_v57  ;;  %5594 = vmatprep.mubr.f32.mxu0 %v12307_v30 }
 0x6f0   : > { %5707 = vmatprep.mubr.f32.mxu1 %v12307_v30 }
 0x6f2   : > { %6595 = vmatmul.mubr.msk.f32.gmra.mrb[60].mxu0 %vm3817_vm5, %v5425_v14 }
 0x6f3   : > { %6603 = vmatmul.mubr.msk.f32.gmra.mrb[60].mxu1 %vm3817_vm5, %v5425_v14  ;;  %5600 = vmatprep.mubr.f32.mxu0 %v12307_v30 }
 0x6f4   : > { %5713 = vmatprep.mubr.f32.mxu1 %v12307_v30 }
 0x6f6   : > { %6596 = vmatmul.mubr.msk.f32.gmra.mrb[62].mxu0 %vm3817_vm5, %v5426_v63 }
 0x6f7   : > { %6604 = vmatmul.mubr.msk.f32.gmra.mrb[62].mxu1 %vm3817_vm5, %v5426_v63  ;;  %5606 = vmatprep.mubr.f32.mxu0 %v12307_v30 }
 0x6f8   : > { %5719 = vmatprep.mubr.f32.mxu1 %v12307_v30 }
 0x6fa   : > { %6597 = vmatmul.mubr.msk.f32.gmra.mrb[64].mxu0 %vm3817_vm5, %v5427_v5 }
 0x6fb   : > { %6605 = vmatmul.mubr.msk.f32.gmra.mrb[64].mxu1 %vm3817_vm5, %v5427_v5  ;;  %6160 = vmatprep.mubr.f32.mxu0 %v12307_v30 }
 0x6fc   : > { %6255 = vmatprep.mubr.f32.mxu1 %v12307_v30 }
 0x7b1   : > { %v5566_v20 = vpop.f32.mrb[50].mxu0 }
 0x7b2   : > { %v11242_v24 = vadd.f32 %v5566_v20, %v5439_v18  ;;  %v5679_v40 = vpop.f32.mrb[50].mxu1  ;;  %v5568_v60 = vpop.f32.mrb[51].mxu0 }
 0x7b3   : > { %v11244_v1 = vadd.f32 %v5679_v40, %v5439_v18  ;;  %v11246_v48 = vadd.f32 %v5568_v60, %v5439_v18  ;;  %v5681_v31 = vpop.f32.mrb[51].mxu1 }
 0x7b4   : > { %v11249_v13 = vmul.f32 100.0, %v11242_v24  ;;  %v11251_v52 = vadd.f32 %v5681_v31, %v5439_v18 }
 0x7b5   : > { %v11254_v55 = vmul.f32 100.0, %v11244_v1  ;;  %v11257_v8 = vmul.f32 100.0, %v11246_v48  ;;  %v5572_v16 = vpop.f32.mrb[52].mxu0 }
 0x7b6   : > { %12308 = vst [vmem:[#allocation63_spill] sm:$0xff] %v11251_v52  ;;  %v5790_v51 = vmin.f32 %v11249_v13, 20.0  ;;  %v11261_v26 = vmul.f32 100.0, %v11251_v52  ;;  %v11263_v39 = vadd.f32 %v5572_v16, %v5444_v33  ;;  %v5685_v49 = vpop.f32.mrb[52].mxu1  ;;  %v5574_v43 = vpop.f32.mrb[53].mxu0  ;;  %vm5758_vm11 = vcmp.gt.f32.partialorder %v11249_v13, 20.0 }
 0x7b7   : > { %v5792_v62 = vmin.f32 %v11254_v55, 20.0  ;;  %v5791_v11 = vmin.f32 %v11257_v8, 20.0  ;;  %v5687_v3 = vpop.f32.mrb[53].mxu1  ;;  %v11271_v53 = vadd.f32 %v5685_v49, %v5444_v33  ;;  %v11273_v47 = vadd.f32 %v5574_v43, %v5444_v33 }
 0x7b8   : > { %v5822_v19 = vmul.f32 1.442695, %v5790_v51  ;;  %v5793_v61 = vmin.f32 %v11261_v26, 20.0  ;;  %v11269_v37 = vmul.f32 100.0, %v11263_v39  ;;  %v11282_v54 = vadd.f32 %v5687_v3, %v5444_v33 }
 0x7b9   : > { %v5826_v25 = vmul.f32 1.442695, %v5792_v62  ;;  %v5824_v36 = vmul.f32 1.442695, %v5791_v11  ;;  %v5578_v6 = vpop.f32.mrb[54].mxu0  ;;  %v11277_v28 = vmul.f32 100.0, %v11271_v53 }
 0x7ba   : > { %7401 = vpow2.f32 %v5822_v19  ;;  %v5828_v32 = vmul.f32 1.442695, %v5793_v61  ;;  %v5794_v50 = vmin.f32 %v11269_v37, 20.0  ;;  %v5691_v23 = vpop.f32.mrb[54].mxu1  ;;  %v5580_v42 = vpop.f32.mrb[55].mxu0  ;;  %v11280_v2 = vmul.f32 100.0, %v11273_v47 }
 0x7bb   : > { %7403 = vpow2.f32 %v5826_v25  ;;  %12309 = vst [vmem:[#allocation62_spill] sm:$0xff] %v11282_v54  ;;  %v5693_v22 = vpop.f32.mrb[55].mxu1  ;;  %v11284_v7 = vadd.f32 %v5578_v6, %v5449_v21  ;;  %v11286_v46 = vadd.f32 %v5691_v23, %v5449_v21  ;;  %v5796_v17 = vmin.f32 %v11277_v28, 20.0 }
 0x7bc   : > { %7405 = vpow2.f32 %v5824_v36  ;;  %v5830_v34 = vmul.f32 1.442695, %v5794_v50  ;;  %v5795_v4 = vmin.f32 %v11280_v2, 20.0  ;;  %v11291_v41 = vmul.f32 100.0, %v11282_v54 }
 0x7bd   : > { %7407 = vpow2.f32 %v5828_v32  ;;  %v5584_v58 = vpop.f32.mrb[56].mxu0  ;;  %v11294_v29 = vmul.f32 100.0, %v11284_v7  ;;  %v5834_v9 = vmul.f32 1.442695, %v5796_v17  ;;  %v11297_v12 = vmul.f32 100.0, %v11286_v46 }
 0x7be   : > { %7409 = vpow2.f32 %v5830_v34  ;;  %v5697_v0 = vpop.f32.mrb[56].mxu1  ;;  %v5586_v38 = vpop.f32.mrb[57].mxu0  ;;  %v11299_v56 = vadd.f32 %v5580_v42, %v5449_v21  ;;  %v11301_v35 = vadd.f32 %v5693_v22, %v5449_v21  ;;  %v5832_v27 = vmul.f32 1.442695, %v5795_v4 }
 0x7bf   : > { %v5699_v15 = vpop.f32.mrb[57].mxu1  ;;  %v5797_v44 = vmin.f32 %v11291_v41, 20.0  ;;  %7411 = vpow2.f32 %v5834_v9  ;;  %v5798_v59 = vmin.f32 %v11294_v29, 20.0  ;;  %v5800_v10 = vmin.f32 %v11297_v12, 20.0 }
 0x7c0   : > { %12310 = vst [vmem:[#allocation28_spill] sm:$0xff] %v11299_v56  ;;  %12311 = vst [vmem:[#allocation16_spill] sm:$0xff] %v11301_v35  ;;  %7413 = vpow2.f32 %v5832_v27  ;;  %v11307_v63 = vmul.f32 100.0, %v11299_v56  ;;  %v11310_v5 = vmul.f32 100.0, %v11301_v35  ;;  %v11314_v31 = vadd.f32 %v5584_v58, %v5454_v45  ;;  %v5459_v58 = vpop.permute.xlu1 %5458 }
 0x7c1   : > { %v5590_v57 = vpop.f32.mrb[58].mxu0  ;;  %v5836_v14 = vmul.f32 1.442695, %v5797_v44  ;;  %v5838_v40 = vmul.f32 1.442695, %v5798_v59  ;;  %v11316_v33 = vadd.f32 %v5697_v0, %v5454_v45  ;;  %v11337_v9 = vadd.f32 %v5586_v38, %v5454_v45 }
 0x7c2   : > { %v5703_v18 = vpop.f32.mrb[58].mxu1  ;;  %v11312_v20 = vpop.f32.mrb[59].mxu0  ;;  %v5842_v60 = vmul.f32 1.442695, %v5800_v10  ;;  %v5799_v49 = vmin.f32 %v11307_v63, 20.0  ;;  %v5801_v11 = vmin.f32 %v11310_v5, 20.0  ;;  %v11342_v59 = vadd.f32 %v5699_v15, %v5454_v45 }
 0x7c3   : > { %v11318_v16 = vpop.f32.mrb[59].mxu1  ;;  %7415 = vpow2.f32 %v5836_v14  ;;  %v11323_v3 = vmul.f32 100.0, %v11314_v31  ;;  %v11328_v36 = vmul.f32 100.0, %v11316_v33  ;;  %12312 = vst [vmem:[#allocation13_spill] sm:$0xff] %v11337_v9  ;;  %v11344_v10 = vadd.f32 %v5590_v57, %v5459_v58 }
 0x7c4   : > { %v7402_v51 = vpop.eup %7401  ;;  %7417 = vpow2.f32 %v5838_v40  ;;  %v5840_v34 = vmul.f32 1.442695, %v5799_v49  ;;  %v5844_v0 = vmul.f32 1.442695, %v5801_v11  ;;  %12313 = vst [vmem:[#allocation21_spill] sm:$0xff] %v11342_v59  ;;  %v11351_v49 = vmul.f32 100.0, %v11337_v9 }
 0x7c5   : > { %v7404_v43 = vpop.eup %7403  ;;  %v5886_v62 = vadd.f32 1.0, %v7402_v51  ;;  %v11325_v19 = vpop.f32.mrb[60].mxu0  ;;  %7419 = vpow2.f32 %v5842_v60  ;;  %v5802_v17 = vmin.f32 %v11323_v3, 20.0  ;;  %v5804_v44 = vmin.f32 %v11328_v36, 20.0 }
 0x7c6   : > { %v7406_v61 = vpop.eup %7405  ;;  %v5888_v25 = vadd.f32 1.0, %v7404_v43  ;;  %v11330_v6 = vpop.f32.mrb[60].mxu1  ;;  %v11353_v38 = vadd.f32 %v5703_v18, %v5459_v58  ;;  %v11358_v15 = vmul.f32 100.0, %v11342_v59  ;;  %v11361_v45 = vmul.f32 100.0, %v11344_v10 }
 0x7c7   : > { %v11332_v32 = vpop.f32.mrb[61].mxu0  ;;  %v7408_v50 = vpop.eup %7407  ;;  %7421 = vlog2.f32 %v5886_v62  ;;  %v5887_v23 = vadd.f32 1.0, %v7406_v61  ;;  %v5846_v51 = vmul.f32 1.442695, %v5802_v17  ;;  %v5803_v61 = vmin.f32 %v11351_v49, 20.0 }
 0x7c8   : > { %v11334_v42 = vpop.f32.mrb[61].mxu1  ;;  %v7410_v21 = vpop.eup %7409  ;;  %7423 = vlog2.f32 %v5888_v25  ;;  %v5889_v22 = vadd.f32 1.0, %v7408_v50  ;;  %12314 = vst [vmem:[#allocation22_spill] sm:$0xff] %v11358_v15  ;;  %v5805_v18 = vmin.f32 %v11358_v15, 20.0  ;;  %v5806_v17 = vmin.f32 %v11361_v45, 20.0 }
 0x7c9   : > { %7425 = vlog2.f32 %v5887_v23  ;;  %v5890_v4 = vadd.f32 1.0, %v7410_v21  ;;  %v11339_v27 = vpop.f32.mrb[62].mxu0  ;;  %v7412_v60 = vpop.eup %7411  ;;  %v5848_v35 = vmul.f32 1.442695, %v5803_v61  ;;  %vm5760_vm6 = vcmp.gt.f32.partialorder %v11254_v55, 20.0 }
 0x7ca   : > { %7427 = vlog2.f32 %v5889_v22  ;;  %v11346_v14 = vpop.f32.mrb[62].mxu1  ;;  %v11348_v40 = vpop.f32.mrb[63].mxu0  ;;  %v5892_v11 = vadd.f32 1.0, %v7412_v60  ;;  %v5852_v56 = vmul.f32 1.442695, %v5805_v18  ;;  %vm5762_vm3 = vcmp.gt.f32.partialorder %v11269_v37, 20.0 }
 0x7cb   : > { %7429 = vlog2.f32 %v5890_v4  ;;  %v11355_v43 = vpop.f32.mrb[63].mxu1  ;;  %v7414_v62 = vpop.eup %7413  ;;  %vm5764_vm8 = vcmp.gt.f32.partialorder %v11277_v28, 20.0  ;;  %vm5766_vm14 = vcmp.gt.f32.partialorder %v11294_v29, 20.0  ;;  %vm5768_vm10 = vcmp.gt.f32.partialorder %v11297_v12, 20.0 }
 0x7cc   : > { %7431 = vpow2.f32 %v5840_v34  ;;  %v5891_v57 = vadd.f32 1.0, %v7414_v62  ;;  %v5850_v62 = vmul.f32 1.442695, %v5804_v44  ;;  %v5854_v44 = vmul.f32 1.442695, %v5806_v17 }
 0x7cd   : > { %7433 = vpow2.f32 %v5844_v0  ;;  %v11364_v25 = vpop.f32.mrb[64].mxu0  ;;  %v7416_v50 = vpop.eup %7415  ;;  %vm5770_vm1 = vcmp.gt.f32.partialorder %v11323_v3, 20.0  ;;  %vm5772_vm12 = vcmp.gt.f32.partialorder %v11328_v36, 20.0  ;;  %vm5759_vm7 = vcmp.gt.f32.partialorder %v11257_v8, 20.0 }
 0x7ce   : > { %7435 = vlog2.f32 %v5892_v11  ;;  %v11367_v23 = vpop.f32.mrb[64].mxu1  ;;  %v11369_v21 = vpop.f32.mrb[65].mxu0  ;;  %v5893_v34 = vadd.f32 1.0, %v7416_v50  ;;  %v11376_v11 = vmul.f32 100.0, %v11353_v38  ;;  %vm5763_vm0 = vcmp.gt.f32.partialorder %v11280_v2, 20.0 }
 0x7cf   : > { %v7418_v22 = vpop.eup %7417  ;;  %7437 = vlog2.f32 %v5891_v57  ;;  %v11372_v4 = vpop.f32.mrb[65].mxu1  ;;  %v11379_v57 = vadd.f32 %v11312_v20, %v5459_v58  ;;  %vm5774_vm2 = vcmp.gt.f32.partialorder %v11361_v45, 20.0  ;;  %vm5761_vm9 = vcmp.gt.f32.partialorder %v11261_v26, 20.0 }
 0x7d0   : > { %v7420_v0 = vpop.eup %7419  ;;  %v5894_v60 = vadd.f32 1.0, %v7418_v22  ;;  %7439 = vpow2.f32 %v5846_v51  ;;  %v5808_v54 = vmin.f32 %v11376_v11, 20.0  ;;  %v11388_v22 = vadd.f32 %v11318_v16, %v5459_v58  ;;  %v11392_v20 = vpop.permute.xlu0 %5463 }
 0x7d1   : > { %v7422_v30 = vpop.eup %7421  ;;  %7441 = vlog2.f32 %v5893_v34  ;;  %v5896_v59 = vadd.f32 1.0, %v7420_v0  ;;  %12315 = vst [vmem:[#allocation29_spill] sm:$0xff] %v11379_v57  ;;  %v11385_v51 = vmul.f32 100.0, %v11379_v57  ;;  %v11398_v17 = vadd.f32 %v11325_v19, %v11392_v20 }
 0x7d2   : > { %v7424_v50 = vpop.eup %7423  ;;  %v5919_v9 = vmul.f32 0.6931472, %v7422_v30  ;;  %7443 = vlog2.f32 %v5894_v60  ;;  %12317 = vst [vmem:[#allocation20_spill] sm:$0xff] %v11388_v22  ;;  %v5858_v18 = vmul.f32 1.442695, %v5808_v54  ;;  %v11402_v60 = vmul.f32 100.0, %v11388_v22 }
 0x7d3   : > { %v11382_v52 = vpop.eup %7425  ;;  %7445 = vlog2.f32 %v5896_v59  ;;  %12316 = vst [vmem:[#allocation38_spill] sm:$0xff] %v11385_v51  ;;  %v5923_v30 = vmul.f32 0.6931472, %v7424_v50  ;;  %v5807_v59 = vmin.f32 %v11385_v51, 20.0  ;;  %v11414_v15 = vmul.f32 100.0, %v11398_v17 }
 0x7d4   : > { %v11390_v61 = vpop.eup %7427  ;;  %7447 = vpow2.f32 %v5850_v62  ;;  %v5982_v0 = vmul.f32 0.01, %v5919_v9  ;;  %v5809_v22 = vmin.f32 %v11402_v60, 20.0  ;;  %vm5776_vm13 = vcmp.gt.f32.partialorder %v11376_v11, 20.0 }
 0x7d5   : > { %v7430_v34 = vpop.eup %7429  ;;  %7449 = vpow2.f32 %v5848_v35  ;;  %v5856_v35 = vmul.f32 1.442695, %v5807_v59  ;;  %v5984_v62 = vmul.f32 0.01, %v5923_v30  ;;  %vm5778_vm4 = vcmp.gt.f32.partialorder %v11414_v15, 20.0 }
 0x7d6   : > { %v7432_v16 = vpop.eup %7431  ;;  %v5927_v58 = vmul.f32 0.6931472, %v7430_v34  ;;  %7451 = vpow2.f32 %v5852_v56  ;;  %v11410_v56 = vsel %vm5758_vm11, %v11242_v24, %v5982_v0  ;;  %v11427_v24 = vadd.f32 %v11332_v32, %v11392_v20 }
 0x7d7   : > { %v7434_v50 = vpop.eup %7433  ;;  %v5895_v54 = vadd.f32 1.0, %v7432_v16  ;;  %7453 = vpow2.f32 %v5854_v44  ;;  %v11440_v32 = vsel %vm5760_vm6, %v11244_v1, %v5984_v62  ;;  %vm5765_vm15 = vcmp.gt.f32.partialorder %v11291_v41, 20.0 }
 0x7d8   : > { %v7436_v9 = vpop.eup %7435  ;;  %v5986_v57 = vmul.f32 0.01, %v5927_v58  ;;  %v5897_v51 = vadd.f32 1.0, %v7434_v50  ;;  %7455 = vpow2.f32 %v5858_v18  ;;  %v11423_v18 = vadd.f32 %v11330_v6, %v11392_v20  ;;  %12318 = vst [vmem:[#allocation37_spill] sm:$0xff] %v11427_v24 }
 0x7d9   : > { %v11405_v19 = vpop.eup %7437  ;;  %v5931_v34 = vmul.f32 0.6931472, %v7436_v9  ;;  %7457 = vlog2.f32 %v5895_v54  ;;  %v11450_v9 = vmul.f32 100.0, %v11427_v24  ;;  %vm5767_vm11 = vcmp.gt.f32.partialorder %v11307_v63, 20.0  ;;  %v12332_v63 = vld [vmem:[#allocation16_spill] sm:$0xff] }
 0x7da   : > { %v7440_v44 = vpop.eup %7439  ;;  %v11419_v30 = vsel %vm5762_vm3, %v11263_v39, %v5986_v57  ;;  %7459 = vpow2.f32 %v5856_v35  ;;  %v5860_v39 = vmul.f32 1.442695, %v5809_v22  ;;  %v5810_v57 = vmin.f32 %v11414_v15, 20.0 }
 0x7db   : > { %v11429_v13 = vpop.eup %7441  ;;  %v5988_v59 = vmul.f32 0.01, %v5931_v34  ;;  %v5898_v16 = vadd.f32 1.0, %v7440_v44  ;;  %7461 = vlog2.f32 %v5897_v51  ;;  %v11435_v6 = vmul.f32 100.0, %v11423_v18 }
 0x7dc   : > { %v7444_v37 = vpop.eup %7443  ;;  %v5862_v35 = vmul.f32 1.442695, %v5810_v57  ;;  %v5811_v51 = vmin.f32 %v11450_v9, 20.0  ;;  %vm5771_vm3 = vcmp.gt.f32.partialorder %v11351_v49, 20.0 }
 0x7dd   : > { %v7446_v58 = vpop.eup %7445  ;;  %v11445_v50 = vsel %vm5764_vm8, %v11271_v53, %v5988_v59  ;;  %7463 = vlog2.f32 %v5898_v16  ;;  %v5935_v22 = vmul.f32 0.6931472, %v7444_v37  ;;  %v5812_v1 = vmin.f32 %v11435_v6, 20.0  ;;  %v5469_v59 = vpop.permute.xlu1 %5468 }
 0x7de   : > { %v7448_v54 = vpop.eup %7447  ;;  %7465 = vpow2.f32 %v5860_v39  ;;  %v5939_v53 = vmul.f32 0.6931472, %v7446_v58  ;;  %v11457_v39 = vadd.f32 %v11334_v42, %v11392_v20  ;;  %v5864_v58 = vmul.f32 1.442695, %v5811_v51 }
 0x7df   : > { %v7450_v34 = vpop.eup %7449  ;;  %v5900_v44 = vadd.f32 1.0, %v7448_v54  ;;  %7467 = vpow2.f32 %v5862_v35  ;;  %v5990_v16 = vmul.f32 0.01, %v5935_v22  ;;  %v5866_v57 = vmul.f32 1.442695, %v5812_v1 }
 0x7e0   : > { %v7452_v55 = vpop.eup %7451  ;;  %v5899_v0 = vadd.f32 1.0, %v7450_v34  ;;  %12319 = vst [vmem:[#allocation33_spill] sm:$0xff] %v11457_v39  ;;  %v11460_v54 = vadd.f32 %v11339_v27, %v5469_v59  ;;  %v11468_v22 = vadd.f32 %v11348_v40, %v5469_v59  ;;  %v11486_v20 = vadd.f32 %v11355_v43, %v5469_v59 }
 0x7e1   : > { %v7454_v28 = vpop.eup %7453  ;;  %7469 = vlog2.f32 %v5900_v44  ;;  %v11465_v44 = vadd.f32 %v11346_v14, %v5469_v59  ;;  %v5901_v34 = vadd.f32 1.0, %v7452_v55  ;;  %vm5780_vm6 = vcmp.gt.f32.partialorder %v11435_v6, 20.0 }
 0x7e2   : > { %v7456_v62 = vpop.eup %7455  ;;  %v5902_v37 = vadd.f32 1.0, %v7454_v28  ;;  %12320 = vst [vmem:[#allocation25_spill] sm:$0xff] %v11460_v54  ;;  %12322 = vst [vmem:[#allocation40_spill] sm:$0xff] %v11468_v22  ;;  %v11471_v28 = vmul.f32 100.0, %v11457_v39  ;;  %v11474_v42 = vmul.f32 100.0, %v11460_v54  ;;  %v11483_v40 = vmul.f32 100.0, %v11468_v22 }
 0x7e3   : > { %v5904_v24 = vadd.f32 1.0, %v7456_v62  ;;  %v11462_v35 = vpop.eup %7457  ;;  %12321 = vst [vmem:[#allocation24_spill] sm:$0xff] %v11465_v44  ;;  %v11480_v14 = vmul.f32 100.0, %v11465_v44  ;;  %v5992_v62 = vmul.f32 0.01, %v5939_v53  ;;  %v11494_v22 = vsel %vm5766_vm14, %v11284_v7, %v5990_v16 }
 0x7e4   : > { %7471 = vlog2.f32 %v5902_v37  ;;  %v7460_v1 = vpop.eup %7459  ;;  %12323 = vst [vmem:[#allocation39_spill] sm:$0xff] %v11471_v28  ;;  %12324 = vst [vmem:[#allocation54_spill] sm:$0xff] %v11474_v42  ;;  %v5813_v55 = vmin.f32 %v11471_v28, 20.0  ;;  %v5815_v53 = vmin.f32 %v11483_v40, 20.0  ;;  %vm5769_vm8 = vcmp.gt.f32.partialorder %v11310_v5, 20.0 }
 0x7e5   : > { %7473 = vlog2.f32 %v5904_v24  ;;  %v11476_v27 = vpop.eup %7461  ;;  %v5903_v51 = vadd.f32 1.0, %v7460_v1  ;;  %v5816_v59 = vmin.f32 %v11480_v14, 20.0  ;;  %v5474_v1 = vpop.permute.xlu0 %5473 }
 0x7e6   : > { %7475 = vpow2.f32 %v5866_v57  ;;  %v5814_v57 = vmin.f32 %v11474_v42, 20.0  ;;  %v5868_v43 = vmul.f32 1.442695, %v5813_v55  ;;  %v11502_v7 = vadd.f32 %v11364_v25, %v5474_v1 }
 0x7e7   : > { %v7464_v24 = vpop.eup %7463  ;;  %7477 = vpow2.f32 %v5864_v58  ;;  %v5874_v28 = vmul.f32 1.442695, %v5816_v59 }
 0x7e8   : > { %v5943_v37 = vmul.f32 0.6931472, %v7464_v24  ;;  %7479 = vlog2.f32 %v5899_v0  ;;  %v7466_v44 = vpop.eup %7465  ;;  %v5870_v39 = vmul.f32 1.442695, %v5814_v57  ;;  %v11499_v0 = vmul.f32 100.0, %v11486_v20 }
 0x7e9   : > { %7481 = vlog2.f32 %v5901_v34  ;;  %v7468_v54 = vpop.eup %7467  ;;  %v5872_v34 = vmul.f32 1.442695, %v5815_v53  ;;  %v11514_v25 = vmul.f32 100.0, %v11502_v7  ;;  %v11522_v57 = vsel %vm5768_vm10, %v11286_v46, %v5992_v62 }
 0x7ea   : > { %v5994_v58 = vmul.f32 0.01, %v5943_v37  ;;  %7483 = vlog2.f32 %v5903_v51  ;;  %v5906_v42 = vadd.f32 1.0, %v7468_v54  ;;  %v5817_v54 = vmin.f32 %v11499_v0, 20.0 }
 0x7eb   : > { %v7470_v24 = vpop.eup %7469  ;;  %7485 = vpow2.f32 %v5868_v43 }
 0x7ec   : > { %v11507_v29 = vsel %vm5770_vm1, %v11314_v31, %v5994_v58  ;;  %v5947_v16 = vmul.f32 0.6931472, %v7470_v24  ;;  %7487 = vlog2.f32 %v5906_v42  ;;  %v11517_v31 = vadd.f32 %v11367_v23, %v5474_v1 }
 0x7ed   : > { %7489 = vpow2.f32 %v5870_v39  ;;  %v5876_v36 = vmul.f32 1.442695, %v5817_v54  ;;  %v11525_v42 = vadd.f32 %v11369_v21, %v5474_v1  ;;  %v5905_v58 = vadd.f32 1.0, %v7466_v44 }
 0x7ee   : > { %v7472_v51 = vpop.eup %7471  ;;  %v5996_v37 = vmul.f32 0.01, %v5947_v16  ;;  %7491 = vpow2.f32 %v5874_v28  ;;  %v11538_v28 = vmul.f32 100.0, %v11517_v31  ;;  %v11547_v16 = vadd.f32 %v11372_v4, %v5474_v1 }
 0x7ef   : > { %v7474_v3 = vpop.eup %7473  ;;  %v5951_v59 = vmul.f32 0.6931472, %v7472_v51  ;;  %7493 = vpow2.f32 %v5872_v34  ;;  %v11544_v62 = vmul.f32 100.0, %v11525_v42  ;;  %v5921_v1 = vmul.f32 0.6931472, %v11382_v52 }
 0x7f0   : > { %v7476_v43 = vpop.eup %7475  ;;  %v11528_v39 = vsel %vm5772_vm12, %v11316_v33, %v5996_v37  ;;  %7495 = vpow2.f32 %v5876_v36  ;;  %v5955_v12 = vmul.f32 0.6931472, %v7474_v3  ;;  %v5818_v33 = vmin.f32 %v11514_v25, 20.0 }
 0x7f1   : > { %v7478_v23 = vpop.eup %7477  ;;  %v5908_v24 = vadd.f32 1.0, %v7476_v43  ;;  %v5998_v34 = vmul.f32 0.01, %v5951_v59  ;;  %v5820_v37 = vmin.f32 %v11538_v28, 20.0  ;;  %v11555_v3 = vmul.f32 100.0, %v11547_v16 }
 0x7f2   : > { %v11532_v46 = vpop.eup %7479  ;;  %v5907_v21 = vadd.f32 1.0, %v7478_v23  ;;  %v5878_v54 = vmul.f32 1.442695, %v5818_v33  ;;  %v6000_v4 = vmul.f32 0.01, %v5955_v12  ;;  %vm5779_vm1 = vcmp.gt.f32.partialorder %v11450_v9, 20.0 }
 0x7f3   : > { %v11540_v44 = vpop.eup %7481  ;;  %7497 = vlog2.f32 %v5908_v24  ;;  %v5929_v43 = vmul.f32 0.6931472, %v11405_v19  ;;  %v5882_v23 = vmul.f32 1.442695, %v5820_v37  ;;  %v5819_v24 = vmin.f32 %v11544_v62, 20.0 }
 0x7f4   : > { %7499 = vlog2.f32 %v5905_v58  ;;  %v11550_v51 = vpop.eup %7483  ;;  %v11566_v53 = vsel %vm5774_vm2, %v11344_v10, %v5998_v34  ;;  %v5821_v12 = vmin.f32 %v11555_v3, 20.0  ;;  %v11576_v10 = vsel %vm5776_vm13, %v11353_v38, %v6000_v4 }
 0x7f5   : > { %7501 = vlog2.f32 %v5907_v21  ;;  %v7486_v36 = vpop.eup %7485  ;;  %v5925_v21 = vmul.f32 0.6931472, %v11390_v61  ;;  %v5987_v37 = vmul.f32 0.01, %v5929_v43  ;;  %v5933_v61 = vmul.f32 0.6931472, %v11429_v13 }
 0x7f6   : > { %7503 = vpow2.f32 %v5878_v54  ;;  %v7488_v59 = vpop.eup %7487  ;;  %v5909_v58 = vadd.f32 1.0, %v7486_v36  ;;  %v5983_v54 = vmul.f32 0.01, %v5921_v1  ;;  %v5945_v15 = vmul.f32 0.6931472, %v11532_v46 }
 0x7f7   : > { %v7490_v33 = vpop.eup %7489  ;;  %v5959_v55 = vmul.f32 0.6931472, %v7488_v59  ;;  %v5880_v59 = vmul.f32 1.442695, %v5819_v24  ;;  %v6019_v43 = vsel %vm5763_vm0, %v11273_v47, %v5987_v37  ;;  %v5989_v24 = vmul.f32 0.01, %v5933_v61 }
 0x7f8   : > { %v7492_v52 = vpop.eup %7491  ;;  %7505 = vlog2.f32 %v5909_v58  ;;  %v5910_v19 = vadd.f32 1.0, %v7490_v33  ;;  %v5884_v58 = vmul.f32 1.442695, %v5821_v12  ;;  %v6015_v13 = vsel %vm5759_vm7, %v11246_v48, %v5983_v54  ;;  %v12325_v33 = vld [vmem:[#allocation22_spill] sm:$0xff]  ;;  %v12326_v54 = vld [vmem:[#allocation63_spill] sm:$0xff] }
 0x7f9   : > { %v7494_v36 = vpop.eup %7493  ;;  %v6002_v45 = vmul.f32 0.01, %v5959_v55  ;;  %v5912_v34 = vadd.f32 1.0, %v7492_v52  ;;  %7507 = vpow2.f32 %v5882_v23  ;;  %vm5773_vm14 = vcmp.gt.f32.partialorder %v12325_v33, 20.0 }
 0x7fa   : > { %v7496_v1 = vpop.eup %7495  ;;  %7509 = vlog2.f32 %v5910_v19  ;;  %v5911_v11 = vadd.f32 1.0, %v7494_v36  ;;  %v6737_v55 = vpack.c.bf16 %v6019_v43, %v6015_v13  ;;  %v5985_v48 = vmul.f32 0.01, %v5925_v21  ;;  %v12327_v19 = vld [vmem:[#allocation62_spill] sm:$0xff] }
 0x7fb   : > { %v11589_v38 = vsel %vm5778_vm4, %v11398_v17, %v6002_v45  ;;  %v5913_v8 = vadd.f32 1.0, %v7496_v1  ;;  %7511 = vlog2.f32 %v5912_v34  ;;  %v5937_v47 = vmul.f32 0.6931472, %v11462_v35 }
 0x7fc   : > { %v6747_v23 = vpack.c.bf16 %v11589_v38, %v11566_v53  ;;  %6738 = vmatprep.subr.bf16.mxu0 %v6737_v55  ;;  %7513 = vpow2.f32 %v5880_v59  ;;  %v6017_v52 = vsel %vm5761_vm9, %v12326_v54, %v5985_v48  ;;  %v6021_v37 = vsel %vm5765_vm15, %v12327_v19, %v5989_v24  ;;  %v12329_v59 = vld [vmem:[#allocation28_spill] sm:$0xff]  ;;  %v12337_v19 = vld [vmem:[#allocation29_spill] sm:$0xff] }
 0x7fd   : > { %v7498_v4 = vpop.eup %7497  ;;  %v12328_v21 = vpack.c.bf16 %v11419_v30, %v11410_v56  ;;  %v5941_v61 = vmul.f32 0.6931472, %v11476_v27  ;;  %7515 = vpow2.f32 %v5884_v58  ;;  %v6753_v46 = vpack.c.bf16 %v6021_v37, %v6017_v52  ;;  %v12338_v37 = vld [vmem:[#allocation37_spill] sm:$0xff] }
 0x7fe   : > { %v7500_v12 = vpop.eup %7499  ;;  %v5963_v2 = vmul.f32 0.6931472, %v7498_v4  ;;  %v5991_v45 = vmul.f32 0.01, %v5937_v47  ;;  %7517 = vlog2.f32 %v5911_v11  ;;  %v5995_v1 = vmul.f32 0.01, %v5945_v15 }
 0x7ff   : > { %v7502_v17 = vpop.eup %7501  ;;  %6740 = vmatpush1.bf16.msra.mxu0 %v12328_v21  ;;  %v5949_v26 = vmul.f32 0.6931472, %v11540_v44  ;;  %6754 = vmatprep.subr.bf16.mxu1 %v6753_v46  ;;  %v5993_v30 = vmul.f32 0.01, %v5941_v61  ;;  %v5953_v27 = vmul.f32 0.6931472, %v11550_v51  ;;  %v12330_v43 = vpack.c.bf16 %v11445_v50, %v11440_v32 }
 0x800   : > { %v7504_v36 = vpop.eup %7503  ;;  %v6004_v35 = vmul.f32 0.01, %v5963_v2  ;;  %v6023_v56 = vsel %vm5767_vm11, %v12329_v59, %v5991_v45  ;;  %v12331_v44 = vld [vmem:[#allocation13_spill] sm:$0xff]  ;;  %v5961_v51 = vmul.f32 0.6931472, %v7502_v17  ;;  %v12334_v15 = vld [vmem:[#allocation38_spill] sm:$0xff]  ;;  %v12335_v5 = vpack.c.bf16 %v11507_v29, %v11494_v22 }
 0x801   : > { %v5914_v34 = vadd.f32 1.0, %v7504_v36  ;;  %6756 = vmatpush1.bf16.msra.mxu1 %v12330_v43  ;;  %v5997_v6 = vmul.f32 0.01, %v5949_v26  ;;  %v6025_v4 = vsel %vm5769_vm8, %v12332_v63, %v5993_v30  ;;  %v5999_v48 = vmul.f32 0.01, %v5953_v27  ;;  %v12340_v22 = vld [vmem:[#allocation20_spill] sm:$0xff] }
 0x802   : > { %v6036_v41 = vsel %vm5780_vm6, %v11423_v18, %v6004_v35  ;;  %v7506_v58 = vpop.eup %7505  ;;  %v6027_v18 = vsel %vm5771_vm3, %v12331_v44, %v5995_v1  ;;  %v5957_v32 = vmul.f32 0.6931472, %v7500_v12  ;;  %vm5775_vm10 = vcmp.gt.f32.partialorder %v12334_v15, 20.0  ;;  %v12336_v12 = vld [vmem:[#allocation39_spill] sm:$0xff]  ;;  %v12341_v35 = vld [vmem:[#allocation33_spill] sm:$0xff]  ;;  %v12342_v43 = vld [vmem:[#allocation54_spill] sm:$0xff] }
 0x803   : > { %v6763_v13 = vpack.c.bf16 %v6036_v41, %v11576_v10  ;;  %7519 = vlog2.f32 %v5914_v34  ;;  %v7508_v11 = vpop.eup %7507  ;;  %v6741_v55 = vpack.c.bf16 %v6027_v18, %v6023_v56  ;;  %v12333_v10 = vld [vmem:[#allocation21_spill] sm:$0xff]  ;;  %v5965_v50 = vmul.f32 0.6931472, %v7506_v58 }
 0x804   : > { %v5916_v24 = vadd.f32 1.0, %v7508_v11  ;;  %v6029_v2 = vsel %vm5773_vm14, %v12333_v10, %v5997_v6  ;;  %v7510_v47 = vpop.eup %7509  ;;  %7521 = vlog2.f32 %v5913_v8  ;;  %v6003_v54 = vmul.f32 0.01, %v5961_v51  ;;  %v12343_v44 = vld [vmem:[#allocation25_spill] sm:$0xff] }
 0x805   : > { %6742 = vmatprep.subr.bf16.mxu0 %v6741_v55  ;;  %v6757_v49 = vpack.c.bf16 %v6029_v2, %v6025_v4  ;;  %v6001_v17 = vmul.f32 0.01, %v5957_v32  ;;  %v6005_v52 = vmul.f32 0.01, %v5965_v50  ;;  %v7512_v33 = vpop.eup %7511  ;;  %vm5777_vm12 = vcmp.gt.f32.partialorder %v11402_v60, 20.0  ;;  %v12344_v4 = vld [vmem:[#allocation24_spill] sm:$0xff] }
 0x806   : > { %7523 = vlog2.f32 %v5916_v24  ;;  %6744 = vmatpush1.bf16.msra.mxu0 %v12335_v5  ;;  %vm5781_vm7 = vcmp.gt.f32.partialorder %v12336_v12, 20.0  ;;  %v6031_v8 = vsel %vm5775_vm10, %v12337_v19, %v5999_v48  ;;  %v6035_v21 = vsel %vm5779_vm1, %v12338_v37, %v6003_v54  ;;  %v7514_v61 = vpop.eup %7513 }
 0x807   : > { %6758 = vmatprep.subr.bf16.mxu1 %v6757_v49  ;;  %v12339_v9 = vpack.c.bf16 %v11528_v39, %v11522_v57  ;;  %v6745_v36 = vpack.c.bf16 %v6035_v21, %v6031_v8  ;;  %v6033_v29 = vsel %vm5777_vm12, %v12340_v22, %v6001_v17  ;;  %v6037_v46 = vsel %vm5781_vm7, %v12341_v35, %v6005_v52  ;;  %v7516_v45 = vpop.eup %7515 }
 0x808   : > { %v5967_v34 = vmul.f32 0.6931472, %v7510_v47  ;;  %v5915_v60 = vadd.f32 1.0, %v7514_v61  ;;  %v6761_v1 = vpack.c.bf16 %v6037_v46, %v6033_v29  ;;  %v7518_v26 = vpop.eup %7517  ;;  %v5917_v41 = vadd.f32 1.0, %v7516_v45  ;;  %v6064_v61 = vpop.permute.xlu0 %6063 }
 0x809   : > { %6760 = vmatpush1.bf16.msra.mxu1 %v12339_v9  ;;  %6746 = vmatprep.subr.bf16.mxu0 %v6745_v36  ;;  %v5971_v59 = vmul.f32 0.6931472, %v7512_v33  ;;  %vm5782_vm0 = vcmp.gt.f32.partialorder %v12342_v43, 20.0  ;;  %vm5786_vm2 = vcmp.gt.f32.partialorder %v11514_v25, 20.0  ;;  %vm5784_vm13 = vcmp.gt.f32.partialorder %v11480_v14, 20.0  ;;  %v12345_v14 = vld [vmem:[#allocation40_spill] sm:$0xff] }
 0x80a   : > { %7525 = vlog2.f32 %v5915_v60  ;;  %6762 = vmatprep.subr.bf16.mxu1 %v6761_v1  ;;  %6748 = vmatpush1.bf16.msra.mxu0 %v6747_v23  ;;  %v6006_v39 = vmul.f32 0.01, %v5967_v34  ;;  %v5969_v23 = vmul.f32 0.6931472, %v7518_v26  ;;  %vm5788_vm4 = vcmp.gt.f32.partialorder %v11538_v28, 20.0 }
 0x80b   : > { %7527 = vlog2.f32 %v5917_v41  ;;  %v6008_v6 = vmul.f32 0.01, %v5971_v59  ;;  %vm5783_vm9 = vcmp.gt.f32.partialorder %v11483_v40, 20.0  ;;  %vm5787_vm15 = vcmp.gt.f32.partialorder %v11544_v62, 20.0  ;;  %v6046_v40 = vld [vmem:[%s11783_s14] sm:$0xff]  ;;  %v6049_v62 = vld [vmem:[%s11783_s14 + $0x18] sm:$0xff] }
 0x80c   : > { %v6038_v18 = vsel %vm5782_vm0, %v12343_v44, %v6006_v39  ;;  %v6007_v2 = vmul.f32 0.01, %v5969_v23  ;;  %vm5785_vm11 = vcmp.gt.f32.partialorder %v11499_v0, 20.0  ;;  %vm5789_vm6 = vcmp.gt.f32.partialorder %v11555_v3, 20.0  ;;  %v6059_v3 = vpop.permute.xlu1 %6058 }
 0x80d   : > { %v7520_v57 = vpop.eup %7519  ;;  %6764 = vmatpush1.bf16.msra.mxu1 %v6763_v13  ;;  %v6040_v51 = vsel %vm5784_vm13, %v12344_v4, %v6008_v6  ;;  %v12346_v0 = vmov 0.0  }
 0x80e   : > { %v5975_v56 = vmul.f32 0.6931472, %v7520_v57  ;;  %v7522_v30 = vpop.eup %7521  ;;  %v6039_v28 = vsel %vm5783_vm9, %v12345_v14, %v6007_v2 }
 0x80f   : > { %v5973_v13 = vmul.f32 0.6931472, %v7522_v30 }
 0x810   : > { %v6010_v27 = vmul.f32 0.01, %v5975_v56  ;;  %v7524_v58 = vpop.eup %7523  ;;  %v6069_v60 = vpop.permute.xlu1 %6068 }
 0x811   : > { %v5979_v53 = vmul.f32 0.6931472, %v7524_v58 }
 0x812   : > { %v6042_v11 = vsel %vm5786_vm2, %v11502_v7, %v6010_v27  ;;  %v6009_v7 = vmul.f32 0.01, %v5973_v13  ;;  %v6074_v27 = vpop.permute.xlu0 %6073 }
 0x813   : > { %v6751_v38 = vpack.c.bf16 %v6042_v11, %v6038_v18  ;;  %v6012_v55 = vmul.f32 0.01, %v5979_v53 }
 0x814   : > { %v7526_v63 = vpop.eup %7525  ;;  %v6041_v49 = vsel %vm5785_vm11, %v11486_v20, %v6009_v7  ;;  %v6047_v20 = vld [vmem:[%s11783_s14 + $0x8] sm:$0xff]  ;;  %v6079_v23 = vpop.permute.xlu1 %6078 }
 0x815   : > { %v6044_v48 = vsel %vm5788_vm4, %v11517_v31, %v6012_v55  ;;  %v7528_v25 = vpop.eup %7527  ;;  %v5977_v10 = vmul.f32 0.6931472, %v7526_v63 }
 0x816   : > { %v6767_v24 = vpack.c.bf16 %v6044_v48, %v6040_v51  ;;  %v5981_v32 = vmul.f32 0.6931472, %v7528_v25 }
 0x817   : > { %v6011_v50 = vmul.f32 0.01, %v5977_v10 }
 0x818   : > { %v6013_v47 = vmul.f32 0.01, %v5981_v32 }
 0x819   : > { %v6043_v31 = vsel %vm5787_vm15, %v11525_v42, %v6011_v50  ;;  %v6048_v42 = vld [vmem:[%s11783_s14 + $0x10] sm:$0xff] }
 0x81a   : > { %v6749_v15 = vpack.c.bf16 %v6043_v31, %v6039_v28  ;;  %v6045_v54 = vsel %vm5789_vm6, %v11547_v16, %v6013_v47  ;;  %v6050_v16 = vld [vmem:[%s11783_s14 + $0x20] sm:$0xf] }
 0x81b   : > { %v6765_v5 = vpack.c.bf16 %v6045_v54, %v6041_v49 }
 0x81c   : > { %6750 = vmatprep.subr.bf16.mxu0 %v6749_v15 }
 0x81d   : > { %6766 = vmatprep.subr.bf16.mxu1 %v6765_v5  ;;  %6752 = vmatpush1.bf16.msra.mxu0 %v6751_v38 }
 0x81e   : > { %6768 = vmatpush1.bf16.msra.mxu1 %v6767_v24 }
 0x820   : > { %6606 = vmatmul.mubr.msk.f32.vlgmr.msra.gmra.mrb[66].mxu0 %vm3817_vm5, %v6046_v40 }
 0x821   : > { %6611 = vmatmul.mubr.msk.f32.vlgmr.msra.gmra.mrb[66].mxu1 %vm3817_vm5, %v6046_v40  ;;  %6166 = vmatprep.mubr.f32.mxu0 %v12346_v0 }
 0x822   : > { %6261 = vmatprep.mubr.f32.mxu1 %v12346_v0 }
 0x824   : > { %6607 = vmatmul.mubr.msk.f32.gmra.mrb[68].mxu0 %vm3817_vm5, %v6047_v20 }
 0x825   : > { %6612 = vmatmul.mubr.msk.f32.gmra.mrb[68].mxu1 %vm3817_vm5, %v6047_v20  ;;  %6172 = vmatprep.mubr.f32.mxu0 %v12346_v0 }
 0x826   : > { %6267 = vmatprep.mubr.f32.mxu1 %v12346_v0 }
 0x828   : > { %6608 = vmatmul.mubr.msk.f32.gmra.mrb[70].mxu0 %vm3817_vm5, %v6048_v42 }
 0x829   : > { %6613 = vmatmul.mubr.msk.f32.gmra.mrb[70].mxu1 %vm3817_vm5, %v6048_v42  ;;  %6178 = vmatprep.mubr.f32.mxu0 %v12346_v0 }
 0x82a   : > { %6273 = vmatprep.mubr.f32.mxu1 %v12346_v0 }
 0x82c   : > { %6609 = vmatmul.mubr.msk.f32.gmra.mrb[72].mxu0 %vm3817_vm5, %v6049_v62 }
 0x82d   : > { %6614 = vmatmul.mubr.msk.f32.gmra.mrb[72].mxu1 %vm3817_vm5, %v6049_v62  ;;  %6184 = vmatprep.mubr.f32.mxu0 %v12346_v0 }
 0x82e   : > { %6279 = vmatprep.mubr.f32.mxu1 %v12346_v0 }
 0x830   : > { %6610 = vmatmul.mubr.msk.f32.gmra.mrb[74].mxu0 %vm3817_vm5, %v6050_v16 }
 0x831   : > { %6615 = vmatmul.mubr.msk.f32.gmra.mrb[74].mxu1 %vm3817_vm5, %v6050_v16 }
 0x8f3   : > { %v6162_v17 = vpop.f32.mrb[66].mxu0 }
 0x8f4   : > { %v6163_v52 = vadd.f32 %v6162_v17, %v6059_v3  ;;  %v6257_v33 = vpop.f32.mrb[66].mxu1  ;;  %v6164_v12 = vpop.f32.mrb[67].mxu0 }
 0x8f5   : > { %v6258_v19 = vadd.f32 %v6257_v33, %v6059_v3  ;;  %v6165_v8 = vadd.f32 %v6164_v12, %v6059_v3  ;;  %v6259_v37 = vpop.f32.mrb[67].mxu1 }
 0x8f6   : > { %6286 = vst [vmem:[%s11695_s30] sm:$0xff] %v6163_v52  ;;  %v6260_v21 = vadd.f32 %v6259_v37, %v6059_v3 }
 0x8f7   : > { %6288 = vst [vmem:[%s11695_s30 + $0x10] sm:$0xff] %v6258_v19  ;;  %6287 = vst [vmem:[%s11695_s30 + $0x8] sm:$0xff] %v6165_v8  ;;  %v6168_v9 = vpop.f32.mrb[68].mxu0 }
 0x8f8   : > { %6289 = vst [vmem:[%s11695_s30 + $0x18] sm:$0xff] %v6260_v21  ;;  %v6169_v36 = vadd.f32 %v6168_v9, %v6064_v61  ;;  %v6263_v22 = vpop.f32.mrb[68].mxu1  ;;  %v6170_v29 = vpop.f32.mrb[69].mxu0 }
 0x8f9   : > { %v6264_v35 = vadd.f32 %v6263_v22, %v6064_v61  ;;  %v6171_v46 = vadd.f32 %v6170_v29, %v6064_v61  ;;  %v6265_v45 = vpop.f32.mrb[69].mxu1 }
 0x8fa   : > { %6290 = vst [vmem:[%s11695_s30 + $0x20] sm:$0xff] %v6169_v36  ;;  %v6266_v34 = vadd.f32 %v6265_v45, %v6064_v61 }
 0x8fb   : > { %6292 = vst [vmem:[%s11695_s30 + $0x30] sm:$0xff] %v6264_v35  ;;  %6291 = vst [vmem:[%s11695_s30 + $0x28] sm:$0xff] %v6171_v46  ;;  %v6174_v1 = vpop.f32.mrb[70].mxu0 }
 0x8fc   : > { %6293 = vst [vmem:[%s11695_s30 + $0x38] sm:$0xff] %v6266_v34  ;;  %v6175_v26 = vadd.f32 %v6174_v1, %v6069_v60  ;;  %v6269_v41 = vpop.f32.mrb[70].mxu1  ;;  %v6176_v57 = vpop.f32.mrb[71].mxu0 }
 0x8fd   : > { %v6270_v39 = vadd.f32 %v6269_v41, %v6069_v60  ;;  %v6177_v59 = vadd.f32 %v6176_v57, %v6069_v60  ;;  %v6271_v56 = vpop.f32.mrb[71].mxu1 }
 0x8fe   : > { %6294 = vst [vmem:[%s11695_s30 + $0x40] sm:$0xff] %v6175_v26  ;;  %v6272_v30 = vadd.f32 %v6271_v56, %v6069_v60 }
 0x8ff   : > { %6296 = vst [vmem:[%s11695_s30 + $0x50] sm:$0xff] %v6270_v39  ;;  %6295 = vst [vmem:[%s11695_s30 + $0x48] sm:$0xff] %v6177_v59  ;;  %v6180_v58 = vpop.f32.mrb[72].mxu0 }
 0x900   : > { %6297 = vst [vmem:[%s11695_s30 + $0x58] sm:$0xff] %v6272_v30  ;;  %v6181_v43 = vadd.f32 %v6180_v58, %v6074_v27  ;;  %v6275_v44 = vpop.f32.mrb[72].mxu1  ;;  %v6182_v18 = vpop.f32.mrb[73].mxu0 }
 0x901   : > { %v6276_v6 = vadd.f32 %v6275_v44, %v6074_v27  ;;  %v6183_v11 = vadd.f32 %v6182_v18, %v6074_v27  ;;  %v6277_v53 = vpop.f32.mrb[73].mxu1 }
 0x902   : > { %6298 = vst [vmem:[%s11695_s30 + $0x60] sm:$0xff] %v6181_v43  ;;  %v6278_v38 = vadd.f32 %v6277_v53, %v6074_v27 }
 0x903   : > { %6300 = vst [vmem:[%s11695_s30 + $0x70] sm:$0xff] %v6276_v6  ;;  %6299 = vst [vmem:[%s11695_s30 + $0x68] sm:$0xff] %v6183_v11  ;;  %v6186_v55 = vpop.f32.mrb[74].mxu0 }
 0x904   : > { %6301 = vst [vmem:[%s11695_s30 + $0x78] sm:$0xff] %v6278_v38  ;;  %v6187_v13 = vadd.f32 %v6186_v55, %v6079_v23  ;;  %v6281_v63 = vpop.f32.mrb[74].mxu1  ;;  %v6188_v4 = vpop.f32.mrb[75].mxu0 }
 0x905   : > { %v6282_v51 = vadd.f32 %v6281_v63, %v6079_v23  ;;  %v6189_v48 = vadd.f32 %v6188_v4, %v6079_v23  ;;  %v6283_v25 = vpop.f32.mrb[75].mxu1 }
 0x906   : > { %6302 = vst [vmem:[%s11695_s30 + $0x80] sm:$0xf] %v6187_v13  ;;  %v6284_v24 = vadd.f32 %v6283_v25, %v6079_v23 }
 0x907   : > { %6304 = vst [vmem:[%s11695_s30 + $0x90] sm:$0xf] %v6282_v51  ;;  %6303 = vst [vmem:[%s11695_s30 + $0x88] sm:$0xf] %v6189_v48 }
 0x908   : > { %6305 = vst [vmem:[%s11695_s30 + $0x98] sm:$0xf] %v6284_v24 }
 0x909   : > { %7546 = shalt.err (!%p7543_p3)
}
 0x90a   : > { %s7547_s19 = scalar_lea.hbm %s11718_s25, 2560  ;;  %s7551_s23 = scalar_lea.hbm %s11785_s16, 10240 }
 0x90b   : > { %p7548_p4 = scmp.ne.s32.totalorder %s11718_s25, %s7547_s19  ;;  %p7552_p9 = scmp.lt.u32.totalorder %s11718_s25, %s11785_s16 }
 0x90c   : > { %p7553_p10 = scmp.lt.u32.totalorder %s7551_s23, %s7547_s19  ;;  %p7555_p12 = scmp.lt.u32.totalorder %s7547_s19, %s11718_s25 }
 0x90d   : > { %p7549_p7 = pnand %p7548_p4, %p7733_p5 }
 0x90e   : > { %p7554_p11 = por %p7553_p10, %p7552_p9 }
 0x90f   : > { %p7550_p8 = pneg %p7549_p7 }
 0x910   : > { %p7556_p13 = por %p7555_p12, %p7554_p11 }
 0x912   : > { %p7557_p0 = pnand %p7556_p13, %p7550_p8 }
 0x914   : > { %7560 = shalt.err (!%p7557_p0)
}
 0x915   : > { %s7607_s26 = smov 512   ;;  %s7608_s24 = smov 2048  }
 0x916   : > { %s7609_s28 = smov 32  }
 0x917   : > { %6946 = dma.vmem_to_hbm [thread:$0]  (%p7733_p5), %s11720_s21, 2560, %s11718_s25, %s11728_s18, %s7607_s26, %s7608_s24, %s7609_s28  }
 0x918 PF: > { %s12347_s29 = sld [smem:[#allocation7_spill]]  ;;  %s12348_s20 = sld [smem:[#allocation5_spill]] }
 0x91e   : > { %p6952_p1 = scmp.ge.s32.totalorder %s12347_s29, 2  ;;  %s6335_s23 = sand.u32 1, %s12348_s20  }
 0x91f   : > { %s6336_s19 = scalar_lea.sflag [#allocation3], %s6335_s23 }
 0x920   : > { %p6949_p2 = pnand %p6952_p1, %p7737_p6 }
 0x922   : > { %7578 = dma.done.wait (!%p6949_p2), %s6336_s19, 2560  }
 0x923   : > { %7580 = vsyncadd (!%p6949_p2), %s6336_s19, 4294964736  ;;  %s12350_s24 = sld [smem:[#allocation8_spill]]  ;;  %s12351_s27 = sld [smem:[#allocation6_spill]] }
 0x924   : > { %s12352_s23 = sld [smem:[#allocation9_spill]]  ;;  %s12353_s21 = smov %s7587_s22 }
 0x929   : > { %p26_p3 = scmp.ge.s32.totalorder %s12350_s24, 6   ;;  %s12354_s22 = smov %s12351_s27 }
 0x92b   :  { %28 = sbr.rel (!%p26_p3) target bundleno = 5 (0x5), region = 119 }
 0x932   :  { %6341 = vsyncpa [#allocation3], 1 }
 0x933   :  { %6343 = vsyncpa [#allocation3 + $0x1], 1 }

</bundles_post_ra>
